<compile_context>
chip_gen: v7x
topology: tpu7x:2x2x1
jax: 0.10.0
libtpu: 0.0.40
codegen_flags: <defaults>
</compile_context>

<pallas_src>
import functools

import jax
import jax.numpy as jnp
from jax.experimental import pallas as pl
from jax.experimental.pallas import tpu as pltpu

LEAKY_ALPHA = 0.2
MASK_FILL = -999.0

_TQ_CANDIDATES = (512, 256, 128, 64, 32, 16, 8)
_VMEM_BUDGET = 40 * 1024 * 1024          # conservative: fits v7x 64 MiB with headroom


def _ceil_to(x, m):
    return ((x + m - 1) // m) * m


def _vmem_estimate(N, in_dim, att_head, out_dim, tq):
    """Rough per-grid-step VMEM bytes: pipelined blocks + persistent scratch + live temporaries."""
    ho = att_head * out_dim
    f32, bf16 = 4, 2
    x_blk = 2 * N * in_dim * f32                              # feat_in block (double-buffered)
    adj_blk = 2 * tq * _ceil_to(N, 128) * bf16                # adj tile
    out_blk = 2 * tq * _ceil_to(in_dim, 128) * f32            # output tile
    weights = 2 * (in_dim * _ceil_to(ho + in_dim, 128) * bf16     # fused [W_cat | H_w^T]
                   + _ceil_to(ho, 8) * 128 * bf16                 # fused [Wsrc | Wdst]
                   + 2 * 8 * _ceil_to(in_dim, 128) * f32)         # biases
    scratch = (N * _ceil_to(ho, 128) * bf16                   # cached h (attention values)
               + N * 128 * f32                                # cached src scores (lane-padded)
               + 8 * _ceil_to(N, 128) * f32                   # cached dst^T scores (sublane-padded)
               + N * _ceil_to(in_dim, 128) * f32)             # cached sigmoid gate
    live = 3 * tq * _ceil_to(N, 128) * f32                    # s / e / mask temporaries
    return x_blk + adj_blk + out_blk + weights + scratch + live


def _pick_tq(N, in_dim, att_head, out_dim):
    for tq in _TQ_CANDIDATES:
        if tq <= N and N % tq == 0 and _vmem_estimate(N, in_dim, att_head, out_dim, tq) <= _VMEM_BUDGET:
            return tq
    return N  # tiny / awkward N: single query tile fallback


def _attention_layer_kernel(x_ref, adj_ref, wall_ref, wsd_ref, bcat_ref, hb_ref,
                            out_ref, h_vmem, src_vmem, dstT_vmem, gate_vmem,
                            *, att_head, out_dim, tq):
    """One (batch, query-tile) step.  Per-batch projections cached in scratch at q == 0."""
    ho = att_head * out_dim

    @pl.when(pl.program_id(1) == 0)
    def _init():
        # One fused MXU pass: columns [0, ho) = per-head projection, [ho, ho+in_dim) = gate logits.
        x_full = x_ref[0]                                                  # (N, in_dim) f32
        xb = x_full.astype(jnp.bfloat16)
        proj = jnp.dot(xb, wall_ref[...], preferred_element_type=jnp.float32)
        h_all = proj[:, :ho]                                               # (N, ho)
        gate_logits = proj[:, ho:] + hb_ref[...]                           # (N, in_dim)
        h_vmem[...] = h_all.astype(jnp.bfloat16)
        gate_vmem[...] = jax.nn.sigmoid(gate_logits)
        # One fused score matmul: columns [0, H) = src scores, [H, 2H) = dst scores.
        th = jnp.tanh(h_all).astype(jnp.bfloat16)
        scores = jnp.dot(th, wsd_ref[...], preferred_element_type=jnp.float32)   # (N, 2H)
        src_vmem[...] = scores[:, :att_head]
        dstT_vmem[...] = jnp.transpose(scores[:, att_head:])               # hoisted: one transpose / batch

    row0 = pl.multiple_of(pl.program_id(1) * tq, tq)
    adj_t = adj_ref[0]                                                     # (tq, N) bf16
    masked = adj_t == 0                                                    # masked_fill positions
    x_q = x_ref[0, pl.ds(row0, tq), :]                                     # (tq, in_dim) f32
    src_q = src_vmem[pl.ds(row0, tq), :]                                   # (tq, H)
    gate_q = gate_vmem[pl.ds(row0, tq), :]                                 # (tq, in_dim)

    head_outs = []
    for h in range(att_head):                                              # static unroll, att_head small
        # s[i, j] = src[i, h] + dst[j, h]
        s = src_q[:, h:h + 1] + dstT_vmem[h:h + 1, :]                      # (tq, N)
        s = jnp.where(s > 0, s, LEAKY_ALPHA * s)                           # leaky_relu
        s = jnp.where(masked, MASK_FILL, s)                                # masked_fill(mask, -999)
        m = jnp.max(s, axis=-1, keepdims=True)
        e = jnp.exp(s - m)
        denom = jnp.sum(e, axis=-1, keepdims=True)
        h_h = h_vmem[:, h * out_dim:(h + 1) * out_dim]                     # (N, out_dim) bf16
        o_h = jnp.dot(e.astype(jnp.bfloat16), h_h, preferred_element_type=jnp.float32)
        head_outs.append(o_h * pl.reciprocal(denom, approx=True))          # normalize after matmul (EUP)

    # Concatenate heads along the lane axis (matches transpose(1,2).view(batch, N, -1)).
    fo = jnp.concatenate(head_outs, axis=-1) + bcat_ref[...]               # (tq, in_dim)
    # ELU (alpha=1), numerically safe.
    fo = jnp.where(fo > 0, fo, jnp.exp(jnp.minimum(fo, 0.0)) - 1.0)
    # Gated residual.
    out_ref[0] = gate_q * fo + (1.0 - gate_q) * x_q
    # TODO(synk): F.dropout(self.dp_gnn) is omitted (inference / training=False behaviour).


def attention_layer_forward(feat_in, adj, params, *, tq=None):
    W = params["W"]                # (att_head, in_dim, out_dim)
    b = params["b"]                # (out_dim,)
    w_src = params["w_src"]        # (att_head, out_dim)
    w_dst = params["w_dst"]        # (att_head, out_dim)
    H_w = params["H_w"]            # (in_dim, in_dim), PyTorch Linear weight (out_feat, in_feat)
    H_b = params["H_b"]            # (in_dim,)

    batch, N, in_dim = feat_in.shape
    att_head, _, out_dim = W.shape
    ho = att_head * out_dim
    assert in_dim == ho, "gated residual requires in_dim == att_head * out_dim"

    if tq is None:
        tq = _pick_tq(N, in_dim, att_head, out_dim)
    assert N % tq == 0 and (tq % 8 == 0 or tq == N), "query tile must divide N and be 8-aligned"
    num_q = N // tq
    vmem_limit = int(min(max(1.5 * _vmem_estimate(N, in_dim, att_head, out_dim, tq),
                             32 * 1024 * 1024), 48 * 1024 * 1024))

    # --- one-time host-side glue on tiny parameter arrays ---
    # Fold heads into the lane axis and fuse the small matmuls:
    #   W_all  = [W_cat | H_w^T]           (in_dim, ho + in_dim), bf16 MXU operand
    #   W_sd   = [Wsrc_blk | Wdst_blk]     (ho, 2*att_head), block-diagonal score projections
    W_cat = jnp.transpose(W, (1, 0, 2)).reshape(in_dim, ho)
    W_all = jnp.concatenate([W_cat, H_w.T], axis=1).astype(jnp.bfloat16)
    eye_h = jnp.eye(att_head, dtype=W.dtype)
    Wsrc_blk = (w_src[:, :, None] * eye_h[:, None, :]).reshape(ho, att_head)
    Wdst_blk = (w_dst[:, :, None] * eye_h[:, None, :]).reshape(ho, att_head)
    W_sd = jnp.concatenate([Wsrc_blk, Wdst_blk], axis=1).astype(jnp.bfloat16)
    b_cat = jnp.tile(b, att_head).reshape(1, in_dim)
    H_b2 = H_b.reshape(1, in_dim)
    adj_bf16 = adj.astype(jnp.bfloat16)    # only compared against 0 in-kernel; halves the HBM stream

    kernel = functools.partial(_attention_layer_kernel,
                               att_head=att_head, out_dim=out_dim, tq=tq)

    return pl.pallas_call(
        kernel,
        out_shape=jax.ShapeDtypeStruct((batch, N, in_dim), jnp.float32),
        grid_spec=pltpu.PrefetchScalarGridSpec(
            num_scalar_prefetch=0,
            grid=(batch, num_q),
            in_specs=[
                pl.BlockSpec((1, N, in_dim), lambda bb, qq: (bb, 0, 0)),        # feat_in (full, per batch)
                pl.BlockSpec((1, tq, N), lambda bb, qq: (bb, qq, 0)),           # adj query tile (bf16)
                pl.BlockSpec((in_dim, ho + in_dim), lambda bb, qq: (0, 0)),     # fused [W_cat | H_w^T]
                pl.BlockSpec((ho, 2 * att_head), lambda bb, qq: (0, 0)),        # fused [Wsrc | Wdst]
                pl.BlockSpec((1, in_dim), lambda bb, qq: (0, 0)),               # b tiled per head
                pl.BlockSpec((1, in_dim), lambda bb, qq: (0, 0)),               # H bias
            ],
            out_specs=pl.BlockSpec((1, tq, in_dim), lambda bb, qq: (bb, qq, 0)),
            scratch_shapes=[
                pltpu.VMEM((N, ho), jnp.bfloat16),          # cached h (attention values)
                pltpu.VMEM((N, att_head), jnp.float32),     # cached src scores
                pltpu.VMEM((att_head, N), jnp.float32),     # cached dst^T scores
                pltpu.VMEM((N, in_dim), jnp.float32),       # cached sigmoid gate
            ],
        ),
        compiler_params=pltpu.CompilerParams(
            dimension_semantics=("parallel", "arbitrary"),
            vmem_limit_bytes=vmem_limit,
        ),
    )(feat_in, adj_bf16, W_all, W_sd, b_cat, H_b2)


def _reference_forward(feat_in, adj, params):
    """Pure-JAX f32 reference mirroring the PyTorch forward (eval mode)."""
    W, b = params["W"], params["b"]
    w_src, w_dst = params["w_src"], params["w_dst"]
    H_w, H_b = params["H_w"], params["H_b"]
    batch, N, in_dim = feat_in.shape
    att_head, _, out_dim = W.shape

    h = jnp.einsum("bnd,hdo->bhno", feat_in, W)
    th = jnp.tanh(h)
    attn_src = jnp.einsum("bhno,ho->bhn", th, w_src)[..., :, None]
    attn_dst = jnp.einsum("bhno,ho->bhn", th, w_dst)[..., None, :]
    attn = attn_src + attn_dst
    attn = jnp.where(attn > 0, attn, LEAKY_ALPHA * attn)
    mask = (1.0 - adj[:, None, :, :]) != 0.0
    attn = jnp.where(mask, MASK_FILL, attn)
    attn = jax.nn.softmax(attn, axis=-1)
    feat_out = jnp.einsum("bhnm,bhmo->bhno", attn, h) + b
    feat_out = jnp.transpose(feat_out, (0, 2, 1, 3)).reshape(batch, N, att_head * out_dim)
    feat_out = jnp.where(feat_out > 0, feat_out, jnp.exp(jnp.minimum(feat_out, 0.0)) - 1.0)
    gate = jax.nn.sigmoid(feat_in @ H_w.T + H_b)
    return gate * feat_out + (1.0 - gate) * feat_in


if __name__ == "__main__":
    batch, N = 2, 256
    att_head, out_dim = 4, 32
    in_dim = att_head * out_dim                     # 128 -> lane-dense output tiles

    key = jax.random.PRNGKey(0)
    k_W, k_src, k_dst, k_Hw, k_Hb, k_x, k_adj = jax.random.split(key, 7)

    # Deterministic "xavier-ish" parameter init (synthetic, not a checkpoint load).
    bound_W = (6.0 / (in_dim + out_dim)) ** 0.5
    W = jax.random.uniform(k_W, (att_head, in_dim, out_dim), jnp.float32, -bound_W, bound_W)
    b = jnp.zeros((out_dim,), jnp.float32)
    bound_w = (6.0 / (out_dim + 1)) ** 0.5
    w_src = jax.random.uniform(k_src, (att_head, out_dim), jnp.float32, -bound_w, bound_w)
    w_dst = jax.random.uniform(k_dst, (att_head, out_dim), jnp.float32, -bound_w, bound_w)
    std_H = (2.0 / (in_dim + in_dim)) ** 0.5
    H_w = std_H * jax.random.normal(k_Hw, (in_dim, in_dim), jnp.float32)
    bound_Hb = 1.0 / (in_dim ** 0.5)
    H_b = jax.random.uniform(k_Hb, (in_dim,), jnp.float32, -bound_Hb, bound_Hb)

    params = dict(W=W, b=b, w_src=w_src, w_dst=w_dst, H_w=H_w, H_b=H_b)

    feat_in = jax.random.normal(k_x, (batch, N, in_dim), jnp.float32)
    adj = jax.random.bernoulli(k_adj, 0.5, (batch, N, N)).astype(jnp.float32)
    eye = jnp.eye(N, dtype=jnp.float32)[None, :, :]
    adj = jnp.maximum(adj, eye)                     # self-loops so no row is fully masked

    # Force 2 query tiles per batch element to exercise the tiled/cached path at this demo size.
    out = attention_layer_forward(feat_in, adj, params, tq=128)
    out = jax.block_until_ready(out)

    ref = _reference_forward(feat_in, adj, params)
    assert out.shape == (batch, N, in_dim)
    # Tolerance loosened vs the old pure-f32 1e-4 check: bf16 MXU operands + approx reciprocal.
    assert jnp.allclose(out, ref, atol=1e-1, rtol=1e-1), "mismatch vs pure-JAX reference"

    print("KERNEL_OK")
</pallas_src>

<mosaic_0001>
module attributes {stable_mosaic.version = 11 : i64} {
  func.func @_attention_layer_kernel(%arg0: i32, %arg1: i32, %arg2: memref<1x256x128xf32, #tpu.memory_space<vmem>>, %arg3: memref<1x128x256xbf16, #tpu.memory_space<vmem>>, %arg4: memref<128x256xbf16, #tpu.memory_space<vmem>>, %arg5: memref<128x8xbf16, #tpu.memory_space<vmem>>, %arg6: memref<1x128xf32, #tpu.memory_space<vmem>>, %arg7: memref<1x128xf32, #tpu.memory_space<vmem>>, %arg8: memref<1x128x128xf32, #tpu.memory_space<vmem>>, %arg9: memref<256x128xbf16, #tpu.memory_space<vmem>>, %arg10: memref<256x4xf32, #tpu.memory_space<vmem>>, %arg11: memref<4x256xf32, #tpu.memory_space<vmem>>, %arg12: memref<256x128xf32, #tpu.memory_space<vmem>>) attributes {dimension_semantics = [#tpu.dimension_semantics<parallel>, #tpu.dimension_semantics<arbitrary>], iteration_bounds = array<i64: 2, 2>, scalar_prefetch = 0 : i64, scratch_operands = 4 : i64, tpu.core_type = #tpu.core_type<tc>, window_params = [{transform_indices = @transform_0, window_bounds = array<i64: 1, 256, 128>}, {transform_indices = @transform_1, window_bounds = array<i64: 1, 128, 256>}, {pipeline_mode = #tpu.pipeline_mode<synchronous>, transform_indices = @transform_2, window_bounds = array<i64: 128, 256>}, {pipeline_mode = #tpu.pipeline_mode<synchronous>, transform_indices = @transform_3, window_bounds = array<i64: 128, 8>}, {pipeline_mode = #tpu.pipeline_mode<synchronous>, transform_indices = @transform_4, window_bounds = array<i64: 1, 128>}, {pipeline_mode = #tpu.pipeline_mode<synchronous>, transform_indices = @transform_5, window_bounds = array<i64: 1, 128>}, {transform_indices = @transform_6, window_bounds = array<i64: 1, 128, 128>}]} {
    %c0_i32 = arith.constant 0 : i32
    %0 = arith.cmpi eq, %arg1, %c0_i32 : i32
    %1 = arith.extui %0 : i1 to i32
    %c0_i32_0 = arith.constant 0 : i32
    %2 = arith.cmpi ne, %1, %c0_i32_0 : i32
    scf.if %2 {
      %c0_50 = arith.constant 0 : index
      %c0_51 = arith.constant 0 : index
      %c0_52 = arith.constant 0 : index
      %136 = vector.load %arg2[%c0_50, %c0_51, %c0_52] : memref<1x256x128xf32, #tpu.memory_space<vmem>>, vector<1x256x128xf32>
      %137 = vector.shape_cast %136 : vector<1x256x128xf32> to vector<256x128xf32>
      %138 = arith.truncf %137 : vector<256x128xf32> to vector<256x128xbf16>
      %c0_53 = arith.constant 0 : index
      %c0_54 = arith.constant 0 : index
      %139 = vector.load %arg4[%c0_53, %c0_54] : memref<128x256xbf16, #tpu.memory_space<vmem>>, vector<128x256xbf16>
      %cst_55 = arith.constant dense<0.000000e+00> : vector<256x256xf32>
      %140 = tpu.matmul %138, %139, %cst_55 {dimension_numbers = #tpu.dot_dimension_numbers<[1], [0], [0], [1], [0, 0, 1, 1], [], []>} : vector<256x128xbf16>, vector<128x256xbf16>, vector<256x256xf32> -> vector<256x256xf32>
      %141 = vector.extract_strided_slice %140 {offsets = [0, 0], sizes = [256, 128], strides = [1, 1]} : vector<256x256xf32> to vector<256x128xf32>
      %142 = vector.extract_strided_slice %140 {offsets = [0, 128], sizes = [256, 128], strides = [1, 1]} : vector<256x256xf32> to vector<256x128xf32>
      %c0_56 = arith.constant 0 : index
      %c0_57 = arith.constant 0 : index
      %143 = vector.load %arg7[%c0_56, %c0_57] : memref<1x128xf32, #tpu.memory_space<vmem>>, vector<1x128xf32>
      %144 = vector.broadcast %143 : vector<1x128xf32> to vector<256x128xf32>
      %145 = arith.addf %142, %144 : vector<256x128xf32>
      %146 = arith.truncf %141 : vector<256x128xf32> to vector<256x128xbf16>
      %c0_58 = arith.constant 0 : index
      %c0_59 = arith.constant 0 : index
      %147 = vector.load %arg9[%c0_58, %c0_59] : memref<256x128xbf16, #tpu.memory_space<vmem>>, vector<256x128xbf16>
      tpu.vector_store %arg9[%c0_58, %c0_59], %146 {strides = array<i32>} : memref<256x128xbf16, #tpu.memory_space<vmem>>, vector<256x128xbf16>,
      %148 = arith.negf %145 : vector<256x128xf32>
      %149 = math.exp %148 : vector<256x128xf32>
      %cst_60 = arith.constant 1.000000e+00 : f32
      %150 = vector.broadcast %cst_60 : f32 to vector<256x128xf32>
      %151 = arith.addf %150, %149 : vector<256x128xf32>
      %152 = arith.divf %150, %151 : vector<256x128xf32>
      %c0_61 = arith.constant 0 : index
      %c0_62 = arith.constant 0 : index
      %153 = vector.load %arg12[%c0_61, %c0_62] : memref<256x128xf32, #tpu.memory_space<vmem>>, vector<256x128xf32>
      tpu.vector_store %arg12[%c0_61, %c0_62], %152 {strides = array<i32>} : memref<256x128xf32, #tpu.memory_space<vmem>>, vector<256x128xf32>,
      %154 = math.tanh %141 : vector<256x128xf32>
      %155 = arith.truncf %154 : vector<256x128xf32> to vector<256x128xbf16>
      %c0_63 = arith.constant 0 : index
      %c0_64 = arith.constant 0 : index
      %156 = vector.load %arg5[%c0_63, %c0_64] : memref<128x8xbf16, #tpu.memory_space<vmem>>, vector<128x8xbf16>
      %cst_65 = arith.constant dense<0.000000e+00> : vector<256x8xf32>
      %157 = tpu.matmul %155, %156, %cst_65 {dimension_numbers = #tpu.dot_dimension_numbers<[1], [0], [0], [1], [0, 0, 1, 1], [], []>} : vector<256x128xbf16>, vector<128x8xbf16>, vector<256x8xf32> -> vector<256x8xf32>
      %158 = vector.extract_strided_slice %157 {offsets = [0, 0], sizes = [256, 4], strides = [1, 1]} : vector<256x8xf32> to vector<256x4xf32>
      %c0_66 = arith.constant 0 : index
      %c0_67 = arith.constant 0 : index
      %159 = vector.load %arg10[%c0_66, %c0_67] : memref<256x4xf32, #tpu.memory_space<vmem>>, vector<256x4xf32>
      tpu.vector_store %arg10[%c0_66, %c0_67], %158 {strides = array<i32>} : memref<256x4xf32, #tpu.memory_space<vmem>>, vector<256x4xf32>,
      %160 = vector.extract_strided_slice %157 {offsets = [0, 4], sizes = [256, 4], strides = [1, 1]} : vector<256x8xf32> to vector<256x4xf32>
      %161 = tpu.transpose %160, [1, 0] : vector<256x4xf32> -> vector<4x256xf32>
      %c0_68 = arith.constant 0 : index
      %c0_69 = arith.constant 0 : index
      %162 = vector.load %arg11[%c0_68, %c0_69] : memref<4x256xf32, #tpu.memory_space<vmem>>, vector<4x256xf32>
      tpu.vector_store %arg11[%c0_68, %c0_69], %161 {strides = array<i32>} : memref<4x256xf32, #tpu.memory_space<vmem>>, vector<4x256xf32>,
    } else {
    }
    %c128_i32 = arith.constant 128 : i32
    %3 = arith.muli %arg1, %c128_i32 : i32
    %4 = tpu.assume_multiple %3, 128 : i32
    %c0 = arith.constant 0 : index
    %c0_1 = arith.constant 0 : index
    %c0_2 = arith.constant 0 : index
    %5 = vector.load %arg3[%c0, %c0_1, %c0_2] : memref<1x128x256xbf16, #tpu.memory_space<vmem>>, vector<1x128x256xbf16>
    %6 = vector.shape_cast %5 : vector<1x128x256xbf16> to vector<128x256xbf16>
    %cst = arith.constant 0.000000e+00 : bf16
    %7 = vector.broadcast %cst : bf16 to vector<128x256xbf16>
    %8 = arith.cmpf oeq, %6, %7 : vector<128x256xbf16>
    %c0_3 = arith.constant 0 : index
    %9 = arith.index_cast %4 : i32 to index
    %c0_4 = arith.constant 0 : index
    %10 = vector.load %arg2[%c0_3, %9, %c0_4] : memref<1x256x128xf32, #tpu.memory_space<vmem>>, vector<1x128x128xf32>
    %11 = vector.shape_cast %10 : vector<1x128x128xf32> to vector<128x128xf32>
    %12 = arith.index_cast %4 : i32 to index
    %c0_5 = arith.constant 0 : index
    %13 = vector.load %arg10[%12, %c0_5] : memref<256x4xf32, #tpu.memory_space<vmem>>, vector<128x4xf32>
    %14 = arith.index_cast %4 : i32 to index
    %c0_6 = arith.constant 0 : index
    %15 = vector.load %arg12[%14, %c0_6] : memref<256x128xf32, #tpu.memory_space<vmem>>, vector<128x128xf32>
    %16 = vector.extract_strided_slice %13 {offsets = [0, 0], sizes = [128, 1], strides = [1, 1]} : vector<128x4xf32> to vector<128x1xf32>
    %c0_7 = arith.constant 0 : index
    %c0_8 = arith.constant 0 : index
    %17 = vector.load %arg11[%c0_7, %c0_8] : memref<4x256xf32, #tpu.memory_space<vmem>>, vector<1x256xf32>
    %18 = vector.broadcast %16 : vector<128x1xf32> to vector<128x256xf32>
    %19 = vector.broadcast %17 : vector<1x256xf32> to vector<128x256xf32>
    %20 = arith.addf %18, %19 : vector<128x256xf32>
    %cst_9 = arith.constant 0.000000e+00 : f32
    %21 = vector.broadcast %cst_9 : f32 to vector<128x256xf32>
    %22 = arith.cmpf ogt, %20, %21 : vector<128x256xf32>
    %cst_10 = arith.constant 2.000000e-01 : f32
    %23 = vector.broadcast %cst_10 : f32 to vector<128x256xf32>
    %24 = arith.mulf %23, %20 : vector<128x256xf32>
    %25 = arith.select %22, %20, %24 : vector<128x256xi1>, vector<128x256xf32>
    %cst_11 = arith.constant -9.990000e+02 : f32
    %26 = vector.broadcast %cst_11 : f32 to vector<128x256xf32>
    %27 = arith.select %8, %26, %25 : vector<128x256xi1>, vector<128x256xf32>
    %cst_12 = arith.constant dense<0xFF800000> : vector<128xf32>
    %28 = vector.multi_reduction <maximumf>, %27, %cst_12 [1] : vector<128x256xf32> to vector<128xf32>
    %29 = vector.shape_cast %28 : vector<128xf32> to vector<128x1xf32>
    %30 = vector.broadcast %29 : vector<128x1xf32> to vector<128x256xf32>
    %31 = arith.subf %27, %30 : vector<128x256xf32>
    %32 = math.exp %31 : vector<128x256xf32>
    %cst_13 = arith.constant dense<0.000000e+00> : vector<128xf32>
    %33 = vector.multi_reduction <add>, %32, %cst_13 [1] : vector<128x256xf32> to vector<128xf32>
    %34 = vector.shape_cast %33 : vector<128xf32> to vector<128x1xf32>
    %c0_14 = arith.constant 0 : index
    %c0_15 = arith.constant 0 : index
    %35 = vector.load %arg9[%c0_14, %c0_15] : memref<256x128xbf16, #tpu.memory_space<vmem>>, vector<256x32xbf16>
    %36 = arith.truncf %32 : vector<128x256xf32> to vector<128x256xbf16>
    %cst_16 = arith.constant dense<0.000000e+00> : vector<128x32xf32>
    %37 = tpu.matmul %36, %35, %cst_16 {dimension_numbers = #tpu.dot_dimension_numbers<[1], [0], [0], [1], [0, 0, 1, 1], [], []>} : vector<128x256xbf16>, vector<256x32xbf16>, vector<128x32xf32> -> vector<128x32xf32>
    %38 = tpu.reciprocal %34 {approx = true} : vector<128x1xf32> -> vector<128x1xf32>
    %39 = vector.broadcast %38 : vector<128x1xf32> to vector<128x32xf32>
    %40 = arith.mulf %37, %39 : vector<128x32xf32>
    %41 = vector.extract_strided_slice %13 {offsets = [0, 1], sizes = [128, 1], strides = [1, 1]} : vector<128x4xf32> to vector<128x1xf32>
    %c1 = arith.constant 1 : index
    %c0_17 = arith.constant 0 : index
    %42 = vector.load %arg11[%c1, %c0_17] : memref<4x256xf32, #tpu.memory_space<vmem>>, vector<1x256xf32>
    %43 = vector.broadcast %41 : vector<128x1xf32> to vector<128x256xf32>
    %44 = vector.broadcast %42 : vector<1x256xf32> to vector<128x256xf32>
    %45 = arith.addf %43, %44 : vector<128x256xf32>
    %cst_18 = arith.constant 0.000000e+00 : f32
    %46 = vector.broadcast %cst_18 : f32 to vector<128x256xf32>
    %47 = arith.cmpf ogt, %45, %46 : vector<128x256xf32>
    %cst_19 = arith.constant 2.000000e-01 : f32
    %48 = vector.broadcast %cst_19 : f32 to vector<128x256xf32>
    %49 = arith.mulf %48, %45 : vector<128x256xf32>
    %50 = arith.select %47, %45, %49 : vector<128x256xi1>, vector<128x256xf32>
    %cst_20 = arith.constant -9.990000e+02 : f32
    %51 = vector.broadcast %cst_20 : f32 to vector<128x256xf32>
    %52 = arith.select %8, %51, %50 : vector<128x256xi1>, vector<128x256xf32>
    %cst_21 = arith.constant dense<0xFF800000> : vector<128xf32>
    %53 = vector.multi_reduction <maximumf>, %52, %cst_21 [1] : vector<128x256xf32> to vector<128xf32>
    %54 = vector.shape_cast %53 : vector<128xf32> to vector<128x1xf32>
    %55 = vector.broadcast %54 : vector<128x1xf32> to vector<128x256xf32>
    %56 = arith.subf %52, %55 : vector<128x256xf32>
    %57 = math.exp %56 : vector<128x256xf32>
    %cst_22 = arith.constant dense<0.000000e+00> : vector<128xf32>
    %58 = vector.multi_reduction <add>, %57, %cst_22 [1] : vector<128x256xf32> to vector<128xf32>
    %59 = vector.shape_cast %58 : vector<128xf32> to vector<128x1xf32>
    %c0_23 = arith.constant 0 : index
    %c32 = arith.constant 32 : index
    %60 = vector.load %arg9[%c0_23, %c32] : memref<256x128xbf16, #tpu.memory_space<vmem>>, vector<256x32xbf16>
    %61 = arith.truncf %57 : vector<128x256xf32> to vector<128x256xbf16>
    %cst_24 = arith.constant dense<0.000000e+00> : vector<128x32xf32>
    %62 = tpu.matmul %61, %60, %cst_24 {dimension_numbers = #tpu.dot_dimension_numbers<[1], [0], [0], [1], [0, 0, 1, 1], [], []>} : vector<128x256xbf16>, vector<256x32xbf16>, vector<128x32xf32> -> vector<128x32xf32>
    %63 = tpu.reciprocal %59 {approx = true} : vector<128x1xf32> -> vector<128x1xf32>
    %64 = vector.broadcast %63 : vector<128x1xf32> to vector<128x32xf32>
    %65 = arith.mulf %62, %64 : vector<128x32xf32>
    %66 = vector.extract_strided_slice %13 {offsets = [0, 2], sizes = [128, 1], strides = [1, 1]} : vector<128x4xf32> to vector<128x1xf32>
    %c2 = arith.constant 2 : index
    %c0_25 = arith.constant 0 : index
    %67 = vector.load %arg11[%c2, %c0_25] : memref<4x256xf32, #tpu.memory_space<vmem>>, vector<1x256xf32>
    %68 = vector.broadcast %66 : vector<128x1xf32> to vector<128x256xf32>
    %69 = vector.broadcast %67 : vector<1x256xf32> to vector<128x256xf32>
    %70 = arith.addf %68, %69 : vector<128x256xf32>
    %cst_26 = arith.constant 0.000000e+00 : f32
    %71 = vector.broadcast %cst_26 : f32 to vector<128x256xf32>
    %72 = arith.cmpf ogt, %70, %71 : vector<128x256xf32>
    %cst_27 = arith.constant 2.000000e-01 : f32
    %73 = vector.broadcast %cst_27 : f32 to vector<128x256xf32>
    %74 = arith.mulf %73, %70 : vector<128x256xf32>
    %75 = arith.select %72, %70, %74 : vector<128x256xi1>, vector<128x256xf32>
    %cst_28 = arith.constant -9.990000e+02 : f32
    %76 = vector.broadcast %cst_28 : f32 to vector<128x256xf32>
    %77 = arith.select %8, %76, %75 : vector<128x256xi1>, vector<128x256xf32>
    %cst_29 = arith.constant dense<0xFF800000> : vector<128xf32>
    %78 = vector.multi_reduction <maximumf>, %77, %cst_29 [1] : vector<128x256xf32> to vector<128xf32>
    %79 = vector.shape_cast %78 : vector<128xf32> to vector<128x1xf32>
    %80 = vector.broadcast %79 : vector<128x1xf32> to vector<128x256xf32>
    %81 = arith.subf %77, %80 : vector<128x256xf32>
    %82 = math.exp %81 : vector<128x256xf32>
    %cst_30 = arith.constant dense<0.000000e+00> : vector<128xf32>
    %83 = vector.multi_reduction <add>, %82, %cst_30 [1] : vector<128x256xf32> to vector<128xf32>
    %84 = vector.shape_cast %83 : vector<128xf32> to vector<128x1xf32>
    %c0_31 = arith.constant 0 : index
    %c64 = arith.constant 64 : index
    %85 = vector.load %arg9[%c0_31, %c64] : memref<256x128xbf16, #tpu.memory_space<vmem>>, vector<256x32xbf16>
    %86 = arith.truncf %82 : vector<128x256xf32> to vector<128x256xbf16>
    %cst_32 = arith.constant dense<0.000000e+00> : vector<128x32xf32>
    %87 = tpu.matmul %86, %85, %cst_32 {dimension_numbers = #tpu.dot_dimension_numbers<[1], [0], [0], [1], [0, 0, 1, 1], [], []>} : vector<128x256xbf16>, vector<256x32xbf16>, vector<128x32xf32> -> vector<128x32xf32>
    %88 = tpu.reciprocal %84 {approx = true} : vector<128x1xf32> -> vector<128x1xf32>
    %89 = vector.broadcast %88 : vector<128x1xf32> to vector<128x32xf32>
    %90 = arith.mulf %87, %89 : vector<128x32xf32>
    %91 = vector.extract_strided_slice %13 {offsets = [0, 3], sizes = [128, 1], strides = [1, 1]} : vector<128x4xf32> to vector<128x1xf32>
    %c3 = arith.constant 3 : index
    %c0_33 = arith.constant 0 : index
    %92 = vector.load %arg11[%c3, %c0_33] : memref<4x256xf32, #tpu.memory_space<vmem>>, vector<1x256xf32>
    %93 = vector.broadcast %91 : vector<128x1xf32> to vector<128x256xf32>
    %94 = vector.broadcast %92 : vector<1x256xf32> to vector<128x256xf32>
    %95 = arith.addf %93, %94 : vector<128x256xf32>
    %cst_34 = arith.constant 0.000000e+00 : f32
    %96 = vector.broadcast %cst_34 : f32 to vector<128x256xf32>
    %97 = arith.cmpf ogt, %95, %96 : vector<128x256xf32>
    %cst_35 = arith.constant 2.000000e-01 : f32
    %98 = vector.broadcast %cst_35 : f32 to vector<128x256xf32>
    %99 = arith.mulf %98, %95 : vector<128x256xf32>
    %100 = arith.select %97, %95, %99 : vector<128x256xi1>, vector<128x256xf32>
    %cst_36 = arith.constant -9.990000e+02 : f32
    %101 = vector.broadcast %cst_36 : f32 to vector<128x256xf32>
    %102 = arith.select %8, %101, %100 : vector<128x256xi1>, vector<128x256xf32>
    %cst_37 = arith.constant dense<0xFF800000> : vector<128xf32>
    %103 = vector.multi_reduction <maximumf>, %102, %cst_37 [1] : vector<128x256xf32> to vector<128xf32>
    %104 = vector.shape_cast %103 : vector<128xf32> to vector<128x1xf32>
    %105 = vector.broadcast %104 : vector<128x1xf32> to vector<128x256xf32>
    %106 = arith.subf %102, %105 : vector<128x256xf32>
    %107 = math.exp %106 : vector<128x256xf32>
    %cst_38 = arith.constant dense<0.000000e+00> : vector<128xf32>
    %108 = vector.multi_reduction <add>, %107, %cst_38 [1] : vector<128x256xf32> to vector<128xf32>
    %109 = vector.shape_cast %108 : vector<128xf32> to vector<128x1xf32>
    %c0_39 = arith.constant 0 : index
    %c96 = arith.constant 96 : index
    %110 = vector.load %arg9[%c0_39, %c96] : memref<256x128xbf16, #tpu.memory_space<vmem>>, vector<256x32xbf16>
    %111 = arith.truncf %107 : vector<128x256xf32> to vector<128x256xbf16>
    %cst_40 = arith.constant dense<0.000000e+00> : vector<128x32xf32>
    %112 = tpu.matmul %111, %110, %cst_40 {dimension_numbers = #tpu.dot_dimension_numbers<[1], [0], [0], [1], [0, 0, 1, 1], [], []>} : vector<128x256xbf16>, vector<256x32xbf16>, vector<128x32xf32> -> vector<128x32xf32>
    %113 = tpu.reciprocal %109 {approx = true} : vector<128x1xf32> -> vector<128x1xf32>
    %114 = vector.broadcast %113 : vector<128x1xf32> to vector<128x32xf32>
    %115 = arith.mulf %112, %114 : vector<128x32xf32>
    %116 = tpu.concatenate %40, %65, %90, %115 in 1 : vector<128x32xf32>, vector<128x32xf32>, vector<128x32xf32>, vector<128x32xf32> -> vector<128x128xf32>
    %c0_41 = arith.constant 0 : index
    %c0_42 = arith.constant 0 : index
    %117 = vector.load %arg6[%c0_41, %c0_42] : memref<1x128xf32, #tpu.memory_space<vmem>>, vector<1x128xf32>
    %118 = vector.broadcast %117 : vector<1x128xf32> to vector<128x128xf32>
    %119 = arith.addf %116, %118 : vector<128x128xf32>
    %cst_43 = arith.constant 0.000000e+00 : f32
    %120 = vector.broadcast %cst_43 : f32 to vector<128x128xf32>
    %121 = arith.cmpf ogt, %119, %120 : vector<128x128xf32>
    %cst_44 = arith.constant 0.000000e+00 : f32
    %122 = vector.broadcast %cst_44 : f32 to vector<128x128xf32>
    %123 = arith.minimumf %119, %122 : vector<128x128xf32>
    %124 = math.exp %123 : vector<128x128xf32>
    %cst_45 = arith.constant 1.000000e+00 : f32
    %125 = vector.broadcast %cst_45 : f32 to vector<128x128xf32>
    %126 = arith.subf %124, %125 : vector<128x128xf32>
    %127 = arith.select %121, %119, %126 : vector<128x128xi1>, vector<128x128xf32>
    %128 = arith.mulf %15, %127 : vector<128x128xf32>
    %cst_46 = arith.constant 1.000000e+00 : f32
    %129 = vector.broadcast %cst_46 : f32 to vector<128x128xf32>
    %130 = arith.subf %129, %15 : vector<128x128xf32>
    %131 = arith.mulf %130, %11 : vector<128x128xf32>
    %132 = arith.addf %128, %131 : vector<128x128xf32>
    %c0_47 = arith.constant 0 : index
    %c0_48 = arith.constant 0 : index
    %c0_49 = arith.constant 0 : index
    %133 = vector.load %arg8[%c0_47, %c0_48, %c0_49] : memref<1x128x128xf32, #tpu.memory_space<vmem>>, vector<1x128x128xf32>
    %134 = vector.shape_cast %133 : vector<1x128x128xf32> to vector<128x128xf32>
    %135 = vector.shape_cast %132 : vector<128x128xf32> to vector<1x128x128xf32>
    tpu.vector_store %arg8[%c0_47, %c0_48, %c0_49], %135 {strides = array<i32>} : memref<1x128x128xf32, #tpu.memory_space<vmem>>, vector<1x128x128xf32>,
    return
  }
  func.func @transform_0(%arg0: i32, %arg1: i32) -> (i32, i32, i32) {
    %c0_i32 = arith.constant 0 : i32
    %c0_i32_0 = arith.constant 0 : i32
    %c0_i32_1 = arith.constant 0 : i32
    return %arg0, %c0_i32, %c0_i32_0 : i32, i32, i32
  }
  func.func @transform_1(%arg0: i32, %arg1: i32) -> (i32, i32, i32) {
    %c0_i32 = arith.constant 0 : i32
    %c0_i32_0 = arith.constant 0 : i32
    return %arg0, %arg1, %c0_i32 : i32, i32, i32
  }
  func.func @transform_2(%arg0: i32, %arg1: i32) -> (i32, i32) {
    %c0_i32 = arith.constant 0 : i32
    %c0_i32_0 = arith.constant 0 : i32
    %c0_i32_1 = arith.constant 0 : i32
    return %c0_i32, %c0_i32_0 : i32, i32
  }
  func.func @transform_3(%arg0: i32, %arg1: i32) -> (i32, i32) {
    %c0_i32 = arith.constant 0 : i32
    %c0_i32_0 = arith.constant 0 : i32
    %c0_i32_1 = arith.constant 0 : i32
    return %c0_i32, %c0_i32_0 : i32, i32
  }
  func.func @transform_4(%arg0: i32, %arg1: i32) -> (i32, i32) {
    %c0_i32 = arith.constant 0 : i32
    %c0_i32_0 = arith.constant 0 : i32
    %c0_i32_1 = arith.constant 0 : i32
    return %c0_i32, %c0_i32_0 : i32, i32
  }
  func.func @transform_5(%arg0: i32, %arg1: i32) -> (i32, i32) {
    %c0_i32 = arith.constant 0 : i32
    %c0_i32_0 = arith.constant 0 : i32
    %c0_i32_1 = arith.constant 0 : i32
    return %c0_i32, %c0_i32_0 : i32, i32
  }
  func.func @transform_6(%arg0: i32, %arg1: i32) -> (i32, i32, i32) {
    %c0_i32 = arith.constant 0 : i32
    %c0_i32_0 = arith.constant 0 : i32
    return %arg0, %arg1, %c0_i32 : i32, i32, i32
  }
}

</mosaic_0001>

<bundles_post_ra>
// kernel: tpu_custom_call.1
= control target key start
LH: loop header
LB: loop body
LE: loop exit
PB: predicated region body
PF: predicated region fallthrough
CT: control target
= control target key end

     0   :  { %s9794_s0 = inlined_call_operand.hbm [shape: f32[2,256,128], index: 0, kind: input, shape index: {}]   ;;  %s9795_s1 = inlined_call_operand.hbm [shape: bf16[2,256,256], index: 1, kind: input, shape index: {}]   ;;  %s9796_s2 = inlined_call_operand.hbm [shape: bf16[128,256], index: 2, kind: input, shape index: {}]   ;;  %s9797_s3 = inlined_call_operand.vmem [shape: bf16[128,8], index: 3, kind: input, shape index: {}]   ;;  %s9798_s4 = inlined_call_operand.vmem [shape: f32[1,128], index: 4, kind: input, shape index: {}]   ;;  %s9799_s5 = inlined_call_operand.vmem [shape: f32[1,128], index: 5, kind: input, shape index: {}]   ;;  %s9800_s6 = inlined_call_operand.hbm [shape: f32[2,256,128], index: 6, kind: output, shape index: {}]  }
   0x1   :  { %10028 = sst [smem:[#allocation132_spill]] %s9794_s0 }
   0x2   :  { %10029 = sst [smem:[#allocation133_spill]] %s9796_s2 }
   0x3   :  { %10030 = sst [smem:[#allocation134_spill]] %s9797_s3 }
   0x4   :  { %10031 = sst [smem:[#allocation135_spill]] %s9798_s4 }
   0x5   :  { %10032 = sst [smem:[#allocation136_spill]] %s9799_s5 }
   0x6   :  { %10033 = sst [smem:[#allocation137_spill]] %s9800_s6 }
   0x7   :  { %11 = vsyncpa [#allocation7], 0 }
   0x8   :  { %13 = vsyncpa [#allocation7 + $0x1], 0 }
   0x9   :  { %14 = vsyncpa [#allocation10], 0 }
   0xa   :  { %16 = vsyncpa [#allocation10 + $0x1], 0 }
   0xb   :  { %17 = vsyncpa [#allocation8], 0 }
   0xc   :  { %19 = vsyncpa [#allocation8 + $0x1], 0  ;;  %s6270_s21 = smov 0   ;;  %s6272_s22 = smov 0  }
   0xd   :  { %s6274_s23 = smov 0   ;;  %s6276_s24 = smov 0  }
   0xe   :  { %s6278_s25 = smov 0   ;;  %s6280_s26 = smov 0  }
   0xf   :  { %s6282_s27 = smov 0   ;;  %s6284_s28 = smov 0  }
  0x10   :  { %s6286_s29 = smov 0   ;;  %s6288_s30 = smov 0  }
  0x11   :  { %s6290_s7 = smov 0  }
  0x12 LB: > { %10034 = sst [smem:[#allocation17_spill]] %s6176_s21  ;;  %s6324_s8 = sadd.s32 4294967295, %s6216_s7   ;;  %s6216_s7 = sphi %s6290_s7, %s25_s7   ;;  %s6212_s30 = sphi %s6288_s30, %s10596_s30   ;;  %s6208_s29 = sphi %s6286_s29, %s10595_s29   ;;  %s6204_s28 = sphi %s6284_s28, %s10594_s28   ;;  %s6200_s27 = sphi %s6282_s27, %s10593_s27   ;;  %s6196_s26 = sphi %s6280_s26, %s10592_s26   ;;  %s6192_s25 = sphi %s6278_s25, %s10591_s25   ;;  %s6188_s24 = sphi %s6276_s24, %s10590_s24   ;;  %s6184_s23 = sphi %s6274_s23, %s10589_s23   ;;  %s6180_s22 = sphi %s6272_s22, %s10588_s22   ;;  %s6176_s21 = sphi %s6270_s21, %s10587_s21  }
  0x13   : > { %10035 = sst [smem:[#allocation18_spill]] %s6200_s27  ;;  %s4725_s9 = sadd.s32 4294967294, %s6216_s7  }
  0x14   : > { %10036 = sst [smem:[#allocation19_spill]] %s6204_s28  ;;  %p57_p0 = scmp.ne.s32.totalorder %s6192_s25, %s6188_s24 }
  0x15   : > { %p9803_p1 = scmp.eq.s32.totalorder %s6324_s8, 0  ;;  %p85_p2 = scmp.ne.s32.totalorder %s6180_s22, %s6176_s21 }
  0x16   : > { %p201_p5 = scmp.eq.s32.totalorder %s4725_s9, 3  ;;  %p4726_p7 = scmp.ge.s32.totalorder %s6216_s7, 1 }
  0x17   : > { %p6334_p4 = por %p9803_p1, %p57_p0  ;;  %p6340_p6 = por %p85_p2, %p9803_p1 }
  0x18   : > { %p6345_p8 = por %p201_p5, %p85_p2  ;;  %p208_p9 = scmp.lt.s32.totalorder %s6216_s7, 5 }
  0x19   : > { %s10037_s10 = scalar_select %p6334_p4, 1, 0 }
  0x1a   : > { %s10038_s11 = scalar_select %p6340_p6, 1, 0 }
  0x1b   : > { %s10040_s12 = scalar_select %p6345_p8, 1, 0 }
  0x1c   : > { %10039 = sst [smem:[#allocation20_spill]] %s10038_s11  ;;  %p6350_p10 = pnand %p4726_p7, %p208_p9 }
  0x1d   : > { %10041 = sst [smem:[#allocation21_spill]] %s10040_s12  ;;  %s6218_s14 = smov [#allocation11]  }
  0x1e   : > { %s10042_s13 = scalar_select %p6350_p10, 1, 0 }
  0x1f   : > { %s220_s15 = sshll.u32 %s6218_s14, 4  ;;  %p5180_p11 = pneg %p6350_p10  ;;  %s221_s15 = int_to_ptr.vmem [resolvable:$true] %s220_s15 }
  0x20   : > { %s10044_s2 = sld [smem:[#allocation133_spill]] }
  0x21   : > { %p6358_p12 = pnand %p5180_p11, %p9803_p1 }
  0x23   : > { %p6000_p0 = pneg %p6358_p12 }
  0x26   : > { %s5998_s20 = scalar_lea.hbm %s10044_s2, 2048 }
  0x27   : > { %p5999_p13 = scmp.ne.s32.totalorder %s10044_s2, %s5998_s20  ;;  %p6005_p7 = scmp.lt.u32.totalorder %s5998_s20, %s10044_s2 }
  0x29   : > { %p6001_p2 = pnand %p6000_p0, %p5999_p13 }
  0x2b   : > { %p6002_p5 = pneg %p6001_p2 }
  0x2d   : > { %p6007_p9 = pnand %p6005_p7, %p6002_p5 }
  0x2f   : > { %6010 = shalt.err (!%p6007_p9)
}
  0x30   : > { %s6011_s21 = scalar_lea.vmem %s221_s15, 2048  ;;  %p6019_p8 = scmp.lt.s32.totalorder %s221_s15, %s221_s15 }
  0x31   : > { %p6012_p11 = scmp.ne.s32.totalorder %s221_s15, %s6011_s21  ;;  %p6020_p6 = scmp.lt.s32.totalorder %s6011_s21, %s6011_s21 }
  0x33   : > { %p6014_p1 = pnand %p6012_p11, %p6000_p0  ;;  %p6021_p4 = por %p6020_p6, %p6019_p8 }
  0x35   : > { %p6015_p3 = pneg %p6014_p1 }
  0x37   : > { %p6022_p10 = pnand %p6021_p4, %p6015_p3 }
  0x39   : > { %6025 = shalt.err (!%p6022_p10)
}
  0x3a   : > { %s9808_s18 = smov 128   ;;  %s9810_s12 = smov 8  }
  0x3b   : > { %5183 = dma.hbm_to_vmem [thread:$0]  (!%p6358_p12), %s10044_s2, 2048, %s221_s15, [#allocation10], %s9808_s18, %s9808_s18, %s9810_s12  }
  0x3c   : > { %p51_p1 = scmp.ne.s32.totalorder %s6196_s26, %s6192_s25  ;;  %p52_p3 = scmp.eq.s32.totalorder %s6216_s7, 0 }
  0x3d   : > { %p9812_p4 = scmp.lt.s32.totalorder %s6216_s7, 4  ;;  %s243_s24 = sand.u32 1, %s6196_s26  }
  0x3e   : > { %s4824_s9 = sshll.u32 %s6212_s30, 12  ;;  %p53_p6 = por %p52_p3, %p51_p1 }
  0x3f   : > { %s4729_s14 = sshll.u32 %s243_s24, 8  ;;  %s10045_s0 = sld [smem:[#allocation132_spill]] }
  0x40   : > { %p6398_p8 = pnand %p9812_p4, %p53_p6  ;;  %s247_s21 = scalar_lea.vmem [#allocation6], %s4729_s14 }
  0x41   : > { %s254_s19 = sshll.u32 %s247_s21, 4  ;;  %s6404_s20 = scalar_lea.sflag [#allocation7], %s243_s24  ;;  %s6402_s19 = int_to_ptr.vmem [resolvable:$true] %s254_s19 }
  0x42   : > { %p6028_p12 = pneg %p6398_p8 }
  0x45   : > { %s6394_s16 = scalar_lea.hbm %s10045_s0, %s4824_s9  ;;  %s6031_s18 = scalar_lea.hbm %s10045_s0, 8192 }
  0x46   : > { %s6026_s6 = scalar_lea.hbm %s6394_s16, 4096  ;;  %p6032_p2 = scmp.lt.u32.totalorder %s6394_s16, %s10045_s0 }
  0x47   : > { %p6027_p10 = scmp.ne.s32.totalorder %s6394_s16, %s6026_s6  ;;  %p6033_p5 = scmp.lt.u32.totalorder %s6031_s18, %s6026_s6 }
  0x48   : > { %p6035_p9 = scmp.lt.u32.totalorder %s6026_s6, %s6394_s16 }
  0x49   : > { %p6029_p13 = pnand %p6028_p12, %p6027_p10  ;;  %p6034_p7 = por %p6033_p5, %p6032_p2 }
  0x4b   : > { %p6030_p0 = pneg %p6029_p13  ;;  %p6036_p11 = por %p6035_p9, %p6034_p7 }
  0x4d   : > { %p6037_p1 = pnand %p6036_p11, %p6030_p0 }
  0x4f   : > { %6040 = shalt.err (!%p6037_p1)
}
  0x50   : > { %s6041_s24 = scalar_lea.vmem %s6402_s19, 4096  ;;  %s6221_s14 = smov [#allocation6]  }
  0x51   : > { %p6042_p6 = scmp.ne.s32.totalorder %s6402_s19, %s6041_s24  ;;  %s6046_s21 = sshll.u32 %s6221_s14, 4  ;;  %s6047_s21 = int_to_ptr.vmem [resolvable:$false] %s6046_s21 }
  0x52   : > { %s6048_s2 = scalar_lea.vmem %s6047_s21, 8192  ;;  %p6049_p4 = scmp.lt.s32.totalorder %s6402_s19, %s6047_s21 }
  0x53   : > { %p6044_p10 = pnand %p6042_p6, %p6028_p12  ;;  %p6050_p2 = scmp.lt.s32.totalorder %s6048_s2, %s6041_s24 }
  0x55   : > { %p6045_p13 = pneg %p6044_p10  ;;  %p6051_p5 = por %p6050_p2, %p6049_p4 }
  0x57   : > { %p6052_p7 = pnand %p6051_p5, %p6045_p13 }
  0x59   : > { %6055 = shalt.err (!%p6052_p7)
}
  0x5a   : > { %s10047_s18 = smov 8   ;;  %s10048_s12 = smov 128  }
  0x5b   : > { %5187 = dma.hbm_to_vmem [thread:$0]  (!%p6398_p8), %s6394_s16, 4096, %s6402_s19, %s6404_s20, %s10048_s12, %s10048_s12, %s10047_s18  }
  0x5c   : > { %s72_s15 = sadd.s32 1, %s6184_s23  ;;  %s34_s6 = sadd.s32 1, %s6208_s29 }
  0x5d   : > { %p79_p4 = scmp.ne.s32.totalorder %s6184_s23, %s6180_s22  ;;  %p35_p12 = scmp.ge.s32.totalorder %s34_s6, 2 }
  0x5e   : > { %s264_s17 = sand.u32 1, %s6216_s7   ;;  %p10050_p9 = scmp.eq.s32.totalorder %s6324_s8, 3 }
  0x5f   : > { %p6442_p0 = por %p79_p4, %p52_p3  ;;  %s10598_s6 = smov (%p35_p12, %s34_s6), 0 }
  0x60   : > { %p6448_p11 = por %p10050_p9, %p79_p4  ;;  %10053 = sst [smem:[#allocation23_spill]] %s10598_s6 }
  0x61   : > { %s10054_s20 = sadd.s32 1, %s6212_s30  ;;  %s68_s16 = ssub.s32 %s6208_s29, %s10598_s6 }
  0x62   : > { %s10051_s24 = scalar_select %p6448_p11, 1, 0 }
  0x63   : > { %s10600_s20 = smov (!%p35_p12, %s10054_s20), %s6212_s30  ;;  %s266_s19 = sand.u32 1, %s6184_s23  }
  0x64   : > { %10052 = sst [smem:[#allocation22_spill]] %s10051_s24  ;;  %p39_p8 = scmp.ge.s32.totalorder %s10600_s20, 2 }
  0x65   : > { %s4732_s14 = sshll.u32 %s266_s19, 7  ;;  %s4825_s21 = sshll.u32 %s6208_s29, 5 }
  0x66   : > { %s10602_s20 = smov (%p39_p8, %s10600_s20), 0  ;;  %s4735_s2 = sshll.u32 %s6212_s30, 6 }
  0x67   : > { %10055 = sst [smem:[#allocation24_spill]] %s10602_s20  ;;  %s41_s0 = ssub.s32 %s6212_s30, %s10602_s20 }
  0x68   : > { %s275_s24 = sadd.s32 %s4825_s21, %s4735_s2  ;;  %p42_p3 = scmp.eq.s32.totalorder %s41_s0, 0 }
  0x69   : > { %s69_s28 = sor.u32 %s68_s16, %s41_s0  ;;  %s4736_s4 = sshll.u32 %s275_s24, 6 }
  0x6a   : > { %p70_p1 = scmp.eq.s32.totalorder %s69_s28, 0  ;;  %s10056_s5 = sadd.s32 1, %s6196_s26 }
  0x6b   : > { %s6469_s3 = scalar_select %p42_p3, %s6196_s26, %s10056_s5  }
  0x6c   : > { %s6472_s6 = scalar_select %p70_p1, %s6184_s23, %s72_s15  }
  0x6d   : > { %s6477_s11 = scalar_lea.hbm %s9795_s1, %s4736_s4  ;;  %s268_s20 = scalar_lea.vmem [#allocation9], %s4732_s14 }
  0x6e   : > { %s278_s21 = sshll.u32 %s268_s20, 4  ;;  %p10057_p6 = scmp.lt.s32.totalorder %s6216_s7, 4  ;;  %s6479_s21 = int_to_ptr.vmem [resolvable:$true] %s278_s21 }
  0x6f   : > { %s6489_s5 = scalar_lea.sflag [#allocation10], %s264_s17  ;;  %s6056_s4 = scalar_lea.hbm %s6477_s11, 2048 }
  0x70   : > { %p6485_p10 = pnand %p10057_p6, %p6442_p0  ;;  %p6057_p13 = scmp.ne.s32.totalorder %s6477_s11, %s6056_s4 }
  0x71   : > { %s6061_s15 = scalar_lea.hbm %s9795_s1, 8192  ;;  %p6062_p4 = scmp.lt.u32.totalorder %s6477_s11, %s9795_s1 }
  0x72   : > { %p6058_p2 = pneg %p6485_p10  ;;  %p6063_p12 = scmp.lt.u32.totalorder %s6061_s15, %s6056_s4 }
  0x73   : > { %p6065_p9 = scmp.lt.u32.totalorder %s6056_s4, %s6477_s11 }
  0x74   : > { %p6059_p5 = pnand %p6058_p2, %p6057_p13  ;;  %p6064_p0 = por %p6063_p12, %p6062_p4 }
  0x76   : > { %p6060_p7 = pneg %p6059_p5  ;;  %p6066_p8 = por %p6065_p9, %p6064_p0 }
  0x78   : > { %p6067_p3 = pnand %p6066_p8, %p6060_p7 }
  0x7a   : > { %6070 = shalt.err (!%p6067_p3)
}
  0x7b   : > { %s6071_s17 = scalar_lea.vmem %s6479_s21, 2048  ;;  %s6222_s20 = smov [#allocation9]  }
  0x7c   : > { %p6072_p1 = scmp.ne.s32.totalorder %s6479_s21, %s6071_s17  ;;  %s6076_s16 = sshll.u32 %s6222_s20, 4  ;;  %s6077_s16 = int_to_ptr.vmem [resolvable:$false] %s6076_s16 }
  0x7d   : > { %s6078_s14 = scalar_lea.vmem %s6077_s16, 4096  ;;  %p6079_p5 = scmp.lt.s32.totalorder %s6479_s21, %s6077_s16 }
  0x7e   : > { %p6074_p6 = pnand %p6072_p1, %p6058_p2  ;;  %p6080_p4 = scmp.lt.s32.totalorder %s6078_s14, %s6071_s17 }
  0x80   : > { %p6075_p13 = pneg %p6074_p6  ;;  %p6081_p12 = por %p6080_p4, %p6079_p5 }
  0x82   : > { %p6082_p0 = pnand %p6081_p12, %p6075_p13 }
  0x84   : > { %6085 = shalt.err (!%p6082_p0)
}
  0x85   : > { %5190 = dma.hbm_to_vmem [thread:$0]  (!%p6485_p10), %s6477_s11, 2048, %s6479_s21, %s6489_s5, %s10048_s12, %s10048_s12, %s10047_s18  }
  0x86   : > { %p10059_p2 = scmp.ne.s32.totalorder %s10042_s13, 0 }
  0x88   : > { %290 = sbr.rel (%p10059_p2) target bundleno = 2665 (0xa69), region = 44 }
  0x8f   : > { %s292_s2 = sand.u32 1, %s6192_s25   ;;  %p10060_p7 = scmp.ne.s32.totalorder %s10037_s10, 0 }
  0x90   : > { %s4738_s19 = sshll.u32 %s292_s2, 8  ;;  %s293_s4 = scalar_lea.sflag [#allocation7], %s292_s2 }
  0x91   : > { %s6523_s27 = scalar_lea.vmem [#allocation6], %s4738_s19 }
  0x92   : > { %6159 = dma.done.wait (%p10060_p7), %s293_s4, 4096  }
  0x93   : > { %6161 = vsyncadd (%p10060_p7), %s293_s4, 4294963200  ;;  %s10061_s0 = sld [smem:[#allocation20_spill]]  ;;  %s301_s11 = sand.u32 1, %s6324_s8  }
  0x94   : > { %s303_s18 = sand.u32 1, %s6180_s22   ;;  %s302_s12 = scalar_lea.sflag [#allocation10], %s301_s11 }
  0x95   : > { %s4739_s13 = sshll.u32 %s303_s18, 7 }
  0x96   : > { %s6533_s21 = scalar_lea.vmem [#allocation9], %s4739_s13 }
  0x99   : > { %p10062_p10 = scmp.ne.s32.totalorder %s10061_s0, 0 }
  0x9b   : > { %6163 = dma.done.wait (%p10062_p10), %s302_s12, 2048  }
  0x9c   : > { %6165 = vsyncadd (%p10062_p10), %s302_s12, 4294965248  ;;  %p10063_p9 = scmp.eq.s32.totalorder %s6324_s8, 0 }
  0x9e   : > { %6167 = dma.done.wait (%p10063_p9), [#allocation10], 2048   ;;  %p10064_p8 = pmov %p10063_p9 }
  0x9f   : > { %s6543_s10 = scalar_lea.vmem [#allocation12], %s4739_s13  ;;  %s10065_s5 = sld [smem:[#allocation18_spill]] }
  0xa0   : > { %6169 = vsyncadd (%p10064_p8), [#allocation10], 4294965248 }
  0xa5   : > { %p4742_p3 = scmp.ne.s32.totalorder %s10065_s5, 0 }
  0xa6   : > { %v5301_v0 = vld [vmem:[#allocation11 + $0x4] ss:$8 sps:$4 sm:$0xff] (!%p4742_p3)   ;;  %v5303_v1 = vld [vmem:[#allocation11] ss:$8 sps:$4 sm:$0xff] (!%p4742_p3)   ;;  %v6223_v2 = vmov (!%p4742_p3), 0   ;;  %s10066_s15 = sld [smem:[#allocation134_spill]] (!%p4742_p3) }
  0xa7   : > { %351 = sbr.rel (%p4742_p3) target bundleno = 966 (0x3c6), region = 60  ;;  %528 = vmatprep.mubr.bf16.mxu0 (!%p4742_p3), %v6223_v2  ;;  %648 = vmatprep.mubr.bf16.mxu1 (!%p4742_p3), %v6223_v2  ;;  %v5304_v3 = vld [vmem:[#allocation11 + $0x14] ss:$8 sps:$4 sm:$0xff] (!%p4742_p3)   ;;  %v5306_v4 = vld [vmem:[#allocation11 + $0x10] ss:$8 sps:$4 sm:$0xff] (!%p4742_p3)   ;;  %v352_v17 = vld [vmem:[%s6523_s27] sm:$0xff] (!%p4742_p3) }
  0xa8   : > { %496 = vmatprep.subr.bf16.mxu0 (!%p4742_p3), %v5301_v0  ;;  %5154 = vmatprep.subr.bf16.mxu1 (!%p4742_p3), %v5301_v0  ;;  %v5307_v5 = vld [vmem:[#allocation11 + $0x24] ss:$8 sps:$4 sm:$0xff] (!%p4742_p3)   ;;  %v5309_v6 = vld [vmem:[#allocation11 + $0x20] ss:$8 sps:$4 sm:$0xff] (!%p4742_p3)   ;;  %v5310_v7 = vld [vmem:[#allocation11 + $0x34] ss:$8 sps:$4 sm:$0xff] (!%p4742_p3)  }
  0xa9   : > { %497 = vmatpush1.bf16.msra.mxu0 (!%p4742_p3), %v5303_v1  ;;  %5162 = vmatpush1.bf16.msra.mxu1 (!%p4742_p3), %v5303_v1  ;;  %v5312_v8 = vld [vmem:[#allocation11 + $0x30] ss:$8 sps:$4 sm:$0xff] (!%p4742_p3)   ;;  %v5313_v9 = vld [vmem:[#allocation11 + $0x44] ss:$8 sps:$4 sm:$0xff] (!%p4742_p3)   ;;  %v5315_v10 = vld [vmem:[#allocation11 + $0x40] ss:$8 sps:$4 sm:$0xff] (!%p4742_p3)  }
  0xaa   : > { %498 = vmatprep.subr.bf16.mxu0 (!%p4742_p3), %v5304_v3  ;;  %5155 = vmatprep.subr.bf16.mxu1 (!%p4742_p3), %v5304_v3  ;;  %v5316_v11 = vld [vmem:[#allocation11 + $0x54] ss:$8 sps:$4 sm:$0xff] (!%p4742_p3)   ;;  %v5318_v12 = vld [vmem:[#allocation11 + $0x50] ss:$8 sps:$4 sm:$0xff] (!%p4742_p3)   ;;  %v5319_v13 = vld [vmem:[#allocation11 + $0x64] ss:$8 sps:$4 sm:$0xff] (!%p4742_p3)  }
  0xab   : > { %v5321_v14 = vld [vmem:[#allocation11 + $0x60] ss:$8 sps:$4 sm:$0xff] (!%p4742_p3)   ;;  %v5322_v15 = vld [vmem:[#allocation11 + $0x74] ss:$8 sps:$4 sm:$0xff] (!%p4742_p3)   ;;  %v5324_v16 = vld [vmem:[#allocation11 + $0x70] ss:$8 sps:$4 sm:$0xff] (!%p4742_p3)  }
  0xac   : > { %v353_v18 = vld [vmem:[%s6523_s27 + $0x8] sm:$0xff] (!%p4742_p3)  ;;  %v376_v19 = vld [vmem:[%s6523_s27 + $0xc0] sm:$0xff] (!%p4742_p3)  ;;  %v5325_v21 = vld [vmem:[%s10066_s15] sm:$0xff] (!%p4742_p3)   ;;  %s10067_s9 = sld [smem:[#allocation136_spill]] (!%p4742_p3)  ;;  %vm1257_vm0 = vcmask (!%p4742_p3), 31744   ;;  %s6224_s24 = smov (!%p4742_p3), 124  }
  0xad   : > { %499 = vmatpush1.bf16.msra.mxu0 (!%p4742_p3), %v5306_v4  ;;  %5163 = vmatpush1.bf16.msra.mxu1 (!%p4742_p3), %v5306_v4  ;;  %v377_v20 = vld [vmem:[%s6523_s27 + $0xc8] sm:$0xff] (!%p4742_p3)  ;;  %v384_v22 = vpack.c.bf16 (!%p4742_p3), %v353_v18, %v352_v17  ;;  %v5326_v24 = vld [vmem:[%s10066_s15 + $0x8] sm:$0xff] (!%p4742_p3)   ;;  %v354_v25 = vld [vmem:[%s6523_s27 + $0x10] sm:$0xff] (!%p4742_p3) }
  0xae   : > { %500 = vmatprep.subr.bf16.mxu0 %v5307_v5  ;;  %5156 = vmatprep.subr.bf16.mxu1 %v5307_v5  ;;  %v396_v23 = vpack.c.bf16 %v377_v20, %v376_v19  ;;  %v355_v26 = vld [vmem:[%s6523_s27 + $0x18] sm:$0xff]  ;;  %v378_v27 = vld [vmem:[%s6523_s27 + $0xd0] sm:$0xff]  ;;  %v356_v31 = vld [vmem:[%s6523_s27 + $0x20] sm:$0xff] }
  0xaf   : > { %v379_v28 = vld [vmem:[%s6523_s27 + $0xd8] sm:$0xff]  ;;  %v385_v29 = vpack.c.bf16 %v355_v26, %v354_v25  ;;  %v357_v32 = vld [vmem:[%s6523_s27 + $0x28] sm:$0xff]  ;;  %v380_v33 = vld [vmem:[%s6523_s27 + $0xe0] sm:$0xff] }
  0xb0   : > { %v397_v30 = vpack.c.bf16 %v379_v28, %v378_v27  ;;  %v381_v34 = vld [vmem:[%s6523_s27 + $0xe8] sm:$0xff]  ;;  %v386_v35 = vpack.c.bf16 %v357_v32, %v356_v31  ;;  %v358_v37 = vld [vmem:[%s6523_s27 + $0x30] sm:$0xff]  ;;  %v359_v38 = vld [vmem:[%s6523_s27 + $0x38] sm:$0xff] }
  0xb1   : > { %501 = vmatpush1.bf16.msra.mxu0 %v5309_v6  ;;  %5164 = vmatpush1.bf16.msra.mxu1 %v5309_v6  ;;  %v398_v36 = vpack.c.bf16 %v381_v34, %v380_v33  ;;  %v382_v39 = vld [vmem:[%s6523_s27 + $0xf0] sm:$0xff]  ;;  %v383_v40 = vld [vmem:[%s6523_s27 + $0xf8] sm:$0xff]  ;;  %v387_v41 = vpack.c.bf16 %v359_v38, %v358_v37  ;;  %v360_v43 = vld [vmem:[%s6523_s27 + $0x40] sm:$0xff] }
  0xb2   : > { %502 = vmatprep.subr.bf16.mxu0 %v5310_v7  ;;  %5157 = vmatprep.subr.bf16.mxu1 %v5310_v7  ;;  %v399_v42 = vpack.c.bf16 %v383_v40, %v382_v39  ;;  %v361_v44 = vld [vmem:[%s6523_s27 + $0x48] sm:$0xff]  ;;  %v362_v46 = vld [vmem:[%s6523_s27 + $0x50] sm:$0xff]  ;;  %v363_v47 = vld [vmem:[%s6523_s27 + $0x58] sm:$0xff] }
  0xb3   : > { %v388_v45 = vpack.c.bf16 %v361_v44, %v360_v43  ;;  %v389_v48 = vpack.c.bf16 %v363_v47, %v362_v46  ;;  %v364_v49 = vld [vmem:[%s6523_s27 + $0x60] sm:$0xff]  ;;  %v365_v50 = vld [vmem:[%s6523_s27 + $0x68] sm:$0xff]  ;;  %v366_v52 = vld [vmem:[%s6523_s27 + $0x70] sm:$0xff] }
  0xb4   : > { %v390_v51 = vpack.c.bf16 %v365_v50, %v364_v49  ;;  %v367_v53 = vld [vmem:[%s6523_s27 + $0x78] sm:$0xff]  ;;  %v368_v55 = vld [vmem:[%s6523_s27 + $0x80] sm:$0xff]  ;;  %v369_v56 = vld [vmem:[%s6523_s27 + $0x88] sm:$0xff] }
  0xb5   : > { %503 = vmatpush1.bf16.msra.mxu0 %v5312_v8  ;;  %5165 = vmatpush1.bf16.msra.mxu1 %v5312_v8  ;;  %v391_v54 = vpack.c.bf16 %v367_v53, %v366_v52  ;;  %v392_v57 = vpack.c.bf16 %v369_v56, %v368_v55  ;;  %v370_v58 = vld [vmem:[%s6523_s27 + $0x90] sm:$0xff]  ;;  %v371_v59 = vld [vmem:[%s6523_s27 + $0x98] sm:$0xff]  ;;  %v372_v61 = vld [vmem:[%s6523_s27 + $0xa0] sm:$0xff] }
  0xb6   : > { %504 = vmatprep.subr.bf16.mxu0 %v5313_v9  ;;  %5158 = vmatprep.subr.bf16.mxu1 %v5313_v9  ;;  %v393_v60 = vpack.c.bf16 %v371_v59, %v370_v58  ;;  %v373_v62 = vld [vmem:[%s6523_s27 + $0xa8] sm:$0xff]  ;;  %v374_v0 = vld [vmem:[%s6523_s27 + $0xb0] sm:$0xff]  ;;  %v375_v1 = vld [vmem:[%s6523_s27 + $0xb8] sm:$0xff] }
  0xb7   : > { %v394_v63 = vpack.c.bf16 %v373_v62, %v372_v61  ;;  %v5327_v3 = vld [vmem:[%s10066_s15 + $0x10] sm:$0xff]   ;;  %v395_v4 = vpack.c.bf16 %v375_v1, %v374_v0  ;;  %v5328_v5 = vld [vmem:[%s10066_s15 + $0x18] sm:$0xff]   ;;  %v5330_v6 = vld [vmem:[%s10066_s15 + $0x28] sm:$0xff]  }
  0xb8   : > { %v5331_v7 = vld [vmem:[%s10066_s15 + $0x30] sm:$0xff]   ;;  %v5332_v8 = vld [vmem:[%s10066_s15 + $0x38] sm:$0xff]   ;;  %v6621_v9 = vld [vmem:[%s10067_s9] ss:$0 sm:$0xff] }
  0xb9   : > { %505 = vmatpush1.bf16.msra.mxu0 %v5315_v10  ;;  %5166 = vmatpush1.bf16.msra.mxu1 %v5315_v10 }
  0xba   : > { %506 = vmatprep.subr.bf16.mxu0 %v5316_v11  ;;  %5159 = vmatprep.subr.bf16.mxu1 %v5316_v11 }
  0xbd   : > { %507 = vmatpush1.bf16.msra.mxu0 %v5318_v12  ;;  %5167 = vmatpush1.bf16.msra.mxu1 %v5318_v12 }
  0xbe   : > { %508 = vmatprep.subr.bf16.mxu0 %v5319_v13  ;;  %5160 = vmatprep.subr.bf16.mxu1 %v5319_v13 }
  0xc1   : > { %509 = vmatpush1.bf16.msra.mxu0 %v5321_v14  ;;  %5168 = vmatpush1.bf16.msra.mxu1 %v5321_v14 }
  0xc2   : > { %510 = vmatprep.subr.bf16.mxu0 %v5322_v15  ;;  %5161 = vmatprep.subr.bf16.mxu1 %v5322_v15 }
  0xc5   : > { %511 = vmatpush1.bf16.msra.mxu0 %v5324_v16  ;;  %5169 = vmatpush1.bf16.msra.mxu1 %v5324_v16 }
  0xc6   : > { %5106 = vmatprep.subr.bf16.mxu1 %v5325_v21 }
  0xc8   : > { %529 = vmatmul.mubr.bf16.vlgmr.msra.gmra.mrb[0].mxu0 %v384_v22  ;;  %649 = vmatmul.mubr.bf16.vlgmr.msra.gmra.mrb[0].mxu1 %v396_v23 }
  0xc9   : > { %538 = vmatprep.mubr.bf16.mxu0 %v6223_v2  ;;  %658 = vmatprep.mubr.bf16.mxu1 %v6223_v2 }
  0xca   : > { %5107 = vmatpush3.bf16.msra.mxu1 %v5325_v21 }
  0xcb   : > { %5108 = vmatprep.subr.bf16.mxu1 %v5326_v24 }
  0xce   : > { %5109 = vmatpush3.bf16.msra.mxu1 %v5326_v24 }
  0xcf   : > { %5110 = vmatprep.subr.bf16.mxu1 %v5327_v3 }
  0xd0   : > { %539 = vmatmul.mubr.bf16.gmra.mrb[4].mxu0 %v385_v29  ;;  %659 = vmatmul.mubr.bf16.gmra.mrb[4].mxu1 %v397_v30 }
  0xd1   : > { %548 = vmatprep.mubr.bf16.mxu0 %v6223_v2  ;;  %668 = vmatprep.mubr.bf16.mxu1 %v6223_v2 }
  0xd2   : > { %5111 = vmatpush3.bf16.msra.mxu1 %v5327_v3 }
  0xd3   : > { %5112 = vmatprep.subr.bf16.mxu1 %v5328_v5 }
  0xd6   : > { %5113 = vmatpush3.bf16.msra.mxu1 %v5328_v5 }
  0xd8   : > { %549 = vmatmul.mubr.bf16.gmra.mrb[8].mxu0 %v386_v35  ;;  %669 = vmatmul.mubr.bf16.gmra.mrb[8].mxu1 %v398_v36 }
  0xd9   : > { %558 = vmatprep.mubr.bf16.mxu0 %v6223_v2  ;;  %678 = vmatprep.mubr.bf16.mxu1 %v6223_v2 }
  0xe0   : > { %559 = vmatmul.mubr.bf16.gmra.mrb[12].mxu0 %v387_v41  ;;  %679 = vmatmul.mubr.bf16.gmra.mrb[12].mxu1 %v399_v42 }
  0xe1   : > { %568 = vmatprep.mubr.bf16.mxu0 %v6223_v2 }
  0xe8   : > { %569 = vmatmul.mubr.bf16.gmra.mrb[16].mxu0 %v388_v45 }
  0xe9   : > { %578 = vmatprep.mubr.bf16.mxu0 %v6223_v2 }
  0xf0   : > { %579 = vmatmul.mubr.bf16.gmra.mrb[20].mxu0 %v389_v48 }
  0xf1   : > { %588 = vmatprep.mubr.bf16.mxu0 %v6223_v2 }
  0xf8   : > { %589 = vmatmul.mubr.bf16.gmra.mrb[24].mxu0 %v390_v51 }
  0xf9   : > { %598 = vmatprep.mubr.bf16.mxu0 %v6223_v2 }
 0x100   : > { %599 = vmatmul.mubr.bf16.gmra.mrb[28].mxu0 %v391_v54 }
 0x101   : > { %608 = vmatprep.mubr.bf16.mxu0 %v6223_v2 }
 0x108   : > { %609 = vmatmul.mubr.bf16.gmra.mrb[32].mxu0 %v392_v57 }
 0x109   : > { %618 = vmatprep.mubr.bf16.mxu0 %v6223_v2 }
 0x110   : > { %619 = vmatmul.mubr.bf16.gmra.mrb[36].mxu0 %v393_v60 }
 0x111   : > { %628 = vmatprep.mubr.bf16.mxu0 %v6223_v2 }
 0x118   : > { %629 = vmatmul.mubr.bf16.gmra.mrb[40].mxu0 %v394_v63 }
 0x119   : > { %638 = vmatprep.mubr.bf16.mxu0 %v6223_v2  ;;  %v5329_v2 = vld [vmem:[%s10066_s15 + $0x20] sm:$0xff]  }
 0x11a   : > { %5114 = vmatprep.subr.bf16.mxu1 %v5329_v2 }
 0x11b   : > { %5115 = vmatpush3.bf16.msra.mxu1 %v5329_v2 }
 0x11c   : > { %5116 = vmatprep.subr.bf16.mxu1 %v5330_v6 }
 0x11f   : > { %5117 = vmatpush3.bf16.msra.mxu1 %v5330_v6 }
 0x120   : > { %639 = vmatmul.mubr.bf16.gmra.mrb[44].mxu0 %v395_v4  ;;  %5118 = vmatprep.subr.bf16.mxu1 %v5331_v7 }
 0x123   : > { %5119 = vmatpush3.bf16.msra.mxu1 %v5331_v7 }
 0x124   : > { %5120 = vmatprep.subr.bf16.mxu1 %v5332_v8 }
 0x127   : > { %5121 = vmatpush3.bf16.msra.mxu1 %v5332_v8 }
 0x19b   : > { %v530_v10 = vpop.f32.mrb[0].mxu0  ;;  %v650_v11 = vpop.f32.mrb[0].mxu1 }
 0x19c   : > { %5333 = vtanh.f32 %v530_v10  ;;  %v532_v12 = vpop.f32.mrb[1].mxu0  ;;  %v652_v13 = vpop.f32.mrb[1].mxu1 }
 0x19d   : > { %v696_v14 = vadd.f32 %v6621_v9, %v532_v12  ;;  %v534_v15 = vpop.f32.mrb[2].mxu0  ;;  %5335 = vtanh.f32 %v650_v11  ;;  %v720_v16 = vadd.f32 %v6621_v9, %v652_v13  ;;  %v654_v17 = vpop.f32.mrb[2].mxu1 }
 0x19e   : > { %v728_v18 = vpack.c.bf16 %v534_v15, %v530_v10  ;;  %5337 = vtanh.f32 %v534_v15  ;;  %v536_v19 = vpop.f32.mrb[3].mxu0  ;;  %v740_v20 = vpack.c.bf16 %v654_v17, %v650_v11  ;;  %v656_v21 = vpop.f32.mrb[3].mxu1 }
 0x19f   : > { %v4760_v22 = vmul.f32 -1.442695, %v696_v14  ;;  %v697_v23 = vadd.f32 %v6621_v9, %v536_v19  ;;  %v4784_v24 = vmul.f32 -1.442695, %v720_v16  ;;  %5339 = vtanh.f32 %v654_v17 }
 0x1a0   : > { %744 = vst [vmem:[#allocation2] sm:$0xff] %v728_v18  ;;  %756 = vst [vmem:[#allocation2 + $0x60] sm:$0xff] %v740_v20  ;;  %v721_v25 = vadd.f32 %v6621_v9, %v656_v21 }
 0x1a1   : > { %5341 = vpow2.f32 %v4760_v22  ;;  %v4761_v26 = vmul.f32 -1.442695, %v697_v23 }
 0x1a2   : > { %5343 = vpow2.f32 %v4784_v24  ;;  %v4785_v27 = vmul.f32 -1.442695, %v721_v25 }
 0x1a3   : > { %5345 = vpow2.f32 %v4761_v26  ;;  %v540_v28 = vpop.f32.mrb[4].mxu0  ;;  %v660_v29 = vpop.f32.mrb[4].mxu1 }
 0x1a4   : > { %5347 = vtanh.f32 %v540_v28  ;;  %v542_v30 = vpop.f32.mrb[5].mxu0  ;;  %v662_v31 = vpop.f32.mrb[5].mxu1 }
 0x1a5   : > { %v698_v32 = vadd.f32 %v6621_v9, %v542_v30  ;;  %v544_v33 = vpop.f32.mrb[6].mxu0  ;;  %5349 = vpow2.f32 %v4785_v27  ;;  %v722_v34 = vadd.f32 %v6621_v9, %v662_v31  ;;  %v664_v35 = vpop.f32.mrb[6].mxu1 }
 0x1a6   : > { %v5334_v36 = vpop.eup %5333  ;;  %v729_v37 = vpack.c.bf16 %v544_v33, %v540_v28  ;;  %5351 = vtanh.f32 %v544_v33  ;;  %v546_v38 = vpop.f32.mrb[7].mxu0  ;;  %v741_v39 = vpack.c.bf16 %v664_v35, %v660_v29 }
 0x1a7   : > { %v666_v40 = vpop.f32.mrb[7].mxu1  ;;  %v6629_v41 = vpop.eup %5335  ;;  %v4762_v42 = vmul.f32 -1.442695, %v698_v32  ;;  %v699_v43 = vadd.f32 %v6621_v9, %v546_v38  ;;  %5353 = vtanh.f32 %v660_v29  ;;  %v4786_v44 = vmul.f32 -1.442695, %v722_v34 }
 0x1a8   : > { %v5338_v45 = vpop.eup %5337  ;;  %745 = vst [vmem:[#allocation2 + $0x8] sm:$0xff] %v729_v37  ;;  %757 = vst [vmem:[#allocation2 + $0x68] sm:$0xff] %v741_v39  ;;  %5355 = vtanh.f32 %v664_v35  ;;  %v723_v46 = vadd.f32 %v6621_v9, %v666_v40 }
 0x1a9   : > { %v6633_v47 = vpop.eup %5339  ;;  %5357 = vpow2.f32 %v4762_v42  ;;  %v4763_v48 = vmul.f32 -1.442695, %v699_v43  ;;  %v1016_v49 = vpack.c.bf16 %v5338_v45, %v5334_v36 }
 0x1aa   : > { %5359 = vpow2.f32 %v4786_v44  ;;  %v4787_v50 = vmul.f32 -1.442695, %v723_v46  ;;  %v1028_v51 = vpack.c.bf16 %v6633_v47, %v6629_v41 }
 0x1ab   : > { %v5342_v52 = vpop.eup %5341  ;;  %5361 = vpow2.f32 %v4763_v48  ;;  %v550_v53 = vpop.f32.mrb[8].mxu0  ;;  %5122 = vmatprep.mubr.bf16.mxu1 %v1016_v49 }
 0x1ac   : > { %v6637_v54 = vpop.f32.mrb[8].mxu1  ;;  %v5344_v55 = vpop.eup %5343  ;;  %v856_v56 = vadd.f32 1.0, %v5342_v52  ;;  %5363 = vtanh.f32 %v550_v53 }
 0x1ad   : > { %v552_v57 = vpop.f32.mrb[9].mxu0  ;;  %v6639_v58 = vpop.f32.mrb[9].mxu1  ;;  %v880_v62 = vadd.f32 1.0, %v5344_v55  ;;  %5365 = vpow2.f32 %v4787_v50 }
 0x1ae   : > { %v5346_v59 = vpop.eup %5345  ;;  %v700_v60 = vadd.f32 %v6621_v9, %v552_v57  ;;  %v554_v61 = vpop.f32.mrb[10].mxu0  ;;  %5367 = vrcp.f32 %v856_v56  ;;  %v724_v56 = vadd.f32 %v6621_v9, %v6639_v58 }
 0x1af   : > { %v6642_v63 = vpop.f32.mrb[10].mxu1  ;;  %v5348_v0 = vpop.eup %5347  ;;  %v857_v1 = vadd.f32 1.0, %v5346_v59  ;;  %v730_v3 = vpack.c.bf16 %v554_v61, %v550_v53  ;;  %5369 = vtanh.f32 %v554_v61 }
 0x1b0   : > { %v556_v4 = vpop.f32.mrb[11].mxu0  ;;  %v742_v5 = vpack.c.bf16 %v6642_v63, %v6637_v54  ;;  %v6646_v2 = vpop.f32.mrb[11].mxu1  ;;  %v4764_v7 = vmul.f32 -1.442695, %v700_v60 }
 0x1b1   : > { %v5350_v6 = vpop.eup %5349  ;;  %v701_v8 = vadd.f32 %v6621_v9, %v556_v4  ;;  %5371 = vrcp.f32 %v857_v1  ;;  %746 = vst [vmem:[#allocation2 + $0x10] sm:$0xff] %v730_v3 }
 0x1b2   : > { %v5352_v10 = vpop.eup %5351  ;;  %758 = vst [vmem:[#allocation2 + $0x70] sm:$0xff] %v742_v5  ;;  %5373 = vpow2.f32 %v4764_v7  ;;  %v881_v14 = vadd.f32 1.0, %v5350_v6  ;;  %v4788_v6 = vmul.f32 -1.442695, %v724_v56 }
 0x1b3   : > { %v6649_v11 = vpop.eup %5353  ;;  %v4765_v12 = vmul.f32 -1.442695, %v701_v8  ;;  %v1017_v13 = vpack.c.bf16 %v5352_v10, %v5348_v0  ;;  %5375 = vrcp.f32 %v880_v62  ;;  %v560_v17 = vpop.f32.mrb[12].mxu0 }
 0x1b4   : > { %v6651_v15 = vpop.eup %5355  ;;  %v6653_v18 = vpop.f32.mrb[12].mxu1 }
 0x1b5   : > { %v5358_v16 = vpop.eup %5357  ;;  %5377 = vpow2.f32 %v4765_v12  ;;  %5123 = vmatmul.mubr.bf16.vlgmr.msra.gmra.mrb[16].mxu1 %v1017_v13  ;;  %v1029_v19 = vpack.c.bf16 %v6651_v15, %v6649_v11  ;;  %v562_v22 = vpop.f32.mrb[13].mxu0 }
 0x1b6   : > { %v5360_v20 = vpop.eup %5359  ;;  %v858_v21 = vadd.f32 1.0, %v5358_v16  ;;  %5379 = vtanh.f32 %v560_v17  ;;  %v6657_v23 = vpop.f32.mrb[13].mxu1  ;;  %v702_v25 = vadd.f32 %v6621_v9, %v562_v22 }
 0x1b7   : > { %v5362_v24 = vpop.eup %5361  ;;  %v564_v26 = vpop.f32.mrb[14].mxu0  ;;  %5381 = vrcp.f32 %v881_v14  ;;  %v882_v27 = vadd.f32 1.0, %v5360_v20 }
 0x1b8   : > { %v6660_v28 = vpop.f32.mrb[14].mxu1  ;;  %v5364_v29 = vpop.eup %5363  ;;  %5383 = vrcp.f32 %v858_v21  ;;  %v859_v30 = vadd.f32 1.0, %v5362_v24  ;;  %v731_v31 = vpack.c.bf16 %v564_v26, %v560_v17  ;;  %v4766_v36 = vmul.f32 -1.442695, %v702_v25 }
 0x1b9   : > { %v566_v32 = vpop.f32.mrb[15].mxu0  ;;  %v743_v33 = vpack.c.bf16 %v6660_v28, %v6653_v18  ;;  %v6664_v34 = vpop.f32.mrb[15].mxu1  ;;  %5385 = vtanh.f32 %v564_v26  ;;  %v725_v21 = vadd.f32 %v6621_v9, %v6646_v2 }
 0x1ba   : > { %v5366_v35 = vpop.eup %5365  ;;  %v703_v37 = vadd.f32 %v6621_v9, %v566_v32  ;;  %5387 = vrcp.f32 %v859_v30  ;;  %747 = vst [vmem:[#allocation2 + $0x18] sm:$0xff] %v731_v31 }
 0x1bb   : > { %v5368_v38 = vpop.eup %5367  ;;  %759 = vst [vmem:[#allocation2 + $0x78] sm:$0xff] %v743_v33  ;;  %5389 = vpow2.f32 %v4766_v36  ;;  %v883_v42 = vadd.f32 1.0, %v5366_v35  ;;  %v570_v46 = vpop.f32.mrb[16].mxu0  ;;  %v4789_v33 = vmul.f32 -1.442695, %v725_v21 }
 0x1bc   : > { %v5370_v39 = vpop.eup %5369  ;;  %952 = vst [vmem:[#allocation5] sm:$0xff] %v5368_v38  ;;  %v4767_v40 = vmul.f32 -1.442695, %v703_v37  ;;  %5391 = vrcp.f32 %v882_v27  ;;  %v572_v50 = vpop.f32.mrb[17].mxu0 }
 0x1bd   : > { %v5372_v43 = vpop.eup %5371  ;;  %v1018_v44 = vpack.c.bf16 %v5370_v39, %v5364_v29  ;;  %v704_v53 = vadd.f32 %v6621_v9, %v572_v50  ;;  %v574_v55 = vpop.f32.mrb[18].mxu0 }
 0x1be   : > { %v5374_v45 = vpop.eup %5373  ;;  %953 = vst [vmem:[#allocation5 + $0x8] sm:$0xff] %v5372_v43  ;;  %5393 = vpow2.f32 %v4767_v40  ;;  %v732_v60 = vpack.c.bf16 %v574_v55, %v570_v46  ;;  %v576_v61 = vpop.f32.mrb[19].mxu0 }
 0x1bf   : > { %v5376_v48 = vpop.eup %5375  ;;  %v860_v49 = vadd.f32 1.0, %v5374_v45  ;;  %5395 = vtanh.f32 %v570_v46  ;;  %5126 = vmatprep.mubr.bf16.mxu1 %v1018_v44  ;;  %v4768_v0 = vmul.f32 -1.442695, %v704_v53  ;;  %v705_v1 = vadd.f32 %v6621_v9, %v576_v61 }
 0x1c0   : > { %v5378_v52 = vpop.eup %5377  ;;  %976 = vst [vmem:[#allocation5 + $0xc0] sm:$0xff] %v5376_v48  ;;  %5397 = vrcp.f32 %v883_v42  ;;  %748 = vst [vmem:[#allocation2 + $0x20] sm:$0xff] %v732_v60 }
 0x1c1   : > { %v5380_v57 = vpop.eup %5379  ;;  %5399 = vrcp.f32 %v860_v49  ;;  %v861_v59 = vadd.f32 1.0, %v5378_v52  ;;  %v4769_v5 = vmul.f32 -1.442695, %v705_v1 }
 0x1c2   : > { %v5382_v62 = vpop.eup %5381  ;;  %5401 = vtanh.f32 %v574_v55 }
 0x1c3   : > { %v5384_v3 = vpop.eup %5383  ;;  %5403 = vrcp.f32 %v861_v59  ;;  %977 = vst [vmem:[#allocation5 + $0xc8] sm:$0xff] %v5382_v62  ;;  %v580_v10 = vpop.f32.mrb[20].mxu0 }
 0x1c4   : > { %v5386_v4 = vpop.eup %5385  ;;  %954 = vst [vmem:[#allocation5 + $0x10] sm:$0xff] %v5384_v3  ;;  %5405 = vpow2.f32 %v4768_v0  ;;  %v582_v14 = vpop.f32.mrb[21].mxu0 }
 0x1c5   : > { %v5388_v58 = vpop.eup %5387  ;;  %v1019_v7 = vpack.c.bf16 %v5386_v4, %v5380_v57  ;;  %5407 = vtanh.f32 %v6637_v54  ;;  %v706_v17 = vadd.f32 %v6621_v9, %v582_v14  ;;  %v584_v20 = vpop.f32.mrb[22].mxu0 }
 0x1c6   : > { %v5390_v8 = vpop.eup %5389  ;;  %955 = vst [vmem:[#allocation5 + $0x18] sm:$0xff] %v5388_v58  ;;  %5409 = vpow2.f32 %v4769_v5  ;;  %v733_v24 = vpack.c.bf16 %v584_v20, %v580_v10  ;;  %v586_v25 = vpop.f32.mrb[23].mxu0  ;;  %v726_v58 = vadd.f32 %v6621_v9, %v6657_v23 }
 0x1c7   : > { %v5392_v12 = vpop.eup %5391  ;;  %v862_v13 = vadd.f32 1.0, %v5390_v8  ;;  %5411 = vtanh.f32 %v580_v10  ;;  %5127 = vmatmul.mubr.bf16.gmra.mrb[20].mxu1 %v1019_v7  ;;  %v4770_v27 = vmul.f32 -1.442695, %v706_v17  ;;  %v707_v29 = vadd.f32 %v6621_v9, %v586_v25 }
 0x1c8   : > { %v5394_v16 = vpop.eup %5393  ;;  %978 = vst [vmem:[#allocation5 + $0xd0] sm:$0xff] %v5392_v12  ;;  %5413 = vpow2.f32 %v4788_v6  ;;  %749 = vst [vmem:[#allocation2 + $0x28] sm:$0xff] %v733_v24 }
 0x1c9   : > { %v5396_v22 = vpop.eup %5395  ;;  %5415 = vrcp.f32 %v862_v13  ;;  %v863_v54 = vadd.f32 1.0, %v5394_v16  ;;  %v4771_v32 = vmul.f32 -1.442695, %v707_v29 }
 0x1ca   : > { %v5398_v26 = vpop.eup %5397  ;;  %5417 = vtanh.f32 %v584_v20 }
 0x1cb   : > { %v5400_v30 = vpop.eup %5399  ;;  %5419 = vrcp.f32 %v863_v54  ;;  %979 = vst [vmem:[#allocation5 + $0xd8] sm:$0xff] %v5398_v26  ;;  %v590_v37 = vpop.f32.mrb[24].mxu0 }
 0x1cc   : > { %v5402_v31 = vpop.eup %5401  ;;  %956 = vst [vmem:[#allocation5 + $0x20] sm:$0xff] %v5400_v30  ;;  %5421 = vpow2.f32 %v4770_v27  ;;  %v592_v40 = vpop.f32.mrb[25].mxu0 }
 0x1cd   : > { %v5404_v2 = vpop.eup %5403  ;;  %v1020_v35 = vpack.c.bf16 %v5402_v31, %v5396_v22  ;;  %5423 = vtanh.f32 %v6642_v63  ;;  %v708_v43 = vadd.f32 %v6621_v9, %v592_v40  ;;  %v594_v44 = vpop.f32.mrb[26].mxu0  ;;  %v4790_v22 = vmul.f32 -1.442695, %v726_v58 }
 0x1ce   : > { %v5406_v36 = vpop.eup %5405  ;;  %957 = vst [vmem:[#allocation5 + $0x28] sm:$0xff] %v5404_v2  ;;  %5425 = vpow2.f32 %v4771_v32  ;;  %v734_v48 = vpack.c.bf16 %v594_v44, %v590_v37  ;;  %v596_v63 = vpop.f32.mrb[27].mxu0  ;;  %v727_v2 = vadd.f32 %v6621_v9, %v6664_v34 }
 0x1cf   : > { %v6677_v38 = vpop.eup %5407  ;;  %v864_v39 = vadd.f32 1.0, %v5406_v36  ;;  %5427 = vtanh.f32 %v590_v37  ;;  %5130 = vmatprep.mubr.bf16.mxu1 %v1020_v35  ;;  %v4772_v50 = vmul.f32 -1.442695, %v708_v43  ;;  %v709_v52 = vadd.f32 %v6621_v9, %v596_v63 }
 0x1d0   : > { %v5410_v42 = vpop.eup %5409  ;;  %5429 = vpow2.f32 %v4789_v33  ;;  %750 = vst [vmem:[#allocation2 + $0x30] sm:$0xff] %v734_v48  ;;  %v4791_v48 = vmul.f32 -1.442695, %v727_v2 }
 0x1d1   : > { %v5412_v45 = vpop.eup %5411  ;;  %5431 = vrcp.f32 %v864_v39  ;;  %v865_v46 = vadd.f32 1.0, %v5410_v42  ;;  %v4773_v57 = vmul.f32 -1.442695, %v709_v52 }
 0x1d2   : > { %v5414_v49 = vpop.eup %5413  ;;  %5433 = vtanh.f32 %v594_v44 }
 0x1d3   : > { %v5416_v53 = vpop.eup %5415  ;;  %5435 = vrcp.f32 %v865_v46  ;;  %v884_v55 = vadd.f32 1.0, %v5414_v49  ;;  %v600_v62 = vpop.f32.mrb[28].mxu0 }
 0x1d4   : > { %v5418_v56 = vpop.eup %5417  ;;  %958 = vst [vmem:[#allocation5 + $0x30] sm:$0xff] %v5416_v53  ;;  %5437 = vpow2.f32 %v4772_v50  ;;  %v602_v3 = vpop.f32.mrb[29].mxu0 }
 0x1d5   : > { %v5420_v59 = vpop.eup %5419  ;;  %v1021_v60 = vpack.c.bf16 %v5418_v56, %v5412_v45  ;;  %5439 = vrcp.f32 %v884_v55  ;;  %v710_v5 = vadd.f32 %v6621_v9, %v602_v3  ;;  %v604_v6 = vpop.f32.mrb[30].mxu0 }
 0x1d6   : > { %v5422_v61 = vpop.eup %5421  ;;  %959 = vst [vmem:[#allocation5 + $0x38] sm:$0xff] %v5420_v59  ;;  %5441 = vpow2.f32 %v4773_v57  ;;  %v735_v12 = vpack.c.bf16 %v604_v6, %v600_v62  ;;  %v606_v13 = vpop.f32.mrb[31].mxu0 }
 0x1d7   : > { %v6681_v0 = vpop.eup %5423  ;;  %v866_v1 = vadd.f32 1.0, %v5422_v61  ;;  %5443 = vtanh.f32 %v600_v62  ;;  %5131 = vmatmul.mubr.bf16.gmra.mrb[24].mxu1 %v1021_v60  ;;  %v4774_v16 = vmul.f32 -1.442695, %v710_v5  ;;  %v711_v17 = vadd.f32 %v6621_v9, %v606_v13 }
 0x1d8   : > { %v5426_v4 = vpop.eup %5425  ;;  %5445 = vtanh.f32 %v6653_v18  ;;  %v1030_v7 = vpack.c.bf16 %v6681_v0, %v6677_v38  ;;  %751 = vst [vmem:[#allocation2 + $0x38] sm:$0xff] %v735_v12 }
 0x1d9   : > { %v5428_v8 = vpop.eup %5427  ;;  %5447 = vrcp.f32 %v866_v1  ;;  %v867_v10 = vadd.f32 1.0, %v5426_v4  ;;  %v4775_v23 = vmul.f32 -1.442695, %v711_v17 }
 0x1da   : > { %v5430_v14 = vpop.eup %5429  ;;  %5449 = vtanh.f32 %v604_v6 }
 0x1db   : > { %v5432_v20 = vpop.eup %5431  ;;  %5451 = vrcp.f32 %v867_v10  ;;  %v885_v18 = vadd.f32 1.0, %v5430_v14  ;;  %v610_v26 = vpop.f32.mrb[32].mxu0 }
 0x1dc   : > { %v5434_v21 = vpop.eup %5433  ;;  %960 = vst [vmem:[#allocation5 + $0x40] sm:$0xff] %v5432_v20  ;;  %5453 = vpow2.f32 %v4774_v16  ;;  %v612_v30 = vpop.f32.mrb[33].mxu0 }
 0x1dd   : > { %v5436_v54 = vpop.eup %5435  ;;  %v1022_v24 = vpack.c.bf16 %v5434_v21, %v5428_v8  ;;  %5455 = vrcp.f32 %v885_v18  ;;  %v712_v32 = vadd.f32 %v6621_v9, %v612_v30  ;;  %v614_v33 = vpop.f32.mrb[34].mxu0 }
 0x1de   : > { %v5438_v25 = vpop.eup %5437  ;;  %961 = vst [vmem:[#allocation5 + $0x48] sm:$0xff] %v5436_v54  ;;  %5457 = vpow2.f32 %v4775_v23  ;;  %v736_v37 = vpack.c.bf16 %v614_v33, %v610_v26  ;;  %v616_v39 = vpop.f32.mrb[35].mxu0 }
 0x1df   : > { %v5440_v27 = vpop.eup %5439  ;;  %v868_v29 = vadd.f32 1.0, %v5438_v25  ;;  %5459 = vtanh.f32 %v610_v26  ;;  %5134 = vmatprep.mubr.bf16.mxu1 %v1022_v24  ;;  %v4776_v42 = vmul.f32 -1.442695, %v712_v32  ;;  %v713_v43 = vadd.f32 %v6621_v9, %v616_v39 }
 0x1e0   : > { %v5442_v31 = vpop.eup %5441  ;;  %980 = vst [vmem:[#allocation5 + $0xe0] sm:$0xff] %v5440_v27  ;;  %5461 = vpow2.f32 %v4790_v22  ;;  %752 = vst [vmem:[#allocation2 + $0x40] sm:$0xff] %v736_v37 }
 0x1e1   : > { %v5444_v35 = vpop.eup %5443  ;;  %5463 = vrcp.f32 %v868_v29  ;;  %v869_v36 = vadd.f32 1.0, %v5442_v31  ;;  %v4777_v46 = vmul.f32 -1.442695, %v713_v43 }
 0x1e2   : > { %v6693_v40 = vpop.eup %5445  ;;  %5465 = vtanh.f32 %v614_v33 }
 0x1e3   : > { %v5448_v44 = vpop.eup %5447  ;;  %5467 = vrcp.f32 %v869_v36  ;;  %v620_v50 = vpop.f32.mrb[36].mxu0 }
 0x1e4   : > { %v5450_v45 = vpop.eup %5449  ;;  %962 = vst [vmem:[#allocation5 + $0x50] sm:$0xff] %v5448_v44  ;;  %5469 = vpow2.f32 %v4776_v42  ;;  %v622_v55 = vpop.f32.mrb[37].mxu0 }
 0x1e5   : > { %v5452_v34 = vpop.eup %5451  ;;  %v1023_v63 = vpack.c.bf16 %v5450_v45, %v5444_v35  ;;  %5471 = vtanh.f32 %v6660_v28  ;;  %v714_v57 = vadd.f32 %v6621_v9, %v622_v55  ;;  %v624_v59 = vpop.f32.mrb[38].mxu0 }
 0x1e6   : > { %v5454_v49 = vpop.eup %5453  ;;  %963 = vst [vmem:[#allocation5 + $0x58] sm:$0xff] %v5452_v34  ;;  %5473 = vpow2.f32 %v4777_v46  ;;  %v737_v62 = vpack.c.bf16 %v624_v59, %v620_v50  ;;  %v626_v28 = vpop.f32.mrb[39].mxu0 }
 0x1e7   : > { %v5456_v52 = vpop.eup %5455  ;;  %v870_v53 = vadd.f32 1.0, %v5454_v49  ;;  %5475 = vtanh.f32 %v620_v50  ;;  %5135 = vmatmul.mubr.bf16.gmra.mrb[28].mxu1 %v1023_v63  ;;  %v4778_v3 = vmul.f32 -1.442695, %v714_v57  ;;  %v715_v4 = vadd.f32 %v6621_v9, %v626_v28 }
 0x1e8   : > { %v5458_v56 = vpop.eup %5457  ;;  %981 = vst [vmem:[#allocation5 + $0xe8] sm:$0xff] %v5456_v52  ;;  %5477 = vpow2.f32 %v4791_v48  ;;  %753 = vst [vmem:[#allocation2 + $0x48] sm:$0xff] %v737_v62 }
 0x1e9   : > { %v5460_v60 = vpop.eup %5459  ;;  %5479 = vrcp.f32 %v870_v53  ;;  %v871_v61 = vadd.f32 1.0, %v5458_v56  ;;  %v4779_v8 = vmul.f32 -1.442695, %v715_v4 }
 0x1ea   : > { %v5462_v1 = vpop.eup %5461  ;;  %5481 = vtanh.f32 %v624_v59 }
 0x1eb   : > { %v5464_v5 = vpop.eup %5463  ;;  %5483 = vrcp.f32 %v871_v61  ;;  %v886_v6 = vadd.f32 1.0, %v5462_v1  ;;  %v630_v14 = vpop.f32.mrb[40].mxu0 }
 0x1ec   : > { %v5466_v58 = vpop.eup %5465  ;;  %964 = vst [vmem:[#allocation5 + $0x60] sm:$0xff] %v5464_v5  ;;  %5485 = vpow2.f32 %v4778_v3  ;;  %v632_v20 = vpop.f32.mrb[41].mxu0 }
 0x1ed   : > { %v5468_v10 = vpop.eup %5467  ;;  %v1024_v12 = vpack.c.bf16 %v5466_v58, %v5460_v60  ;;  %5487 = vrcp.f32 %v886_v6  ;;  %v716_v21 = vadd.f32 %v6621_v9, %v632_v20  ;;  %v634_v23 = vpop.f32.mrb[42].mxu0 }
 0x1ee   : > { %v5470_v13 = vpop.eup %5469  ;;  %965 = vst [vmem:[#allocation5 + $0x68] sm:$0xff] %v5468_v10  ;;  %5489 = vpow2.f32 %v4779_v8  ;;  %v738_v25 = vpack.c.bf16 %v634_v23, %v630_v14  ;;  %v636_v26 = vpop.f32.mrb[43].mxu0 }
 0x1ef   : > { %v6699_v16 = vpop.eup %5471  ;;  %v872_v17 = vadd.f32 1.0, %v5470_v13  ;;  %5138 = vmatprep.mubr.bf16.mxu1 %v1024_v12  ;;  %5491 = vtanh.f32 %v630_v14  ;;  %v4780_v29 = vmul.f32 -1.442695, %v716_v21  ;;  %v717_v30 = vadd.f32 %v6621_v9, %v636_v26 }
 0x1f0   : > { %v5474_v18 = vpop.eup %5473  ;;  %v1031_v22 = vpack.c.bf16 %v6699_v16, %v6693_v40  ;;  %754 = vst [vmem:[#allocation2 + $0x50] sm:$0xff] %v738_v25 }
 0x1f1   : > { %v5476_v54 = vpop.eup %5475  ;;  %5493 = vrcp.f32 %v872_v17  ;;  %v873_v24 = vadd.f32 1.0, %v5474_v18  ;;  %v4781_v2 = vmul.f32 -1.442695, %v717_v30 }
 0x1f2   : > { %v5478_v27 = vpop.eup %5477  ;;  %5495 = vtanh.f32 %v634_v23 }
 0x1f3   : > { %v5480_v31 = vpop.eup %5479  ;;  %5497 = vrcp.f32 %v873_v24  ;;  %v887_v32 = vadd.f32 1.0, %v5478_v27  ;;  %v640_v39 = vpop.f32.mrb[44].mxu0 }
 0x1f4   : > { %v5482_v33 = vpop.eup %5481  ;;  %966 = vst [vmem:[#allocation5 + $0x70] sm:$0xff] %v5480_v31  ;;  %5499 = vpow2.f32 %v4780_v29  ;;  %v642_v44 = vpop.f32.mrb[45].mxu0 }
 0x1f5   : > { %v5484_v35 = vpop.eup %5483  ;;  %v1025_v36 = vpack.c.bf16 %v5482_v33, %v5476_v54  ;;  %5501 = vrcp.f32 %v887_v32  ;;  %v718_v46 = vadd.f32 %v6621_v9, %v642_v44  ;;  %v644_v48 = vpop.f32.mrb[46].mxu0 }
 0x1f6   : > { %v5486_v37 = vpop.eup %5485  ;;  %967 = vst [vmem:[#allocation5 + $0x78] sm:$0xff] %v5484_v35  ;;  %5503 = vpow2.f32 %v4781_v2  ;;  %v739_v63 = vpack.c.bf16 %v644_v48, %v640_v39  ;;  %v646_v49 = vpop.f32.mrb[47].mxu0 }
 0x1f7   : > { %v5488_v42 = vpop.eup %5487  ;;  %v874_v43 = vadd.f32 1.0, %v5486_v37  ;;  %5139 = vmatmul.mubr.bf16.gmra.mrb[32].mxu1 %v1025_v36  ;;  %5505 = vtanh.f32 %v640_v39  ;;  %v4782_v52 = vmul.f32 -1.442695, %v718_v46  ;;  %v719_v53 = vadd.f32 %v6621_v9, %v646_v49 }
 0x1f8   : > { %v5490_v45 = vpop.eup %5489  ;;  %982 = vst [vmem:[#allocation5 + $0xf0] sm:$0xff] %v5488_v42  ;;  %755 = vst [vmem:[#allocation2 + $0x58] sm:$0xff] %v739_v63 }
 0x1f9   : > { %5507 = vrcp.f32 %v874_v43  ;;  %v875_v34 = vadd.f32 1.0, %v5490_v45  ;;  %v5492_v50 = vpop.eup %5491  ;;  %v4783_v57 = vmul.f32 -1.442695, %v719_v53 }
 0x1fa   : > { %5509 = vtanh.f32 %v644_v48 }
 0x1fb   : > { %v5494_v55 = vpop.eup %5493  ;;  %5511 = vrcp.f32 %v875_v34 }
 0x1fc   : > { %v5496_v56 = vpop.eup %5495  ;;  %968 = vst [vmem:[#allocation5 + $0x80] sm:$0xff] %v5494_v55  ;;  %5513 = vpow2.f32 %v4782_v52 }
 0x1fd   : > { %v5498_v59 = vpop.eup %5497  ;;  %v1026_v60 = vpack.c.bf16 %v5496_v56, %v5492_v50  ;;  %5515 = vpow2.f32 %v4783_v57 }
 0x1fe   : > { %v5500_v61 = vpop.eup %5499  ;;  %969 = vst [vmem:[#allocation5 + $0x88] sm:$0xff] %v5498_v59 }
 0x1ff   : > { %v5502_v62 = vpop.eup %5501  ;;  %v876_v28 = vadd.f32 1.0, %v5500_v61  ;;  %5142 = vmatprep.mubr.bf16.mxu1 %v1026_v60 }
 0x200   : > { %v5504_v1 = vpop.eup %5503  ;;  %983 = vst [vmem:[#allocation5 + $0xf8] sm:$0xff] %v5502_v62 }
 0x201   : > { %5517 = vrcp.f32 %v876_v28  ;;  %v877_v3 = vadd.f32 1.0, %v5504_v1  ;;  %v5506_v9 = vpop.eup %5505 }
 0x203   : > { %v5508_v4 = vpop.eup %5507  ;;  %5519 = vrcp.f32 %v877_v3 }
 0x204   : > { %v5510_v5 = vpop.eup %5509  ;;  %970 = vst [vmem:[#allocation5 + $0x90] sm:$0xff] %v5508_v4 }
 0x205   : > { %v5512_v6 = vpop.eup %5511  ;;  %v1027_v58 = vpack.c.bf16 %v5510_v5, %v5506_v9 }
 0x206   : > { %v5514_v8 = vpop.eup %5513  ;;  %971 = vst [vmem:[#allocation5 + $0x98] sm:$0xff] %v5512_v6 }
 0x207   : > { %v878_v10 = vadd.f32 1.0, %v5514_v8  ;;  %5143 = vmatmul.mubr.bf16.gmra.mrb[36].mxu1 %v1027_v58  ;;  %v5516_v12 = vpop.eup %5515 }
 0x208   : > { %5146 = vmatprep.mubr.bf16.mxu1 %v1028_v51  ;;  %v879_v13 = vadd.f32 1.0, %v5516_v12 }
 0x209   : > { %5521 = vrcp.f32 %v878_v10 }
 0x20a   : > { %5523 = vrcp.f32 %v879_v13 }
 0x20b   : > { %v5518_v14 = vpop.eup %5517 }
 0x20c   : > { %972 = vst [vmem:[#allocation5 + $0xa0] sm:$0xff] %v5518_v14 }
 0x20d   : > { %v5520_v17 = vpop.eup %5519 }
 0x20e   : > { %973 = vst [vmem:[#allocation5 + $0xa8] sm:$0xff] %v5520_v17 }
 0x20f   : > { %5147 = vmatmul.mubr.bf16.gmra.mrb[40].mxu1 %v1029_v19 }
 0x210   : > { %5150 = vmatprep.mubr.bf16.mxu1 %v1030_v7 }
 0x213   : > { %v5522_v20 = vpop.eup %5521 }
 0x214   : > { %974 = vst [vmem:[#allocation5 + $0xb0] sm:$0xff] %v5522_v20  ;;  %v5524_v18 = vpop.eup %5523 }
 0x215   : > { %975 = vst [vmem:[#allocation5 + $0xb8] sm:$0xff] %v5524_v18 }
 0x217   : > { %5151 = vmatmul.mubr.bf16.gmra.mrb[44].mxu1 %v1031_v22 }
 0x288   : > { %v5124_v41 = vpop.f32.mrb[16].mxu1 }
 0x289   : > { %1260 = vst.msk [vmem:[#allocation3 + $0x10] sm:$0xff] %vm1257_vm0, %v5124_v41  ;;  %1326 = vrot.lane.b32.xlu1 %v5124_v41, %s6224_s24  ;;  %v1130_v47 = vpop.f32.mrb[17].mxu1 }
 0x28a   : > { %1258 = vst.msk [vmem:[#allocation3] sm:$0xff] %vm1257_vm0, %v1130_v47  ;;  %1322 = vrot.lane.b32.xlu0 %v1130_v47, %s6224_s24  ;;  %v5125_v51 = vpop.f32.mrb[18].mxu1 }
 0x28b   : > { %1261 = vst.msk [vmem:[#allocation3 + $0x18] sm:$0xff] %vm1257_vm0, %v5125_v51  ;;  %v1133_v11 = vpop.f32.mrb[19].mxu1 }
 0x28c   : > { %1259 = vst.msk [vmem:[#allocation3 + $0x8] sm:$0xff] %vm1257_vm0, %v1133_v11 }
 0x28d   : > { %1328 = vrot.lane.b32.xlu1 %v5125_v51, %s6224_s24 }
 0x28e   : > { %1324 = vrot.lane.b32.xlu0 %v1133_v11, %s6224_s24 }
 0x29a   : > { %v5128_v15 = vpop.f32.mrb[20].mxu1 }
 0x29b   : > { %1264 = vst.msk [vmem:[#allocation3 + $0x30] sm:$0xff] %vm1257_vm0, %v5128_v15  ;;  %1334 = vrot.lane.b32.xlu0 %v5128_v15, %s6224_s24  ;;  %v1146_v19 = vpop.f32.mrb[21].mxu1 }
 0x29c   : > { %1262 = vst.msk [vmem:[#allocation3 + $0x20] sm:$0xff] %vm1257_vm0, %v1146_v19  ;;  %v5129_v38 = vpop.f32.mrb[22].mxu1 }
 0x29d   : > { %1265 = vst.msk [vmem:[#allocation3 + $0x38] sm:$0xff] %vm1257_vm0, %v5129_v38  ;;  %1336 = vrot.lane.b32.xlu1 %v5129_v38, %s6224_s24  ;;  %v1149_v0 = vpop.f32.mrb[23].mxu1 }
 0x29e   : > { %1263 = vst.msk [vmem:[#allocation3 + $0x28] sm:$0xff] %vm1257_vm0, %v1149_v0 }
 0x29f   : > { %1330 = vrot.lane.b32.xlu0 %v1146_v19, %s6224_s24 }
 0x2a1   : > { %1332 = vrot.lane.b32.xlu1 %v1149_v0, %s6224_s24 }
 0x2aa   : > { %v5132_v7 = vpop.f32.mrb[24].mxu1 }
 0x2ab   : > { %1268 = vst.msk [vmem:[#allocation3 + $0x50] sm:$0xff] %vm1257_vm0, %v5132_v7  ;;  %1342 = vrot.lane.b32.xlu0 %v5132_v7, %s6224_s24  ;;  %v1162_v40 = vpop.f32.mrb[25].mxu1 }
 0x2ac   : > { %1266 = vst.msk [vmem:[#allocation3 + $0x40] sm:$0xff] %vm1257_vm0, %v1162_v40  ;;  %v5133_v16 = vpop.f32.mrb[26].mxu1 }
 0x2ad   : > { %1269 = vst.msk [vmem:[#allocation3 + $0x58] sm:$0xff] %vm1257_vm0, %v5133_v16  ;;  %v1165_v21 = vpop.f32.mrb[27].mxu1 }
 0x2ae   : > { %1267 = vst.msk [vmem:[#allocation3 + $0x48] sm:$0xff] %vm1257_vm0, %v1165_v21 }
 0x2af   : > { %1338 = vrot.lane.b32.xlu0 %v1162_v40, %s6224_s24 }
 0x2b3   : > { %1344 = vrot.lane.b32.xlu0 %v5133_v16, %s6224_s24 }
 0x2b7   : > { %1340 = vrot.lane.b32.xlu0 %v1165_v21, %s6224_s24 }
 0x2ba   : > { %v5136_v23 = vpop.f32.mrb[28].mxu1 }
 0x2bb   : > { %1272 = vst.msk [vmem:[#allocation3 + $0x70] sm:$0xff] %vm1257_vm0, %v5136_v23  ;;  %1350 = vrot.lane.b32.xlu0 %v5136_v23, %s6224_s24  ;;  %v1178_v22 = vpop.f32.mrb[29].mxu1 }
 0x2bc   : > { %1270 = vst.msk [vmem:[#allocation3 + $0x60] sm:$0xff] %vm1257_vm0, %v1178_v22  ;;  %v5137_v54 = vpop.f32.mrb[30].mxu1 }
 0x2bd   : > { %1273 = vst.msk [vmem:[#allocation3 + $0x78] sm:$0xff] %vm1257_vm0, %v5137_v54  ;;  %v1181_v24 = vpop.f32.mrb[31].mxu1 }
 0x2be   : > { %1271 = vst.msk [vmem:[#allocation3 + $0x68] sm:$0xff] %vm1257_vm0, %v1181_v24 }
 0x2bf   : > { %1346 = vrot.lane.b32.xlu0 %v1178_v22, %s6224_s24 }
 0x2c3   : > { %1352 = vrot.lane.b32.xlu0 %v5137_v54, %s6224_s24 }
 0x2c7   : > { %1348 = vrot.lane.b32.xlu0 %v1181_v24, %s6224_s24 }
 0x2ca   : > { %v5140_v25 = vpop.f32.mrb[32].mxu1 }
 0x2cb   : > { %1276 = vst.msk [vmem:[#allocation3 + $0x90] sm:$0xff] %vm1257_vm0, %v5140_v25  ;;  %1358 = vrot.lane.b32.xlu0 %v5140_v25, %s6224_s24  ;;  %v1194_v26 = vpop.f32.mrb[33].mxu1 }
 0x2cc   : > { %1274 = vst.msk [vmem:[#allocation3 + $0x80] sm:$0xff] %vm1257_vm0, %v1194_v26  ;;  %v5141_v27 = vpop.f32.mrb[34].mxu1 }
 0x2cd   : > { %1277 = vst.msk [vmem:[#allocation3 + $0x98] sm:$0xff] %vm1257_vm0, %v5141_v27  ;;  %1360 = vrot.lane.b32.xlu1 %v5141_v27, %s6224_s24  ;;  %v1197_v29 = vpop.f32.mrb[35].mxu1 }
 0x2ce   : > { %1275 = vst.msk [vmem:[#allocation3 + $0x88] sm:$0xff] %vm1257_vm0, %v1197_v29 }
 0x2cf   : > { %1354 = vrot.lane.b32.xlu0 %v1194_v26, %s6224_s24 }
 0x2d1   : > { %1356 = vrot.lane.b32.xlu1 %v1197_v29, %s6224_s24 }
 0x2da   : > { %v5144_v30 = vpop.f32.mrb[36].mxu1 }
 0x2db   : > { %1280 = vst.msk [vmem:[#allocation3 + $0xb0] sm:$0xff] %vm1257_vm0, %v5144_v30  ;;  %1366 = vrot.lane.b32.xlu0 %v5144_v30, %s6224_s24  ;;  %v1210_v31 = vpop.f32.mrb[37].mxu1 }
 0x2dc   : > { %1278 = vst.msk [vmem:[#allocation3 + $0xa0] sm:$0xff] %vm1257_vm0, %v1210_v31  ;;  %v5145_v32 = vpop.f32.mrb[38].mxu1 }
 0x2dd   : > { %1281 = vst.msk [vmem:[#allocation3 + $0xb8] sm:$0xff] %vm1257_vm0, %v5145_v32  ;;  %1368 = vrot.lane.b32.xlu1 %v5145_v32, %s6224_s24  ;;  %v1213_v33 = vpop.f32.mrb[39].mxu1 }
 0x2de   : > { %1279 = vst.msk [vmem:[#allocation3 + $0xa8] sm:$0xff] %vm1257_vm0, %v1213_v33 }
 0x2df   : > { %1362 = vrot.lane.b32.xlu0 %v1210_v31, %s6224_s24 }
 0x2e1   : > { %1364 = vrot.lane.b32.xlu1 %v1213_v33, %s6224_s24 }
 0x2e2   : > { %v5148_v2 = vpop.f32.mrb[40].mxu1 }
 0x2e3   : > { %1284 = vst.msk [vmem:[#allocation3 + $0xd0] sm:$0xff] %vm1257_vm0, %v5148_v2  ;;  %v1226_v35 = vpop.f32.mrb[41].mxu1 }
 0x2e4   : > { %1282 = vst.msk [vmem:[#allocation3 + $0xc0] sm:$0xff] %vm1257_vm0, %v1226_v35  ;;  %v5149_v36 = vpop.f32.mrb[42].mxu1 }
 0x2e5   : > { %1285 = vst.msk [vmem:[#allocation3 + $0xd8] sm:$0xff] %vm1257_vm0, %v5149_v36  ;;  %1374 = vrot.lane.b32.xlu1 %v5148_v2, %s6224_s24  ;;  %v1229_v37 = vpop.f32.mrb[43].mxu1 }
 0x2e6   : > { %1283 = vst.msk [vmem:[#allocation3 + $0xc8] sm:$0xff] %vm1257_vm0, %v1229_v37 }
 0x2e9   : > { %1370 = vrot.lane.b32.xlu1 %v1226_v35, %s6224_s24 }
 0x2ea   : > { %v5152_v39 = vpop.f32.mrb[44].mxu1 }
 0x2eb   : > { %1288 = vst.msk [vmem:[#allocation3 + $0xf0] sm:$0xff] %vm1257_vm0, %v5152_v39  ;;  %v1242_v42 = vpop.f32.mrb[45].mxu1 }
 0x2ec   : > { %1286 = vst.msk [vmem:[#allocation3 + $0xe0] sm:$0xff] %vm1257_vm0, %v1242_v42  ;;  %v5153_v43 = vpop.f32.mrb[46].mxu1 }
 0x2ed   : > { %1376 = vrot.lane.b32.xlu1 %v5149_v36, %s6224_s24  ;;  %1289 = vst.msk [vmem:[#allocation3 + $0xf8] sm:$0xff] %vm1257_vm0, %v5153_v43  ;;  %v1245_v44 = vpop.f32.mrb[47].mxu1 }
 0x2ee   : > { %1287 = vst.msk [vmem:[#allocation3 + $0xe8] sm:$0xff] %vm1257_vm0, %v1245_v44 }
 0x2f1   : > { %1372 = vrot.lane.b32.xlu1 %v1229_v37, %s6224_s24 }
 0x2f5   : > { %1382 = vrot.lane.b32.xlu1 %v5152_v39, %s6224_s24 }
 0x2f9   : > { %1378 = vrot.lane.b32.xlu1 %v1242_v42, %s6224_s24 }
 0x2fb   : > { %v1327_v48 = vpop.permute.xlu1 %1326 }
 0x2fc   : > { %v1323_v45 = vpop.permute.xlu0 %1322 }
 0x2fd   : > { %1384 = vrot.lane.b32.xlu1 %v5153_v43, %s6224_s24  ;;  %1418 = vxpose.xlu0.b32.start [1/16] (narrow) %v1323_v45, 8 }
 0x2ff   : > { %v1329_v34 = vpop.permute.xlu1 %1328 }
 0x300   : > { %v1325_v46 = vpop.permute.xlu0 %1324 }
 0x301   : > { %1380 = vrot.lane.b32.xlu1 %v1245_v44, %s6224_s24  ;;  %1419 = vxpose.xlu0.b32.cont [2/16] (narrow) %v1325_v46, 8 }
 0x305   : > { %1420 = vxpose.xlu0.b32.cont [3/16] (narrow) %v1327_v48, 8 }
 0x309   : > { %1421 = vxpose.xlu0.b32.cont [4/16] (narrow) %v1329_v34, 8 }
 0x30d   : > { %v1335_v63 = vpop.permute.xlu0 %1334 }
 0x30f   : > { %v1337_v49 = vpop.permute.xlu1 %1336 }
 0x311   : > { %v1331_v50 = vpop.permute.xlu0 %1330 }
 0x312   : > { %1422 = vxpose.xlu0.b32.cont [5/16] (narrow) %v1331_v50, 8 }
 0x313   : > { %v1333_v52 = vpop.permute.xlu1 %1332 }
 0x316   : > { %1423 = vxpose.xlu0.b32.cont [6/16] (narrow) %v1333_v52, 8 }
 0x31a   : > { %1424 = vxpose.xlu0.b32.cont [7/16] (narrow) %v1335_v63, 8 }
 0x31d   : > { %v1343_v53 = vpop.permute.xlu0 %1342 }
 0x31e   : > { %1425 = vxpose.xlu0.b32.cont [8/16] (narrow) %v1337_v49, 8 }
 0x321   : > { %v1339_v55 = vpop.permute.xlu0 %1338 }
 0x322   : > { %1426 = vxpose.xlu0.b32.cont [9/16] (narrow) %v1339_v55, 8 }
 0x325   : > { %v1345_v56 = vpop.permute.xlu0 %1344 }
 0x329   : > { %v1341_v57 = vpop.permute.xlu0 %1340 }
 0x32a   : > { %1427 = vxpose.xlu0.b32.cont [10/16] (narrow) %v1341_v57, 8 }
 0x32d   : > { %v1351_v59 = vpop.permute.xlu0 %1350 }
 0x32e   : > { %1428 = vxpose.xlu0.b32.cont [11/16] (narrow) %v1343_v53, 8 }
 0x331   : > { %v1347_v60 = vpop.permute.xlu0 %1346 }
 0x332   : > { %1429 = vxpose.xlu0.b32.cont [12/16] (narrow) %v1345_v56, 8 }
 0x335   : > { %v1353_v61 = vpop.permute.xlu0 %1352 }
 0x336   : > { %1430 = vxpose.xlu0.b32.cont [13/16] (narrow) %v1347_v60, 8 }
 0x339   : > { %v1349_v62 = vpop.permute.xlu0 %1348 }
 0x33a   : > { %1431 = vxpose.xlu0.b32.cont [14/16] (narrow) %v1349_v62, 8 }
 0x33d   : > { %v1359_v28 = vpop.permute.xlu0 %1358 }
 0x33e   : > { %1432 = vxpose.xlu0.b32.cont [15/16] (narrow) %v1351_v59, 8 }
 0x33f   : > { %v1361_v1 = vpop.permute.xlu1 %1360 }
 0x341   : > { %v1355_v3 = vpop.permute.xlu0 %1354 }
 0x342   : > { %1433 = vxpose.xlu0.b32.end [16/16] (narrow) %v1353_v61, 8  ;;  %1450 = vxpose.xlu1.b32.start [1/16] (narrow) %v1355_v3, 8 }
 0x343   : > { %v1357_v9 = vpop.permute.xlu1 %1356 }
 0x346   : > { %1451 = vxpose.xlu1.b32.cont [2/16] (narrow) %v1357_v9, 8 }
 0x34a   : > { %1452 = vxpose.xlu1.b32.cont [3/16] (narrow) %v1359_v28, 8 }
 0x34d   : > { %v1367_v4 = vpop.permute.xlu0 %1366 }
 0x34e   : > { %1453 = vxpose.xlu1.b32.cont [4/16] (narrow) %v1361_v1, 8 }
 0x34f   : > { %v1369_v5 = vpop.permute.xlu1 %1368 }
 0x351   : > { %v1363_v6 = vpop.permute.xlu0 %1362 }
 0x352   : > { %1454 = vxpose.xlu1.b32.cont [5/16] (narrow) %v1363_v6, 8 }
 0x353   : > { %v1365_v58 = vpop.permute.xlu1 %1364 }
 0x356   : > { %1455 = vxpose.xlu1.b32.cont [6/16] (narrow) %v1365_v58, 8 }
 0x357   : > { %v1375_v8 = vpop.permute.xlu1 %1374 }
 0x35a   : > { %1456 = vxpose.xlu1.b32.cont [7/16] (narrow) %v1367_v4, 8 }
 0x35b   : > { %v1371_v10 = vpop.permute.xlu1 %1370 }
 0x35e   : > { %1457 = vxpose.xlu1.b32.cont [8/16] (narrow) %v1369_v5, 8 }
 0x35f   : > { %v1377_v12 = vpop.permute.xlu1 %1376 }
 0x362   : > { %1458 = vxpose.xlu1.b32.cont [9/16] (narrow) %v1371_v10, 8 }
 0x363   : > { %v1373_v13 = vpop.permute.xlu1 %1372 }
 0x366   : > { %1459 = vxpose.xlu1.b32.cont [10/16] (narrow) %v1373_v13, 8 }
 0x367   : > { %v1383_v14 = vpop.permute.xlu1 %1382 }
 0x36a   : > { %1460 = vxpose.xlu1.b32.cont [11/16] (narrow) %v1375_v8, 8 }
 0x36b   : > { %v1379_v17 = vpop.permute.xlu1 %1378 }
 0x36e   : > { %1461 = vxpose.xlu1.b32.cont [12/16] (narrow) %v1377_v12, 8 }
 0x36f   : > { %v1385_v20 = vpop.permute.xlu1 %1384 }
 0x372   : > { %1462 = vxpose.xlu1.b32.cont [13/16] (narrow) %v1379_v17, 8 }
 0x373   : > { %v1381_v18 = vpop.permute.xlu1 %1380 }
 0x376   : > { %1463 = vxpose.xlu1.b32.cont [14/16] (narrow) %v1381_v18, 8 }
 0x37a   : > { %1464 = vxpose.xlu1.b32.cont [15/16] (narrow) %v1383_v14, 8 }
 0x37e   : > { %1465 = vxpose.xlu1.b32.end [16/16] (narrow) %v1385_v20, 8 }
 0x386   : > { %v1434_v41 = vpop.trf.xlu0 }
 0x3c2   : > { %v1466_v47 = vpop.trf.xlu1 }
 0x3c3   : > { %v1484_v51 = vcombine.low %v1434_v41, %v1466_v47 }
 0x3c5   : > { %1486 = vst [vmem:[#allocation4] sm:$0xff] %v1484_v51 }
 0x3c6 PF: > { %s10068_s17 = sld [smem:[#allocation18_spill]]  ;;  %v6225_v11 = vmov 0   ;;  %v6226_v30 = vmov 1   ;;  %v1653_v31 = vlaneseq  ;;  %v1488_v33 = vld [vmem:[%s6533_s21] sm:$0xff]  ;;  %v1490_v2 = vld [vmem:[%s6533_s21 + $0x10] sm:$0xff]  ;;  %v1489_v35 = vld [vmem:[%s6533_s21 + $0x8] sm:$0xff] }
 0x3c7   : > { %5526 = vset.pattern.permute.xlu1 %v6225_v11  ;;  %5525 = vset.pattern.permute.xlu0 %v6225_v11  ;;  %vm1504_vm1 = vcmp.eq.bf16.partialorder %v1488_v33, 0  ;;  %v1491_v36 = vld [vmem:[%s6533_s21 + $0x18] sm:$0xff]  ;;  %vm1506_vm2 = vcmp.eq.bf16.partialorder %v1490_v2, 0  ;;  %v1492_v39 = vld [vmem:[%s6533_s21 + $0x20] sm:$0xff]  ;;  %vm1505_vm3 = vcmp.eq.bf16.partialorder %v1489_v35, 0  ;;  %v1493_v44 = vld [vmem:[%s6533_s21 + $0x28] sm:$0xff] }
 0x3c8   : > { %v1654_v32 = vshrl.u32 %v1653_v31, 7  ;;  %v1791_v45 = vsel %vm1504_vm1, 65537, %v6225_v11  ;;  %vm1507_vm4 = vcmp.eq.bf16.partialorder %v1491_v36, 0  ;;  %v1494_v46 = vld [vmem:[%s6533_s21 + $0x30] sm:$0xff]  ;;  %v1793_v48 = vsel %vm1506_vm2, 65537, %v6225_v11  ;;  %v1495_v34 = vld [vmem:[%s6533_s21 + $0x38] sm:$0xff] }
 0x3c9   : > { %vm1508_vm5 = vcmp.eq.bf16.partialorder %v1492_v39, 0  ;;  %v6840_v49 = vsel %vm1505_vm3, 65537, %v6225_v11  ;;  %vm1509_vm6 = vcmp.eq.bf16.partialorder %v1493_v44, 0  ;;  %v1807_v52 = vunpack.c.l.b16 %v1791_v45  ;;  %v1496_v55 = vld [vmem:[%s6533_s21 + $0x40] sm:$0xff]  ;;  %v1497_v60 = vld [vmem:[%s6533_s21 + $0x48] sm:$0xff]  ;;  %v1498_v61 = vld [vmem:[%s6533_s21 + $0x50] sm:$0xff] }
 0x3ca   : > { %v6826_v37 = vsub.s32 0, %v1654_v32  ;;  %v6829_v43 = vsub.s32 1, %v1654_v32  ;;  %v6846_v53 = vsel %vm1507_vm4, 65537, %v6225_v11  ;;  %vm1510_vm7 = vcmp.eq.bf16.partialorder %v1494_v46, 0  ;;  %v1499_v9 = vld [vmem:[%s6533_s21 + $0x58] sm:$0xff]  ;;  %v1500_v58 = vld [vmem:[%s6533_s21 + $0x60] sm:$0xff] }
 0x3cb   : > { %v1808_v56 = vunpack.c.h.b16 %v1791_v45  ;;  %v1811_v57 = vunpack.c.l.b16 %v1793_v48  ;;  %v6850_v59 = vsel %vm1508_vm5, 65537, %v6225_v11  ;;  %vm1511_vm8 = vcmp.eq.bf16.partialorder %v1495_v34, 0  ;;  %v1501_v8 = vld [vmem:[%s6533_s21 + $0x68] sm:$0xff]  ;;  %v1502_v20 = vld [vmem:[%s6533_s21 + $0x70] sm:$0xff]  ;;  %v1503_v18 = vld [vmem:[%s6533_s21 + $0x78] sm:$0xff]  ;;  %s6229_s21 = smov 96  }
 0x3cc   : > { %s6784_s20 = sshll.u32 %s10068_s17, 7  ;;  %10069 = vst [vmem:[#allocation25_spill] sm:$0xff] %v6826_v37  ;;  %v1571_v42 = vld [vmem:[#allocation4] ss:$4 sm:$0x3]  ;;  %10070 = vst [vmem:[#allocation26_spill] sm:$0xff] %v6829_v43  ;;  %v1812_v62 = vunpack.c.h.b16 %v1793_v48  ;;  %v1809_v28 = vunpack.c.l.b16 %v6840_v49  ;;  %v1810_v1 = vunpack.c.h.b16 %v6840_v49  ;;  %v1813_v4 = vunpack.c.l.b16 %v6846_v53 }
 0x3cd   : > { %s6789_s16 = scalar_lea.vmem [#allocation3], %s6784_s20  ;;  %v6837_v63 = vrot.slane %v1571_v42, %v6826_v37  ;;  %v6843_v50 = vrot.slane %v1571_v42, %v6829_v43  ;;  %v6857_v3 = vsel %vm1509_vm6, 65537, %v6225_v11  ;;  %v1814_v5 = vunpack.c.h.b16 %v6846_v53  ;;  %v2103_v36 = vld [vmem:[#allocation2 + $0x40] sm:$0xff]  ;;  %v2104_v42 = vld [vmem:[#allocation2 + $0x48] sm:$0xff]  ;;  %v2097_v53 = vld [vmem:[#allocation2 + $0x10] sm:$0xff]  ;;  %s6230_s14 = smov 64  }
 0x3ce   : > { %v1540_v15 = vld [vmem:[%s6789_s16 + $0x10] sm:$0xff]  ;;  %v1538_v19 = vld [vmem:[%s6789_s16] sm:$0xff]  ;;  %v1541_v38 = vld [vmem:[%s6789_s16 + $0x18] sm:$0xff]  ;;  %v6863_v6 = vsel %vm1510_vm7, 65537, %v6225_v11  ;;  %vm1512_vm9 = vcmp.eq.bf16.partialorder %v1496_v55, 0  ;;  %v1815_v10 = vunpack.c.l.b16 %v6850_v59  ;;  %v6869_v12 = vsel %vm1511_vm8, 65537, %v6225_v11  ;;  %4850 = vmatprep.subr.bf16.mxu0 %v2103_v36  ;;  %s9381_s4 = scalar_lea.vmem %s6523_s27, %s6784_s20 [#allocation6] }
 0x3cf   : > { %1584 = vperm.xlu1 %5526, %v1540_v15   ;;  %1574 = vperm.xlu0 %5525, %v1538_v19   ;;  %v1539_v0 = vld [vmem:[%s6789_s16 + $0x8] sm:$0xff]  ;;  %v1542_v40 = vld [vmem:[%s6789_s16 + $0x20] sm:$0xff]  ;;  %v1545_v16 = vld [vmem:[%s6789_s16 + $0x38] sm:$0xff]  ;;  %vm1513_vm10 = vcmp.eq.bf16.partialorder %v1497_v60, 0  ;;  %vm1514_vm11 = vcmp.eq.bf16.partialorder %v1498_v61, 0  ;;  %v1816_v13 = vunpack.c.h.b16 %v6850_v59  ;;  %v1817_v14 = vunpack.c.l.b16 %v6857_v3  ;;  %s6231_s2 = smov 32  }
 0x3d0   : > { %v1543_v7 = vld [vmem:[%s6789_s16 + $0x28] sm:$0xff]  ;;  %v1544_v21 = vld [vmem:[%s6789_s16 + $0x30] sm:$0xff]  ;;  %v1546_v22 = vld [vmem:[%s6789_s16 + $0x40] sm:$0xff]  ;;  %v1818_v17 = vunpack.c.h.b16 %v6857_v3  ;;  %vm1515_vm12 = vcmp.eq.bf16.partialorder %v1499_v9, 0  ;;  %v1819_v41 = vunpack.c.l.b16 %v6863_v6  ;;  %v6878_v47 = vsel %vm1512_vm9, 65537, %v6225_v11  ;;  %s9365_s19 = scalar_lea.vmem [#allocation5], %s6784_s20 }
 0x3d1   : > { %v1547_v23 = vld [vmem:[%s6789_s16 + $0x48] sm:$0xff]  ;;  %v6802_v54 = vld [vmem:[%s6789_s16 + $0x58] sm:$0xff]  ;;  %v1548_v24 = vld [vmem:[%s6789_s16 + $0x50] sm:$0xff]  ;;  %vm1516_vm13 = vcmp.eq.bf16.partialorder %v1500_v58, 0  ;;  %vm1517_vm14 = vcmp.eq.bf16.partialorder %v1501_v8, 0  ;;  %v1820_v51 = vunpack.c.h.b16 %v6863_v6  ;;  %vm6888_vm15 = vcmp.ne.s32.totalorder %v1807_v52, 0 }
 0x3d2   : > { %v6807_v25 = vld [vmem:[%s6789_s16 + $0x68] sm:$0xff]  ;;  %v6810_v26 = vld [vmem:[%s6789_s16 + $0x60] sm:$0xff]  ;;  %v6815_v27 = vld [vmem:[%s6789_s16 + $0x78] sm:$0xff]  ;;  %vm6892_vm0 = vcmp.ne.s32.totalorder %v1808_v56, 0  ;;  %vm6896_vm1 = vcmp.ne.s32.totalorder %v1811_v57, 0  ;;  %vm6900_vm2 = vcmp.ne.s32.totalorder %v1812_v62, 0 }
 0x3d3   : > { %1589 = vperm.xlu1 %5526, %v1541_v38   ;;  %1579 = vperm.xlu0 %5525, %v1539_v0   ;;  %v6818_v29 = vld [vmem:[%s6789_s16 + $0x70] sm:$0xff]  ;;  %vm1518_vm3 = vcmp.eq.bf16.partialorder %v1502_v20, 0  ;;  %vm1519_vm4 = vcmp.eq.bf16.partialorder %v1503_v18, 0  ;;  %v6917_v31 = vsel %vm1517_vm14, 65537, %v6225_v11  ;;  %v2095_v39 = vld [vmem:[#allocation2] sm:$0xff]  ;;  %v2096_v58 = vld [vmem:[#allocation2 + $0x8] sm:$0xff] }
 0x3d4   : > { %v6926_v46 = vsel %vm1518_vm3, 65537, %v6225_v11  ;;  %v6929_v48 = vsel %vm1519_vm4, 65537, %v6225_v11  ;;  %4851 = vmatpush3.bf16.msra.mxu0 %v2095_v39  ;;  %v2105_v60 = vld [vmem:[#allocation2 + $0x50] sm:$0xff]  ;;  %vm6945_vm7 = vcmp.ne.s32.totalorder %v1809_v28, 0  ;;  %vm6951_vm8 = vcmp.ne.s32.totalorder %v1810_v1, 0  ;;  %s10576_s11 = sld [smem:[#allocation135_spill]] }
 0x3d5   : > { %4852 = vmatprep.subr.bf16.mxu0 %v2104_v42  ;;  %v10086_v42 = vmov 0  ;;  %v10089_v8 = vmov 0  ;;  %v10092_v49 = vmov 0  ;;  %vm6999_vm14 = vcmp.ne.s32.totalorder %v1816_v13, 0  ;;  %s10579_s13 = sld [smem:[#allocation19_spill]]  ;;  %s4819_s12 = sshll.u32 %s10068_s17, 4 }
 0x3d6   : > { %v10087_v42 = vsel %vm6951_vm8, 4294967295, %v10086_v42  ;;  %vm7017_vm4 = vcmp.ne.s32.totalorder %v1817_v14, 0  ;;  %vm7023_vm3 = vcmp.ne.s32.totalorder %v1818_v17, 0  ;;  %v10113_v14 = vmov 0  ;;  %s4596_s9 = sshll.u32 %s6543_s10, 4  ;;  %s9722_s9 = int_to_ptr.vmem [resolvable:$true] %s4596_s9 }
 0x3d7   : > { %1599 = vperm.xlu1 %5526, %v1543_v7   ;;  %1594 = vperm.xlu0 %5525, %v1542_v40   ;;  %10088 = vst [vmem:[#allocation32_spill] sm:$0xff] %v10087_v42  ;;  %v10116_v3 = vmov 0 }
 0x3d8   : > { %4853 = vmatpush3.bf16.msra.mxu0 %v2096_v58 }
 0x3d9   : > { %4854 = vmatprep.subr.bf16.mxu0 %v2105_v60 }
 0x3db   : > { %1609 = vperm.xlu1 %5526, %v1545_v16   ;;  %1604 = vperm.xlu0 %5525, %v1544_v21   ;;  %s4820_s5 = sshll.u32 %s10579_s13, 5 }
 0x3dc   : > { %4855 = vmatpush3.bf16.msra.mxu0 %v2097_v53  ;;  %v10105_v53 = vmov 0  ;;  %s4593_s8 = sadd.s32 %s4820_s5, %s4819_s12 }
 0x3dd   : > { %v10106_v53 = vsel %vm7017_vm4, 4294967295, %v10105_v53  ;;  %s4821_s24 = sshll.u32 %s4593_s8, 7 }
 0x3de   : > { %10107 = vst [vmem:[#allocation41_spill] sm:$0xff] %v10106_v53 }
 0x3df   : > { %1619 = vperm.xlu1 %5526, %v1547_v23   ;;  %1614 = vperm.xlu0 %5525, %v1546_v22  }
 0x3e3   : > { %1629 = vperm.xlu1 %5526, %v6802_v54   ;;  %1624 = vperm.xlu0 %5525, %v1548_v24  }
 0x3e7   : > { %1639 = vperm.xlu1 %5526, %v6807_v25   ;;  %1634 = vperm.xlu0 %5525, %v6810_v26  }
 0x3eb   : > { %1649 = vperm.xlu1 %5526, %v6815_v27   ;;  %1644 = vperm.xlu0 %5525, %v6818_v29  }
 0x3ef   : > { %5527 = vset.pattern.permute.xlu1 %v6226_v30  ;;  %5528 = vset.pattern.permute.xlu0 %v6226_v30  ;;  %v6913_v30 = vsel %vm1516_vm13, 65537, %v6225_v11  ;;  %vm6973_vm13 = vcmp.ne.s32.totalorder %v1815_v10, 0 }
 0x3f0   : > { %2259 = vperm.xlu1 %5527, %v1538_v19   ;;  %2263 = vperm.xlu0 %5528, %v1539_v0   ;;  %v6883_v19 = vsel %vm1513_vm10, 65537, %v6225_v11  ;;  %v10071_v0 = vmov 0 }
 0x3f1   : > { %v10072_v0 = vsel %vm6888_vm15, 4294967295, %v10071_v0 }
 0x3f2   : > { %10073 = vst [vmem:[#allocation27_spill] sm:$0xff] %v10072_v0 }
 0x3f4   : > { %2267 = vperm.xlu1 %5527, %v1540_v15   ;;  %2299 = vperm.xlu0 %5528, %v1548_v24   ;;  %v1821_v15 = vunpack.c.l.b16 %v6869_v12  ;;  %v1824_v24 = vunpack.c.h.b16 %v6878_v47 }
 0x3f8   : > { %2271 = vperm.xlu1 %5527, %v1541_v38   ;;  %v6886_v38 = vsel %vm1514_vm11, 65537, %v6225_v11  ;;  %vm6957_vm11 = vcmp.ne.s32.totalorder %v1813_v4, 0  ;;  %v10095_v4 = vmov 0 }
 0x3f9   : > { %v10090_v8 = vsel %vm6957_vm11, 4294967295, %v10089_v8  ;;  %v10096_v4 = vsel %vm6973_vm13, 4294967295, %v10095_v4 }
 0x3fa   : > { %10091 = vst [vmem:[#allocation33_spill] sm:$0xff] %v10090_v8  ;;  %10097 = vst [vmem:[#allocation35_spill] sm:$0xff] %v10096_v4 }
 0x3fc   : > { %2275 = vperm.xlu1 %5527, %v1542_v40   ;;  %v10077_v40 = vmov 0 }
 0x3fd   : > { %v10078_v40 = vsel %vm6896_vm1, 4294967295, %v10077_v40 }
 0x3fe   : > { %10079 = vst [vmem:[#allocation29_spill] sm:$0xff] %v10078_v40 }
 0x400   : > { %2279 = vperm.xlu1 %5527, %v1543_v7   ;;  %v10074_v7 = vmov 0 }
 0x401   : > { %v10075_v7 = vsel %vm6892_vm0, 4294967295, %v10074_v7 }
 0x402   : > { %10076 = vst [vmem:[#allocation28_spill] sm:$0xff] %v10075_v7 }
 0x404   : > { %2283 = vperm.xlu1 %5527, %v1544_v21   ;;  %v1822_v21 = vunpack.c.h.b16 %v6869_v12 }
 0x408   : > { %2287 = vperm.xlu1 %5527, %v1545_v16   ;;  %v10080_v16 = vmov 0 }
 0x409   : > { %v10081_v16 = vsel %vm6900_vm2, 4294967295, %v10080_v16 }
 0x40a   : > { %10082 = vst [vmem:[#allocation30_spill] sm:$0xff] %v10081_v16 }
 0x40c   : > { %2291 = vperm.xlu1 %5527, %v1546_v22   ;;  %v1823_v22 = vunpack.c.l.b16 %v6878_v47 }
 0x410   : > { %2295 = vperm.xlu1 %5527, %v1547_v23   ;;  %v6907_v23 = vsel %vm1515_vm12, 65537, %v6225_v11  ;;  %vm6963_vm12 = vcmp.ne.s32.totalorder %v1814_v5, 0 }
 0x411   : > { %v10093_v49 = vsel %vm6963_vm12, 4294967295, %v10092_v49 }
 0x412   : > { %10094 = vst [vmem:[#allocation34_spill] sm:$0xff] %v10093_v49 }
 0x44e   : > { %v1585_v34 = vpop.permute.xlu1 %1584  ;;  %v1575_v52 = vpop.permute.xlu0 %1574 }
 0x44f   : > { %v1667_v61 = vadd.f32 %v6837_v63, %v1585_v34  ;;  %v1668_v62 = vadd.f32 %v6843_v50, %v1585_v34  ;;  %v1663_v9 = vadd.f32 %v6837_v63, %v1575_v52  ;;  %v1664_v11 = vadd.f32 %v6843_v50, %v1575_v52 }
 0x450   : > { %v10083_v34 = vmov 0 }
 0x451   : > { %vm1695_vm5 = vcmp.gt.f32.partialorder %v1663_v9, 0.0  ;;  %vm1696_vm6 = vcmp.gt.f32.partialorder %v1664_v11, 0.0  ;;  %v1727_v39 = vmul.f32 0.2, %v1663_v9  ;;  %v1728_v57 = vmul.f32 0.2, %v1664_v11 }
 0x452   : > { %v10084_v34 = vsel %vm6945_vm7, 4294967295, %v10083_v34  ;;  %v1590_v52 = vpop.permute.xlu1 %1589  ;;  %v1580_v18 = vpop.permute.xlu0 %1579  ;;  %vm1699_vm9 = vcmp.gt.f32.partialorder %v1667_v61, 0.0  ;;  %vm1700_vm10 = vcmp.gt.f32.partialorder %v1668_v62, 0.0  ;;  %v1731_v36 = vmul.f32 0.2, %v1667_v61 }
 0x453   : > { %10085 = vst [vmem:[#allocation31_spill] sm:$0xff] %v10084_v34  ;;  %v1732_v20 = vmul.f32 0.2, %v1668_v62  ;;  %v1669_v28 = vadd.f32 %v6837_v63, %v1590_v52  ;;  %v1670_v1 = vadd.f32 %v6843_v50, %v1590_v52  ;;  %v1665_v56 = vadd.f32 %v6837_v63, %v1580_v18 }
 0x454   : > { %v1666_v55 = vadd.f32 %v6843_v50, %v1580_v18  ;;  %v1759_v5 = vsel %vm1695_vm5, %v1663_v9, %v1727_v39  ;;  %v1760_v58 = vsel %vm1696_vm6, %v1664_v11, %v1728_v57  ;;  %v1763_v45 = vsel %vm1699_vm9, %v1667_v61, %v1731_v36 }
 0x455   : > { %v1764_v52 = vsel %vm1700_vm10, %v1668_v62, %v1732_v20  ;;  %v6983_v44 = vsel %vm6888_vm15, -999.0, %v1759_v5  ;;  %v6987_v10 = vsel %vm6892_vm0, -999.0, %v1760_v58  ;;  %v6991_v60 = vsel %vm6896_vm1, -999.0, %v1763_v45 }
 0x456   : > { %10098 = vst [vmem:[#allocation36_spill] sm:$0xff] %v6983_v44  ;;  %10099 = vst [vmem:[#allocation37_spill] sm:$0xff] %v6987_v10  ;;  %v6995_v9 = vsel %vm6900_vm2, -999.0, %v1764_v52  ;;  %v10102_v57 = vmov 0  ;;  %v1600_v61 = vpop.permute.xlu1 %1599  ;;  %v1595_v62 = vpop.permute.xlu0 %1594  ;;  %v1903_v11 = vmax.f32 %v6983_v44, %v6987_v10  ;;  %v1729_v36 = vmul.f32 0.2, %v1665_v56 }
 0x457   : > { %10100 = vst [vmem:[#allocation38_spill] sm:$0xff] %v6991_v60  ;;  %10101 = vst [vmem:[#allocation39_spill] sm:$0xff] %v6995_v9  ;;  %v10103_v57 = vsel %vm6999_vm14, 4294967295, %v10102_v57  ;;  %v1909_v20 = vmax.f32 %v6991_v60, %v6995_v9  ;;  %v7008_v45 = vadd.f32 %v6837_v63, %v1600_v61  ;;  %v7011_v59 = vadd.f32 %v6843_v50, %v1600_v61 }
 0x458   : > { %10104 = vst [vmem:[#allocation40_spill] sm:$0xff] %v10103_v57  ;;  %v1671_v13 = vadd.f32 %v6837_v63, %v1595_v62  ;;  %v1672_v18 = vadd.f32 %v6843_v50, %v1595_v62  ;;  %1904 = vmax.xlane.f32.xlu0 %v1903_v11  ;;  %v1730_v39 = vmul.f32 0.2, %v1666_v55  ;;  %v1733_v5 = vmul.f32 0.2, %v1669_v28 }
 0x459   : > { %v1734_v58 = vmul.f32 0.2, %v1670_v1  ;;  %v10108_v52 = vmov 0  ;;  %vm10111_vm5 = vcmp.gt.f32.partialorder %v1665_v56, 0.0  ;;  %vm10112_vm6 = vcmp.gt.f32.partialorder %v1666_v55, 0.0 }
 0x45a   : > { %v10109_v52 = vsel %vm7023_vm3, 4294967295, %v10108_v52  ;;  %v1610_v61 = vpop.permute.xlu1 %1609  ;;  %v1605_v62 = vpop.permute.xlu0 %1604  ;;  %v1761_v11 = vsel %vm10111_vm5, %v1665_v56, %v1729_v36  ;;  %v1762_v35 = vsel %vm10112_vm6, %v1666_v55, %v1730_v39  ;;  %v1735_v2 = vmul.f32 0.2, %v1671_v13 }
 0x45b   : > { %10110 = vst [vmem:[#allocation42_spill] sm:$0xff] %v10109_v52  ;;  %v1736_v33 = vmul.f32 0.2, %v1672_v18  ;;  %vm7031_vm10 = vcmp.ne.s32.totalorder %v1819_v41, 0  ;;  %vm7037_vm9 = vcmp.ne.s32.totalorder %v1820_v51, 0  ;;  %v7042_v17 = vadd.f32 %v6837_v63, %v1610_v61 }
 0x45c   : > { %v10114_v14 = vsel %vm7031_vm10, 4294967295, %v10113_v14  ;;  %v10117_v3 = vsel %vm7037_vm9, 4294967295, %v10116_v3  ;;  %v7045_v56 = vadd.f32 %v6843_v50, %v1610_v61  ;;  %v1675_v55 = vadd.f32 %v6837_v63, %v1605_v62  ;;  %1910 = vmax.xlane.f32.xlu0 %v1909_v20 }
 0x45d   : > { %10115 = vst [vmem:[#allocation43_spill] sm:$0xff] %v10114_v14  ;;  %10118 = vst [vmem:[#allocation44_spill] sm:$0xff] %v10117_v3  ;;  %v1676_v36 = vadd.f32 %v6843_v50, %v1605_v62  ;;  %v7051_v41 = vsel %vm6945_vm7, -999.0, %v1761_v11  ;;  %v7055_v6 = vsel %vm6951_vm8, -999.0, %v1762_v35  ;;  %vm10121_vm5 = vcmp.gt.f32.partialorder %v1669_v28, 0.0 }
 0x45e   : > { %10119 = vst [vmem:[#allocation45_spill] sm:$0xff] %v7051_v41  ;;  %10120 = vst [vmem:[#allocation46_spill] sm:$0xff] %v7055_v6  ;;  %v1765_v51 = vsel %vm10121_vm5, %v1669_v28, %v1733_v5  ;;  %vm10122_vm6 = vcmp.gt.f32.partialorder %v1670_v1, 0.0  ;;  %v1906_v61 = vmax.f32 %v7051_v41, %v7055_v6  ;;  %vm10125_vm2 = vcmp.gt.f32.partialorder %v1671_v13, 0.0  ;;  %v1620_v11 = vpop.permute.xlu1 %1619  ;;  %v1615_v35 = vpop.permute.xlu0 %1614 }
 0x45f   : > { %v1766_v39 = vsel %vm10122_vm6, %v1670_v1, %v1734_v58  ;;  %v7063_v32 = vsel %vm6957_vm11, -999.0, %v1765_v51  ;;  %v1767_v62 = vsel %vm10125_vm2, %v1671_v13, %v1735_v2  ;;  %vm10126_vm5 = vcmp.gt.f32.partialorder %v1672_v18, 0.0 }
 0x460   : > { %10123 = vst [vmem:[#allocation47_spill] sm:$0xff] %v7063_v32  ;;  %v7067_v20 = vsel %vm6963_vm12, -999.0, %v1766_v39  ;;  %v1768_v1 = vsel %vm10126_vm5, %v1672_v18, %v1736_v33  ;;  %v7075_v5 = vsel %vm6973_vm13, -999.0, %v1767_v62  ;;  %vm7080_vm11 = vcmp.ne.s32.totalorder %v1821_v15, 0  ;;  %1907 = vmax.xlane.f32.xlu1 %v1906_v61 }
 0x461   : > { %10124 = vst [vmem:[#allocation48_spill] sm:$0xff] %v7067_v20  ;;  %v1912_v28 = vmax.f32 %v7063_v32, %v7067_v20  ;;  %10127 = vst [vmem:[#allocation49_spill] sm:$0xff] %v7075_v5  ;;  %v10128_v58 = vmov 0  ;;  %vm7086_vm2 = vcmp.ne.s32.totalorder %v1822_v21, 0  ;;  %v10131_v2 = vmov 0 }
 0x462   : > { %v10129_v58 = vsel %vm7080_vm11, 4294967295, %v10128_v58  ;;  %v10132_v2 = vsel %vm7086_vm2, 4294967295, %v10131_v2  ;;  %v7091_v33 = vadd.f32 %v6837_v63, %v1620_v11  ;;  %v7094_v13 = vadd.f32 %v6843_v50, %v1620_v11 }
 0x463   : > { %10130 = vst [vmem:[#allocation50_spill] sm:$0xff] %v10129_v58  ;;  %10133 = vst [vmem:[#allocation51_spill] sm:$0xff] %v10132_v2  ;;  %v1679_v18 = vadd.f32 %v6837_v63, %v1615_v35  ;;  %v7098_v15 = vadd.f32 %v6843_v50, %v1615_v35  ;;  %1913 = vmax.xlane.f32.xlu0 %v1912_v28  ;;  %v7102_v12 = vsel %vm6999_vm14, -999.0, %v1768_v1  ;;  %vm1706_vm5 = vcmp.gt.f32.partialorder %v7011_v59, 0.0  ;;  %v1630_v35 = vpop.permute.xlu1 %1629  ;;  %v1625_v28 = vpop.permute.xlu0 %1624 }
 0x464   : > { %10134 = vst [vmem:[#allocation52_spill] sm:$0xff] %v7102_v12  ;;  %v1737_v21 = vmul.f32 0.2, %v7008_v45  ;;  %v1738_v51 = vmul.f32 0.2, %v7011_v59  ;;  %vm7109_vm6 = vcmp.ne.s32.totalorder %v1823_v22, 0  ;;  %v1915_v61 = vmax.f32 %v7075_v5, %v7102_v12 }
 0x465   : > { %v10135_v39 = vmov 0  ;;  %vm1707_vm12 = vcmp.gt.f32.partialorder %v1675_v55, 0.0  ;;  %vm1708_vm13 = vcmp.gt.f32.partialorder %v1676_v36, 0.0  ;;  %v1739_v62 = vmul.f32 0.2, %v1675_v55 }
 0x466   : > { %v10136_v39 = vsel %vm7109_vm6, 4294967295, %v10135_v39  ;;  %vm7117_vm14 = vcmp.ne.s32.totalorder %v1824_v24, 0  ;;  %v10138_v11 = vmov 0  ;;  %vm10141_vm1 = vcmp.gt.f32.partialorder %v7008_v45, 0.0  ;;  %1916 = vmax.xlane.f32.xlu1 %v1915_v61 }
 0x467   : > { %10137 = vst [vmem:[#allocation53_spill] sm:$0xff] %v10136_v39  ;;  %v10139_v11 = vsel %vm7117_vm14, 4294967295, %v10138_v11  ;;  %v1769_v22 = vsel %vm10141_vm1, %v7008_v45, %v1737_v21  ;;  %v1770_v1 = vsel %vm1706_vm5, %v7011_v59, %v1738_v51  ;;  %v1740_v20 = vmul.f32 0.2, %v1676_v36 }
 0x468   : > { %10140 = vst [vmem:[#allocation54_spill] sm:$0xff] %v10139_v11  ;;  %v7127_v12 = vadd.f32 %v6837_v63, %v1630_v35  ;;  %v7130_v47 = vadd.f32 %v6843_v50, %v1630_v35  ;;  %v7133_v24 = vadd.f32 %v6837_v63, %v1625_v28  ;;  %v7136_v5 = vadd.f32 %v6843_v50, %v1625_v28 }
 0x469   : > { %v10142_v45 = vunpack.c.l.b16 %v6883_v19  ;;  %v10143_v59 = vmov 0  ;;  %v7146_v21 = vsel %vm7017_vm4, -999.0, %v1769_v22  ;;  %v7150_v51 = vsel %vm7023_vm3, -999.0, %v1770_v1 }
 0x46a   : > { %10146 = vst [vmem:[#allocation56_spill] sm:$0xff] %v7146_v21  ;;  %10147 = vst [vmem:[#allocation57_spill] sm:$0xff] %v7150_v51  ;;  %v1771_v61 = vsel %vm1707_vm12, %v1675_v55, %v1739_v62  ;;  %v1772_v35 = vsel %vm1708_vm13, %v1676_v36, %v1740_v20  ;;  %v10148_v28 = vunpack.c.h.b16 %v6883_v19  ;;  %v10149_v32 = vmov 0  ;;  %v1640_v55 = vpop.permute.xlu1 %1639  ;;  %v1635_v36 = vpop.permute.xlu0 %1634 }
 0x46b   : > { %vm7140_vm1 = vcmp.ne.s32.totalorder %v10142_v45, 0  ;;  %v1918_v45 = vmax.f32 %v7146_v21, %v7150_v51  ;;  %v7164_v22 = vsel %vm7031_vm10, -999.0, %v1771_v61  ;;  %v7168_v1 = vsel %vm7037_vm9, -999.0, %v1772_v35 }
 0x46c   : > { %v10144_v59 = vsel %vm7140_vm1, 4294967295, %v10143_v59  ;;  %vm7156_vm5 = vcmp.ne.s32.totalorder %v10148_v28, 0  ;;  %10152 = vst [vmem:[#allocation59_spill] sm:$0xff] %v7164_v22  ;;  %10153 = vst [vmem:[#allocation60_spill] sm:$0xff] %v7168_v1  ;;  %v1921_v19 = vmax.f32 %v7164_v22, %v7168_v1  ;;  %v1741_v20 = vmul.f32 0.2, %v7042_v17 }
 0x46d   : > { %10145 = vst [vmem:[#allocation55_spill] sm:$0xff] %v10144_v59  ;;  %v10150_v32 = vsel %vm7156_vm5, 4294967295, %v10149_v32  ;;  %v1742_v62 = vmul.f32 0.2, %v7045_v56  ;;  %v10154_v28 = vunpack.c.l.b16 %v6886_v38  ;;  %v10155_v61 = vmov 0  ;;  %1919 = vmax.xlane.f32.xlu0 %v1918_v45 }
 0x46e   : > { %10151 = vst [vmem:[#allocation58_spill] sm:$0xff] %v10150_v32  ;;  %v10158_v35 = vunpack.c.h.b16 %v6886_v38  ;;  %v10159_v51 = vmov 0  ;;  %v7188_v1 = vadd.f32 %v6837_v63, %v1640_v55  ;;  %v7191_v22 = vadd.f32 %v6843_v50, %v1640_v55  ;;  %1922 = vmax.xlane.f32.xlu1 %v1921_v19 }
 0x46f   : > { %vm7177_vm8 = vcmp.ne.s32.totalorder %v10154_v28, 0  ;;  %v7194_v21 = vadd.f32 %v6837_v63, %v1635_v36  ;;  %v7197_v28 = vadd.f32 %v6843_v50, %v1635_v36  ;;  %v10162_v6 = vunpack.c.l.b16 %v6907_v23 }
 0x470   : > { %v10156_v61 = vsel %vm7177_vm8, 4294967295, %v10155_v61  ;;  %vm7183_vm3 = vcmp.ne.s32.totalorder %v10158_v35, 0  ;;  %v10163_v38 = vmov 0  ;;  %vm10166_vm12 = vcmp.gt.f32.partialorder %v7042_v17, 0.0 }
 0x471   : > { %10157 = vst [vmem:[#allocation61_spill] sm:$0xff] %v10156_v61  ;;  %v10160_v51 = vsel %vm7183_vm3, 4294967295, %v10159_v51  ;;  %vm7201_vm13 = vcmp.ne.s32.totalorder %v10162_v6, 0  ;;  %v1773_v45 = vsel %vm10166_vm12, %v7042_v17, %v1741_v20  ;;  %vm10167_vm4 = vcmp.gt.f32.partialorder %v7045_v56, 0.0  ;;  %v1650_v20 = vpop.permute.xlu1 %1649 }
 0x472   : > { %10161 = vst [vmem:[#allocation62_spill] sm:$0xff] %v10160_v51  ;;  %v10164_v38 = vsel %vm7201_vm13, 4294967295, %v10163_v38  ;;  %v1774_v55 = vsel %vm10167_vm4, %v7045_v56, %v1742_v62  ;;  %vm1712_vm9 = vcmp.gt.f32.partialorder %v7098_v15, 0.0  ;;  %v1743_v35 = vmul.f32 0.2, %v1679_v18  ;;  %v1645_v62 = vpop.permute.xlu0 %1644 }
 0x473   : > { %10165 = vst [vmem:[#allocation63_spill] sm:$0xff] %v10164_v38  ;;  %v10168_v36 = vunpack.c.h.b16 %v6907_v23  ;;  %v10169_v41 = vmov 0  ;;  %v7220_v6 = vsel %vm7080_vm11, -999.0, %v1773_v45  ;;  %v7224_v17 = vsel %vm7086_vm2, -999.0, %v1774_v55 }
 0x474   : > { %10172 = vst [vmem:[#allocation65_spill] sm:$0xff] %v7220_v6  ;;  %10173 = vst [vmem:[#allocation66_spill] sm:$0xff] %v7224_v17  ;;  %v1744_v19 = vmul.f32 0.2, %v7098_v15  ;;  %v1924_v56 = vmax.f32 %v7220_v6, %v7224_v17  ;;  %vm10174_vm12 = vcmp.gt.f32.partialorder %v1679_v18, 0.0  ;;  %v7239_v9 = vadd.f32 %v6837_v63, %v1650_v20 }
 0x475   : > { %vm7214_vm10 = vcmp.ne.s32.totalorder %v10168_v36, 0  ;;  %v1775_v23 = vsel %vm10174_vm12, %v1679_v18, %v1743_v35  ;;  %v1745_v45 = vmul.f32 0.2, %v7091_v33  ;;  %v7242_v60 = vadd.f32 %v6843_v50, %v1650_v20 }
 0x476   : > { %v10170_v41 = vsel %vm7214_vm10, 4294967295, %v10169_v41  ;;  %v1776_v36 = vsel %vm1712_vm9, %v7098_v15, %v1744_v19  ;;  %v7236_v55 = vsel %vm7109_vm6, -999.0, %v1775_v23  ;;  %v10175_v18 = vunpack.c.l.b16 %v6913_v30  ;;  %v2106_v19 = vld [vmem:[#allocation2 + $0x58] sm:$0xff]  ;;  %1925 = vmax.xlane.f32.xlu0 %v1924_v56 }
 0x477   : > { %10171 = vst [vmem:[#allocation64_spill] sm:$0xff] %v10170_v41  ;;  %v10176_v35 = vmov 0  ;;  %v10179_v17 = vunpack.c.h.b16 %v6913_v30  ;;  %v10180_v15 = vmov 0  ;;  %v2098_v23 = vld [vmem:[#allocation2 + $0x18] sm:$0xff]  ;;  %v7258_v6 = vsel %vm7117_vm14, -999.0, %v1776_v36  ;;  %4856 = vmatprep.subr.bf16.mxu0 %v2106_v19 }
 0x478   : > { %vm7246_vm12 = vcmp.ne.s32.totalorder %v10175_v18, 0  ;;  %10183 = vst [vmem:[#allocation69_spill] sm:$0xff] %v7258_v6  ;;  %v7261_v20 = vadd.f32 %v6837_v63, %v1645_v62  ;;  %v7264_v18 = vadd.f32 %v6843_v50, %v1645_v62  ;;  %v1746_v10 = vmul.f32 0.2, %v7094_v13  ;;  %4857 = vmatpush3.bf16.msra.mxu0 %v2098_v23 }
 0x479   : > { %v10177_v35 = vsel %vm7246_vm12, 4294967295, %v10176_v35  ;;  %vm7252_vm7 = vcmp.ne.s32.totalorder %v10179_v17, 0  ;;  %v10184_v30 = vunpack.c.l.b16 %v6917_v31  ;;  %v10185_v17 = vmov 0 }
 0x47a   : > { %10178 = vst [vmem:[#allocation67_spill] sm:$0xff] %v10177_v35  ;;  %v10181_v15 = vsel %vm7252_vm7, 4294967295, %v10180_v15  ;;  %v10188_v56 = vunpack.c.h.b16 %v6917_v31  ;;  %v10189_v44 = vmov 0  ;;  %v1927_v63 = vmax.f32 %v7236_v55, %v7258_v6 }
 0x47b   : > { %10182 = vst [vmem:[#allocation68_spill] sm:$0xff] %v10181_v15  ;;  %vm7269_vm9 = vcmp.ne.s32.totalorder %v10184_v30, 0  ;;  %vm10192_vm2 = vcmp.gt.f32.partialorder %v7091_v33, 0.0  ;;  %vm1715_vm11 = vcmp.gt.f32.partialorder %v7133_v24, 0.0  ;;  %vm1716_vm14 = vcmp.gt.f32.partialorder %v7136_v5, 0.0 }
 0x47c   : > { %v10186_v17 = vsel %vm7269_vm9, 4294967295, %v10185_v17  ;;  %vm7275_vm4 = vcmp.ne.s32.totalorder %v10188_v56, 0  ;;  %v1777_v50 = vsel %vm10192_vm2, %v7091_v33, %v1745_v45  ;;  %vm10193_vm6 = vcmp.gt.f32.partialorder %v7094_v13, 0.0  ;;  %1928 = vmax.xlane.f32.xlu1 %v1927_v63 }
 0x47d   : > { %10187 = vst [vmem:[#allocation70_spill] sm:$0xff] %v10186_v17  ;;  %v10190_v44 = vsel %vm7275_vm4, 4294967295, %v10189_v44  ;;  %v1778_v31 = vsel %vm10193_vm6, %v7094_v13, %v1746_v10  ;;  %v7291_v62 = vsel %vm7140_vm1, -999.0, %v1777_v50  ;;  %v1747_v36 = vmul.f32 0.2, %v7133_v24 }
 0x47e   : > { %10191 = vst [vmem:[#allocation71_spill] sm:$0xff] %v10190_v44  ;;  %v1748_v19 = vmul.f32 0.2, %v7136_v5  ;;  %v7297_v33 = vsel %vm7156_vm5, -999.0, %v1778_v31  ;;  %vm1717_vm2 = vcmp.gt.f32.partialorder %v7127_v12, 0.0  ;;  %vm1718_vm0 = vcmp.gt.f32.partialorder %v7130_v47, 0.0 }
 0x47f   : > { %v1749_v45 = vmul.f32 0.2, %v7127_v12  ;;  %v10194_v10 = vunpack.c.l.b16 %v6926_v46  ;;  %v10195_v13 = vmov 0  ;;  %v1930_v23 = vmax.f32 %v7291_v62, %v7297_v33 }
 0x480   : > { %v1779_v30 = vsel %vm1715_vm11, %v7133_v24, %v1747_v36  ;;  %v1780_v56 = vsel %vm1716_vm14, %v7136_v5, %v1748_v19  ;;  %v1750_v63 = vmul.f32 0.2, %v7130_v47  ;;  %v10198_v50 = vunpack.c.h.b16 %v6926_v46 }
 0x481   : > { %vm7304_vm6 = vcmp.ne.s32.totalorder %v10194_v10, 0  ;;  %v10199_v31 = vmov 0  ;;  %v7321_v10 = vsel %vm7177_vm8, -999.0, %v1779_v30  ;;  %v7325_v6 = vsel %vm7183_vm3, -999.0, %v1780_v56  ;;  %1931 = vmax.xlane.f32.xlu0 %v1930_v23 }
 0x482   : > { %v10196_v13 = vsel %vm7304_vm6, 4294967295, %v10195_v13  ;;  %vm7315_vm5 = vcmp.ne.s32.totalorder %v10198_v50, 0  ;;  %v1781_v24 = vsel %vm1717_vm2, %v7127_v12, %v1749_v45  ;;  %v10202_v5 = vunpack.c.l.b16 %v6929_v48  ;;  %v2107_v12 = vld [vmem:[#allocation2 + $0x60] sm:$0xff] }
 0x483   : > { %10197 = vst [vmem:[#allocation72_spill] sm:$0xff] %v10196_v13  ;;  %v10200_v31 = vsel %vm7315_vm5, 4294967295, %v10199_v31  ;;  %v10203_v46 = vmov 0  ;;  %v1933_v36 = vmax.f32 %v7321_v10, %v7325_v6  ;;  %v1782_v19 = vsel %vm1718_vm0, %v7130_v47, %v1750_v63  ;;  %v2099_v45 = vld [vmem:[#allocation2 + $0x20] sm:$0xff]  ;;  %4858 = vmatprep.subr.bf16.mxu0 %v2107_v12 }
 0x484   : > { %10201 = vst [vmem:[#allocation73_spill] sm:$0xff] %v10200_v31  ;;  %vm7331_vm14 = vcmp.ne.s32.totalorder %v10202_v5, 0  ;;  %v7340_v30 = vsel %vm7201_vm13, -999.0, %v1781_v24  ;;  %vm1720_vm2 = vcmp.gt.f32.partialorder %v7197_v28, 0.0  ;;  %v7345_v56 = vsel %vm7214_vm10, -999.0, %v1782_v19  ;;  %4859 = vmatpush3.bf16.msra.mxu0 %v2099_v45 }
 0x485   : > { %v10204_v46 = vsel %vm7331_vm14, 4294967295, %v10203_v46  ;;  %v1751_v50 = vmul.f32 0.2, %v7194_v21  ;;  %v1752_v23 = vmul.f32 0.2, %v7197_v28  ;;  %vm1721_vm11 = vcmp.gt.f32.partialorder %v7188_v1, 0.0  ;;  %1934 = vmax.xlane.f32.xlu1 %v1933_v36 }
 0x486   : > { %10205 = vst [vmem:[#allocation74_spill] sm:$0xff] %v10204_v46  ;;  %v1936_v47 = vmax.f32 %v7340_v30, %v7345_v56  ;;  %vm1722_vm0 = vcmp.gt.f32.partialorder %v7191_v22, 0.0  ;;  %v1753_v63 = vmul.f32 0.2, %v7188_v1  ;;  %v1754_v24 = vmul.f32 0.2, %v7191_v22 }
 0x487   : > { %vm10206_vm10 = vcmp.gt.f32.partialorder %v7194_v21, 0.0  ;;  %v1784_v19 = vsel %vm1720_vm2, %v7197_v28, %v1752_v23  ;;  %vm1723_vm13 = vcmp.gt.f32.partialorder %v7261_v20, 0.0  ;;  %vm1724_vm3 = vcmp.gt.f32.partialorder %v7264_v18, 0.0 }
 0x488   : > { %v1783_v5 = vsel %vm10206_vm10, %v7194_v21, %v1751_v50  ;;  %1937 = vmax.xlane.f32.xlu0 %v1936_v47  ;;  %v7367_v12 = vsel %vm7252_vm7, -999.0, %v1784_v19  ;;  %v1785_v45 = vsel %vm1721_vm11, %v7188_v1, %v1753_v63  ;;  %v1786_v41 = vsel %vm1722_vm0, %v7191_v22, %v1754_v24  ;;  %v2108_v21 = vld [vmem:[#allocation2 + $0x68] sm:$0xff] }
 0x489   : > { %v7363_v36 = vsel %vm7246_vm12, -999.0, %v1783_v5  ;;  %v2100_v50 = vld [vmem:[#allocation2 + $0x28] sm:$0xff]  ;;  %v7375_v23 = vsel %vm7269_vm9, -999.0, %v1785_v45  ;;  %v7379_v47 = vsel %vm7275_vm4, -999.0, %v1786_v41  ;;  %v1755_v5 = vmul.f32 0.2, %v7261_v20  ;;  %4860 = vmatprep.subr.bf16.mxu0 %v2108_v21 }
 0x48a   : > { %v1939_v28 = vmax.f32 %v7363_v36, %v7367_v12  ;;  %10207 = vst [vmem:[#allocation75_spill] sm:$0xff] %v7379_v47  ;;  %v1942_v1 = vmax.f32 %v7375_v23, %v7379_v47  ;;  %v1756_v22 = vmul.f32 0.2, %v7264_v18  ;;  %vm1725_vm10 = vcmp.gt.f32.partialorder %v7239_v9, 0.0  ;;  %4861 = vmatpush3.bf16.msra.mxu0 %v2100_v50 }
 0x48b   : > { %vm1726_vm11 = vcmp.gt.f32.partialorder %v7242_v60, 0.0  ;;  %v1787_v63 = vsel %vm1723_vm13, %v7261_v20, %v1755_v5  ;;  %v1757_v41 = vmul.f32 0.2, %v7239_v9  ;;  %v1758_v24 = vmul.f32 0.2, %v7242_v60 }
 0x48c   : > { %1940 = vmax.xlane.f32.xlu1 %v1939_v28  ;;  %v10208_v19 = vunpack.c.h.b16 %v6929_v48  ;;  %v10209_v45 = vmov 0  ;;  %1943 = vmax.xlane.f32.xlu0 %v1942_v1  ;;  %v1788_v21 = vsel %vm1724_vm3, %v7264_v18, %v1756_v22  ;;  %v7403_v50 = vsel %vm7304_vm6, -999.0, %v1787_v63  ;;  %v2109_v22 = vld [vmem:[#allocation2 + $0x70] sm:$0xff] }
 0x48d   : > { %10212 = vst [vmem:[#allocation77_spill] sm:$0xff] %v7403_v50  ;;  %v7407_v20 = vsel %vm7315_vm5, -999.0, %v1788_v21  ;;  %v1789_v28 = vsel %vm1725_vm10, %v7239_v9, %v1757_v41  ;;  %v1790_v48 = vsel %vm1726_vm11, %v7242_v60, %v1758_v24  ;;  %v2101_v63 = vld [vmem:[#allocation2 + $0x30] sm:$0xff]  ;;  %4862 = vmatprep.subr.bf16.mxu0 %v2109_v22  ;;  %v2110_v60 = vld [vmem:[#allocation2 + $0x78] sm:$0xff]  ;;  %v2260_v41 = vpop.permute.xlu1 %2259  ;;  %v9910_v35 = vmov 2  }
 0x48e   : > { %vm7394_vm2 = vcmp.ne.s32.totalorder %v10208_v19, 0  ;;  %10213 = vst [vmem:[#allocation78_spill] sm:$0xff] %v7407_v20  ;;  %v1945_v5 = vmax.f32 %v7403_v50, %v7407_v20  ;;  %v7415_v1 = vsel %vm7331_vm14, -999.0, %v1789_v28  ;;  %4863 = vmatpush3.bf16.msra.mxu0 %v2101_v63  ;;  %v2102_v9 = vld [vmem:[#allocation2 + $0x38] sm:$0xff] }
 0x48f   : > { %v10210_v45 = vsel %vm7394_vm2, 4294967295, %v10209_v45  ;;  %10214 = vst [vmem:[#allocation79_spill] sm:$0xff] %v7415_v1  ;;  %v7419_v18 = vsel %vm7394_vm2, -999.0, %v1790_v48  ;;  %4864 = vmatprep.subr.bf16.mxu0 %v2110_v60  ;;  %v2257_v48 = vld [vmem:[#allocation4 + $0x1] ss:$4 sm:$0x3] }
 0x490   : > { %10211 = vst [vmem:[#allocation76_spill] sm:$0xff] %v10210_v45  ;;  %10215 = vst [vmem:[#allocation80_spill] sm:$0xff] %v7419_v18  ;;  %v1948_v19 = vmax.f32 %v7415_v1, %v7419_v18  ;;  %1946 = vmax.xlane.f32.xlu1 %v1945_v5  ;;  %v7429_v22 = vrot.slane %v2257_v48, %v6826_v37  ;;  %v7432_v63 = vrot.slane %v2257_v48, %v6829_v43 }
 0x491   : > { %v2268_v24 = vpop.permute.xlu1 %2267 }
 0x492   : > { %1949 = vmax.xlane.f32.xlu0 %v1948_v19  ;;  %4865 = vmatpush3.bf16.msra.mxu0 %v2102_v9  ;;  %v2264_v19 = vpop.permute.xlu0 %2263  ;;  %v2338_v9 = vadd.f32 %v7432_v63, %v2268_v24 }
 0x494   : > { %v2402_v45 = vmul.f32 0.2, %v2338_v9  ;;  %vm2370_vm3 = vcmp.gt.f32.partialorder %v2338_v9, 0.0 }
 0x495   : > { %v2272_v21 = vpop.permute.xlu1 %2271 }
 0x496   : > { %v2340_v1 = vadd.f32 %v7432_v63, %v2272_v21 }
 0x499   : > { %v2276_v28 = vpop.permute.xlu1 %2275 }
 0x49a   : > { %v2341_v46 = vadd.f32 %v7429_v22, %v2276_v28 }
 0x49d   : > { %v2280_v5 = vpop.permute.xlu1 %2279 }
 0x49e   : > { %v2343_v20 = vadd.f32 %v7429_v22, %v2280_v5 }
 0x4a0   : > { %v2407_v47 = vmul.f32 0.2, %v2343_v20  ;;  %vm2375_vm6 = vcmp.gt.f32.partialorder %v2343_v20, 0.0 }
 0x4a1   : > { %2303 = vperm.xlu1 %5527, %v6802_v54   ;;  %v2333_v54 = vadd.f32 %v7429_v22, %v2260_v41  ;;  %v2284_v60 = vpop.permute.xlu1 %2283 }
 0x4a3   : > { %v2397_v37 = vmul.f32 0.2, %v2333_v54  ;;  %vm10216_vm0 = vcmp.gt.f32.partialorder %v2333_v54, 0.0 }
 0x4a5   : > { %2311 = vperm.xlu1 %5527, %v6807_v25   ;;  %v2334_v25 = vadd.f32 %v7432_v63, %v2260_v41  ;;  %v2288_v15 = vpop.permute.xlu1 %2287  ;;  %v7440_v41 = vpop.permute.xlu0 %2299  ;;  %v2429_v44 = vsel %vm10216_vm0, %v2333_v54, %v2397_v37  ;;  %v2345_v37 = vadd.f32 %v7429_v22, %v2284_v60  ;;  %v2434_v54 = vsel %vm2370_vm3, %v2338_v9, %v2402_v45 }
 0x4a6   : > { %vm10223_vm0 = vnez %v10084_v34 }
 0x4a7   : > { %v2398_v31 = vmul.f32 0.2, %v2334_v25  ;;  %vm2366_vm13 = vcmp.gt.f32.partialorder %v2334_v25, 0.0 }
 0x4a8   : > { %2307 = vperm.xlu0 %5528, %v6810_v26   ;;  %v2335_v26 = vadd.f32 %v7429_v22, %v2264_v19 }
 0x4a9   : > { %2319 = vperm.xlu1 %5527, %v6815_v27   ;;  %v2336_v27 = vadd.f32 %v7432_v63, %v2264_v19  ;;  %v2339_v19 = vadd.f32 %v7429_v22, %v2272_v21  ;;  %v2430_v17 = vsel %vm2366_vm13, %v2334_v25, %v2398_v31  ;;  %v2346_v31 = vadd.f32 %v7432_v63, %v2284_v60 }
 0x4aa   : > { %v2399_v13 = vmul.f32 0.2, %v2335_v26  ;;  %vm10217_vm10 = vcmp.gt.f32.partialorder %v2335_v26, 0.0  ;;  %vm10221_vm13 = vnez %v10075_v7  ;;  %v2409_v60 = vmul.f32 0.2, %v2345_v37 }
 0x4ab   : > { %v2400_v48 = vmul.f32 0.2, %v2336_v27  ;;  %vm10218_vm11 = vcmp.gt.f32.partialorder %v2336_v27, 0.0  ;;  %v7467_v21 = vsel %vm10221_vm13, -999.0, %v2430_v17  ;;  %vm2378_vm3 = vcmp.gt.f32.partialorder %v2346_v31, 0.0 }
 0x4ac   : > { %2315 = vperm.xlu0 %5528, %v6818_v29   ;;  %v2337_v29 = vadd.f32 %v7429_v22, %v2268_v24  ;;  %v2342_v24 = vadd.f32 %v7432_v63, %v2276_v28  ;;  %v2431_v38 = vsel %vm10217_vm10, %v2335_v26, %v2399_v13  ;;  %v7455_v28 = vadd.f32 %v7429_v22, %v7440_v41 }
 0x4ad   : > { %5529 = vset.pattern.permute.xlu1 %v9910_v35  ;;  %v2432_v18 = vsel %vm10218_vm11, %v2336_v27, %v2400_v48  ;;  %v7463_v13 = vsel %vm6888_vm15, -999.0, %v2429_v44  ;;  %10222 = vst [vmem:[#allocation82_spill] sm:$0xff] %v7467_v21  ;;  %v7471_v25 = vsel %vm10223_vm0, -999.0, %v2431_v38  ;;  %vm10226_vm10 = vnez %v10078_v40 }
 0x4ae   : > { %v2401_v43 = vmul.f32 0.2, %v2337_v29  ;;  %vm10219_vm5 = vcmp.gt.f32.partialorder %v2337_v29, 0.0  ;;  %10220 = vst [vmem:[#allocation81_spill] sm:$0xff] %v7463_v13  ;;  %vm2374_vm11 = vcmp.gt.f32.partialorder %v2342_v24, 0.0  ;;  %vm10227_vm15 = vnez %v10081_v16 }
 0x4af   : > { %v2405_v44 = vmul.f32 0.2, %v2341_v46  ;;  %v7483_v17 = vsel %vm10227_vm15, -999.0, %v2434_v54  ;;  %v2406_v26 = vmul.f32 0.2, %v2342_v24  ;;  %v2493_v27 = vmax.f32 %v7463_v13, %v7467_v21 }
 0x4b0   : > { %5530 = vset.pattern.permute.xlu0 %v9910_v35  ;;  %v2433_v50 = vsel %vm10219_vm5, %v2337_v29, %v2401_v43  ;;  %v2344_v35 = vadd.f32 %v7432_v63, %v2280_v5  ;;  %vm10224_vm5 = vnez %v10087_v42  ;;  %v2292_v5 = vpop.permute.xlu1 %2291  ;;  %v2403_v38 = vmul.f32 0.2, %v2339_v19 }
 0x4b1   : > { %v7475_v43 = vsel %vm10224_vm5, -999.0, %v2432_v18  ;;  %v7479_v45 = vsel %vm10226_vm10, -999.0, %v2433_v50  ;;  %v2404_v18 = vmul.f32 0.2, %v2340_v1  ;;  %v2410_v29 = vmul.f32 0.2, %v2346_v31 }
 0x4b2   : > { %10225 = vst [vmem:[#allocation83_spill] sm:$0xff] %v7475_v43  ;;  %v2349_v9 = vadd.f32 %v7429_v22, %v2292_v5  ;;  %vm2372_vm10 = vcmp.gt.f32.partialorder %v2340_v1, 0.0  ;;  %vm2377_vm5 = vcmp.gt.f32.partialorder %v2345_v37, 0.0  ;;  %v2347_v50 = vadd.f32 %v7429_v22, %v2288_v15 }
 0x4b3   : > { %v2348_v48 = vadd.f32 %v7432_v63, %v2288_v15  ;;  %v2496_v54 = vmax.f32 %v7471_v25, %v7475_v43  ;;  %vm10228_vm13 = vcmp.gt.f32.partialorder %v2341_v46, 0.0  ;;  %v2350_v40 = vadd.f32 %v7432_v63, %v2292_v5 }
 0x4b4   : > { %v2437_v16 = vsel %vm10228_vm13, %v2341_v46, %v2405_v44  ;;  %v2499_v7 = vmax.f32 %v7479_v45, %v7483_v17  ;;  %v2438_v0 = vsel %vm2374_vm11, %v2342_v24, %v2406_v26  ;;  %vm10229_vm15 = vcmp.gt.f32.partialorder %v2339_v19, 0.0  ;;  %v2296_v43 = vpop.permute.xlu1 %2295 }
 0x4b5   : > { %v2435_v42 = vsel %vm10229_vm15, %v2339_v19, %v2403_v38  ;;  %v2436_v34 = vsel %vm2372_vm10, %v2340_v1, %v2404_v18  ;;  %v2441_v21 = vsel %vm2377_vm5, %v2345_v37, %v2409_v60  ;;  %v2442_v13 = vsel %vm2378_vm3, %v2346_v31, %v2410_v29 }
 0x4b6   : > { %vm10230_vm0 = vnez %v10096_v4  ;;  %v2408_v46 = vmul.f32 0.2, %v2344_v35  ;;  %v2413_v44 = vmul.f32 0.2, %v2349_v9  ;;  %vm10231_vm13 = vnez %v10103_v57 }
 0x4b7   : > { %v7500_v15 = vsel %vm10230_vm0, -999.0, %v2437_v16  ;;  %v7504_v5 = vsel %vm10231_vm13, -999.0, %v2438_v0  ;;  %vm10232_vm11 = vnez %v10090_v8  ;;  %vm2376_vm15 = vcmp.gt.f32.partialorder %v2344_v35, 0.0 }
 0x4b8   : > { %v7508_v24 = vsel %vm10232_vm11, -999.0, %v2435_v42  ;;  %vm2381_vm5 = vcmp.gt.f32.partialorder %v2349_v9, 0.0  ;;  %vm10233_vm10 = vnez %v10093_v49  ;;  %vm10234_vm3 = vnez %v10114_v14 }
 0x4b9   : > { %v7512_v1 = vsel %vm10233_vm10, -999.0, %v2436_v34  ;;  %v7516_v16 = vsel %vm10234_vm3, -999.0, %v2441_v21  ;;  %vm10235_vm0 = vnez %v10117_v3  ;;  %vm2382_vm13 = vcmp.gt.f32.partialorder %v2350_v40, 0.0 }
 0x4ba   : > { %v7520_v19 = vsel %vm10235_vm0, -999.0, %v2442_v13  ;;  %v2351_v0 = vadd.f32 %v7429_v22, %v2296_v43  ;;  %v2352_v42 = vadd.f32 %v7432_v63, %v2296_v43  ;;  %v2439_v37 = vsel %vm2375_vm6, %v2343_v20, %v2407_v47 }
 0x4bb   : > { %v2414_v31 = vmul.f32 0.2, %v2350_v40  ;;  %v2440_v26 = vsel %vm2376_vm15, %v2344_v35, %v2408_v46  ;;  %v2445_v38 = vsel %vm2381_vm5, %v2349_v9, %v2413_v44  ;;  %v2412_v34 = vmul.f32 0.2, %v2348_v48 }
 0x4bc   : > { %v2354_v21 = vadd.f32 %v7432_v63, %v7440_v41  ;;  %v2505_v18 = vmax.f32 %v7500_v15, %v7504_v5  ;;  %vm2379_vm0 = vcmp.gt.f32.partialorder %v2347_v50, 0.0  ;;  %vm2380_vm3 = vcmp.gt.f32.partialorder %v2348_v48, 0.0 }
 0x4bd   : > { %v2502_v13 = vmax.f32 %v7508_v24, %v7512_v1  ;;  %v2511_v47 = vmax.f32 %v7516_v16, %v7520_v19  ;;  %vm10236_vm6 = vnez %v10106_v53  ;;  %vm10237_vm15 = vnez %v10109_v52 }
 0x4be   : > { %v7534_v35 = vsel %vm10236_vm6, -999.0, %v2439_v37  ;;  %v7538_v20 = vsel %vm10237_vm15, -999.0, %v2440_v26  ;;  %v2446_v41 = vsel %vm2382_vm13, %v2350_v40, %v2414_v31  ;;  %vm10238_vm5 = vnez %v10136_v39  ;;  %v10262_v39 = vld [vmem:[#allocation69_spill] sm:$0xff] }
 0x4bf   : > { %v7543_v43 = vsel %vm10238_vm5, -999.0, %v2445_v38  ;;  %v2444_v60 = vsel %vm2380_vm3, %v2348_v48, %v2412_v34  ;;  %v2415_v29 = vmul.f32 0.2, %v2351_v0  ;;  %v2416_v9 = vmul.f32 0.2, %v2352_v42 }
 0x4c0   : > { %v2418_v46 = vmul.f32 0.2, %v2354_v21  ;;  %vm2383_vm6 = vcmp.gt.f32.partialorder %v2351_v0, 0.0  ;;  %vm2384_vm10 = vcmp.gt.f32.partialorder %v2352_v42, 0.0  ;;  %v2508_v44 = vmax.f32 %v7534_v35, %v7538_v20 }
 0x4c1   : > { %vm10239_vm13 = vnez %v10139_v11  ;;  %vm2385_vm5 = vcmp.gt.f32.partialorder %v7455_v28, 0.0  ;;  %vm10240_vm3 = vnez %v10129_v58  ;;  %vm10241_vm15 = vnez %v10132_v2 }
 0x4c2   : > { %v7550_v40 = vsel %vm10239_vm13, -999.0, %v2446_v41  ;;  %v7559_v48 = vsel %vm10241_vm15, -999.0, %v2444_v60  ;;  %v2447_v37 = vsel %vm2383_vm6, %v2351_v0, %v2415_v29  ;;  %v2448_v31 = vsel %vm2384_vm10, %v2352_v42, %v2416_v9  ;;  %v10246_v41 = vld [vmem:[#allocation36_spill] sm:$0xff]  ;;  %v10247_v60 = vld [vmem:[#allocation37_spill] sm:$0xff] }
 0x4c3   : > { %v2517_v26 = vmax.f32 %v7543_v43, %v7550_v40  ;;  %vm10242_vm13 = vnez %v10150_v32  ;;  %vm10244_vm10 = vnez %v10160_v51  ;;  %v10250_v51 = vld [vmem:[#allocation45_spill] sm:$0xff] }
 0x4cb   : > { %2494 = vmax.xlane.f32.xlu0 %v2493_v27  ;;  %v2411_v27 = vmul.f32 0.2, %v2347_v50 }
 0x4cd   : > { %2497 = vmax.xlane.f32.xlu1 %v2496_v54  ;;  %v2417_v54 = vmul.f32 0.2, %v7455_v28 }
 0x4cf   : > { %2500 = vmax.xlane.f32.xlu0 %v2499_v7  ;;  %v2443_v7 = vsel %vm2379_vm0, %v2347_v50, %v2411_v27  ;;  %vm2386_vm0 = vcmp.gt.f32.partialorder %v2354_v21, 0.0  ;;  %v2449_v38 = vsel %vm2385_vm5, %v7455_v28, %v2417_v54 }
 0x4d0   : > { %v7555_v50 = vsel %vm10240_vm3, -999.0, %v2443_v7  ;;  %v2450_v27 = vsel %vm2386_vm0, %v2354_v21, %v2418_v46  ;;  %v7576_v0 = vsel %vm7177_vm8, -999.0, %v2449_v38 }
 0x4d1   : > { %2506 = vmax.xlane.f32.xlu1 %v2505_v18  ;;  %v2514_v34 = vmax.f32 %v7555_v50, %v7559_v48  ;;  %v7568_v18 = vsel %vm7140_vm1, -999.0, %v2447_v37  ;;  %10243 = vst [vmem:[#allocation84_spill] sm:$0xff] %v7576_v0  ;;  %v7580_v28 = vsel %vm10244_vm10, -999.0, %v2450_v27 }
 0x4d2   : > { %10245 = vst [vmem:[#allocation85_spill] sm:$0xff] %v7580_v28  ;;  %v2523_v21 = vmax.f32 %v7576_v0, %v7580_v28  ;;  %v2895_v0 = vld [vmem:[#allocation4 + $0x2] ss:$4 sm:$0x3] }
 0x4d3   : > { %2503 = vmax.xlane.f32.xlu0 %v2502_v13  ;;  %v7572_v13 = vsel %vm10242_vm13, -999.0, %v2448_v31  ;;  %v10249_v31 = vld [vmem:[#allocation39_spill] sm:$0xff] }
 0x4d4   : > { %v2520_v42 = vmax.f32 %v7568_v18, %v7572_v13 }
 0x4d5   : > { %2512 = vmax.xlane.f32.xlu1 %v2511_v47 }
 0x4d7   : > { %2509 = vmax.xlane.f32.xlu0 %v2508_v44  ;;  %v10248_v44 = vld [vmem:[#allocation38_spill] sm:$0xff] }
 0x4d9   : > { %2518 = vmax.xlane.f32.xlu1 %v2517_v26 }
 0x4db   : > { %2515 = vmax.xlane.f32.xlu0 %v2514_v34 }
 0x4dd   : > { %2524 = vmax.xlane.f32.xlu1 %v2523_v21 }
 0x4df   : > { %2521 = vmax.xlane.f32.xlu0 %v2520_v42  ;;  %v10251_v42 = vld [vmem:[#allocation46_spill] sm:$0xff] }
 0x4e5   : > { %v1905_v47 = vpop.xlane.xlu0 %1904 }
 0x4e6   : > { %v1951_v7 = vsub.f32 %v10246_v41, %v1905_v47  ;;  %v1952_v29 = vsub.f32 %v10247_v60, %v1905_v47  ;;  %v10252_v41 = vld [vmem:[#allocation47_spill] sm:$0xff] }
 0x4e8   : > { %v1983_v9 = vmul.f32 1.442695, %v1951_v7  ;;  %v1985_v54 = vmul.f32 1.442695, %v1952_v29  ;;  %v10253_v7 = vld [vmem:[#allocation48_spill] sm:$0xff] }
 0x4e9   : > { %v1911_v46 = vpop.xlane.xlu0 %1910 }
 0x4ea   : > { %5547 = vpow2.f32 %v1983_v9  ;;  %v1955_v37 = vsub.f32 %v10248_v44, %v1911_v46  ;;  %v1956_v26 = vsub.f32 %v10249_v31, %v1911_v46  ;;  %v10255_v31 = vld [vmem:[#allocation52_spill] sm:$0xff] }
 0x4eb   : > { %5549 = vpow2.f32 %v1985_v54  ;;  %v10254_v54 = vld [vmem:[#allocation49_spill] sm:$0xff] }
 0x4ec   : > { %v1991_v27 = vmul.f32 1.442695, %v1955_v37  ;;  %v1993_v34 = vmul.f32 1.442695, %v1956_v26 }
 0x4ed   : > { %v1908_v38 = vpop.xlane.xlu1 %1907 }
 0x4ee   : > { %v1953_v21 = vsub.f32 %v10250_v51, %v1908_v38  ;;  %v1954_v61 = vsub.f32 %v10251_v42, %v1908_v38  ;;  %5551 = vpow2.f32 %v1991_v27 }
 0x4ef   : > { %5553 = vpow2.f32 %v1993_v34 }
 0x4f0   : > { %v1914_v32 = vpop.xlane.xlu0 %1913  ;;  %v1987_v29 = vmul.f32 1.442695, %v1953_v21  ;;  %v1989_v9 = vmul.f32 1.442695, %v1954_v61  ;;  %v10256_v61 = vld [vmem:[#allocation56_spill] sm:$0xff]  ;;  %v10257_v21 = vld [vmem:[#allocation57_spill] sm:$0xff] }
 0x4f1   : > { %v1957_v47 = vsub.f32 %v10252_v41, %v1914_v32  ;;  %v1958_v60 = vsub.f32 %v10253_v7, %v1914_v32  ;;  %v10258_v7 = vld [vmem:[#allocation59_spill] sm:$0xff] }
 0x4f2   : > { %5555 = vpow2.f32 %v1987_v29  ;;  %v10259_v29 = vld [vmem:[#allocation60_spill] sm:$0xff] }
 0x4f3   : > { %v1917_v44 = vpop.xlane.xlu1 %1916  ;;  %v1995_v59 = vmul.f32 1.442695, %v1957_v47  ;;  %v1997_v46 = vmul.f32 1.442695, %v1958_v60  ;;  %5557 = vpow2.f32 %v1989_v9 }
 0x4f4   : > { %v1959_v37 = vsub.f32 %v10254_v54, %v1917_v44  ;;  %v1960_v26 = vsub.f32 %v10255_v31, %v1917_v44  ;;  %v5548_v27 = vpop.eup %5547 }
 0x4f5   : > { %5559 = vpow2.f32 %v1995_v59  ;;  %v5550_v41 = vpop.eup %5549 }
 0x4f6   : > { %v1999_v51 = vmul.f32 1.442695, %v1959_v37  ;;  %v2001_v38 = vmul.f32 1.442695, %v1960_v26  ;;  %5561 = vpow2.f32 %v1997_v46  ;;  %v7600_v44 = vadd.f32 %v5550_v41, %v5548_v27 }
 0x4f8   : > { %5563 = vpow2.f32 %v1999_v51  ;;  %v7602_v37 = vpop.eup %5551 }
 0x4f9   : > { %5565 = vpow2.f32 %v2001_v38  ;;  %v5554_v26 = vpop.eup %5553 }
 0x4fa   : > { %v1920_v42 = vpop.xlane.xlu0 %1919 }
 0x4fb   : > { %v1923_v32 = vpop.xlane.xlu1 %1922  ;;  %v1961_v34 = vsub.f32 %v10256_v61, %v1920_v42  ;;  %v1962_v47 = vsub.f32 %v10257_v21, %v1920_v42  ;;  %v10260_v61 = vld [vmem:[#allocation65_spill] sm:$0xff]  ;;  %v10261_v42 = vld [vmem:[#allocation66_spill] sm:$0xff]  ;;  %v7607_v21 = vadd.f32 %v5554_v26, %v7602_v37 }
 0x4fc   : > { %v1963_v60 = vsub.f32 %v10258_v7, %v1923_v32  ;;  %v1964_v54 = vsub.f32 %v10259_v29, %v1923_v32  ;;  %v5556_v32 = vpop.eup %5555 }
 0x4fd   : > { %v2003_v9 = vmul.f32 1.442695, %v1961_v34  ;;  %v2005_v31 = vmul.f32 1.442695, %v1962_v47  ;;  %v5558_v7 = vpop.eup %5557 }
 0x4fe   : > { %v2007_v59 = vmul.f32 1.442695, %v1963_v60  ;;  %v2009_v46 = vmul.f32 1.442695, %v1964_v54  ;;  %v2111_v54 = vpack.c.bf16 %v5556_v32, %v5548_v27  ;;  %v2112_v2 = vpack.c.bf16 %v5558_v7, %v5550_v41 }
 0x4ff   : > { %5567 = vpow2.f32 %v2003_v9  ;;  %v5560_v47 = vpop.eup %5559 }
 0x500   : > { %5569 = vpow2.f32 %v2007_v59  ;;  %2159 = vmatprep.mubr.bf16.mxu0 %v2112_v2 }
 0x501   : > { %5571 = vpow2.f32 %v2009_v46  ;;  %2160 = vmatmul.mubr.bf16.vlgmr.msra.gmra.mrb[0].mxu0 %v2111_v54 }
 0x502   : > { %5573 = vpow2.f32 %v2005_v31 }
 0x503   : > { %v1926_v51 = vpop.xlane.xlu0 %1925 }
 0x504   : > { %v1965_v11 = vsub.f32 %v10260_v61, %v1926_v51  ;;  %v1966_v38 = vsub.f32 %v10261_v42, %v1926_v51  ;;  %v7611_v61 = vadd.f32 %v5558_v7, %v5556_v32  ;;  %v5562_v51 = vpop.eup %5561 }
 0x505   : > { %v7613_v42 = vpop.eup %5563 }
 0x506   : > { %v2011_v29 = vmul.f32 1.442695, %v1965_v11  ;;  %v2013_v60 = vmul.f32 1.442695, %v1966_v38  ;;  %v2114_v11 = vpack.c.bf16 %v5562_v51, %v5554_v26  ;;  %v5566_v38 = vpop.eup %5565 }
 0x507   : > { %v7620_v32 = vadd.f32 %v5566_v38, %v7613_v42 }
 0x508   : > { %5575 = vpow2.f32 %v2011_v29  ;;  %2167 = vmatprep.mubr.bf16.mxu0 %v2114_v11 }
 0x509   : > { %v1929_v34 = vpop.xlane.xlu1 %1928  ;;  %5577 = vpow2.f32 %v2013_v60 }
 0x50a   : > { %v1967_v9 = vsub.f32 %v7236_v55, %v1929_v34  ;;  %v1968_v59 = vsub.f32 %v10262_v39, %v1929_v34  ;;  %v7617_v39 = vadd.f32 %v5562_v51, %v5560_v47  ;;  %v5568_v34 = vpop.eup %5567 }
 0x50b   : > { %v7624_v60 = vpop.eup %5569 }
 0x50c   : > { %v2015_v58 = vmul.f32 1.442695, %v1967_v9  ;;  %v2017_v46 = vmul.f32 1.442695, %v1968_v59  ;;  %v5572_v9 = vpop.eup %5571 }
 0x50d   : > { %v5574_v51 = vpop.eup %5573 }
 0x50e   : > { %v1932_v31 = vpop.xlane.xlu0 %1931  ;;  %5579 = vpow2.f32 %v2015_v58 }
 0x50f   : > { %v1969_v27 = vsub.f32 %v7291_v62, %v1932_v31  ;;  %v1970_v55 = vsub.f32 %v7297_v33, %v1932_v31  ;;  %5581 = vpow2.f32 %v2017_v46  ;;  %v7630_v46 = vadd.f32 %v5572_v9, %v7624_v60 }
 0x511   : > { %v2019_v26 = vmul.f32 1.442695, %v1969_v27  ;;  %v2021_v29 = vmul.f32 1.442695, %v1970_v55 }
 0x512   : > { %v1935_v41 = vpop.xlane.xlu1 %1934 }
 0x513   : > { %v1971_v7 = vsub.f32 %v7321_v10, %v1935_v41  ;;  %v1972_v2 = vsub.f32 %v7325_v6, %v1935_v41  ;;  %5583 = vpow2.f32 %v2019_v26  ;;  %v2113_v6 = vpack.c.bf16 %v5560_v47, %v7602_v37 }
 0x514   : > { %5585 = vpow2.f32 %v2021_v29  ;;  %v2116_v26 = vpack.c.bf16 %v5574_v51, %v5566_v38  ;;  %v10265_v38 = vld [vmem:[#allocation78_spill] sm:$0xff] }
 0x515   : > { %v1938_v62 = vpop.xlane.xlu0 %1937  ;;  %v2023_v33 = vmul.f32 1.442695, %v1971_v7  ;;  %v2025_v54 = vmul.f32 1.442695, %v1972_v2  ;;  %v10263_v7 = vld [vmem:[#allocation75_spill] sm:$0xff]  ;;  %2168 = vmatmul.mubr.bf16.gmra.mrb[4].mxu0 %v2113_v6 }
 0x516   : > { %v1973_v58 = vsub.f32 %v7340_v30, %v1938_v62  ;;  %v1974_v59 = vsub.f32 %v7345_v56, %v1938_v62  ;;  %v7634_v30 = vpop.eup %5575  ;;  %2175 = vmatprep.mubr.bf16.mxu0 %v2116_v26  ;;  %v7638_v62 = vadd.f32 %v5574_v51, %v5568_v34  ;;  %v10266_v51 = vld [vmem:[#allocation79_spill] sm:$0xff] }
 0x517   : > { %5587 = vpow2.f32 %v2023_v33  ;;  %v5578_v37 = vpop.eup %5577 }
 0x518   : > { %5589 = vpow2.f32 %v2025_v54  ;;  %v2027_v27 = vmul.f32 1.442695, %v1973_v58  ;;  %v2029_v41 = vmul.f32 1.442695, %v1974_v59  ;;  %v7643_v54 = vadd.f32 %v5578_v37, %v7634_v30 }
 0x519   : > { %v1941_v10 = vpop.xlane.xlu1 %1940  ;;  %v1944_v55 = vpop.xlane.xlu0 %1943 }
 0x51a   : > { %v1975_v31 = vsub.f32 %v7363_v36, %v1941_v10  ;;  %v1976_v11 = vsub.f32 %v7367_v12, %v1941_v10  ;;  %v1977_v56 = vsub.f32 %v7375_v23, %v1944_v55  ;;  %v1978_v2 = vsub.f32 %v10263_v7, %v1944_v55  ;;  %v7640_v36 = vpop.eup %5579  ;;  %v10264_v23 = vld [vmem:[#allocation77_spill] sm:$0xff]  ;;  %v10267_v55 = vld [vmem:[#allocation80_spill] sm:$0xff] }
 0x51b   : > { %5591 = vpow2.f32 %v2027_v27  ;;  %v7645_v58 = vpop.eup %5581 }
 0x51c   : > { %v2031_v47 = vmul.f32 1.442695, %v1975_v31  ;;  %v2033_v29 = vmul.f32 1.442695, %v1976_v11  ;;  %v2035_v33 = vmul.f32 1.442695, %v1977_v56  ;;  %5593 = vpow2.f32 %v2029_v41 }
 0x51d   : > { %v1947_v12 = vpop.xlane.xlu1 %1946  ;;  %v2037_v6 = vmul.f32 1.442695, %v1978_v2  ;;  %v7653_v27 = vadd.f32 %v7645_v58, %v7640_v36  ;;  %v7655_v56 = vpop.eup %5583 }
 0x51e   : > { %v1979_v59 = vsub.f32 %v10264_v23, %v1947_v12  ;;  %v1980_v10 = vsub.f32 %v10265_v38, %v1947_v12  ;;  %5595 = vpow2.f32 %v2031_v47  ;;  %v2115_v23 = vpack.c.bf16 %v5568_v34, %v7613_v42  ;;  %v5586_v3 = vpop.eup %5585 }
 0x51f   : > { %v1950_v31 = vpop.xlane.xlu0 %1949  ;;  %5597 = vpow2.f32 %v2033_v29  ;;  %v2118_v47 = vpack.c.bf16 %v5578_v37, %v5572_v9  ;;  %v2117_v42 = vpack.c.bf16 %v7634_v30, %v7624_v60  ;;  %v7667_v34 = vadd.f32 %v5586_v3, %v7655_v56 }
 0x520   : > { %v1981_v11 = vsub.f32 %v10266_v51, %v1950_v31  ;;  %v1982_v7 = vsub.f32 %v10267_v55, %v1950_v31  ;;  %v2039_v26 = vmul.f32 1.442695, %v1979_v59  ;;  %v2041_v41 = vmul.f32 1.442695, %v1980_v10  ;;  %2176 = vmatmul.mubr.bf16.gmra.mrb[8].mxu0 %v2115_v23  ;;  %v10268_v23 = vld [vmem:[#allocation63_spill] sm:$0xff] }
 0x521   : > { %5599 = vpow2.f32 %v2035_v33  ;;  %v2304_v2 = vpop.permute.xlu1 %2303  ;;  %v7658_v38 = vpop.eup %5587  ;;  %2183 = vmatprep.mubr.bf16.mxu0 %v2118_v47  ;;  %v2120_v33 = vpack.c.bf16 %v5586_v3, %v7645_v58  ;;  %vm10269_vm0 = vnez %v10268_v23 }
 0x522   : > { %v2043_v12 = vmul.f32 1.442695, %v1981_v11  ;;  %5601 = vpow2.f32 %v2037_v6  ;;  %v2355_v31 = vadd.f32 %v7429_v22, %v2304_v2  ;;  %v2356_v51 = vadd.f32 %v7432_v63, %v2304_v2  ;;  %v7662_v14 = vpop.eup %5589  ;;  %v10270_v2 = vld [vmem:[#allocation64_spill] sm:$0xff] }
 0x523   : > { %v2045_v55 = vmul.f32 1.442695, %v1982_v7  ;;  %5603 = vpow2.f32 %v2039_v26  ;;  %v7672_v59 = vadd.f32 %v7662_v14, %v7658_v38  ;;  %vm10271_vm10 = vnez %v10270_v2 }
 0x524   : > { %5605 = vpow2.f32 %v2041_v41  ;;  %vm2387_vm6 = vcmp.gt.f32.partialorder %v2355_v31, 0.0  ;;  %vm2388_vm5 = vcmp.gt.f32.partialorder %v2356_v51, 0.0  ;;  %v2419_v9 = vmul.f32 0.2, %v2355_v31 }
 0x525   : > { %5607 = vpow2.f32 %v2043_v12  ;;  %v2312_v37 = vpop.permute.xlu1 %2311  ;;  %v2420_v29 = vmul.f32 0.2, %v2356_v51  ;;  %v7676_v11 = vpop.eup %5591 }
 0x526   : > { %5609 = vpow2.f32 %v2045_v55  ;;  %v2359_v10 = vadd.f32 %v7429_v22, %v2312_v37  ;;  %v2360_v60 = vadd.f32 %v7432_v63, %v2312_v37  ;;  %v2451_v6 = vsel %vm2387_vm6, %v2355_v31, %v2419_v9  ;;  %v7684_v58 = vpop.eup %5593 }
 0x527   : > { %v2308_v30 = vpop.permute.xlu0 %2307  ;;  %v2452_v41 = vsel %vm2388_vm5, %v2356_v51, %v2420_v29  ;;  %v7682_v3 = vsel %vm10269_vm0, -999.0, %v2451_v6 }
 0x528   : > { %v2357_v7 = vadd.f32 %v7429_v22, %v2308_v30  ;;  %v2358_v26 = vadd.f32 %v7432_v63, %v2308_v30  ;;  %v7688_v12 = vsel %vm10271_vm10, -999.0, %v2452_v41  ;;  %vm2391_vm8 = vcmp.gt.f32.partialorder %v2359_v10, 0.0  ;;  %v7690_v31 = vpop.eup %5595  ;;  %2184 = vmatmul.mubr.bf16.gmra.mrb[12].mxu0 %v2117_v42 }
 0x529   : > { %vm2392_vm13 = vcmp.gt.f32.partialorder %v2360_v60, 0.0  ;;  %v2423_v47 = vmul.f32 0.2, %v2359_v10  ;;  %v2320_v55 = vpop.permute.xlu1 %2319  ;;  %v2526_v9 = vmax.f32 %v7682_v3, %v7688_v12  ;;  %v2424_v51 = vmul.f32 0.2, %v2360_v60  ;;  %v5598_v37 = vpop.eup %5597  ;;  %2191 = vmatprep.mubr.bf16.mxu0 %v2120_v33 }
 0x52a   : > { %vm2389_vm6 = vcmp.gt.f32.partialorder %v2357_v7, 0.0  ;;  %v2363_v29 = vadd.f32 %v7429_v22, %v2320_v55  ;;  %v2364_v30 = vadd.f32 %v7432_v63, %v2320_v55  ;;  %v2421_v2 = vmul.f32 0.2, %v2357_v7 }
 0x52b   : > { %v2316_v6 = vpop.permute.xlu0 %2315  ;;  %v2455_v41 = vsel %vm2391_vm8, %v2359_v10, %v2423_v47  ;;  %v5600_v23 = vpop.eup %5599  ;;  %2527 = vmax.xlane.f32.xlu0 %v2526_v9  ;;  %v2456_v57 = vsel %vm2392_vm13, %v2360_v60, %v2424_v51  ;;  %v2422_v47 = vmul.f32 0.2, %v2358_v26 }
 0x52c   : > { %v2361_v52 = vadd.f32 %v7429_v22, %v2316_v6  ;;  %v2362_v53 = vadd.f32 %v7432_v63, %v2316_v6  ;;  %v7701_v49 = vsel %vm7269_vm9, -999.0, %v2455_v41  ;;  %v5602_v8 = vpop.eup %5601  ;;  %v7705_v55 = vsel %vm7275_vm4, -999.0, %v2456_v57 }
 0x52d   : > { %10273 = vst [vmem:[#allocation36_spill] sm:$0xff] %v7701_v49  ;;  %10275 = vst [vmem:[#allocation37_spill] sm:$0xff] %v7705_v55  ;;  %vm2395_vm8 = vcmp.gt.f32.partialorder %v2363_v29, 0.0  ;;  %vm2396_vm5 = vcmp.gt.f32.partialorder %v2364_v30, 0.0  ;;  %v2427_v42 = vmul.f32 0.2, %v2363_v29  ;;  %v5604_v10 = vpop.eup %5603  ;;  %v2532_v22 = vmax.f32 %v7701_v49, %v7705_v55 }
 0x52e   : > { %v2428_v63 = vmul.f32 0.2, %v2364_v30  ;;  %v2453_v60 = vsel %vm2389_vm6, %v2357_v7, %v2421_v2  ;;  %v5606_v9 = vpop.eup %5605  ;;  %vm2393_vm13 = vcmp.gt.f32.partialorder %v2361_v52, 0.0  ;;  %vm2394_vm4 = vcmp.gt.f32.partialorder %v2362_v53, 0.0 }
 0x52f   : > { %v2459_v51 = vsel %vm2395_vm8, %v2363_v29, %v2427_v42  ;;  %v7712_v33 = vsel %vm7246_vm12, -999.0, %v2453_v60  ;;  %v5608_v57 = vpop.eup %5607  ;;  %2533 = vmax.xlane.f32.xlu0 %v2532_v22  ;;  %vm10278_vm9 = vcmp.gt.f32.partialorder %v2358_v26, 0.0  ;;  %v2425_v55 = vmul.f32 0.2, %v2361_v52  ;;  %v10283_v29 = vld [vmem:[#allocation73_spill] sm:$0xff] }
 0x530   : > { %v2460_v41 = vsel %vm2396_vm5, %v2364_v30, %v2428_v63  ;;  %v7716_v4 = vsel %vm7331_vm14, -999.0, %v2459_v51  ;;  %v2454_v28 = vsel %vm10278_vm9, %v2358_v26, %v2422_v47  ;;  %v5610_v49 = vpop.eup %5609  ;;  %v2426_v60 = vmul.f32 0.2, %v2362_v53  ;;  %v10281_v51 = vld [vmem:[#allocation72_spill] sm:$0xff] }
 0x531   : > { %v7721_v2 = vsel %vm7394_vm2, -999.0, %v2460_v41  ;;  %v7725_v42 = vsel %vm7252_vm7, -999.0, %v2454_v28  ;;  %v2119_v30 = vpack.c.bf16 %v7655_v56, %v7640_v36  ;;  %v2457_v63 = vsel %vm2393_vm13, %v2361_v52, %v2425_v55 }
 0x532   : > { %v2538_v22 = vmax.f32 %v7716_v4, %v7721_v2  ;;  %v2529_v26 = vmax.f32 %v7712_v33, %v7725_v42  ;;  %v2458_v47 = vsel %vm2394_vm4, %v2362_v53, %v2426_v60  ;;  %vm10282_vm9 = vnez %v10281_v51 }
 0x533   : > { %v7735_v41 = vsel %vm10282_vm9, -999.0, %v2457_v63  ;;  %2192 = vmatmul.mubr.bf16.gmra.mrb[16].mxu0 %v2119_v30  ;;  %v2122_v28 = vpack.c.bf16 %v7684_v58, %v7662_v14  ;;  %vm10284_vm6 = vnez %v10283_v29  ;;  %v7745_v56 = vadd.f32 %v7684_v58, %v7676_v11  ;;  %v5963_v63 = vld [vmem:[%s6789_s16] sm:$0xff] }
 0x534   : > { %2539 = vmax.xlane.f32.xlu0 %v2538_v22  ;;  %2530 = vmax.xlane.f32.xlu1 %v2529_v26  ;;  %v7741_v36 = vsel %vm10284_vm6, -999.0, %v2458_v47  ;;  %v7747_v53 = vadd.f32 %v5602_v8, %v5600_v23  ;;  %v7749_v52 = vadd.f32 %v5610_v49, %v5608_v57  ;;  %v7754_v14 = vadd.f32 %v5598_v37, %v7690_v31 }
 0x535   : > { %v2535_v55 = vmax.f32 %v7735_v41, %v7741_v36  ;;  %2199 = vmatprep.mubr.bf16.mxu0 %v2122_v28  ;;  %v7756_v60 = vadd.f32 %v5606_v9, %v5604_v10  ;;  %v2121_v58 = vpack.c.bf16 %v7676_v11, %v7658_v38  ;;  %v2124_v30 = vpack.c.bf16 %v5602_v8, %v5598_v37  ;;  %v5964_v28 = vld [vmem:[%s6789_s16 + $0x8] sm:$0xff]  ;;  %v5965_v38 = vld [vmem:[%s6789_s16 + $0x10] sm:$0xff] }
 0x536   : > { %v2123_v22 = vpack.c.bf16 %v5600_v23, %v7690_v31  ;;  %v2126_v26 = vpack.c.bf16 %v5610_v49, %v5606_v9  ;;  %v2125_v47 = vpack.c.bf16 %v5608_v57, %v5604_v10  ;;  %v10285_v8 = vmov 2   ;;  %v10286_v49 = vld [vmem:[#allocation81_spill] sm:$0xff]  ;;  %v10287_v31 = vld [vmem:[#allocation82_spill] sm:$0xff]  ;;  %v5966_v9 = vld [vmem:[%s6789_s16 + $0x18] sm:$0xff] }
 0x538   : > { %2536 = vmax.xlane.f32.xlu1 %v2535_v55  ;;  %v9974_v55 = vmov 3  }
 0x53b   : > { %2200 = vmatmul.mubr.bf16.gmra.mrb[20].mxu0 %v2121_v58 }
 0x53c   : > { %2207 = vmatprep.mubr.bf16.mxu0 %v2124_v30 }
 0x543   : > { %2208 = vmatmul.mubr.bf16.gmra.mrb[24].mxu0 %v2123_v22  ;;  %v10288_v22 = vld [vmem:[#allocation83_spill] sm:$0xff] }
 0x544   : > { %2215 = vmatprep.mubr.bf16.mxu0 %v2126_v26 }
 0x549   : > { %2897 = vperm.xlu1 %5529, %v5963_v63  }
 0x54a   : > { %2901 = vperm.xlu0 %5530, %v5964_v28  }
 0x54b   : > { %2216 = vmatmul.mubr.bf16.gmra.mrb[28].mxu0 %v2125_v47 }
 0x54d   : > { %5531 = vset.pattern.permute.xlu1 %v9974_v55 }
 0x54e   : > { %3519 = vperm.xlu1 %5531, %v5963_v63  }
 0x552   : > { %3523 = vperm.xlu1 %5531, %v5964_v28  }
 0x556   : > { %5532 = vset.pattern.permute.xlu1 %v10285_v8 }
 0x557   : > { %2905 = vperm.xlu1 %5532, %v5965_v38  }
 0x558   : > { %v2495_v11 = vpop.xlane.xlu0 %2494 }
 0x559   : > { %v2541_v23 = vsub.f32 %v10286_v49, %v2495_v11  ;;  %v2542_v37 = vsub.f32 %v10287_v31, %v2495_v11  ;;  %v10289_v49 = vmov 3  }
 0x55a   : > { %v2498_v10 = vpop.xlane.xlu1 %2497 }
 0x55b   : > { %2909 = vperm.xlu1 %5532, %v5966_v9   ;;  %v2573_v57 = vmul.f32 1.442695, %v2541_v23  ;;  %v2575_v58 = vmul.f32 1.442695, %v2542_v37  ;;  %v2543_v30 = vsub.f32 %v7471_v25, %v2498_v10  ;;  %v2544_v26 = vsub.f32 %v10288_v22, %v2498_v10 }
 0x55c   : > { %v2501_v63 = vpop.xlane.xlu0 %2500 }
 0x55d   : > { %v2545_v47 = vsub.f32 %v7479_v45, %v2501_v63  ;;  %v2546_v28 = vsub.f32 %v7483_v17, %v2501_v63  ;;  %v2577_v55 = vmul.f32 1.442695, %v2543_v30  ;;  %v2579_v29 = vmul.f32 1.442695, %v2544_v26 }
 0x55e   : > { %5611 = vpow2.f32 %v2573_v57  ;;  %v2507_v11 = vpop.xlane.xlu1 %2506 }
 0x55f   : > { %5613 = vpow2.f32 %v2575_v58  ;;  %5533 = vset.pattern.permute.xlu1 %v10289_v49  ;;  %v2581_v31 = vmul.f32 1.442695, %v2545_v47  ;;  %v2583_v51 = vmul.f32 1.442695, %v2546_v28  ;;  %v2549_v23 = vsub.f32 %v7500_v15, %v2507_v11 }
 0x560   : > { %5615 = vpow2.f32 %v2577_v55  ;;  %v2550_v25 = vsub.f32 %v7504_v5, %v2507_v11  ;;  %3527 = vperm.xlu1 %5533, %v5965_v38   ;;  %v2504_v37 = vpop.xlane.xlu0 %2503 }
 0x561   : > { %5617 = vpow2.f32 %v2579_v29  ;;  %v2547_v45 = vsub.f32 %v7508_v24, %v2504_v37  ;;  %v2548_v17 = vsub.f32 %v7512_v1, %v2504_v37  ;;  %v2589_v10 = vmul.f32 1.442695, %v2549_v23 }
 0x562   : > { %v2591_v57 = vmul.f32 1.442695, %v2550_v25  ;;  %5619 = vpow2.f32 %v2581_v31  ;;  %v2513_v58 = vpop.xlane.xlu1 %2512 }
 0x563   : > { %5621 = vpow2.f32 %v2583_v51  ;;  %v2585_v30 = vmul.f32 1.442695, %v2547_v45  ;;  %v2587_v22 = vmul.f32 1.442695, %v2548_v17  ;;  %v2553_v55 = vsub.f32 %v7516_v16, %v2513_v58  ;;  %v8008_v45 = vld [vmem:[%s6789_s16 + $0x58] sm:$0xff] }
 0x564   : > { %5623 = vpow2.f32 %v2589_v10  ;;  %v2554_v15 = vsub.f32 %v7520_v19, %v2513_v58  ;;  %3531 = vperm.xlu1 %5533, %v5966_v9   ;;  %v2510_v5 = vpop.xlane.xlu0 %2509  ;;  %v7786_v9 = vld [vmem:[#allocation2 + $0x40] sm:$0xff] }
 0x565   : > { %5625 = vpow2.f32 %v2591_v57  ;;  %v2551_v29 = vsub.f32 %v7534_v35, %v2510_v5  ;;  %v2552_v24 = vsub.f32 %v7538_v20, %v2510_v5  ;;  %v2597_v1 = vmul.f32 1.442695, %v2553_v55 }
 0x566   : > { %v2599_v38 = vmul.f32 1.442695, %v2554_v15  ;;  %5627 = vpow2.f32 %v2585_v30  ;;  %v2519_v51 = vpop.xlane.xlu1 %2518 }
 0x567   : > { %5629 = vpow2.f32 %v2587_v22  ;;  %v2593_v26 = vmul.f32 1.442695, %v2551_v29  ;;  %v2595_v63 = vmul.f32 1.442695, %v2552_v24  ;;  %v2557_v16 = vsub.f32 %v7543_v43, %v2519_v51 }
 0x568   : > { %v7782_v47 = vpop.eup %5611  ;;  %5631 = vpow2.f32 %v2597_v1  ;;  %v2558_v19 = vsub.f32 %v7550_v40, %v2519_v51  ;;  %2733 = vrot.lane.b32.xlu1 %v7786_v9, %s6229_s21  ;;  %v2516_v35 = vpop.xlane.xlu0 %2515 }
 0x569   : > { %v7790_v20 = vpop.eup %5613  ;;  %5633 = vpow2.f32 %v2599_v38  ;;  %2051 = vadd.xlane.f32.xlu0 %v7611_v61  ;;  %v2555_v28 = vsub.f32 %v7555_v50, %v2516_v35  ;;  %v2556_v11 = vsub.f32 %v7559_v48, %v2516_v35  ;;  %5534 = vset.pattern.permute.xlu1 %v10285_v8  ;;  %v2605_v40 = vmul.f32 1.442695, %v2557_v16 }
 0x56a   : > { %v7796_v43 = vpop.eup %5615  ;;  %v2607_v31 = vmul.f32 1.442695, %v2558_v19  ;;  %5635 = vpow2.f32 %v2593_v26 }
 0x56b   : > { %v5618_v23 = vpop.eup %5617  ;;  %5637 = vpow2.f32 %v2595_v63  ;;  %v2601_v25 = vmul.f32 1.442695, %v2555_v28  ;;  %v2603_v37 = vmul.f32 1.442695, %v2556_v11 }
 0x56c   : > { %v7800_v17 = vpop.eup %5619  ;;  %5639 = vpow2.f32 %v2605_v40  ;;  %v2686_v50 = vpack.c.bf16 %v5618_v23, %v7790_v20  ;;  %v2522_v48 = vpop.xlane.xlu0 %2521 }
 0x56d   : > { %v7803_v61 = vpop.eup %5621  ;;  %5641 = vpow2.f32 %v2607_v31  ;;  %2057 = vadd.xlane.f32.xlu0 %v7617_v39  ;;  %v2559_v10 = vsub.f32 %v7568_v18, %v2522_v48  ;;  %v2560_v57 = vsub.f32 %v7572_v13, %v2522_v48  ;;  %v8003_v13 = vld [vmem:[#allocation2 + $0x18] sm:$0xff] }
 0x56e   : > { %v7808_v58 = vpop.eup %5623  ;;  %5643 = vpow2.f32 %v2601_v25  ;;  %2797 = vmatprep.mubr.bf16.mxu1 %v2686_v50  ;;  %v7911_v50 = vpop.xlane.xlu1 %2524  ;;  %10308 = vst [vmem:[#allocation77_spill] sm:$0xff] %v8003_v13 }
 0x56f   : > { %v7810_v30 = vpop.eup %5625  ;;  %5645 = vpow2.f32 %v2603_v37  ;;  %v2609_v22 = vmul.f32 1.442695, %v2559_v10  ;;  %v2611_v55 = vmul.f32 1.442695, %v2560_v57  ;;  %v10296_v10 = vld [vmem:[#allocation36_spill] sm:$0xff] }
 0x570   : > { %v7812_v15 = vpop.eup %5627 }
 0x571   : > { %v7814_v5 = vpop.eup %5629  ;;  %2063 = vadd.xlane.f32.xlu0 %v7638_v62  ;;  %5647 = vpow2.f32 %v2609_v22  ;;  %v10297_v22 = vld [vmem:[#allocation37_spill] sm:$0xff] }
 0x572   : > { %v7819_v39 = vpop.eup %5631  ;;  %5649 = vpow2.f32 %v2611_v55  ;;  %v2646_v31 = vadd.f32 %v7814_v5, %v7812_v15  ;;  %v5983_v62 = vld [vmem:[%s6789_s16 + $0x48] sm:$0xff] }
 0x573   : > { %v7823_v29 = vpop.eup %5633 }
 0x574   : > { %v7825_v24 = vpop.eup %5635  ;;  %v7829_v1 = vadd.f32 %v7823_v29, %v7819_v39 }
 0x575   : > { %v7831_v38 = vpop.eup %5637  ;;  %2069 = vadd.xlane.f32.xlu0 %v7643_v54 }
 0x576   : > { %10290 = vst [vmem:[#allocation38_spill] sm:$0xff] %v7829_v1  ;;  %v7836_v51 = vpop.eup %5639  ;;  %v8022_v1 = vld [vmem:[%s6789_s16 + $0x78] sm:$0xff] }
 0x577   : > { %v7840_v63 = vpop.eup %5641 }
 0x578   : > { %v7842_v16 = vpop.eup %5643  ;;  %v7846_v19 = vadd.f32 %v7840_v63, %v7836_v51 }
 0x579   : > { %v7848_v35 = vpop.eup %5645  ;;  %2075 = vadd.xlane.f32.xlu0 %v7667_v34  ;;  %v2640_v34 = vadd.f32 %v5618_v23, %v7796_v43  ;;  %v7907_v23 = vld [vmem:[#allocation2 + $0x68] sm:$0xff] }
 0x57a   : > { %10291 = vst [vmem:[#allocation39_spill] sm:$0xff] %v7846_v19  ;;  %v7853_v54 = vadd.f32 %v7848_v35, %v7842_v16  ;;  %10295 = vst [vmem:[#allocation48_spill] sm:$0xff] %v7907_v23  ;;  %v8014_v19 = vld [vmem:[%s6789_s16 + $0x60] sm:$0xff] }
 0x57b   : > { %v7855_v28 = vpop.eup %5647 }
 0x57c   : > { %10292 = vst [vmem:[#allocation45_spill] sm:$0xff] %v7853_v54  ;;  %v7857_v11 = vpop.eup %5649 }
 0x57d   : > { %2081 = vadd.xlane.f32.xlu0 %v7745_v56  ;;  %v7862_v40 = vadd.f32 %v7857_v11, %v7855_v28  ;;  %v2652_v56 = vadd.f32 %v7831_v38, %v7825_v24 }
 0x57f   : > { %10293 = vst [vmem:[#allocation46_spill] sm:$0xff] %v7862_v40 }
 0x581   : > { %2087 = vadd.xlane.f32.xlu0 %v7747_v53  ;;  %v7897_v53 = vld [vmem:[#allocation2 + $0x58] sm:$0xff] }
 0x582   : > { %10294 = vst [vmem:[#allocation47_spill] sm:$0xff] %v7897_v53 }
 0x585   : > { %2093 = vadd.xlane.f32.xlu0 %v7749_v52  ;;  %v7902_v52 = vld [vmem:[%s6789_s16 + $0x30] sm:$0xff] }
 0x589   : > { %2641 = vadd.xlane.f32.xlu0 %v2640_v34  ;;  %v7916_v34 = vld [vmem:[%s6789_s16 + $0x40] sm:$0xff] }
 0x58c   : > { %2048 = vadd.xlane.f32.xlu1 %v7600_v44  ;;  %v7878_v44 = vld [vmem:[#allocation2] sm:$0xff] }
 0x58d   : > { %2647 = vadd.xlane.f32.xlu0 %v2646_v31 }
 0x590   : > { %2054 = vadd.xlane.f32.xlu1 %v7607_v21  ;;  %v2637_v21 = vadd.f32 %v7790_v20, %v7782_v47 }
 0x591   : > { %2653 = vadd.xlane.f32.xlu0 %v2652_v56 }
 0x594   : > { %2060 = vadd.xlane.f32.xlu1 %v7620_v32  ;;  %v7885_v32 = vld [vmem:[#allocation2 + $0x8] sm:$0xff] }
 0x598   : > { %2066 = vadd.xlane.f32.xlu1 %v7630_v46  ;;  %v2643_v46 = vadd.f32 %v7803_v61, %v7800_v17 }
 0x59c   : > { %2072 = vadd.xlane.f32.xlu1 %v7653_v27  ;;  %v7892_v27 = vld [vmem:[%s6789_s16 + $0x28] sm:$0xff] }
 0x5a0   : > { %2078 = vadd.xlane.f32.xlu1 %v7672_v59  ;;  %v2649_v59 = vadd.f32 %v7810_v30, %v7808_v58 }
 0x5a4   : > { %2084 = vadd.xlane.f32.xlu1 %v7754_v14 }
 0x5a7   : > { %2717 = vrot.lane.b32.xlu0 %v7878_v44, %s6229_s21 }
 0x5a8   : > { %2090 = vadd.xlane.f32.xlu1 %v7756_v60 }
 0x5ab   : > { %2719 = vrot.lane.b32.xlu0 %v7885_v32, %s6229_s21 }
 0x5ac   : > { %2638 = vadd.xlane.f32.xlu1 %v2637_v21 }
 0x5af   : > { %2917 = vperm.xlu0 %5530, %v7892_v27  }
 0x5b0   : > { %2644 = vadd.xlane.f32.xlu1 %v2643_v46 }
 0x5b3   : > { %2739 = vrot.lane.b32.xlu0 %v7897_v53, %s6229_s21 }
 0x5b4   : > { %2650 = vadd.xlane.f32.xlu1 %v2649_v59 }
 0x5b7   : > { %2921 = vperm.xlu0 %5530, %v7902_v52  }
 0x5b8   : > { %v2528_v14 = vpop.xlane.xlu0 %2527 }
 0x5b9   : > { %v2563_v60 = vsub.f32 %v7682_v3, %v2528_v14  ;;  %v2564_v20 = vsub.f32 %v7688_v12, %v2528_v14 }
 0x5bb   : > { %2743 = vrot.lane.b32.xlu0 %v7907_v23, %s6229_s21  ;;  %v2617_v25 = vmul.f32 1.442695, %v2563_v60  ;;  %v2619_v37 = vmul.f32 1.442695, %v2564_v20  ;;  %v5975_v60 = vld [vmem:[#allocation2 + $0x78] sm:$0xff] }
 0x5bc   : > { %v2534_v48 = vpop.xlane.xlu0 %2533 }
 0x5bd   : > { %5651 = vpow2.f32 %v2617_v25  ;;  %v2567_v57 = vsub.f32 %v10296_v10, %v2534_v48  ;;  %v2568_v55 = vsub.f32 %v10297_v22, %v2534_v48 }
 0x5be   : > { %5653 = vpow2.f32 %v2619_v37 }
 0x5bf   : > { %2929 = vperm.xlu0 %5530, %v7916_v34   ;;  %v2625_v3 = vmul.f32 1.442695, %v2567_v57  ;;  %v2627_v12 = vmul.f32 1.442695, %v2568_v55  ;;  %v7924_v57 = vld [vmem:[#allocation2 + $0x48] sm:$0xff] }
 0x5c1   : > { %v2531_v31 = vpop.xlane.xlu1 %2530  ;;  %v2540_v56 = vpop.xlane.xlu0 %2539  ;;  %5655 = vpow2.f32 %v2625_v3 }
 0x5c2   : > { %v2565_v21 = vsub.f32 %v7712_v33, %v2531_v31  ;;  %v2566_v46 = vsub.f32 %v7725_v42, %v2531_v31  ;;  %v2571_v59 = vsub.f32 %v7716_v4, %v2540_v56  ;;  %v2572_v14 = vsub.f32 %v7721_v2, %v2540_v56  ;;  %v7931_v2 = vld [vmem:[%s6789_s16 + $0x50] sm:$0xff]  ;;  %v5978_v31 = vld [vmem:[%s6789_s16 + $0x20] sm:$0xff] }
 0x5c3   : > { %2747 = vrot.lane.b32.xlu0 %v5975_v60, %s6229_s21  ;;  %5657 = vpow2.f32 %v2627_v12 }
 0x5c4   : > { %v2621_v20 = vmul.f32 1.442695, %v2565_v21  ;;  %v2623_v25 = vmul.f32 1.442695, %v2566_v46  ;;  %v2633_v37 = vmul.f32 1.442695, %v2571_v59 }
 0x5c5   : > { %v2635_v48 = vmul.f32 1.442695, %v2572_v14  ;;  %v2537_v10 = vpop.xlane.xlu1 %2536  ;;  %2735 = vrot.lane.b32.xlu1 %v7924_v57, %s6229_s21 }
 0x5c6   : > { %5659 = vpow2.f32 %v2621_v20  ;;  %v2569_v4 = vsub.f32 %v7735_v41, %v2537_v10  ;;  %v2570_v33 = vsub.f32 %v7741_v36, %v2537_v10  ;;  %v7942_v41 = vld [vmem:[%s6789_s16 + $0x70] sm:$0xff]  ;;  %v5981_v10 = vld [vmem:[%s6789_s16 + $0x38] sm:$0xff] }
 0x5c7   : > { %5661 = vpow2.f32 %v2623_v25  ;;  %2937 = vperm.xlu0 %5530, %v7931_v2   ;;  %v7934_v42 = vpop.eup %5651  ;;  %v7966_v25 = vld [vmem:[#allocation2 + $0x50] sm:$0xff] }
 0x5c8   : > { %5663 = vpow2.f32 %v2633_v37  ;;  %v2629_v22 = vmul.f32 1.442695, %v2569_v4  ;;  %v2631_v55 = vmul.f32 1.442695, %v2570_v33  ;;  %v7936_v3 = vpop.eup %5653 }
 0x5c9   : > { %5665 = vpow2.f32 %v2635_v48  ;;  %v7938_v12 = vpop.permute.xlu1 %2897  ;;  %2913 = vperm.xlu1 %5534, %v5978_v31   ;;  %v7947_v36 = vadd.f32 %v7936_v3, %v7934_v42 }
 0x5ca   : > { %5667 = vpow2.f32 %v2629_v22 }
 0x5cb   : > { %5669 = vpow2.f32 %v2631_v55  ;;  %2953 = vperm.xlu0 %5530, %v7942_v41   ;;  %10298 = vst [vmem:[#allocation49_spill] sm:$0xff] %v7947_v36  ;;  %v7952_v21 = vpop.eup %5655 }
 0x5cd   : > { %v7949_v56 = vpop.permute.xlu1 %3519  ;;  %5535 = vset.pattern.permute.xlu1 %v10289_v49  ;;  %v7954_v46 = vpop.eup %5657 }
 0x5ce   : > { %3535 = vperm.xlu1 %5535, %v5978_v31   ;;  %v7975_v48 = vadd.f32 %v7954_v46, %v7952_v21  ;;  %v7992_v31 = vld [vmem:[#allocation2 + $0x10] sm:$0xff] }
 0x5cf   : > { %5544 = vset.pattern.permute.xlu0 %v10289_v49  ;;  %10306 = vst [vmem:[#allocation69_spill] sm:$0xff] %v7992_v31 }
 0x5d0   : > { %v7957_v59 = vpop.eup %5659  ;;  %3539 = vperm.xlu0 %5544, %v7892_v27   ;;  %10301 = vst [vmem:[#allocation57_spill] sm:$0xff] %v7975_v48 }
 0x5d1   : > { %v7960_v14 = vpop.eup %5661  ;;  %v7962_v60 = vpop.permute.xlu1 %3523 }
 0x5d2   : > { %v7964_v20 = vpop.eup %5663  ;;  %2737 = vrot.lane.b32.xlu1 %v7966_v25, %s6229_s21  ;;  %v7988_v22 = vadd.f32 %v7960_v14, %v7957_v59 }
 0x5d3   : > { %10299 = vst [vmem:[#allocation52_spill] sm:$0xff] %v7964_v20  ;;  %v7970_v37 = vpop.eup %5665  ;;  %5536 = vset.pattern.permute.xlu1 %v10285_v8 }
 0x5d4   : > { %10300 = vst [vmem:[#allocation56_spill] sm:$0xff] %v7970_v37  ;;  %v7977_v27 = vpop.eup %5667  ;;  %3547 = vperm.xlu0 %5544, %v5981_v10   ;;  %v7984_v33 = vadd.f32 %v7970_v37, %v7964_v20  ;;  %10305 = vst [vmem:[#allocation66_spill] sm:$0xff] %v7988_v22 }
 0x5d5   : > { %10302 = vst [vmem:[#allocation59_spill] sm:$0xff] %v7977_v27  ;;  %v7980_v4 = vpop.eup %5669 }
 0x5d6   : > { %10303 = vst [vmem:[#allocation60_spill] sm:$0xff] %v7980_v4  ;;  %10304 = vst [vmem:[#allocation65_spill] sm:$0xff] %v7984_v33  ;;  %v7990_v55 = vpop.permute.xlu1 %2905  ;;  %2721 = vrot.lane.b32.xlu1 %v7992_v31, %s6229_s21  ;;  %v7999_v26 = vadd.f32 %v7980_v4, %v7977_v27  ;;  %v8025_v33 = vld [vmem:[#allocation2 + $0x60] sm:$0xff]  ;;  %v8044_v31 = vld [vmem:[#allocation2 + $0x28] sm:$0xff] }
 0x5d7   : > { %10310 = vst [vmem:[#allocation79_spill] sm:$0xff] %v8025_v33  ;;  %10316 = vst [vmem:[#allocation83_spill] sm:$0xff] %v8044_v31 }
 0x5d8   : > { %3555 = vperm.xlu0 %5544, %v5983_v62   ;;  %10307 = vst [vmem:[#allocation75_spill] sm:$0xff] %v7999_v26 }
 0x5da   : > { %v8001_v18 = vpop.permute.xlu1 %2909  ;;  %2723 = vrot.lane.b32.xlu1 %v8003_v13, %s6229_s21  ;;  %v10314_v13 = vld [vmem:[#allocation25_spill] sm:$0xff] }
 0x5dc   : > { %3563 = vperm.xlu0 %5544, %v8008_v45  }
 0x5de   : > { %2925 = vperm.xlu1 %5536, %v5981_v10   ;;  %v4866_v10 = vpop.f32.mrb[0].mxu0 }
 0x5df   : > { %v8011_v22 = vpop.permute.xlu1 %3527  ;;  %v4867_v48 = vpop.f32.mrb[1].mxu0 }
 0x5e0   : > { %3567 = vperm.xlu0 %5544, %v8014_v19   ;;  %v8030_v36 = vadd.f32 %v4867_v48, %v4866_v10  ;;  %v4869_v40 = vpop.f32.mrb[2].mxu0  ;;  %v2902_v10 = vpop.permute.xlu0 %2901 }
 0x5e1   : > { %v4870_v54 = vpop.f32.mrb[3].mxu0 }
 0x5e2   : > { %5537 = vset.pattern.permute.xlu1 %v10289_v49  ;;  %10311 = vst [vmem:[#allocation80_spill] sm:$0xff] %v8030_v36  ;;  %v8036_v7 = vadd.f32 %v4870_v54, %v4869_v40 }
 0x5e3   : > { %v8018_v26 = vpop.permute.xlu1 %3531  ;;  %3543 = vperm.xlu1 %5537, %v7902_v52   ;;  %v8032_v52 = vld [vmem:[#allocation2 + $0x20] sm:$0xff] }
 0x5e4   : > { %10309 = vst [vmem:[#allocation78_spill] sm:$0xff] %v8018_v26  ;;  %3579 = vperm.xlu0 %5544, %v8022_v1   ;;  %10312 = vst [vmem:[#allocation81_spill] sm:$0xff] %v8032_v52 }
 0x5e5   : > { %10313 = vst [vmem:[#allocation82_spill] sm:$0xff] %v8036_v7 }
 0x5e7   : > { %v2734_v6 = vpop.permute.xlu1 %2733  ;;  %2741 = vrot.lane.b32.xlu1 %v8025_v33, %s6229_s21  ;;  %v8039_v33 = vrot.slane %v2895_v0, %v10314_v13 }
 0x5e8   : > { %4914 = vmatprep.subr.bf16.mxu1 %v2734_v6  ;;  %5538 = vset.pattern.permute.xlu1 %v10285_v8  ;;  %v4872_v23 = vpop.f32.mrb[4].mxu0  ;;  %v10315_v6 = vld [vmem:[#allocation26_spill] sm:$0xff] }
 0x5e9   : > { %v8042_v26 = vrot.slane %v2895_v0, %v10315_v6  ;;  %v4873_v48 = vpop.f32.mrb[5].mxu0  ;;  %v2973_v54 = vadd.f32 %v8039_v33, %v2902_v10 }
 0x5ea   : > { %v8048_v36 = vadd.f32 %v4873_v48, %v4872_v23 }
 0x5eb   : > { %2725 = vrot.lane.b32.xlu1 %v8032_v52, %s6229_s21  ;;  %v4875_v52 = vpop.f32.mrb[6].mxu0  ;;  %v2974_v40 = vadd.f32 %v8042_v26, %v2902_v10  ;;  %v3037_v0 = vmul.f32 0.2, %v2973_v54  ;;  %vm3005_vm4 = vcmp.gt.f32.partialorder %v2973_v54, 0.0 }
 0x5ec   : > { %10317 = vst [vmem:[#allocation36_spill] sm:$0xff] %v8048_v36  ;;  %v4876_v7 = vpop.f32.mrb[7].mxu0 }
 0x5ed   : > { %v8052_v53 = vadd.f32 %v4876_v7, %v4875_v52  ;;  %v3038_v20 = vmul.f32 0.2, %v2974_v40  ;;  %vm3006_vm5 = vcmp.gt.f32.partialorder %v2974_v40, 0.0  ;;  %v3069_v37 = vsel %vm3005_vm4, %v2973_v54, %v3037_v0  ;;  %v8081_v0 = vld [vmem:[#allocation2 + $0x30] sm:$0xff] }
 0x5ef   : > { %2727 = vrot.lane.b32.xlu1 %v8044_v31, %s6229_s21  ;;  %10318 = vst [vmem:[#allocation37_spill] sm:$0xff] %v8052_v53  ;;  %v3070_v7 = vsel %vm3006_vm5, %v2974_v40, %v3038_v20  ;;  %v8064_v53 = vld [vmem:[#allocation2 + $0x70] sm:$0xff] }
 0x5f0   : > { %10323 = vst [vmem:[#allocation88_spill] sm:$0xff] %v8064_v53 }
 0x5f3   : > { %2933 = vperm.xlu1 %5538, %v5983_v62   ;;  %v4878_v31 = vpop.f32.mrb[8].mxu0 }
 0x5f4   : > { %v4879_v23 = vpop.f32.mrb[9].mxu0 }
 0x5f5   : > { %v8058_v48 = vadd.f32 %v4879_v23, %v4878_v31  ;;  %v4881_v36 = vpop.f32.mrb[10].mxu0 }
 0x5f6   : > { %v8054_v27 = vpop.xlane.xlu0 %2051  ;;  %v4882_v10 = vpop.f32.mrb[11].mxu0 }
 0x5f7   : > { %10319 = vst [vmem:[#allocation25_spill] sm:$0xff] %v8054_v27  ;;  %5539 = vset.pattern.permute.xlu1 %v10289_v49  ;;  %10320 = vst [vmem:[#allocation26_spill] sm:$0xff] %v8058_v48  ;;  %v8062_v62 = vadd.f32 %v4882_v10, %v4881_v36  ;;  %v10324_v27 = vld [vmem:[#allocation31_spill] sm:$0xff] }
 0x5f8   : > { %3551 = vperm.xlu1 %5539, %v7916_v34   ;;  %vm10325_vm8 = vnez %v10324_v27  ;;  %v10327_v34 = vld [vmem:[#allocation32_spill] sm:$0xff] }
 0x5f9   : > { %10322 = vst [vmem:[#allocation87_spill] sm:$0xff] %v8062_v62  ;;  %v8070_v4 = vsel %vm10325_vm8, -999.0, %v3069_v37  ;;  %vm10328_vm13 = vnez %v10327_v34  ;;  %v5993_v62 = vld [vmem:[#allocation2 + $0x38] sm:$0xff] }
 0x5fa   : > { %v8060_v52 = vpop.xlane.xlu0 %2057  ;;  %10326 = vst [vmem:[#allocation31_spill] sm:$0xff] %v8070_v4  ;;  %v8074_v31 = vsel %vm10328_vm13, -999.0, %v3070_v7 }
 0x5fb   : > { %10321 = vst [vmem:[#allocation86_spill] sm:$0xff] %v8060_v52  ;;  %v4884_v54 = vpop.f32.mrb[12].mxu0  ;;  %v3134_v36 = vmax.f32 %v8070_v4, %v8074_v31 }
 0x5fc   : > { %2745 = vrot.lane.b32.xlu1 %v8064_v53, %s6229_s21  ;;  %v4885_v40 = vpop.f32.mrb[13].mxu0 }
 0x5fd   : > { %5540 = vset.pattern.permute.xlu1 %v10285_v8  ;;  %v8085_v37 = vadd.f32 %v4885_v40, %v4884_v54  ;;  %v4887_v23 = vpop.f32.mrb[14].mxu0 }
 0x5fe   : > { %v8077_v20 = vpop.xlane.xlu0 %2063  ;;  %v4888_v10 = vpop.f32.mrb[15].mxu0 }
 0x5ff   : > { %10329 = vst [vmem:[#allocation32_spill] sm:$0xff] %v8077_v20  ;;  %10330 = vst [vmem:[#allocation89_spill] sm:$0xff] %v8085_v37  ;;  %v8089_v48 = vadd.f32 %v4888_v10, %v4887_v23 }
 0x600   : > { %2729 = vrot.lane.b32.xlu1 %v8081_v0, %s6229_s21 }
 0x601   : > { %10332 = vst [vmem:[#allocation91_spill] sm:$0xff] %v8089_v48 }
 0x602   : > { %v8087_v7 = vpop.xlane.xlu0 %2069 }
 0x603   : > { %10331 = vst [vmem:[#allocation90_spill] sm:$0xff] %v8087_v7  ;;  %3135 = vmax.xlane.f32.xlu0 %v3134_v36 }
 0x604   : > { %2731 = vrot.lane.b32.xlu1 %v5993_v62, %s6229_s21 }
 0x606   : > { %v8092_v20 = vpop.xlane.xlu0 %2075  ;;  %v4890_v52 = vpop.f32.mrb[16].mxu0 }
 0x607   : > { %10333 = vst [vmem:[#allocation92_spill] sm:$0xff] %v8092_v20  ;;  %v4891_v4 = vpop.f32.mrb[17].mxu0 }
 0x608   : > { %2941 = vperm.xlu1 %5540, %v8008_v45   ;;  %v8095_v53 = vadd.f32 %v4891_v4, %v4890_v52  ;;  %v4893_v54 = vpop.f32.mrb[18].mxu0 }
 0x609   : > { %v4894_v40 = vpop.f32.mrb[19].mxu0 }
 0x60a   : > { %10334 = vst [vmem:[#allocation93_spill] sm:$0xff] %v8095_v53  ;;  %v8097_v37 = vpop.xlane.xlu0 %2081  ;;  %v8099_v7 = vadd.f32 %v4894_v40, %v4893_v54  ;;  %v5994_v40 = vld [vmem:[%s6789_s16 + $0x68] sm:$0xff]  ;;  %s10581_s16 = sld [smem:[#allocation137_spill]] }
 0x60b   : > { %10335 = vst [vmem:[#allocation94_spill] sm:$0xff] %v8097_v37 }
 0x60c   : > { %10336 = vst [vmem:[#allocation95_spill] sm:$0xff] %v8099_v7  ;;  %5541 = vset.pattern.permute.xlu1 %v10289_v49 }
 0x60d   : > { %3559 = vperm.xlu1 %5541, %v7931_v2  }
 0x60e   : > { %v8103_v62 = vpop.xlane.xlu0 %2087  ;;  %v4896_v36 = vpop.f32.mrb[20].mxu0 }
 0x60f   : > { %10337 = vst [vmem:[#allocation96_spill] sm:$0xff] %v8103_v62  ;;  %v4897_v23 = vpop.f32.mrb[21].mxu0 }
 0x610   : > { %v8105_v10 = vadd.f32 %v4897_v23, %v4896_v36  ;;  %v4899_v45 = vpop.f32.mrb[22].mxu0 }
 0x611   : > { %5542 = vset.pattern.permute.xlu1 %v10285_v8  ;;  %v4900_v4 = vpop.f32.mrb[23].mxu0 }
 0x612   : > { %10338 = vst [vmem:[#allocation97_spill] sm:$0xff] %v8105_v10  ;;  %2945 = vperm.xlu1 %5542, %v8014_v19   ;;  %v8109_v52 = vpop.xlane.xlu0 %2093  ;;  %v8111_v54 = vadd.f32 %v4900_v4, %v4899_v45 }
 0x613   : > { %10339 = vst [vmem:[#allocation98_spill] sm:$0xff] %v8109_v52 }
 0x614   : > { %10340 = vst [vmem:[#allocation99_spill] sm:$0xff] %v8111_v54 }
 0x616   : > { %2949 = vperm.xlu1 %5542, %v5994_v40   ;;  %v8114_v53 = vpop.xlane.xlu0 %2641  ;;  %v4902_v2 = vpop.f32.mrb[24].mxu0 }
 0x617   : > { %10341 = vst [vmem:[#allocation100_spill] sm:$0xff] %v8114_v53  ;;  %v4903_v7 = vpop.f32.mrb[25].mxu0 }
 0x618   : > { %v8116_v48 = vadd.f32 %v4903_v7, %v4902_v2  ;;  %v4905_v36 = vpop.f32.mrb[26].mxu0 }
 0x619   : > { %v8118_v23 = vpop.xlane.xlu1 %2048  ;;  %3339 = vrot.lane.b32.xlu0 %v7878_v44, %s6230_s14  ;;  %v4906_v19 = vpop.f32.mrb[27].mxu0 }
 0x61a   : > { %10342 = vst [vmem:[#allocation101_spill] sm:$0xff] %v8116_v48  ;;  %10343 = vst [vmem:[#allocation102_spill] sm:$0xff] %v8118_v23  ;;  %5543 = vset.pattern.permute.xlu1 %v10289_v49  ;;  %v8123_v45 = vpop.xlane.xlu0 %2647  ;;  %v8125_v4 = vadd.f32 %v4906_v19, %v4905_v36 }
 0x61b   : > { %10344 = vst [vmem:[#allocation103_spill] sm:$0xff] %v8123_v45  ;;  %3571 = vperm.xlu1 %5543, %v5994_v40   ;;  %v3517_v40 = vld [vmem:[#allocation4 + $0x3] ss:$4 sm:$0x3] }
 0x61c   : > { %10345 = vst [vmem:[#allocation104_spill] sm:$0xff] %v8125_v4 }
 0x61d   : > { %v8127_v10 = vpop.xlane.xlu1 %2054 }
 0x61e   : > { %10346 = vst [vmem:[#allocation105_spill] sm:$0xff] %v8127_v10  ;;  %v8129_v20 = vpop.xlane.xlu0 %2653  ;;  %v4908_v7 = vpop.f32.mrb[28].mxu0 }
 0x61f   : > { %10347 = vst [vmem:[#allocation106_spill] sm:$0xff] %v8129_v20  ;;  %5545 = vset.pattern.permute.xlu1 %v10285_v8  ;;  %v4909_v2 = vpop.f32.mrb[29].mxu0  ;;  %v8144_v8 = vrot.slane %v3517_v40, %v10314_v13 }
 0x620   : > { %2957 = vperm.xlu1 %5545, %v8022_v1   ;;  %v8133_v54 = vadd.f32 %v4909_v2, %v4908_v7  ;;  %v4911_v52 = vpop.f32.mrb[30].mxu0  ;;  %v8147_v1 = vrot.slane %v3517_v40, %v10315_v6 }
 0x621   : > { %v8135_v62 = vpop.xlane.xlu1 %2060  ;;  %v4912_v37 = vpop.f32.mrb[31].mxu0  ;;  %v3595_v7 = vadd.f32 %v8144_v8, %v7962_v60  ;;  %v3593_v53 = vadd.f32 %v8144_v8, %v7949_v56 }
 0x622   : > { %10348 = vst [vmem:[#allocation107_spill] sm:$0xff] %v8133_v54  ;;  %10349 = vst [vmem:[#allocation108_spill] sm:$0xff] %v8135_v62  ;;  %v2718_v48 = vpop.permute.xlu0 %2717  ;;  %v8137_v36 = vadd.f32 %v4912_v37, %v4911_v52  ;;  %v3596_v37 = vadd.f32 %v8147_v1, %v7962_v60  ;;  %v10360_v62 = vld [vmem:[#allocation27_spill] sm:$0xff] }
 0x623   : > { %4915 = vmatpush3.bf16.msra.mxu1 %v2718_v48  ;;  %v3659_v48 = vmul.f32 0.2, %v3595_v7  ;;  %vm3627_vm4 = vcmp.gt.f32.partialorder %v3595_v7, 0.0 }
 0x624   : > { %10350 = vst [vmem:[#allocation109_spill] sm:$0xff] %v8137_v36  ;;  %5546 = vset.pattern.permute.xlu1 %v10289_v49  ;;  %v3660_v49 = vmul.f32 0.2, %v3596_v37  ;;  %vm3628_vm5 = vcmp.gt.f32.partialorder %v3596_v37, 0.0  ;;  %v10362_v36 = vld [vmem:[#allocation28_spill] sm:$0xff] }
 0x625   : > { %v8140_v19 = vpop.xlane.xlu1 %2066  ;;  %3575 = vperm.xlu1 %5546, %v7942_v41   ;;  %v3691_v41 = vsel %vm3627_vm4, %v3595_v7, %v3659_v48  ;;  %v2971_v7 = vadd.f32 %v8039_v33, %v7938_v12  ;;  %vm10361_vm4 = vnez %v10360_v62  ;;  %v10369_v62 = vpack.c.bf16 %v7796_v43, %v7782_v47 }
 0x626   : > { %10351 = vst [vmem:[#allocation110_spill] sm:$0xff] %v8140_v19  ;;  %v3692_v13 = vsel %vm3628_vm5, %v3596_v37, %v3660_v49  ;;  %v8161_v6 = vsel %vm10325_vm8, -999.0, %v3691_v41  ;;  %v2972_v37 = vadd.f32 %v8042_v26, %v7938_v12  ;;  %vm10363_vm5 = vnez %v10362_v36  ;;  %v2720_v54 = vpop.permute.xlu0 %2719 }
 0x627   : > { %10355 = vst [vmem:[#allocation114_spill] sm:$0xff] %v8161_v6  ;;  %v8165_v40 = vsel %vm10328_vm13, -999.0, %v3692_v13  ;;  %v3035_v27 = vmul.f32 0.2, %v2971_v7  ;;  %vm3003_vm8 = vcmp.gt.f32.partialorder %v2971_v7, 0.0  ;;  %v10370_v36 = vpack.c.bf16 %v7814_v5, %v7803_v61 }
 0x628   : > { %v3036_v49 = vmul.f32 0.2, %v2972_v37  ;;  %vm3004_vm13 = vcmp.gt.f32.partialorder %v2972_v37, 0.0  ;;  %v3597_v47 = vadd.f32 %v8144_v8, %v8011_v22  ;;  %v2692_v43 = vpack.c.bf16 %v7848_v35, %v7823_v29 }
 0x629   : > { %v8153_v52 = vpop.xlane.xlu1 %2072  ;;  %v3067_v13 = vsel %vm3003_vm8, %v2971_v7, %v3035_v27  ;;  %v10374_v61 = vpack.c.bf16 %v7825_v24, %v7808_v58  ;;  %v2691_v29 = vpack.c.bf16 %v7842_v16, %v7819_v39  ;;  %v2694_v58 = vpack.c.bf16 %v7857_v11, %v7840_v63 }
 0x62a   : > { %10352 = vst [vmem:[#allocation111_spill] sm:$0xff] %v8153_v52  ;;  %v3756_v52 = vmax.f32 %v8161_v6, %v8165_v40  ;;  %v3661_v5 = vmul.f32 0.2, %v3597_v47  ;;  %v2693_v63 = vpack.c.bf16 %v7855_v28, %v7836_v51  ;;  %v2698_v51 = vpack.c.bf16 %v7954_v46, %v7960_v14  ;;  %v10380_v46 = vld [vmem:[#allocation60_spill] sm:$0xff] }
 0x62b   : > { %v2977_v28 = vadd.f32 %v8039_v33, %v8001_v18  ;;  %v10381_v14 = vld [vmem:[#allocation56_spill] sm:$0xff] }
 0x62d   : > { %v8155_v2 = vpop.xlane.xlu1 %2078 }
 0x62e   : > { %10353 = vst [vmem:[#allocation112_spill] sm:$0xff] %v8155_v2  ;;  %v3068_v2 = vsel %vm3004_vm13, %v2972_v37, %v3036_v49  ;;  %v8197_v37 = vpop.permute.xlu0 %2917 }
 0x62f   : > { %v8187_v4 = vsel %vm10363_vm5, -999.0, %v3068_v2 }
 0x631   : > { %v8157_v19 = vpop.xlane.xlu1 %2084 }
 0x632   : > { %10354 = vst [vmem:[#allocation113_spill] sm:$0xff] %v8157_v19  ;;  %v2740_v49 = vpop.permute.xlu0 %2739 }
 0x635   : > { %v8167_v60 = vpop.xlane.xlu1 %2090 }
 0x636   : > { %10356 = vst [vmem:[#allocation115_spill] sm:$0xff] %v8167_v60  ;;  %v8211_v23 = vpop.permute.xlu0 %2921 }
 0x638   : > { %3757 = vmax.xlane.f32.xlu0 %v3756_v52  ;;  %v8183_v52 = vsel %vm10361_vm4, -999.0, %v3067_v13  ;;  %v2976_v13 = vadd.f32 %v8042_v26, %v7990_v55 }
 0x639   : > { %v8175_v48 = vpop.xlane.xlu1 %2638  ;;  %v3131_v60 = vmax.f32 %v8183_v52, %v8187_v4 }
 0x63a   : > { %10357 = vst [vmem:[#allocation116_spill] sm:$0xff] %v8175_v48  ;;  %v3040_v10 = vmul.f32 0.2, %v2976_v13  ;;  %vm3008_vm13 = vcmp.gt.f32.partialorder %v2976_v13, 0.0  ;;  %v2744_v45 = vpop.permute.xlu0 %2743 }
 0x63d   : > { %v8177_v41 = vpop.xlane.xlu1 %2644 }
 0x63e   : > { %10358 = vst [vmem:[#allocation117_spill] sm:$0xff] %v8177_v41  ;;  %v10364_v41 = vld [vmem:[#allocation29_spill] sm:$0xff] }
 0x63f   : > { %vm10365_vm6 = vnez %v10364_v41 }
 0x641   : > { %v8179_v34 = vpop.xlane.xlu1 %2650 }
 0x642   : > { %10359 = vst [vmem:[#allocation118_spill] sm:$0xff] %v8179_v34 }
 0x645   : > { %v2736_v12 = vpop.permute.xlu1 %2735 }
 0x646   : > { %4916 = vmatprep.subr.bf16.mxu1 %v2736_v12 }
 0x647   : > { %4917 = vmatpush3.bf16.msra.mxu1 %v2720_v54 }
 0x649   : > { %3132 = vmax.xlane.f32.xlu1 %v3131_v60  ;;  %v8191_v19 = vpop.permute.xlu1 %2913 }
 0x64d   : > { %v8193_v7 = vpop.permute.xlu1 %3535 }
 0x64e   : > { %3961 = vrot.lane.b32.xlu0 %v7878_v44, %s6231_s2  ;;  %v2975_v44 = vadd.f32 %v8039_v33, %v7990_v55  ;;  %v10366_v55 = vld [vmem:[#allocation30_spill] sm:$0xff] }
 0x64f   : > { %vm10367_vm9 = vnez %v10366_v55 }
 0x650   : > { %vm3007_vm8 = vcmp.gt.f32.partialorder %v2975_v44, 0.0 }
 0x651   : > { %v2738_v2 = vpop.permute.xlu1 %2737 }
 0x652   : > { %3979 = vrot.lane.b32.xlu0 %v7924_v57, %s6231_s2  ;;  %4918 = vmatprep.subr.bf16.mxu1 %v2738_v2  ;;  %v3039_v2 = vmul.f32 0.2, %v2975_v44 }
 0x655   : > { %v2722_v27 = vpop.permute.xlu1 %2721 }
 0x656   : > { %4919 = vmatpush3.bf16.msra.mxu1 %v2722_v27 }
 0x657   : > { %4920 = vmatprep.subr.bf16.mxu1 %v2740_v49  ;;  %v3071_v49 = vsel %vm3007_vm8, %v2975_v44, %v3039_v2  ;;  %vm3625_vm8 = vcmp.gt.f32.partialorder %v3593_v53, 0.0 }
 0x658   : > { %v8215_v34 = vsel %vm10365_vm6, -999.0, %v3071_v49 }
 0x659   : > { %v2724_v54 = vpop.permute.xlu1 %2723 }
 0x65a   : > { %3355 = vrot.lane.b32.xlu1 %v7786_v9, %s6230_s14  ;;  %4921 = vmatpush3.bf16.msra.mxu1 %v2724_v54  ;;  %v3072_v54 = vsel %vm3008_vm13, %v2976_v13, %v3040_v10  ;;  %v3657_v10 = vmul.f32 0.2, %v3593_v53 }
 0x65b   : > { %v8219_v48 = vsel %vm10367_vm9, -999.0, %v3072_v54 }
 0x65c   : > { %10368 = vst [vmem:[#allocation27_spill] sm:$0xff] %v8219_v48  ;;  %v3689_v2 = vsel %vm3625_vm8, %v3593_v53, %v3657_v10 }
 0x65d   : > { %v8203_v60 = vpop.permute.xlu1 %2925  ;;  %v8233_v6 = vsel %vm10361_vm4, -999.0, %v3689_v2  ;;  %v10373_v2 = vld [vmem:[#allocation85_spill] sm:$0xff]  ;;  %vm3629_vm4 = vcmp.gt.f32.partialorder %v3597_v47, 0.0 }
 0x65e   : > { %v3693_v24 = vsel %vm3629_vm4, %v3597_v47, %v3661_v5 }
 0x662   : > { %v8209_v12 = vpop.permute.xlu1 %3543 }
 0x666   : > { %v2742_v27 = vpop.permute.xlu1 %2741 }
 0x667   : > { %4922 = vmatprep.subr.bf16.mxu1 %v2742_v27  ;;  %v3594_v27 = vadd.f32 %v8147_v1, %v7949_v56 }
 0x669   : > { %vm3626_vm13 = vcmp.gt.f32.partialorder %v3594_v27, 0.0 }
 0x66a   : > { %v2726_v20 = vpop.permute.xlu1 %2725 }
 0x66b   : > { %4923 = vmatpush3.bf16.msra.mxu1 %v2726_v20  ;;  %v3137_v20 = vmax.f32 %v8215_v34, %v8219_v48 }
 0x66c   : > { %4924 = vmatprep.subr.bf16.mxu1 %v2744_v45  ;;  %v3658_v45 = vmul.f32 0.2, %v3594_v27 }
 0x66e   : > { %v2728_v44 = vpop.permute.xlu1 %2727  ;;  %v3690_v49 = vsel %vm3626_vm13, %v3594_v27, %v3658_v45  ;;  %v10372_v45 = vpack.c.bf16 %v7831_v38, %v7810_v30  ;;  %v10375_v30 = vld [vmem:[#allocation84_spill] sm:$0xff] }
 0x66f   : > { %4925 = vmatpush3.bf16.msra.mxu1 %v2728_v44  ;;  %v8237_v56 = vsel %vm10363_vm5, -999.0, %v3690_v49  ;;  %v8239_v44 = vpop.permute.xlu0 %2929  ;;  %v2562_v49 = vsub.f32 %v10373_v2, %v7911_v50 }
 0x670   : > { %v3753_v48 = vmax.f32 %v8233_v6, %v8237_v56 }
 0x671   : > { %3138 = vmax.xlane.f32.xlu0 %v3137_v20 }
 0x672   : > { %v8227_v13 = vpop.permute.xlu1 %2933 }
 0x673   : > { %v2748_v27 = vpop.permute.xlu0 %2747 }
 0x677   : > { %v8229_v54 = vpop.permute.xlu1 %3551 }
 0x67b   : > { %v2746_v20 = vpop.permute.xlu1 %2745 }
 0x67c   : > { %4926 = vmatprep.subr.bf16.mxu1 %v2746_v20 }
 0x67e   : > { %3754 = vmax.xlane.f32.xlu1 %v3753_v48  ;;  %v10371_v48 = vpack.c.bf16 %v7812_v15, %v7800_v17  ;;  %v2615_v17 = vmul.f32 1.442695, %v2562_v49  ;;  %v2561_v15 = vsub.f32 %v10375_v30, %v7911_v50  ;;  %v8284_v50 = vsel %vm10365_vm6, -999.0, %v3693_v24  ;;  %v10386_v30 = vld [vmem:[#allocation52_spill] sm:$0xff] }
 0x67f   : > { %v2730_v53 = vpop.permute.xlu1 %2729  ;;  %10376 = vst [vmem:[#allocation28_spill] sm:$0xff] %v8284_v50 }
 0x680   : > { %4927 = vmatpush3.bf16.msra.mxu1 %v2730_v53  ;;  %5671 = vpow2.f32 %v2615_v17  ;;  %v2613_v35 = vmul.f32 1.442695, %v2561_v15  ;;  %v10383_v17 = vld [vmem:[#allocation34_spill] sm:$0xff] }
 0x681   : > { %4928 = vmatprep.subr.bf16.mxu1 %v2748_v27  ;;  %vm10384_vm8 = vnez %v10383_v17  ;;  %v3601_v17 = vadd.f32 %v8144_v8, %v8193_v7 }
 0x682   : > { %5673 = vpow2.f32 %v2613_v35 }
 0x683   : > { %v2732_v10 = vpop.permute.xlu1 %2731 }
 0x684   : > { %4929 = vmatpush3.bf16.msra.mxu1 %v2732_v10 }
 0x687   : > { %3359 = vrot.lane.b32.xlu0 %v7966_v25, %s6230_s14  ;;  %2798 = vmatmul.mubr.bf16.vlgmr.msra.gmra.mrb[0].mxu1 %v10369_v62  ;;  %v8308_v27 = vpop.permute.xlu1 %2941  ;;  %v3041_v62 = vmul.f32 0.2, %v2977_v28 }
 0x688   : > { %2805 = vmatprep.mubr.bf16.mxu1 %v10370_v36 }
 0x68a   : > { %v8294_v16 = vpop.eup %5671 }
 0x68b   : > { %10378 = vst [vmem:[#allocation30_spill] sm:$0xff] %v8294_v16  ;;  %v2696_v11 = vpack.c.bf16 %v7936_v3, %v8294_v16  ;;  %v2978_v3 = vadd.f32 %v8042_v26, %v8001_v18 }
 0x68c   : > { %v8302_v55 = vpop.eup %5673 }
 0x68d   : > { %10379 = vst [vmem:[#allocation85_spill] sm:$0xff] %v8302_v55  ;;  %v2695_v53 = vpack.c.bf16 %v7934_v42, %v8302_v55  ;;  %v3042_v36 = vmul.f32 0.2, %v2978_v3  ;;  %vm3010_vm6 = vcmp.gt.f32.partialorder %v2978_v3, 0.0  ;;  %v8318_v42 = vpop.permute.xlu1 %3559 }
 0x68f   : > { %3977 = vrot.lane.b32.xlu1 %v7786_v9, %s6231_s2  ;;  %2806 = vmatmul.mubr.bf16.gmra.mrb[4].mxu1 %v10371_v48  ;;  %v3598_v9 = vadd.f32 %v8147_v1, %v8011_v22  ;;  %v2697_v48 = vpack.c.bf16 %v7952_v21, %v7957_v59  ;;  %v3074_v49 = vsel %vm3010_vm6, %v2978_v3, %v3042_v36  ;;  %v10385_v59 = vld [vmem:[#allocation59_spill] sm:$0xff] }
 0x690   : > { %2813 = vmatprep.mubr.bf16.mxu1 %v10372_v45  ;;  %v2700_v45 = vpack.c.bf16 %v10381_v14, %v10380_v46  ;;  %v2699_v15 = vpack.c.bf16 %v10386_v30, %v10385_v59  ;;  %v10395_v30 = vld [vmem:[#allocation78_spill] sm:$0xff] }
 0x691   : > { %v3662_v38 = vmul.f32 0.2, %v3598_v9  ;;  %vm3630_vm5 = vcmp.gt.f32.partialorder %v3598_v9, 0.0  ;;  %v8326_v47 = vpop.permute.xlu1 %2945 }
 0x693   : > { %3357 = vrot.lane.b32.xlu1 %v7924_v57, %s6230_s14  ;;  %v3694_v57 = vsel %vm3630_vm5, %v3598_v9, %v3662_v38 }
 0x694   : > { %v8288_v22 = vsel %vm10367_vm9, -999.0, %v3694_v57  ;;  %vm3009_vm9 = vcmp.gt.f32.partialorder %v2977_v28, 0.0 }
 0x695   : > { %10377 = vst [vmem:[#allocation29_spill] sm:$0xff] %v8288_v22  ;;  %v3759_v39 = vmax.f32 %v8284_v50, %v8288_v22  ;;  %v3073_v2 = vsel %vm3009_vm9, %v2977_v28, %v3041_v62  ;;  %v8344_v38 = vpop.permute.xlu1 %2949 }
 0x697   : > { %3341 = vrot.lane.b32.xlu1 %v7885_v32, %s6230_s14  ;;  %2814 = vmatmul.mubr.bf16.gmra.mrb[8].mxu1 %v10374_v61  ;;  %v8334_v61 = vsel %vm10384_vm8, -999.0, %v3074_v49 }
 0x698   : > { %2821 = vmatprep.mubr.bf16.mxu1 %v2692_v43  ;;  %v8330_v43 = vsel %vm10232_vm11, -999.0, %v3073_v2 }
 0x699   : > { %v3140_v21 = vmax.f32 %v8330_v43, %v8334_v61 }
 0x69b   : > { %3963 = vrot.lane.b32.xlu1 %v7885_v32, %s6231_s2  ;;  %v8290_v32 = vpop.permute.xlu0 %2937 }
 0x69f   : > { %2822 = vmatmul.mubr.bf16.gmra.mrb[12].mxu1 %v2691_v29  ;;  %v8300_v41 = vpop.permute.xlu0 %2953  ;;  %v10387_v29 = vld [vmem:[#allocation47_spill] sm:$0xff] }
 0x6a0   : > { %2829 = vmatprep.mubr.bf16.mxu1 %v2694_v58 }
 0x6a3   : > { %v8304_v20 = vpop.permute.xlu0 %3539 }
 0x6a6   : > { %3760 = vmax.xlane.f32.xlu0 %v3759_v39  ;;  %v10388_v39 = vld [vmem:[#allocation69_spill] sm:$0xff] }
 0x6a7   : > { %2830 = vmatmul.mubr.bf16.gmra.mrb[16].mxu1 %v2693_v63  ;;  %v8316_v10 = vpop.permute.xlu0 %3547 }
 0x6a8   : > { %2837 = vmatprep.mubr.bf16.mxu1 %v2696_v11  ;;  %v2979_v11 = vadd.f32 %v8039_v33, %v8191_v19 }
 0x6aa   : > { %v3043_v3 = vmul.f32 0.2, %v2979_v11  ;;  %vm3011_vm13 = vcmp.gt.f32.partialorder %v2979_v11, 0.0 }
 0x6ab   : > { %v8324_v18 = vpop.permute.xlu0 %3555 }
 0x6ac   : > { %v3075_v2 = vsel %vm3011_vm13, %v2979_v11, %v3043_v3 }
 0x6af   : > { %2838 = vmatmul.mubr.bf16.gmra.mrb[20].mxu1 %v2695_v53  ;;  %v8342_v5 = vpop.permute.xlu0 %3563  ;;  %v2980_v53 = vadd.f32 %v8042_v26, %v8191_v19 }
 0x6b0   : > { %2845 = vmatprep.mubr.bf16.mxu1 %v2698_v51 }
 0x6b1   : > { %v3044_v62 = vmul.f32 0.2, %v2980_v53  ;;  %vm3012_vm4 = vcmp.gt.f32.partialorder %v2980_v53, 0.0 }
 0x6b3   : > { %v8348_v35 = vpop.permute.xlu0 %3567  ;;  %v3076_v19 = vsel %vm3012_vm4, %v2980_v53, %v3044_v62 }
 0x6b7   : > { %2846 = vmatmul.mubr.bf16.gmra.mrb[24].mxu1 %v2697_v48  ;;  %v8354_v58 = vpop.permute.xlu0 %3579 }
 0x6b8   : > { %2853 = vmatprep.mubr.bf16.mxu1 %v2700_v45 }
 0x6bb   : > { %v8358_v57 = vpop.xlane.xlu0 %3135 }
 0x6bc   : > { %3981 = vrot.lane.b32.xlu0 %v7966_v25, %s6231_s2  ;;  %v8352_v25 = vpop.permute.xlu1 %3571  ;;  %v3182_v51 = vsub.f32 %v8074_v31, %v8358_v57  ;;  %v10389_v31 = vld [vmem:[#allocation35_spill] sm:$0xff] }
 0x6bd   : > { %vm10390_vm5 = vnez %v10389_v31 }
 0x6be   : > { %v3217_v36 = vmul.f32 1.442695, %v3182_v51  ;;  %v8376_v49 = vsel %vm10390_vm5, -999.0, %v3075_v2  ;;  %v10397_v2 = vld [vmem:[#allocation79_spill] sm:$0xff] }
 0x6bf   : > { %3141 = vmax.xlane.f32.xlu1 %v3140_v21  ;;  %2854 = vmatmul.mubr.bf16.gmra.mrb[28].mxu1 %v2699_v15  ;;  %v3340_v45 = vpop.permute.xlu0 %3339  ;;  %10391 = vst [vmem:[#allocation84_spill] sm:$0xff] %v8376_v49  ;;  %v10392_v21 = vld [vmem:[#allocation40_spill] sm:$0xff]  ;;  %v3599_v15 = vadd.f32 %v8144_v8, %v10395_v30 }
 0x6c0   : > { %3361 = vrot.lane.b32.xlu0 %v10387_v29, %s6230_s14  ;;  %v8356_v24 = vpop.permute.xlu1 %2957  ;;  %5675 = vpow2.f32 %v3217_v36  ;;  %vm10393_vm9 = vnez %v10392_v21 }
 0x6c1   : > { %v8380_v59 = vsel %vm10393_vm9, -999.0, %v3076_v19  ;;  %v3663_v3 = vmul.f32 0.2, %v3599_v15  ;;  %vm3631_vm6 = vcmp.gt.f32.partialorder %v3599_v15, 0.0 }
 0x6c2   : > { %10394 = vst [vmem:[#allocation60_spill] sm:$0xff] %v8380_v59 }
 0x6c3   : > { %v3695_v36 = vsel %vm3631_vm6, %v3599_v15, %v3663_v3  ;;  %v10399_v15 = vld [vmem:[#allocation77_spill] sm:$0xff]  ;;  %v3665_v3 = vmul.f32 0.2, %v3601_v17 }
 0x6c4   : > { %3983 = vrot.lane.b32.xlu0 %v10387_v29, %s6231_s2  ;;  %v8362_v63 = vpop.permute.xlu1 %3575  ;;  %v3600_v29 = vadd.f32 %v8147_v1, %v10395_v30 }
 0x6c5   : > { %v8406_v19 = vpop.xlane.xlu0 %3757 }
 0x6c6   : > { %v3664_v62 = vmul.f32 0.2, %v3600_v29  ;;  %vm3632_vm13 = vcmp.gt.f32.partialorder %v3600_v29, 0.0  ;;  %10398 = vst [vmem:[#allocation33_spill] sm:$0xff] %v8406_v19  ;;  %v3804_v9 = vsub.f32 %v8165_v40, %v8406_v19 }
 0x6c9   : > { %v3962_v30 = vpop.permute.xlu0 %3961 }
 0x6ca   : > { %v8388_v11 = vpop.eup %5675 }
 0x6cd   : > { %v3980_v40 = vpop.permute.xlu0 %3979 }
 0x6d0   : > { %3343 = vrot.lane.b32.xlu1 %v10388_v39, %s6230_s14 }
 0x6d6   : > { %v8370_v28 = vpop.xlane.xlu1 %3132 }
 0x6d7   : > { %v3180_v48 = vsub.f32 %v8187_v4, %v8370_v28  ;;  %v3143_v4 = vmax.f32 %v8376_v49, %v8380_v59 }
 0x6d9   : > { %v3213_v46 = vmul.f32 1.442695, %v3180_v48  ;;  %v3696_v48 = vsel %vm3632_vm13, %v3600_v29, %v3664_v62  ;;  %v3839_v29 = vmul.f32 1.442695, %v3804_v9 }
 0x6da   : > { %v3356_v14 = vpop.permute.xlu1 %3355 }
 0x6db   : > { %4978 = vmatprep.subr.bf16.mxu0 %v3356_v14  ;;  %5677 = vpow2.f32 %v3213_v46  ;;  %v8396_v46 = vsel %vm10232_vm11, -999.0, %v3695_v36  ;;  %v8400_v14 = vsel %vm10384_vm8, -999.0, %v3696_v48  ;;  %vm3633_vm11 = vcmp.gt.f32.partialorder %v3601_v17, 0.0 }
 0x6dc   : > { %4979 = vmatpush3.bf16.msra.mxu0 %v3340_v45  ;;  %v3762_v45 = vmax.f32 %v8396_v46, %v8400_v14  ;;  %5679 = vpow2.f32 %v3839_v29  ;;  %v3697_v9 = vsel %vm3633_vm11, %v3601_v17, %v3665_v3 }
 0x6e3   : > { %3144 = vmax.xlane.f32.xlu0 %v3143_v4  ;;  %v3602_v4 = vadd.f32 %v8147_v1, %v8193_v7 }
 0x6e5   : > { %v8390_v53 = vpop.eup %5677  ;;  %v3666_v62 = vmul.f32 0.2, %v3602_v4  ;;  %vm3634_vm8 = vcmp.gt.f32.partialorder %v3602_v4, 0.0 }
 0x6e6   : > { %10396 = vst [vmem:[#allocation56_spill] sm:$0xff] %v8390_v53  ;;  %v3324_v51 = vpack.c.bf16 %v8388_v11, %v8390_v53 }
 0x6e7   : > { %v3698_v50 = vsel %vm3634_vm8, %v3602_v4, %v3666_v62 }
 0x6e8   : > { %3419 = vmatprep.mubr.bf16.mxu0 %v3324_v51 }
 0x6f4   : > { %3763 = vmax.xlane.f32.xlu1 %v3762_v45 }
 0x6f9   : > { %3363 = vrot.lane.b32.xlu0 %v10397_v2, %s6230_s14 }
 0x705   : > { %3965 = vrot.lane.b32.xlu1 %v10388_v39, %s6231_s2 }
 0x709   : > { %3345 = vrot.lane.b32.xlu1 %v10399_v15, %s6230_s14 }
 0x70b   : > { %v3755_v51 = vpop.xlane.xlu1 %3754 }
 0x70c   : > { %v3801_v36 = vsub.f32 %v8233_v6, %v3755_v51  ;;  %v3802_v39 = vsub.f32 %v8237_v56, %v3755_v51  ;;  %v8424_v56 = vsel %vm10390_vm5, -999.0, %v3697_v9  ;;  %v8430_v51 = vpop.xlane.xlu0 %3138  ;;  %v10405_v9 = vld [vmem:[#allocation41_spill] sm:$0xff] }
 0x70d   : > { %3967 = vrot.lane.b32.xlu1 %v10399_v15, %s6231_s2  ;;  %10400 = vst [vmem:[#allocation34_spill] sm:$0xff] %v8424_v56  ;;  %v8428_v15 = vsel %vm10393_vm9, -999.0, %v3698_v50  ;;  %vm10406_vm9 = vnez %v10405_v9 }
 0x70e   : > { %v3833_v48 = vmul.f32 1.442695, %v3801_v36  ;;  %v3835_v7 = vmul.f32 1.442695, %v3802_v39  ;;  %10401 = vst [vmem:[#allocation59_spill] sm:$0xff] %v8428_v15  ;;  %v3765_v29 = vmax.f32 %v8424_v56, %v8428_v15  ;;  %v2981_v36 = vadd.f32 %v8039_v33, %v8197_v37 }
 0x70f   : > { %v3978_v45 = vpop.permute.xlu1 %3977  ;;  %v2982_v39 = vadd.f32 %v8042_v26, %v8197_v37 }
 0x710   : > { %5681 = vpow2.f32 %v3833_v48  ;;  %5042 = vmatprep.subr.bf16.mxu1 %v3978_v45  ;;  %v3360_v4 = vpop.permute.xlu0 %3359  ;;  %vm3013_vm4 = vcmp.gt.f32.partialorder %v2981_v36, 0.0 }
 0x711   : > { %5683 = vpow2.f32 %v3835_v7  ;;  %5043 = vmatpush3.bf16.msra.mxu1 %v3962_v30  ;;  %v8434_v30 = vpop.eup %5679  ;;  %v3046_v48 = vmul.f32 0.2, %v2982_v39  ;;  %vm3014_vm5 = vcmp.gt.f32.partialorder %v2982_v39, 0.0 }
 0x712   : > { %5044 = vmatprep.subr.bf16.mxu1 %v3980_v40  ;;  %10402 = vst [vmem:[#allocation52_spill] sm:$0xff] %v8434_v30  ;;  %v3045_v40 = vmul.f32 0.2, %v2981_v36 }
 0x713   : > { %v3358_v6 = vpop.permute.xlu1 %3357  ;;  %v3078_v45 = vsel %vm3014_vm5, %v2982_v39, %v3046_v48 }
 0x714   : > { %4980 = vmatprep.subr.bf16.mxu0 %v3358_v6  ;;  %v3077_v7 = vsel %vm3013_vm4, %v2981_v36, %v3045_v40  ;;  %v2984_v36 = vadd.f32 %v8042_v26, %v8211_v23 }
 0x715   : > { %v8448_v6 = vsel %vm10406_vm9, -999.0, %v3077_v7 }
 0x716   : > { %v3048_v40 = vmul.f32 0.2, %v2984_v36  ;;  %vm3016_vm11 = vcmp.gt.f32.partialorder %v2984_v36, 0.0 }
 0x717   : > { %v3342_v17 = vpop.permute.xlu1 %3341 }
 0x718   : > { %3766 = vmax.xlane.f32.xlu0 %v3765_v29  ;;  %4981 = vmatpush3.bf16.msra.mxu0 %v3342_v17  ;;  %v10407_v29 = vld [vmem:[#allocation42_spill] sm:$0xff] }
 0x719   : > { %4982 = vmatprep.subr.bf16.mxu0 %v3360_v4  ;;  %vm10408_vm6 = vnez %v10407_v29  ;;  %v10409_v4 = vld [vmem:[#allocation48_spill] sm:$0xff] }
 0x71a   : > { %v8436_v31 = vpop.eup %5681  ;;  %v8452_v17 = vsel %vm10408_vm6, -999.0, %v3078_v45  ;;  %v3080_v45 = vsel %vm3016_vm11, %v2984_v36, %v3048_v40  ;;  %v3604_v36 = vadd.f32 %v8147_v1, %v8304_v20 }
 0x71b   : > { %10403 = vst [vmem:[#allocation47_spill] sm:$0xff] %v8436_v31  ;;  %v5684_v3 = vpop.eup %5683  ;;  %v3964_v62 = vpop.permute.xlu1 %3963  ;;  %v3146_v37 = vmax.f32 %v8448_v6, %v8452_v17 }
 0x71c   : > { %5045 = vmatpush3.bf16.msra.mxu1 %v3964_v62  ;;  %v3946_v50 = vpack.c.bf16 %v8434_v30, %v5684_v3  ;;  %v8440_v21 = vadd.f32 %v5684_v3, %v8436_v31  ;;  %v3668_v40 = vmul.f32 0.2, %v3604_v36 }
 0x71e   : > { %10404 = vst [vmem:[#allocation69_spill] sm:$0xff] %v8440_v21  ;;  %4041 = vmatprep.mubr.bf16.mxu1 %v3946_v50  ;;  %v10411_v50 = vld [vmem:[#allocation81_spill] sm:$0xff]  ;;  %v10414_v21 = vld [vmem:[#allocation44_spill] sm:$0xff] }
 0x71f   : > { %vm10415_vm4 = vnez %v10414_v21 }
 0x720   : > { %v8478_v30 = vsel %vm10415_vm4, -999.0, %v3080_v45 }
 0x721   : > { %10416 = vst [vmem:[#allocation40_spill] sm:$0xff] %v8478_v30 }
 0x72e   : > { %3985 = vrot.lane.b32.xlu0 %v10397_v2, %s6231_s2  ;;  %v2983_v2 = vadd.f32 %v8039_v33, %v8211_v23 }
 0x730   : > { %v3047_v39 = vmul.f32 0.2, %v2983_v2  ;;  %vm3015_vm13 = vcmp.gt.f32.partialorder %v2983_v2, 0.0 }
 0x731   : > { %3147 = vmax.xlane.f32.xlu1 %v3146_v37 }
 0x732   : > { %3365 = vrot.lane.b32.xlu0 %v10409_v4, %s6230_s14  ;;  %v3079_v7 = vsel %vm3015_vm13, %v2983_v2, %v3047_v39  ;;  %v3603_v2 = vadd.f32 %v8144_v8, %v8304_v20  ;;  %vm3636_vm13 = vcmp.gt.f32.partialorder %v3604_v36, 0.0 }
 0x733   : > { %v8460_v3 = vpop.xlane.xlu0 %3760 }
 0x734   : > { %10410 = vst [vmem:[#allocation35_spill] sm:$0xff] %v8460_v3  ;;  %v3667_v39 = vmul.f32 0.2, %v3603_v2  ;;  %vm3635_vm5 = vcmp.gt.f32.partialorder %v3603_v2, 0.0 }
 0x736   : > { %3987 = vrot.lane.b32.xlu0 %v10409_v4, %s6231_s2  ;;  %v10412_v4 = vld [vmem:[#allocation43_spill] sm:$0xff]  ;;  %v3699_v22 = vsel %vm3635_vm5, %v3603_v2, %v3667_v39 }
 0x737   : > { %v3982_v62 = vpop.permute.xlu0 %3981  ;;  %vm10413_vm8 = vnez %v10412_v4  ;;  %v8492_v3 = vsel %vm10406_vm9, -999.0, %v3699_v22  ;;  %v10421_v22 = vld [vmem:[#allocation88_spill] sm:$0xff] }
 0x738   : > { %5046 = vmatprep.subr.bf16.mxu1 %v3982_v62  ;;  %v8474_v62 = vsel %vm10413_vm8, -999.0, %v3079_v7 }
 0x739   : > { %v3149_v23 = vmax.f32 %v8474_v62, %v8478_v30 }
 0x73b   : > { %v3362_v31 = vpop.permute.xlu0 %3361 }
 0x742   : > { %3347 = vrot.lane.b32.xlu1 %v10411_v50, %s6230_s14 }
 0x74c   : > { %v8470_v48 = vpop.xlane.xlu1 %3141 }
 0x750   : > { %v3344_v37 = vpop.permute.xlu1 %3343 }
 0x751   : > { %4983 = vmatpush3.bf16.msra.mxu0 %v3344_v37 }
 0x752   : > { %4984 = vmatprep.subr.bf16.mxu0 %v3362_v31 }
 0x755   : > { %3150 = vmax.xlane.f32.xlu0 %v3149_v23  ;;  %v3700_v23 = vsel %vm3636_vm13, %v3604_v36, %v3668_v40 }
 0x756   : > { %v8496_v20 = vsel %vm10408_vm6, -999.0, %v3700_v23 }
 0x75a   : > { %v4930_v7 = vpop.f32.mrb[0].mxu1 }
 0x75b   : > { %v4931_v45 = vpop.f32.mrb[1].mxu1 }
 0x75c   : > { %v8486_v56 = vadd.f32 %v4931_v45, %v4930_v7  ;;  %v4933_v37 = vpop.f32.mrb[2].mxu1  ;;  %v3768_v45 = vmax.f32 %v8492_v3, %v8496_v20 }
 0x75d   : > { %v4934_v31 = vpop.f32.mrb[3].mxu1 }
 0x75e   : > { %10417 = vst [vmem:[#allocation78_spill] sm:$0xff] %v8486_v56  ;;  %v8488_v15 = vadd.f32 %v4934_v31, %v4933_v37 }
 0x760   : > { %10418 = vst [vmem:[#allocation79_spill] sm:$0xff] %v8488_v15 }
 0x762   : > { %v4936_v19 = vpop.f32.mrb[4].mxu1 }
 0x763   : > { %v4937_v53 = vpop.f32.mrb[5].mxu1 }
 0x764   : > { %v8498_v30 = vadd.f32 %v4937_v53, %v4936_v19  ;;  %v4939_v7 = vpop.f32.mrb[6].mxu1 }
 0x765   : > { %v4940_v37 = vpop.f32.mrb[7].mxu1 }
 0x766   : > { %10419 = vst [vmem:[#allocation77_spill] sm:$0xff] %v8498_v30  ;;  %v8502_v31 = vadd.f32 %v4940_v37, %v4939_v7  ;;  %3769 = vmax.xlane.f32.xlu1 %v3768_v45  ;;  %v3605_v45 = vadd.f32 %v8144_v8, %v8209_v12  ;;  %v3606_v37 = vadd.f32 %v8147_v1, %v8209_v12 }
 0x768   : > { %10420 = vst [vmem:[#allocation41_spill] sm:$0xff] %v8502_v31  ;;  %vm3637_vm9 = vcmp.gt.f32.partialorder %v3605_v45, 0.0  ;;  %vm3638_vm6 = vcmp.gt.f32.partialorder %v3606_v37, 0.0 }
 0x76a   : > { %v4942_v2 = vpop.f32.mrb[8].mxu1 }
 0x76b   : > { %3367 = vrot.lane.b32.xlu0 %v10421_v22, %s6230_s14  ;;  %v4943_v9 = vpop.f32.mrb[9].mxu1 }
 0x76c   : > { %v8506_v29 = vadd.f32 %v4943_v9, %v4942_v2  ;;  %v4945_v36 = vpop.f32.mrb[10].mxu1 }
 0x76d   : > { %v4946_v39 = vpop.f32.mrb[11].mxu1 }
 0x76e   : > { %10422 = vst [vmem:[#allocation42_spill] sm:$0xff] %v8506_v29  ;;  %v8508_v40 = vadd.f32 %v4946_v39, %v4945_v36  ;;  %v10426_v36 = vld [vmem:[#allocation83_spill] sm:$0xff] }
 0x770   : > { %10423 = vst [vmem:[#allocation48_spill] sm:$0xff] %v8508_v40 }
 0x772   : > { %v4948_v53 = vpop.f32.mrb[12].mxu1 }
 0x773   : > { %v4949_v19 = vpop.f32.mrb[13].mxu1 }
 0x774   : > { %v8510_v23 = vadd.f32 %v4949_v19, %v4948_v53  ;;  %v4951_v30 = vpop.f32.mrb[14].mxu1 }
 0x775   : > { %v4952_v56 = vpop.f32.mrb[15].mxu1 }
 0x776   : > { %10424 = vst [vmem:[#allocation81_spill] sm:$0xff] %v8510_v23  ;;  %v8512_v7 = vadd.f32 %v4952_v56, %v4951_v30  ;;  %v3669_v56 = vmul.f32 0.2, %v3605_v45  ;;  %v3670_v30 = vmul.f32 0.2, %v3606_v37 }
 0x777   : > { %3969 = vrot.lane.b32.xlu1 %v10411_v50, %s6231_s2  ;;  %v3984_v50 = vpop.permute.xlu0 %3983 }
 0x778   : > { %10425 = vst [vmem:[#allocation43_spill] sm:$0xff] %v8512_v7 }
 0x77a   : > { %v4954_v2 = vpop.f32.mrb[16].mxu1 }
 0x77b   : > { %v4955_v9 = vpop.f32.mrb[17].mxu1  ;;  %3349 = vrot.lane.b32.xlu1 %v10426_v36, %s6230_s14 }
 0x77c   : > { %v8522_v39 = vadd.f32 %v4955_v9, %v4954_v2  ;;  %v4957_v53 = vpop.f32.mrb[18].mxu1  ;;  %v3701_v2 = vsel %vm3637_vm9, %v3605_v45, %v3669_v56  ;;  %v3702_v9 = vsel %vm3638_vm6, %v3606_v37, %v3670_v30 }
 0x77d   : > { %v4958_v19 = vpop.f32.mrb[19].mxu1 }
 0x77e   : > { %10427 = vst [vmem:[#allocation44_spill] sm:$0xff] %v8522_v39  ;;  %v8524_v7 = vadd.f32 %v4958_v19, %v4957_v53 }
 0x77f   : > { %3971 = vrot.lane.b32.xlu1 %v10426_v36, %s6231_s2  ;;  %v8534_v36 = vsel %vm10413_vm8, -999.0, %v3701_v2  ;;  %v2985_v2 = vadd.f32 %v8039_v33, %v8203_v60 }
 0x780   : > { %10428 = vst [vmem:[#allocation88_spill] sm:$0xff] %v8524_v7  ;;  %10430 = vst [vmem:[#allocation119_spill] sm:$0xff] %v8534_v36 }
 0x781   : > { %v3764_v12 = vpop.xlane.xlu1 %3763  ;;  %vm3017_vm11 = vcmp.gt.f32.partialorder %v2985_v2, 0.0 }
 0x782   : > { %v3807_v40 = vsub.f32 %v8396_v46, %v3764_v12  ;;  %v3808_v31 = vsub.f32 %v8400_v14, %v3764_v12  ;;  %v4960_v23 = vpop.f32.mrb[20].mxu1  ;;  %v8538_v46 = vsel %vm10415_vm4, -999.0, %v3702_v9  ;;  %v8540_v14 = vpop.xlane.xlu0 %3144  ;;  %v2986_v9 = vadd.f32 %v8042_v26, %v8203_v60 }
 0x783   : > { %v4961_v39 = vpop.f32.mrb[21].mxu1  ;;  %10431 = vst [vmem:[#allocation120_spill] sm:$0xff] %v8538_v46  ;;  %10432 = vst [vmem:[#allocation121_spill] sm:$0xff] %v8540_v14 }
 0x784   : > { %v3845_v29 = vmul.f32 1.442695, %v3807_v40  ;;  %v3847_v15 = vmul.f32 1.442695, %v3808_v31  ;;  %v8530_v55 = vadd.f32 %v4961_v39, %v4960_v23  ;;  %v4963_v53 = vpop.f32.mrb[22].mxu1  ;;  %v3771_v31 = vmax.f32 %v8534_v36, %v8538_v46 }
 0x785   : > { %v3966_v19 = vpop.permute.xlu1 %3965  ;;  %v4964_v7 = vpop.f32.mrb[23].mxu1  ;;  %vm3018_vm8 = vcmp.gt.f32.partialorder %v2986_v9, 0.0  ;;  %v3616_v46 = vadd.f32 %v8147_v1, %v8342_v5 }
 0x786   : > { %10429 = vst [vmem:[#allocation83_spill] sm:$0xff] %v8530_v55  ;;  %5685 = vpow2.f32 %v3845_v29  ;;  %v8542_v45 = vadd.f32 %v4964_v7, %v4963_v53  ;;  %5047 = vmatpush3.bf16.msra.mxu1 %v3966_v19  ;;  %v3364_v23 = vpop.permute.xlu0 %3363  ;;  %v10445_v55 = vld [vmem:[#allocation53_spill] sm:$0xff] }
 0x787   : > { %5687 = vpow2.f32 %v3847_v15  ;;  %5048 = vmatprep.subr.bf16.mxu1 %v3984_v50  ;;  %vm10446_vm6 = vnez %v10445_v55 }
 0x788   : > { %10433 = vst [vmem:[#allocation122_spill] sm:$0xff] %v8542_v45  ;;  %v3002_v45 = vadd.f32 %v8042_v26, %v8356_v24 }
 0x789   : > { %v3346_v40 = vpop.permute.xlu1 %3345 }
 0x78a   : > { %3772 = vmax.xlane.f32.xlu0 %v3771_v31  ;;  %v4966_v4 = vpop.f32.mrb[24].mxu1  ;;  %4985 = vmatpush3.bf16.msra.mxu0 %v3346_v40 }
 0x78b   : > { %v4967_v37 = vpop.f32.mrb[25].mxu1  ;;  %4986 = vmatprep.subr.bf16.mxu0 %v3364_v23  ;;  %v3049_v23 = vmul.f32 0.2, %v2985_v2 }
 0x78c   : > { %v8546_v21 = vadd.f32 %v4967_v37, %v4966_v4  ;;  %v4969_v39 = vpop.f32.mrb[26].mxu1  ;;  %v3050_v37 = vmul.f32 0.2, %v2986_v9 }
 0x78d   : > { %v3968_v56 = vpop.permute.xlu1 %3967  ;;  %v4970_v29 = vpop.f32.mrb[27].mxu1 }
 0x78e   : > { %10434 = vst [vmem:[#allocation123_spill] sm:$0xff] %v8546_v21  ;;  %v8548_v7 = vadd.f32 %v4970_v29, %v4969_v39  ;;  %5049 = vmatpush3.bf16.msra.mxu1 %v3968_v56  ;;  %v3081_v39 = vsel %vm3017_vm11, %v2985_v2, %v3049_v23  ;;  %v3082_v56 = vsel %vm3018_vm8, %v2986_v9, %v3050_v37 }
 0x78f   : > { %v8572_v60 = vsel %vm10241_vm15, -999.0, %v3082_v56  ;;  %v3609_v37 = vadd.f32 %v8144_v8, %v8229_v54  ;;  %v3611_v56 = vadd.f32 %v8144_v8, %v8324_v18 }
 0x790   : > { %10435 = vst [vmem:[#allocation124_spill] sm:$0xff] %v8548_v7  ;;  %v8550_v15 = vpop.eup %5685  ;;  %v8568_v7 = vsel %vm10240_vm3, -999.0, %v3081_v39  ;;  %10443 = vst [vmem:[#allocation50_spill] sm:$0xff] %v8572_v60  ;;  %v3610_v39 = vadd.f32 %v8147_v1, %v8229_v54 }
 0x791   : > { %10436 = vst [vmem:[#allocation125_spill] sm:$0xff] %v8550_v15  ;;  %v8552_v30 = vpop.eup %5687  ;;  %vm3641_vm13 = vcmp.gt.f32.partialorder %v3609_v37, 0.0  ;;  %v3675_v21 = vmul.f32 0.2, %v3611_v56  ;;  %vm3643_vm8 = vcmp.gt.f32.partialorder %v3611_v56, 0.0 }
 0x792   : > { %10437 = vst [vmem:[#allocation126_spill] sm:$0xff] %v8552_v30  ;;  %v4972_v50 = vpop.f32.mrb[28].mxu1  ;;  %v8556_v12 = vadd.f32 %v8552_v30, %v8550_v15  ;;  %vm3642_vm9 = vcmp.gt.f32.partialorder %v3610_v39, 0.0 }
 0x793   : > { %v4973_v53 = vpop.f32.mrb[29].mxu1 }
 0x794   : > { %10438 = vst [vmem:[#allocation127_spill] sm:$0xff] %v8556_v12  ;;  %v8562_v19 = vadd.f32 %v4973_v53, %v4972_v50  ;;  %v4975_v31 = vpop.f32.mrb[30].mxu1  ;;  %v3152_v50 = vmax.f32 %v8568_v7, %v8572_v60  ;;  %v5995_v53 = vld [vmem:[#allocation2 + $0x78] sm:$0xff]  ;;  %v10448_v12 = vld [vmem:[#allocation54_spill] sm:$0xff] }
 0x795   : > { %v4976_v40 = vpop.f32.mrb[31].mxu1  ;;  %vm10449_vm11 = vnez %v10448_v12  ;;  %v10460_v60 = vld [vmem:[#allocation70_spill] sm:$0xff] }
 0x796   : > { %10439 = vst [vmem:[#allocation128_spill] sm:$0xff] %v8562_v19  ;;  %v8564_v4 = vadd.f32 %v4976_v40, %v4975_v31  ;;  %v2987_v31 = vadd.f32 %v8039_v33, %v8239_v44  ;;  %v3607_v19 = vadd.f32 %v8144_v8, %v8316_v10 }
 0x798   : > { %10440 = vst [vmem:[#allocation129_spill] sm:$0xff] %v8564_v4  ;;  %v3051_v40 = vmul.f32 0.2, %v2987_v31  ;;  %vm3019_vm4 = vcmp.gt.f32.partialorder %v2987_v31, 0.0  ;;  %v3674_v4 = vmul.f32 0.2, %v3610_v39 }
 0x79a   : > { %v3706_v36 = vsel %vm3642_vm9, %v3610_v39, %v3674_v4 }
 0x79b   : > { %v8626_v4 = vsel %vm10449_vm11, -999.0, %v3706_v36  ;;  %v10455_v36 = vld [vmem:[#allocation58_spill] sm:$0xff] }
 0x79c   : > { %10452 = vst [vmem:[#allocation131_spill] sm:$0xff] %v8626_v4 }
 0x7a0   : > { %3989 = vrot.lane.b32.xlu0 %v10421_v22, %s6231_s2  ;;  %v2988_v22 = vadd.f32 %v8042_v26, %v8239_v44 }
 0x7a2   : > { %v3052_v23 = vmul.f32 0.2, %v2988_v22  ;;  %vm3020_vm5 = vcmp.gt.f32.partialorder %v2988_v22, 0.0 }
 0x7a3   : > { %3153 = vmax.xlane.f32.xlu1 %v3152_v50 }
 0x7a4   : > { %3369 = vrot.lane.b32.xlu0 %v5995_v53, %s6230_s14  ;;  %v3084_v44 = vsel %vm3020_vm5, %v2988_v22, %v3052_v23  ;;  %v2994_v23 = vadd.f32 %v8042_v26, %v8308_v27 }
 0x7a5   : > { %v8579_v2 = vpop.xlane.xlu0 %3766  ;;  %v8606_v15 = vsel %vm10449_vm11, -999.0, %v3084_v44 }
 0x7a6   : > { %10444 = vst [vmem:[#allocation51_spill] sm:$0xff] %v8579_v2  ;;  %10450 = vst [vmem:[#allocation54_spill] sm:$0xff] %v8606_v15  ;;  %v3707_v2 = vsel %vm3643_vm8, %v3611_v56, %v3675_v21  ;;  %vm3026_vm5 = vcmp.gt.f32.partialorder %v2994_v23, 0.0  ;;  %v3680_v56 = vmul.f32 0.2, %v3616_v46  ;;  %vm3648_vm8 = vcmp.gt.f32.partialorder %v3616_v46, 0.0 }
 0x7a7   : > { %v8631_v21 = vsel %vm7140_vm1, -999.0, %v3707_v2 }
 0x7a8   : > { %3991 = vrot.lane.b32.xlu0 %v5995_v53, %s6231_s2  ;;  %v3083_v53 = vsel %vm3019_vm4, %v2987_v31, %v3051_v40  ;;  %v2993_v40 = vadd.f32 %v8039_v33, %v8308_v27 }
 0x7a9   : > { %v3986_v9 = vpop.permute.xlu0 %3985  ;;  %v8602_v54 = vsel %vm10446_vm6, -999.0, %v3083_v53 }
 0x7aa   : > { %5050 = vmatprep.subr.bf16.mxu1 %v3986_v9  ;;  %v3673_v9 = vmul.f32 0.2, %v3609_v37  ;;  %10447 = vst [vmem:[#allocation53_spill] sm:$0xff] %v8602_v54  ;;  %v3155_v44 = vmax.f32 %v8602_v54, %v8606_v15  ;;  %v3057_v39 = vmul.f32 0.2, %v2993_v40  ;;  %vm3025_vm9 = vcmp.gt.f32.partialorder %v2993_v40, 0.0 }
 0x7ab   : > { %v3712_v54 = vsel %vm3648_vm8, %v3616_v46, %v3680_v56  ;;  %v3620_v46 = vadd.f32 %v8147_v1, %v8352_v25 }
 0x7ac   : > { %v3705_v53 = vsel %vm3641_vm13, %v3609_v37, %v3673_v9  ;;  %v3058_v9 = vmul.f32 0.2, %v2994_v23  ;;  %v3089_v2 = vsel %vm3025_vm9, %v2993_v40, %v3057_v39 }
 0x7ad   : > { %v3366_v30 = vpop.permute.xlu0 %3365  ;;  %v8622_v27 = vsel %vm10446_vm6, -999.0, %v3705_v53  ;;  %vm10456_vm6 = vnez %v10455_v36  ;;  %v8649_v14 = vsel %vm10269_vm0, -999.0, %v3089_v2  ;;  %v3617_v36 = vadd.f32 %v8144_v8, %v8348_v35 }
 0x7ae   : > { %10451 = vst [vmem:[#allocation130_spill] sm:$0xff] %v8622_v27  ;;  %v3777_v12 = vmax.f32 %v8622_v27, %v8626_v4 }
 0x7b4   : > { %3351 = vrot.lane.b32.xlu1 %v8081_v0, %s6230_s14  ;;  %v3612_v0 = vadd.f32 %v8147_v1, %v8324_v18  ;;  %v3608_v18 = vadd.f32 %v8147_v1, %v8316_v10  ;;  %v3615_v10 = vadd.f32 %v8144_v8, %v8342_v5 }
 0x7b6   : > { %v3676_v31 = vmul.f32 0.2, %v3612_v0  ;;  %vm3640_vm4 = vcmp.gt.f32.partialorder %v3608_v18, 0.0  ;;  %vm10453_vm13 = vcmp.gt.f32.partialorder %v3612_v0, 0.0  ;;  %v3679_v55 = vmul.f32 0.2, %v3615_v10 }
 0x7b7   : > { %vm3647_vm11 = vcmp.gt.f32.partialorder %v3615_v10, 0.0 }
 0x7b8   : > { %v3708_v37 = vsel %vm10453_vm13, %v3612_v0, %v3676_v31  ;;  %v2997_v0 = vadd.f32 %v8039_v33, %v8344_v38  ;;  %v2998_v31 = vadd.f32 %v8042_v26, %v8344_v38  ;;  %vm10457_vm13 = vcmp.gt.f32.partialorder %v3607_v19, 0.0 }
 0x7b9   : > { %v8637_v53 = vsel %vm10456_vm6, -999.0, %v3708_v37  ;;  %v3711_v27 = vsel %vm3647_vm11, %v3615_v10, %v3679_v55  ;;  %v3066_v55 = vmul.f32 0.2, %v3002_v45  ;;  %vm3034_vm11 = vcmp.gt.f32.partialorder %v3002_v45, 0.0 }
 0x7ba   : > { %v3780_v4 = vmax.f32 %v8631_v21, %v8637_v53  ;;  %v3061_v16 = vmul.f32 0.2, %v2997_v0  ;;  %v3062_v59 = vmul.f32 0.2, %v2998_v31  ;;  %vm3030_vm9 = vcmp.gt.f32.partialorder %v2998_v31, 0.0 }
 0x7bb   : > { %v8671_v10 = vsel %vm10269_vm0, -999.0, %v3711_v27 }
 0x7be   : > { %v8596_v50 = vpop.xlane.xlu1 %3147 }
 0x7c2   : > { %v3348_v22 = vpop.permute.xlu1 %3347 }
 0x7c3   : > { %4987 = vmatpush3.bf16.msra.mxu0 %v3348_v22  ;;  %v3672_v22 = vmul.f32 0.2, %v3608_v18 }
 0x7c4   : > { %4988 = vmatprep.subr.bf16.mxu0 %v3366_v30  ;;  %v3671_v30 = vmul.f32 0.2, %v3607_v19 }
 0x7c5   : > { %v3704_v37 = vsel %vm3640_vm4, %v3608_v18, %v3672_v22 }
 0x7c6   : > { %v3703_v15 = vsel %vm10457_vm13, %v3607_v19, %v3671_v30  ;;  %v3619_v19 = vadd.f32 %v8144_v8, %v8352_v25  ;;  %v8675_v30 = vsel %vm10271_vm10, -999.0, %v3712_v54 }
 0x7c7   : > { %3156 = vmax.xlane.f32.xlu0 %v3155_v44  ;;  %v3090_v44 = vsel %vm3026_vm5, %v2994_v23, %v3058_v9  ;;  %vm3029_vm5 = vcmp.gt.f32.partialorder %v2997_v0, 0.0  ;;  %v8663_v40 = vsel %vm10240_vm3, -999.0, %v3703_v15  ;;  %v8667_v23 = vsel %vm10241_vm15, -999.0, %v3704_v37 }
 0x7c8   : > { %v8653_v38 = vsel %vm10271_vm10, -999.0, %v3090_v44  ;;  %v3093_v25 = vsel %vm3029_vm5, %v2997_v0, %v3061_v16  ;;  %v3683_v39 = vmul.f32 0.2, %v3619_v19  ;;  %v3684_v9 = vmul.f32 0.2, %v3620_v46 }
 0x7c9   : > { %v3164_v18 = vmax.f32 %v8649_v14, %v8653_v38  ;;  %v3001_v15 = vadd.f32 %v8039_v33, %v8356_v24  ;;  %vm3651_vm15 = vcmp.gt.f32.partialorder %v3619_v19, 0.0  ;;  %vm3652_vm3 = vcmp.gt.f32.partialorder %v3620_v46, 0.0  ;;  %v10462_v24 = vld [vmem:[#allocation71_spill] sm:$0xff] }
 0x7ca   : > { %v3786_v49 = vmax.f32 %v8671_v10, %v8675_v30  ;;  %v3774_v29 = vmax.f32 %v8663_v40, %v8667_v23  ;;  %v3623_v16 = vadd.f32 %v8144_v8, %v8354_v58  ;;  %vm10461_vm10 = vnez %v10460_v60 }
 0x7cb   : > { %3778 = vmax.xlane.f32.xlu0 %v3777_v12  ;;  %v8691_v54 = vsel %vm10461_vm10, -999.0, %v3093_v25  ;;  %vm10463_vm0 = vnez %v10462_v24  ;;  %v3065_v22 = vmul.f32 0.2, %v3001_v15  ;;  %v3715_v56 = vsel %vm3651_vm15, %v3619_v19, %v3683_v39  ;;  %v10466_v24 = vld [vmem:[#allocation31_spill] sm:$0xff] }
 0x7cc   : > { %v3716_v12 = vsel %vm3652_vm3, %v3620_v46, %v3684_v9  ;;  %vm3033_vm4 = vcmp.gt.f32.partialorder %v3001_v15, 0.0  ;;  %v3687_v2 = vmul.f32 0.2, %v3623_v16  ;;  %v3098_v19 = vsel %vm3034_vm11, %v3002_v45, %v3066_v55  ;;  %v10467_v55 = vld [vmem:[#allocation45_spill] sm:$0xff] }
 0x7cd   : > { %v3097_v37 = vsel %vm3033_vm4, %v3001_v15, %v3065_v22  ;;  %vm3655_vm8 = vcmp.gt.f32.partialorder %v3623_v16, 0.0  ;;  %v8715_v39 = vsel %vm7394_vm2, -999.0, %v3098_v19  ;;  %v3185_v22 = vsub.f32 %v8330_v43, %v8470_v48 }
 0x7ce   : > { %v8711_v25 = vsel %vm7331_vm14, -999.0, %v3097_v37  ;;  %v3719_v9 = vsel %vm3655_vm8, %v3623_v16, %v3687_v2  ;;  %v3181_v16 = vsub.f32 %v10466_v24, %v8358_v57  ;;  %v3189_v2 = vsub.f32 %v8448_v6, %v8596_v50  ;;  %v10468_v37 = vld [vmem:[#allocation46_spill] sm:$0xff] }
 0x7cf   : > { %3781 = vmax.xlane.f32.xlu0 %v3780_v4  ;;  %v3094_v4 = vsel %vm3030_vm9, %v2998_v31, %v3062_v59  ;;  %v3624_v59 = vadd.f32 %v8147_v1, %v8354_v58  ;;  %v8701_v58 = vsel %vm10461_vm10, -999.0, %v3715_v56  ;;  %v8705_v31 = vsel %vm10463_vm0, -999.0, %v3716_v12 }
 0x7d0   : > { %v8695_v27 = vsel %vm10463_vm0, -999.0, %v3094_v4  ;;  %v3792_v46 = vmax.f32 %v8701_v58, %v8705_v31  ;;  %v3176_v15 = vmax.f32 %v8711_v25, %v8715_v39  ;;  %v8721_v45 = vsel %vm7331_vm14, -999.0, %v3719_v9 }
 0x7d1   : > { %v3170_v0 = vmax.f32 %v8691_v54, %v8695_v27  ;;  %v3688_v44 = vmul.f32 0.2, %v3624_v59  ;;  %vm3656_vm13 = vcmp.gt.f32.partialorder %v3624_v59, 0.0  ;;  %v3215_v56 = vmul.f32 1.442695, %v3181_v16  ;;  %v10471_v16 = vld [vmem:[#allocation65_spill] sm:$0xff] }
 0x7d2   : > { %v3186_v12 = vsub.f32 %v8334_v61, %v8470_v48  ;;  %v3190_v57 = vsub.f32 %v8452_v17, %v8596_v50  ;;  %v3231_v19 = vmul.f32 1.442695, %v3189_v2  ;;  %vm3649_vm4 = vcmp.gt.f32.partialorder %v3617_v36, 0.0 }
 0x7d3   : > { %3165 = vmax.xlane.f32.xlu0 %v3164_v18  ;;  %5689 = vpow2.f32 %v3215_v56  ;;  %v10469_v18 = vld [vmem:[#allocation49_spill] sm:$0xff] }
 0x7d4   : > { %v3225_v43 = vmul.f32 1.442695, %v3186_v12  ;;  %v3233_v61 = vmul.f32 1.442695, %v3190_v57  ;;  %v2989_v57 = vadd.f32 %v8039_v33, %v8227_v13 }
 0x7d6   : > { %vm3021_vm14 = vcmp.gt.f32.partialorder %v2989_v57, 0.0 }
 0x7d7   : > { %3787 = vmax.xlane.f32.xlu0 %v3786_v49  ;;  %v3720_v49 = vsel %vm3656_vm13, %v3624_v59, %v3688_v44  ;;  %v5996_v59 = vld [vmem:[#allocation2 + $0x30] sm:$0xff]  ;;  %v3223_v44 = vmul.f32 1.442695, %v3185_v22 }
 0x7d8   : > { %3775 = vmax.xlane.f32.xlu1 %v3774_v29  ;;  %v8725_v29 = vsel %vm7394_vm2, -999.0, %v3720_v49  ;;  %v10470_v49 = vld [vmem:[#allocation57_spill] sm:$0xff] }
 0x7d9   : > { %v3798_v60 = vmax.f32 %v8721_v45, %v8725_v29  ;;  %5691 = vpow2.f32 %v3223_v44 }
 0x7da   : > { %5693 = vpow2.f32 %v3225_v43 }
 0x7db   : > { %3171 = vmax.xlane.f32.xlu0 %v3170_v0  ;;  %v5997_v0 = vld [vmem:[#allocation2 + $0x38] sm:$0xff]  ;;  %5695 = vpow2.f32 %v3231_v19  ;;  %v2991_v19 = vadd.f32 %v8039_v33, %v8290_v32 }
 0x7dc   : > { %5697 = vpow2.f32 %v3233_v61  ;;  %v3053_v61 = vmul.f32 0.2, %v2989_v57 }
 0x7dd   : > { %vm3023_vm5 = vcmp.gt.f32.partialorder %v2991_v19, 0.0 }
 0x7df   : > { %3793 = vmax.xlane.f32.xlu0 %v3792_v46  ;;  %v3988_v46 = vpop.permute.xlu0 %3987 }
 0x7e3   : > { %3177 = vmax.xlane.f32.xlu0 %v3176_v15  ;;  %v8748_v15 = vpop.xlane.xlu0 %3150 }
 0x7e7   : > { %3799 = vmax.xlane.f32.xlu0 %v3798_v60  ;;  %v8750_v60 = vpop.eup %5689 }
 0x7e9   : > { %3973 = vrot.lane.b32.xlu1 %v5996_v59, %s6231_s2  ;;  %v3278_v59 = vadd.f32 %v8750_v60, %v8388_v11 }
 0x7eb   : > { %2659 = vadd.xlane.f32.xlu0 %v10467_v55 }
 0x7ed   : > { %3353 = vrot.lane.b32.xlu1 %v5997_v0, %s6230_s14 }
 0x7ef   : > { %2665 = vadd.xlane.f32.xlu0 %v10468_v37  ;;  %v2990_v37 = vadd.f32 %v8042_v26, %v8227_v13  ;;  %v3613_v13 = vadd.f32 %v8144_v8, %v8318_v42 }
 0x7f1   : > { %3975 = vrot.lane.b32.xlu1 %v5997_v0, %s6231_s2  ;;  %vm3022_vm2 = vcmp.gt.f32.partialorder %v2990_v37, 0.0  ;;  %vm3645_vm15 = vcmp.gt.f32.partialorder %v3613_v13, 0.0 }
 0x7f3   : > { %v3770_v48 = vpop.xlane.xlu1 %3769  ;;  %2671 = vadd.xlane.f32.xlu0 %v10469_v18  ;;  %v3055_v18 = vmul.f32 0.2, %v2991_v19 }
 0x7f4   : > { %v3811_v6 = vsub.f32 %v8492_v3, %v3770_v48  ;;  %v3812_v4 = vsub.f32 %v8496_v20, %v3770_v48  ;;  %v3368_v3 = vpop.permute.xlu0 %3367  ;;  %v8753_v20 = vpop.eup %5691  ;;  %v3054_v48 = vmul.f32 0.2, %v2990_v37 }
 0x7f5   : > { %v8757_v22 = vpop.eup %5693 }
 0x7f6   : > { %v3853_v17 = vmul.f32 1.442695, %v3811_v6  ;;  %v3855_v50 = vmul.f32 1.442695, %v3812_v4  ;;  %v8759_v56 = vpop.eup %5695  ;;  %v3284_v0 = vadd.f32 %v8757_v22, %v8753_v20  ;;  %v3614_v4 = vadd.f32 %v8147_v1, %v8318_v42 }
 0x7f7   : > { %v3970_v9 = vpop.permute.xlu1 %3969  ;;  %2677 = vadd.xlane.f32.xlu0 %v10470_v49  ;;  %v8761_v12 = vpop.eup %5697  ;;  %v3087_v49 = vsel %vm3023_vm5, %v2991_v19, %v3055_v18  ;;  %v2996_v42 = vadd.f32 %v8042_v26, %v8326_v47  ;;  %v2999_v18 = vadd.f32 %v8039_v33, %v8300_v41 }
 0x7f8   : > { %5699 = vpow2.f32 %v3853_v17  ;;  %5051 = vmatpush3.bf16.msra.mxu1 %v3970_v9  ;;  %v3290_v43 = vadd.f32 %v8761_v12, %v8759_v56  ;;  %v3085_v17 = vsel %vm3021_vm14, %v2989_v57, %v3053_v61  ;;  %vm3646_vm3 = vcmp.gt.f32.partialorder %v3614_v4, 0.0 }
 0x7f9   : > { %5701 = vpow2.f32 %v3855_v50  ;;  %5052 = vmatprep.subr.bf16.mxu1 %v3988_v46  ;;  %v2992_v46 = vadd.f32 %v8042_v26, %v8290_v32  ;;  %v3086_v50 = vsel %vm3022_vm2, %v2990_v37, %v3054_v48  ;;  %v8789_v9 = vsel %vm7140_vm1, -999.0, %v3085_v17  ;;  %v10475_v37 = vld [vmem:[#allocation62_spill] sm:$0xff] }
 0x7fa   : > { %v8793_v32 = vsel %vm10456_vm6, -999.0, %v3086_v50  ;;  %vm10476_vm6 = vnez %v10475_v37  ;;  %v3060_v19 = vmul.f32 0.2, %v2996_v42  ;;  %vm3028_vm0 = vcmp.gt.f32.partialorder %v2996_v42, 0.0 }
 0x7fb   : > { %v3350_v24 = vpop.permute.xlu1 %3349  ;;  %2683 = vadd.xlane.f32.xlu0 %v10471_v16  ;;  %vm3024_vm9 = vcmp.gt.f32.partialorder %v2992_v46, 0.0  ;;  %v3056_v6 = vmul.f32 0.2, %v2992_v46  ;;  %v3677_v16 = vmul.f32 0.2, %v3613_v13  ;;  %v3158_v5 = vmax.f32 %v8789_v9, %v8793_v32 }
 0x7fc   : > { %4989 = vmatpush3.bf16.msra.mxu0 %v3350_v24  ;;  %vm3031_vm8 = vcmp.gt.f32.partialorder %v2999_v18, 0.0 }
 0x7fd   : > { %4990 = vmatprep.subr.bf16.mxu0 %v3368_v3  ;;  %v3088_v24 = vsel %vm3024_vm9, %v2992_v46, %v3056_v6  ;;  %v3678_v3 = vmul.f32 0.2, %v3614_v4  ;;  %v3709_v46 = vsel %vm3645_vm15, %v3613_v13, %v3677_v16  ;;  %v3000_v6 = vadd.f32 %v8042_v26, %v8300_v41 }
 0x7fe   : > { %v3063_v26 = vmul.f32 0.2, %v2999_v18  ;;  %vm4347_vm9 = vcmask 523264   ;;  %vm4364_vm15 = vcmask 785408  }
 0x7ff   : > { %v3972_v55 = vpop.permute.xlu1 %3971  ;;  %3279 = vadd.xlane.f32.xlu0 %v3278_v59  ;;  %v2995_v59 = vadd.f32 %v8039_v33, %v8326_v47  ;;  %v3710_v61 = vsel %vm3646_vm3, %v3614_v4, %v3678_v3  ;;  %v3681_v4 = vmul.f32 0.2, %v3617_v36  ;;  %v3064_v41 = vmul.f32 0.2, %v3000_v6 }
 0x800   : > { %5053 = vmatpush3.bf16.msra.mxu1 %v3972_v55  ;;  %v3618_v55 = vadd.f32 %v8147_v1, %v8348_v35  ;;  %v8827_v13 = vsel %vm10476_vm6, -999.0, %v3710_v61  ;;  %vm3032_vm13 = vcmp.gt.f32.partialorder %v3000_v6, 0.0 }
 0x801   : > { %v3059_v47 = vmul.f32 0.2, %v2995_v59  ;;  %vm3027_vm10 = vcmp.gt.f32.partialorder %v2995_v59, 0.0 }
 0x802   : > { %v8765_v2 = vpop.eup %5699  ;;  %v3682_v50 = vmul.f32 0.2, %v3618_v55  ;;  %vm3650_vm11 = vcmp.gt.f32.partialorder %v3618_v55, 0.0 }
 0x803   : > { %v8767_v44 = vpop.eup %5701  ;;  %3285 = vadd.xlane.f32.xlu0 %v3284_v0  ;;  %v10473_v0 = vld [vmem:[#allocation61_spill] sm:$0xff] }
 0x804   : > { %v8771_v11 = vadd.f32 %v8767_v44, %v8765_v2  ;;  %vm10474_vm1 = vnez %v10473_v0  ;;  %v3191_v0 = vsub.f32 %v8474_v62, %v8748_v15 }
 0x805   : > { %v8807_v57 = vsel %vm10474_vm1, -999.0, %v3087_v49  ;;  %v8823_v17 = vsel %vm10474_vm1, -999.0, %v3709_v46  ;;  %v3091_v49 = vsel %vm3027_vm10, %v2995_v59, %v3059_v47  ;;  %v3621_v59 = vadd.f32 %v8144_v8, %v8362_v63 }
 0x806   : > { %10472 = vst [vmem:[#allocation55_spill] sm:$0xff] %v8771_v11  ;;  %v3783_v33 = vmax.f32 %v8823_v17, %v8827_v13  ;;  %v3713_v47 = vsel %vm3649_vm4, %v3617_v36, %v3681_v4 }
 0x807   : > { %3291 = vadd.xlane.f32.xlu0 %v3290_v43  ;;  %v8811_v43 = vsel %vm10476_vm6, -999.0, %v3088_v24  ;;  %v3092_v24 = vsel %vm3028_vm0, %v2996_v42, %v3060_v19  ;;  %v3622_v42 = vadd.f32 %v8147_v1, %v8362_v63  ;;  %v3714_v19 = vsel %vm3650_vm11, %v3618_v55, %v3682_v50  ;;  %v10479_v55 = vld [vmem:[#allocation72_spill] sm:$0xff]  ;;  %v10481_v50 = vld [vmem:[#allocation73_spill] sm:$0xff] }
 0x808   : > { %v3161_v35 = vmax.f32 %v8807_v57, %v8811_v43  ;;  %v8837_v37 = vsel %vm7252_vm7, -999.0, %v3092_v24  ;;  %v8847_v61 = vsel %vm7246_vm12, -999.0, %v3713_v47  ;;  %v3685_v8 = vmul.f32 0.2, %v3621_v59 }
 0x809   : > { %v3095_v1 = vsel %vm3031_vm8, %v2999_v18, %v3063_v26  ;;  %v3096_v63 = vsel %vm3032_vm13, %v3000_v6, %v3064_v41  ;;  %vm3653_vm14 = vcmp.gt.f32.partialorder %v3621_v59, 0.0  ;;  %vm3654_vm2 = vcmp.gt.f32.partialorder %v3622_v42, 0.0 }
 0x80a   : > { %vm10480_vm5 = vnez %v10479_v55  ;;  %v3179_v41 = vsub.f32 %v8183_v52, %v8370_v28  ;;  %v10487_v52 = vld [vmem:[#allocation27_spill] sm:$0xff] }
 0x80b   : > { %v8857_v4 = vsel %vm10480_vm5, -999.0, %v3095_v1  ;;  %v10486_v1 = vld [vmem:[#allocation38_spill] sm:$0xff]  ;;  %v3184_v28 = vsub.f32 %v10487_v52, %v8430_v51 }
 0x815   : > { %3159 = vmax.xlane.f32.xlu1 %v3158_v5  ;;  %v8833_v5 = vsel %vm7246_vm12, -999.0, %v3091_v49  ;;  %v3686_v49 = vmul.f32 0.2, %v3622_v42  ;;  %vm10482_vm12 = vnez %v10481_v50  ;;  %v10488_v50 = vld [vmem:[#allocation121_spill] sm:$0xff] }
 0x816   : > { %v3167_v46 = vmax.f32 %v8833_v5, %v8837_v37  ;;  %v8861_v24 = vsel %vm10482_vm12, -999.0, %v3096_v63 }
 0x817   : > { %v8813_v48 = vpop.xlane.xlu0 %3772  ;;  %v3173_v18 = vmax.f32 %v8857_v4, %v8861_v24 }
 0x819   : > { %3162 = vmax.xlane.f32.xlu1 %v3161_v35  ;;  %v8851_v35 = vsel %vm7252_vm7, -999.0, %v3714_v19  ;;  %v3183_v19 = vsub.f32 %v8215_v34, %v8430_v51  ;;  %v10490_v34 = vld [vmem:[#allocation39_spill] sm:$0xff]  ;;  %v10492_v51 = vld [vmem:[#allocation30_spill] sm:$0xff]  ;;  %vm4330_vm7 = vcmask 261120  }
 0x81a   : > { %v3789_v36 = vmax.f32 %v8847_v61, %v8851_v35 }
 0x81b   : > { %v3990_v16 = vpop.permute.xlu0 %3989  ;;  %v3219_v55 = vmul.f32 1.442695, %v3183_v19  ;;  %v10494_v19 = vld [vmem:[#allocation40_spill] sm:$0xff] }
 0x81c   : > { %5054 = vmatprep.subr.bf16.mxu1 %v3990_v16  ;;  %v3718_v16 = vsel %vm3654_vm2, %v3622_v42, %v3686_v49  ;;  %v3235_v42 = vmul.f32 1.442695, %v3191_v0  ;;  %v10493_v0 = vld [vmem:[#allocation85_spill] sm:$0xff] }
 0x81d   : > { %3784 = vmax.xlane.f32.xlu1 %v3783_v33  ;;  %v3717_v33 = vsel %vm3653_vm14, %v3621_v59, %v3685_v8  ;;  %v8871_v26 = vsel %vm10482_vm12, -999.0, %v3718_v16  ;;  %v3211_v59 = vmul.f32 1.442695, %v3179_v41  ;;  %v10485_v8 = vld [vmem:[#allocation50_spill] sm:$0xff]  ;;  %v10491_v41 = vld [vmem:[#allocation60_spill] sm:$0xff] }
 0x81e   : > { %v8867_v6 = vsel %vm10480_vm5, -999.0, %v3717_v33  ;;  %10484 = vst [vmem:[#allocation63_spill] sm:$0xff] %v8871_v26  ;;  %v10489_v33 = vld [vmem:[#allocation84_spill] sm:$0xff] }
 0x81f   : > { %10483 = vst [vmem:[#allocation58_spill] sm:$0xff] %v8867_v6  ;;  %v3795_v3 = vmax.f32 %v8867_v6, %v8871_v26  ;;  %5703 = vpow2.f32 %v3211_v59  ;;  %v3187_v16 = vsub.f32 %v10489_v33, %v10488_v50  ;;  %v2667_v59 = vadd.f32 %v10493_v0, %v10492_v51  ;;  %v10505_v6 = vld [vmem:[#allocation29_spill] sm:$0xff] }
 0x820   : > { %5705 = vpow2.f32 %v3235_v42 }
 0x821   : > { %3168 = vmax.xlane.f32.xlu1 %v3167_v46  ;;  %v3227_v42 = vmul.f32 1.442695, %v3187_v16 }
 0x825   : > { %3790 = vmax.xlane.f32.xlu1 %v3789_v36 }
 0x829   : > { %3174 = vmax.xlane.f32.xlu1 %v3173_v18  ;;  %v3221_v18 = vmul.f32 1.442695, %v3184_v28 }
 0x82d   : > { %3796 = vmax.xlane.f32.xlu1 %v3795_v3  ;;  %v3188_v3 = vsub.f32 %v10491_v41, %v10488_v50  ;;  %v10497_v50 = vld [vmem:[#allocation56_spill] sm:$0xff] }
 0x830   : > { %v3154_v47 = vpop.xlane.xlu1 %3153 }
 0x831   : > { %v3193_v46 = vsub.f32 %v8568_v7, %v3154_v47  ;;  %v3194_v49 = vsub.f32 %v10485_v8, %v3154_v47  ;;  %2656 = vadd.xlane.f32.xlu1 %v10486_v1  ;;  %v3370_v7 = vpop.permute.xlu0 %3369  ;;  %v3229_v47 = vmul.f32 1.442695, %v3188_v3  ;;  %v8895_v8 = vpop.eup %5703 }
 0x832   : > { %v8898_v1 = vpop.eup %5705  ;;  %v3275_v33 = vadd.f32 %v8895_v8, %v10497_v50 }
 0x833   : > { %v3239_v63 = vmul.f32 1.442695, %v3193_v46  ;;  %v3241_v36 = vmul.f32 1.442695, %v3194_v49  ;;  %v3192_v46 = vsub.f32 %v10494_v19, %v8748_v15  ;;  %v10495_v49 = vld [vmem:[#allocation66_spill] sm:$0xff] }
 0x834   : > { %v3352_v62 = vpop.permute.xlu1 %3351  ;;  %v10499_v19 = vld [vmem:[#allocation54_spill] sm:$0xff] }
 0x835   : > { %5707 = vpow2.f32 %v3239_v63  ;;  %2662 = vadd.xlane.f32.xlu1 %v10490_v34  ;;  %4991 = vmatpush3.bf16.msra.mxu0 %v3352_v62  ;;  %v3237_v52 = vmul.f32 1.442695, %v3192_v46  ;;  %v10496_v62 = vld [vmem:[#allocation75_spill] sm:$0xff]  ;;  %v3992_v51 = vpop.permute.xlu0 %3991 }
 0x836   : > { %5709 = vpow2.f32 %v3241_v36  ;;  %4992 = vmatprep.subr.bf16.mxu0 %v3370_v7 }
 0x837   : > { %5711 = vpow2.f32 %v3219_v55 }
 0x838   : > { %5713 = vpow2.f32 %v3221_v18 }
 0x839   : > { %2668 = vadd.xlane.f32.xlu1 %v2667_v59  ;;  %5715 = vpow2.f32 %v3227_v42  ;;  %v10498_v42 = vld [vmem:[#allocation53_spill] sm:$0xff] }
 0x83a   : > { %5717 = vpow2.f32 %v3229_v47 }
 0x83b   : > { %5719 = vpow2.f32 %v3237_v52 }
 0x83d   : > { %2674 = vadd.xlane.f32.xlu1 %v10495_v49 }
 0x83f   : > { %v8900_v28 = vpop.eup %5707 }
 0x840   : > { %v8902_v63 = vpop.eup %5709 }
 0x841   : > { %2680 = vadd.xlane.f32.xlu1 %v10496_v62  ;;  %v3296_v15 = vadd.f32 %v8902_v63, %v8900_v28  ;;  %v8909_v55 = vpop.eup %5711 }
 0x842   : > { %v8913_v16 = vpop.eup %5713 }
 0x843   : > { %3297 = vadd.xlane.f32.xlu0 %v3296_v15  ;;  %v8915_v34 = vpop.eup %5715  ;;  %v3281_v7 = vadd.f32 %v8913_v16, %v8909_v55  ;;  %v10500_v15 = vld [vmem:[#allocation130_spill] sm:$0xff] }
 0x844   : > { %v8919_v18 = vpop.eup %5717 }
 0x845   : > { %3276 = vadd.xlane.f32.xlu1 %v3275_v33  ;;  %v3287_v41 = vadd.f32 %v8919_v18, %v8915_v34  ;;  %v8923_v3 = vpop.eup %5719  ;;  %v10501_v33 = vld [vmem:[#allocation131_spill] sm:$0xff] }
 0x846   : > { %v3293_v0 = vadd.f32 %v8923_v3, %v8898_v1 }
 0x849   : > { %3282 = vadd.xlane.f32.xlu1 %v3281_v7 }
 0x84d   : > { %3288 = vadd.xlane.f32.xlu1 %v3287_v41 }
 0x851   : > { %3294 = vadd.xlane.f32.xlu1 %v3293_v0 }
 0x854   : > { %v3157_v59 = vpop.xlane.xlu0 %3156 }
 0x855   : > { %v3195_v47 = vsub.f32 %v10498_v42, %v3157_v59  ;;  %v3196_v46 = vsub.f32 %v10499_v19, %v3157_v59  ;;  %v10503_v19 = vld [vmem:[#allocation114_spill] sm:$0xff] }
 0x857   : > { %v3243_v49 = vmul.f32 1.442695, %v3195_v47  ;;  %v3245_v52 = vmul.f32 1.442695, %v3196_v46  ;;  %v10502_v47 = vld [vmem:[#allocation33_spill] sm:$0xff] }
 0x858   : > { %v3779_v62 = vpop.xlane.xlu0 %3778  ;;  %v3803_v46 = vsub.f32 %v10503_v19, %v10502_v47  ;;  %v10508_v47 = vld [vmem:[#allocation59_spill] sm:$0xff] }
 0x859   : > { %5721 = vpow2.f32 %v3243_v49  ;;  %v3817_v50 = vsub.f32 %v10500_v15, %v3779_v62  ;;  %v3818_v7 = vsub.f32 %v10501_v33, %v3779_v62  ;;  %v10504_v49 = vld [vmem:[#allocation35_spill] sm:$0xff] }
 0x85a   : > { %5723 = vpow2.f32 %v3245_v52  ;;  %v3806_v15 = vsub.f32 %v10505_v6, %v10504_v49 }
 0x85b   : > { %v3865_v41 = vmul.f32 1.442695, %v3817_v50  ;;  %v3867_v36 = vmul.f32 1.442695, %v3818_v7  ;;  %v3837_v50 = vmul.f32 1.442695, %v3803_v46 }
 0x85c   : > { %v3782_v11 = vpop.xlane.xlu0 %3781  ;;  %v3843_v33 = vmul.f32 1.442695, %v3806_v15  ;;  %v10506_v7 = vld [vmem:[#allocation28_spill] sm:$0xff] }
 0x85d   : > { %5725 = vpow2.f32 %v3865_v41  ;;  %v3819_v0 = vsub.f32 %v8631_v21, %v3782_v11  ;;  %v3820_v26 = vsub.f32 %v8637_v53, %v3782_v11  ;;  %v3805_v41 = vsub.f32 %v10506_v7, %v10504_v49 }
 0x85e   : > { %5727 = vpow2.f32 %v3867_v36  ;;  %v3326_v7 = vpack.c.bf16 %v8757_v22, %v8913_v16 }
 0x85f   : > { %v3869_v42 = vmul.f32 1.442695, %v3819_v0  ;;  %v3871_v59 = vmul.f32 1.442695, %v3820_v26 }
 0x861   : > { %5729 = vpow2.f32 %v3869_v42 }
 0x862   : > { %5731 = vpow2.f32 %v3871_v59  ;;  %v10507_v59 = vld [vmem:[#allocation51_spill] sm:$0xff] }
 0x863   : > { %v8937_v52 = vpop.eup %5721  ;;  %5733 = vpow2.f32 %v3837_v50  ;;  %v3810_v19 = vsub.f32 %v10508_v47, %v10507_v59  ;;  %v3841_v50 = vmul.f32 1.442695, %v3805_v41 }
 0x864   : > { %v8939_v62 = vpop.eup %5723  ;;  %5735 = vpow2.f32 %v3843_v33 }
 0x865   : > { %v3776_v21 = vpop.xlane.xlu1 %3775  ;;  %v3299_v53 = vadd.f32 %v8939_v62, %v8937_v52  ;;  %v3851_v49 = vmul.f32 1.442695, %v3810_v19 }
 0x866   : > { %v3815_v11 = vsub.f32 %v8663_v40, %v3776_v21  ;;  %v3816_v26 = vsub.f32 %v8667_v23, %v3776_v21 }
 0x867   : > { %v8945_v36 = vpop.eup %5725  ;;  %3300 = vadd.xlane.f32.xlu1 %v3299_v53  ;;  %v3323_v53 = vpack.c.bf16 %v8750_v60, %v8895_v8  ;;  %v10511_v60 = vld [vmem:[#allocation47_spill] sm:$0xff] }
 0x868   : > { %v8947_v6 = vpop.eup %5727  ;;  %v3861_v0 = vmul.f32 1.442695, %v3815_v11  ;;  %v3863_v42 = vmul.f32 1.442695, %v3816_v26  ;;  %v10509_v11 = vld [vmem:[#allocation34_spill] sm:$0xff] }
 0x869   : > { %v3974_v46 = vpop.permute.xlu1 %3973  ;;  %v8955_v40 = vadd.f32 %v8947_v6, %v8945_v36  ;;  %v3809_v26 = vsub.f32 %v10509_v11, %v10507_v59  ;;  %v10512_v59 = vld [vmem:[#allocation126_spill] sm:$0xff] }
 0x86a   : > { %5055 = vmatpush3.bf16.msra.mxu1 %v3974_v46  ;;  %5737 = vpow2.f32 %v3861_v0 }
 0x86b   : > { %v8957_v23 = vpop.eup %5729  ;;  %5056 = vmatprep.subr.bf16.mxu1 %v3992_v51  ;;  %5739 = vpow2.f32 %v3863_v42  ;;  %v10510_v51 = vld [vmem:[#allocation120_spill] sm:$0xff]  ;;  %v3849_v19 = vmul.f32 1.442695, %v3809_v26  ;;  %v3328_v26 = vpack.c.bf16 %v8761_v12, %v8919_v18  ;;  %v3330_v12 = vpack.c.bf16 %v8902_v63, %v8923_v3 }
 0x86c   : > { %v5732_v15 = vpop.eup %5731  ;;  %5741 = vpow2.f32 %v3841_v50  ;;  %v3814_v41 = vsub.f32 %v10510_v51, %v8813_v48 }
 0x86d   : > { %v3354_v21 = vpop.permute.xlu1 %3353  ;;  %v8960_v33 = vadd.f32 %v5732_v15, %v8957_v23  ;;  %5743 = vpow2.f32 %v3851_v49  ;;  %v8970_v42 = vpop.eup %5733  ;;  %v3325_v49 = vpack.c.bf16 %v8753_v20, %v8909_v55  ;;  %v3954_v3 = vpack.c.bf16 %v5732_v15, %v8947_v6 }
 0x86e   : > { %4993 = vmatpush3.bf16.msra.mxu0 %v3354_v21  ;;  %v8972_v47 = vpop.eup %5735  ;;  %v3945_v8 = vpack.c.bf16 %v8970_v42, %v10511_v60  ;;  %v3859_v16 = vmul.f32 1.442695, %v3814_v41  ;;  %5745 = vpow2.f32 %v3849_v19  ;;  %v10514_v41 = vld [vmem:[#allocation125_spill] sm:$0xff]  ;;  %v3166_v19 = vpop.xlane.xlu0 %3165 }
 0x86f   : > { %v3948_v46 = vpack.c.bf16 %v10512_v59, %v8972_v47 }
 0x870   : > { %5747 = vpow2.f32 %v3859_v16  ;;  %v3201_v16 = vsub.f32 %v8649_v14, %v3166_v19 }
 0x871   : > { %v3976_v0 = vpop.permute.xlu1 %3975  ;;  %3420 = vmatmul.mubr.bf16.vlgmr.msra.gmra.mrb[32].mxu0 %v3323_v53  ;;  %v10513_v53 = vld [vmem:[#allocation119_spill] sm:$0xff] }
 0x872   : > { %3427 = vmatprep.mubr.bf16.mxu0 %v3326_v7  ;;  %5057 = vmatpush3.bf16.msra.mxu1 %v3976_v0  ;;  %v3813_v11 = vsub.f32 %v10513_v53, %v8813_v48  ;;  %v3327_v48 = vpack.c.bf16 %v8759_v56, %v8915_v34  ;;  %v10515_v56 = vpack.c.bf16 %v8900_v28, %v8898_v1  ;;  %v3788_v59 = vpop.xlane.xlu0 %3787 }
 0x873   : > { %v3202_v1 = vsub.f32 %v8653_v38, %v3166_v19  ;;  %v3823_v28 = vsub.f32 %v8671_v10, %v3788_v59  ;;  %v3824_v38 = vsub.f32 %v8675_v30, %v3788_v59 }
 0x874   : > { %v5738_v22 = vpop.eup %5737  ;;  %v3857_v20 = vmul.f32 1.442695, %v3813_v11 }
 0x875   : > { %4042 = vmatmul.mubr.bf16.vlgmr.msra.gmra.mrb[32].mxu1 %v3945_v8  ;;  %v5740_v50 = vpop.eup %5739  ;;  %v3877_v53 = vmul.f32 1.442695, %v3823_v28 }
 0x876   : > { %4049 = vmatprep.mubr.bf16.mxu1 %v3948_v46  ;;  %v8980_v21 = vadd.f32 %v5740_v50, %v5738_v22  ;;  %v8986_v7 = vpop.eup %5741  ;;  %5749 = vpow2.f32 %v3857_v20  ;;  %v3172_v46 = vpop.xlane.xlu0 %3171 }
 0x877   : > { %v8988_v51 = vpop.eup %5743  ;;  %v3947_v0 = vpack.c.bf16 %v10514_v41, %v8986_v7  ;;  %v3205_v6 = vsub.f32 %v8691_v54, %v3172_v46 }
 0x878   : > { %v3950_v55 = vpack.c.bf16 %v8767_v44, %v8988_v51  ;;  %v8998_v18 = vpop.eup %5745 }
 0x879   : > { %3428 = vmatmul.mubr.bf16.gmra.mrb[36].mxu0 %v3325_v49  ;;  %v3949_v8 = vpack.c.bf16 %v8765_v2, %v8998_v18  ;;  %v3953_v2 = vpack.c.bf16 %v8957_v23, %v8945_v36  ;;  %v3206_v23 = vsub.f32 %v8695_v27, %v3172_v46  ;;  %v3263_v10 = vmul.f32 1.442695, %v3205_v6 }
 0x87a   : > { %3435 = vmatprep.mubr.bf16.mxu0 %v3328_v26  ;;  %v9000_v60 = vpop.eup %5747  ;;  %v3794_v49 = vpop.xlane.xlu0 %3793  ;;  %v3879_v27 = vmul.f32 1.442695, %v3824_v38 }
 0x87b   : > { %v3952_v44 = vpack.c.bf16 %v5740_v50, %v9000_v60  ;;  %v3255_v50 = vmul.f32 1.442695, %v3201_v16 }
 0x87d   : > { %4050 = vmatmul.mubr.bf16.gmra.mrb[36].mxu1 %v3947_v0  ;;  %5751 = vpow2.f32 %v3255_v50 }
 0x87e   : > { %4057 = vmatprep.mubr.bf16.mxu1 %v3950_v55  ;;  %v3178_v41 = vpop.xlane.xlu0 %3177 }
 0x880   : > { %v9008_v34 = vpop.eup %5749 }
 0x881   : > { %3436 = vmatmul.mubr.bf16.gmra.mrb[40].mxu0 %v3327_v48  ;;  %v3951_v63 = vpack.c.bf16 %v5738_v22, %v9008_v34  ;;  %v3257_v22 = vmul.f32 1.442695, %v3202_v1 }
 0x882   : > { %3443 = vmatprep.mubr.bf16.mxu0 %v3330_v12  ;;  %v3210_v12 = vsub.f32 %v8715_v39, %v3178_v41 }
 0x883   : > { %5753 = vpow2.f32 %v3257_v22 }
 0x884   : > { %5755 = vpow2.f32 %v3877_v53  ;;  %v3273_v19 = vmul.f32 1.442695, %v3210_v12  ;;  %v10516_v12 = vld [vmem:[#allocation58_spill] sm:$0xff] }
 0x885   : > { %4058 = vmatmul.mubr.bf16.gmra.mrb[40].mxu1 %v3949_v8 }
 0x886   : > { %4065 = vmatprep.mubr.bf16.mxu1 %v3952_v44 }
 0x889   : > { %3444 = vmatmul.mubr.bf16.gmra.mrb[44].mxu0 %v10515_v56 }
 0x88d   : > { %4066 = vmatmul.mubr.bf16.gmra.mrb[44].mxu1 %v3951_v63 }
 0x88e   : > { %4073 = vmatprep.mubr.bf16.mxu1 %v3954_v3  ;;  %v3828_v3 = vsub.f32 %v8705_v31, %v3794_v49  ;;  %v3800_v31 = vpop.xlane.xlu0 %3799 }
 0x890   : > { %v3887_v50 = vmul.f32 1.442695, %v3828_v3 }
 0x895   : > { %4074 = vmatmul.mubr.bf16.gmra.mrb[48].mxu1 %v3953_v2 }
 0x8a2   : > { %v3160_v15 = vpop.xlane.xlu1 %3159 }
 0x8a3   : > { %v3197_v11 = vsub.f32 %v8789_v9, %v3160_v15  ;;  %v3198_v36 = vsub.f32 %v8793_v32, %v3160_v15  ;;  %v3265_v9 = vmul.f32 1.442695, %v3206_v23  ;;  %v3209_v32 = vsub.f32 %v8711_v25, %v3178_v41  ;;  %v9029_v25 = vpop.eup %5751 }
 0x8a4   : > { %v5754_v2 = vpop.eup %5753 }
 0x8a5   : > { %v3247_v14 = vmul.f32 1.442695, %v3197_v11  ;;  %v3249_v26 = vmul.f32 1.442695, %v3198_v36  ;;  %v9034_v59 = vpop.eup %5755  ;;  %v3831_v36 = vsub.f32 %v8721_v45, %v3800_v31 }
 0x8a6   : > { %v3163_v0 = vpop.xlane.xlu1 %3162 }
 0x8a7   : > { %5757 = vpow2.f32 %v3247_v14  ;;  %v3199_v54 = vsub.f32 %v8807_v57, %v3163_v0  ;;  %v3200_v20 = vsub.f32 %v8811_v43, %v3163_v0  ;;  %v3827_v57 = vsub.f32 %v8701_v58, %v3794_v49 }
 0x8a8   : > { %5759 = vpow2.f32 %v3249_v26  ;;  %v3271_v43 = vmul.f32 1.442695, %v3209_v32 }
 0x8a9   : > { %v3251_v55 = vmul.f32 1.442695, %v3199_v54  ;;  %v3253_v48 = vmul.f32 1.442695, %v3200_v20  ;;  %5761 = vpow2.f32 %v3263_v10  ;;  %v3885_v46 = vmul.f32 1.442695, %v3827_v57 }
 0x8aa   : > { %v3785_v30 = vpop.xlane.xlu1 %3784  ;;  %v3893_v20 = vmul.f32 1.442695, %v3831_v36 }
 0x8ab   : > { %5763 = vpow2.f32 %v3251_v55  ;;  %v3821_v8 = vsub.f32 %v8823_v17, %v3785_v30  ;;  %v3822_v44 = vsub.f32 %v8827_v13, %v3785_v30 }
 0x8ac   : > { %5765 = vpow2.f32 %v3253_v48 }
 0x8ad   : > { %5767 = vpow2.f32 %v3265_v9  ;;  %v3873_v56 = vmul.f32 1.442695, %v3821_v8  ;;  %v3875_v63 = vmul.f32 1.442695, %v3822_v44  ;;  %v10517_v8 = vld [vmem:[#allocation63_spill] sm:$0xff] }
 0x8ae   : > { %5769 = vpow2.f32 %v3879_v27  ;;  %v3169_v39 = vpop.xlane.xlu1 %3168 }
 0x8af   : > { %5771 = vpow2.f32 %v3873_v56  ;;  %v3203_v17 = vsub.f32 %v8833_v5, %v3169_v39  ;;  %v3204_v13 = vsub.f32 %v8837_v37, %v3169_v39 }
 0x8b0   : > { %5773 = vpow2.f32 %v3875_v63 }
 0x8b1   : > { %v5758_v58 = vpop.eup %5757  ;;  %5775 = vpow2.f32 %v3271_v43  ;;  %v3259_v16 = vmul.f32 1.442695, %v3203_v17  ;;  %v3261_v1 = vmul.f32 1.442695, %v3204_v13 }
 0x8b2   : > { %v5760_v28 = vpop.eup %5759  ;;  %5777 = vpow2.f32 %v3273_v19  ;;  %v3791_v49 = vpop.xlane.xlu1 %3790  ;;  %v3331_v22 = vpack.c.bf16 %v5758_v58, %v8937_v52  ;;  %v3832_v52 = vsub.f32 %v8725_v29, %v3800_v31  ;;  %v10518_v31 = vld [vmem:[#allocation52_spill] sm:$0xff] }
 0x8b3   : > { %5779 = vpow2.f32 %v3259_v16  ;;  %v3825_v5 = vsub.f32 %v8847_v61, %v3791_v49  ;;  %v3826_v37 = vsub.f32 %v8851_v35, %v3791_v49  ;;  %v3302_v53 = vadd.f32 %v5760_v28, %v5758_v58  ;;  %v9039_v6 = vpop.eup %5761 }
 0x8b4   : > { %5781 = vpow2.f32 %v3261_v1  ;;  %v3332_v15 = vpack.c.bf16 %v5760_v28, %v8939_v62  ;;  %v3308_v35 = vadd.f32 %v5754_v2, %v9029_v25  ;;  %v3895_v55 = vmul.f32 1.442695, %v3832_v52  ;;  %v10520_v52 = vld [vmem:[#allocation69_spill] sm:$0xff] }
 0x8b5   : > { %v5764_v11 = vpop.eup %5763  ;;  %5783 = vpow2.f32 %v3885_v46  ;;  %v3881_v23 = vmul.f32 1.442695, %v3825_v5  ;;  %v3883_v14 = vmul.f32 1.442695, %v3826_v37  ;;  %3303 = vadd.xlane.f32.xlu0 %v3302_v53 }
 0x8b6   : > { %v5766_v26 = vpop.eup %5765  ;;  %5785 = vpow2.f32 %v3887_v50  ;;  %3451 = vmatprep.mubr.bf16.mxu0 %v3332_v15  ;;  %v3175_v61 = vpop.xlane.xlu1 %3174  ;;  %v3333_v19 = vpack.c.bf16 %v9029_v25, %v5764_v11  ;;  %v3900_v25 = vadd.f32 %v8970_v42, %v10518_v31  ;;  %v10535_v31 = vld [vmem:[#allocation48_spill] sm:$0xff] }
 0x8b7   : > { %v5768_v38 = vpop.eup %5767  ;;  %5787 = vpow2.f32 %v3881_v23  ;;  %3452 = vmatmul.mubr.bf16.gmra.mrb[48].mxu0 %v3331_v22  ;;  %v3207_v62 = vsub.f32 %v8857_v4, %v3175_v61  ;;  %v3208_v10 = vsub.f32 %v8861_v24, %v3175_v61  ;;  %v3305_v41 = vadd.f32 %v5766_v26, %v5764_v11  ;;  %v10521_v61 = vld [vmem:[#allocation55_spill] sm:$0xff] }
 0x8b8   : > { %v9047_v45 = vpop.eup %5769  ;;  %5789 = vpow2.f32 %v3883_v14  ;;  %v3334_v0 = vpack.c.bf16 %v5754_v2, %v5766_v26  ;;  %v3314_v4 = vadd.f32 %v5768_v38, %v9039_v6  ;;  %v10519_v14 = vld [vmem:[#allocation127_spill] sm:$0xff] }
 0x8b9   : > { %v9049_v54 = vpop.eup %5771  ;;  %v3267_v29 = vmul.f32 1.442695, %v3207_v62  ;;  %v3269_v9 = vmul.f32 1.442695, %v3208_v10  ;;  %3306 = vadd.xlane.f32.xlu1 %v3305_v41  ;;  %3309 = vadd.xlane.f32.xlu0 %v3308_v35  ;;  %v3903_v35 = vadd.f32 %v8986_v7, %v8972_v47  ;;  %v3915_v62 = vadd.f32 %v9008_v34, %v9000_v60  ;;  %v10523_v34 = vld [vmem:[#allocation116_spill] sm:$0xff] }
 0x8ba   : > { %v9051_v32 = vpop.eup %5773  ;;  %3459 = vmatprep.mubr.bf16.mxu0 %v3334_v0  ;;  %v3797_v48 = vpop.xlane.xlu1 %3796  ;;  %v3955_v24 = vpack.c.bf16 %v9034_v59, %v9049_v54  ;;  %v3930_v10 = vadd.f32 %v9047_v45, %v9034_v59  ;;  %v10524_v59 = vld [vmem:[#allocation118_spill] sm:$0xff] }
 0x8bb   : > { %v5776_v27 = vpop.eup %5775  ;;  %5791 = vpow2.f32 %v3267_v29  ;;  %v3829_v30 = vsub.f32 %v10516_v12, %v3797_v48  ;;  %v3830_v44 = vsub.f32 %v10517_v8, %v3797_v48  ;;  %v3956_v57 = vpack.c.bf16 %v9047_v45, %v9051_v32  ;;  %v2660_v45 = vpop.xlane.xlu0 %2659  ;;  %v10527_v29 = vld [vmem:[#allocation79_spill] sm:$0xff]  ;;  %v10528_v48 = vld [vmem:[#allocation106_spill] sm:$0xff] }
 0x8bc   : > { %v5778_v43 = vpop.eup %5777  ;;  %5793 = vpow2.f32 %v3269_v9  ;;  %v3927_v47 = vadd.f32 %v9051_v32, %v9049_v54  ;;  %v10526_v54 = vld [vmem:[#allocation103_spill] sm:$0xff]  ;;  %v10530_v8 = vld [vmem:[#allocation42_spill] sm:$0xff] }
 0x8bd   : > { %v5780_v56 = vpop.eup %5779  ;;  %5795 = vpow2.f32 %v3893_v20  ;;  %v3889_v63 = vmul.f32 1.442695, %v3829_v30  ;;  %v3891_v3 = vmul.f32 1.442695, %v3830_v44  ;;  %4081 = vmatprep.mubr.bf16.mxu1 %v3956_v57  ;;  %3315 = vadd.xlane.f32.xlu0 %v3314_v4  ;;  %v3320_v46 = vadd.f32 %v5778_v43, %v5776_v27  ;;  %v10529_v4 = vld [vmem:[#allocation78_spill] sm:$0xff] }
 0x8be   : > { %v5782_v39 = vpop.eup %5781  ;;  %5797 = vpow2.f32 %v3895_v55  ;;  %4082 = vmatmul.mubr.bf16.gmra.mrb[52].mxu1 %v3955_v24  ;;  %v3335_v22 = vpack.c.bf16 %v9039_v6, %v5780_v56 }
 0x8bf   : > { %v5784_v2 = vpop.eup %5783  ;;  %5799 = vpow2.f32 %v3889_v63  ;;  %3460 = vmatmul.mubr.bf16.gmra.mrb[52].mxu0 %v3333_v19  ;;  %v3311_v17 = vadd.f32 %v5782_v39, %v5780_v56  ;;  %v3336_v13 = vpack.c.bf16 %v5768_v38, %v5782_v39  ;;  %v3909_v38 = vadd.f32 %v8998_v18, %v8988_v51  ;;  %v10522_v18 = vld [vmem:[#allocation100_spill] sm:$0xff]  ;;  %v2666_v32 = vpop.xlane.xlu0 %2665  ;;  %v10532_v39 = vld [vmem:[#allocation81_spill] sm:$0xff] }
 0x8c0   : > { %v5786_v58 = vpop.eup %5785  ;;  %5801 = vpow2.f32 %v3891_v3 }
 0x8c1   : > { %v5788_v16 = vpop.eup %5787  ;;  %3312 = vadd.xlane.f32.xlu1 %v3311_v17  ;;  %3467 = vmatprep.mubr.bf16.mxu0 %v3336_v13  ;;  %v3936_v41 = vadd.f32 %v5786_v58, %v5784_v2  ;;  %5803 = vrcp.f32 %v10522_v18  ;;  %v10533_v13 = vld [vmem:[#allocation41_spill] sm:$0xff] }
 0x8c2   : > { %v5790_v1 = vpop.eup %5789  ;;  %3321 = vadd.xlane.f32.xlu0 %v3320_v46  ;;  %v3957_v28 = vpack.c.bf16 %v5784_v2, %v5788_v16  ;;  %5805 = vrcp.f32 %v10523_v34 }
 0x8c3   : > { %v3958_v50 = vpack.c.bf16 %v5786_v58, %v5790_v1  ;;  %v3933_v7 = vadd.f32 %v5790_v1, %v5788_v16  ;;  %5807 = vrcp.f32 %v10524_v59  ;;  %v2672_v63 = vpop.xlane.xlu0 %2671  ;;  %v10534_v1 = vld [vmem:[#allocation44_spill] sm:$0xff] }
 0x8c5   : > { %v5792_v49 = vpop.eup %5791  ;;  %4089 = vmatprep.mubr.bf16.mxu1 %v3958_v50 }
 0x8c6   : > { %v5794_v5 = vpop.eup %5793  ;;  %3901 = vadd.xlane.f32.xlu0 %v3900_v25  ;;  %4090 = vmatmul.mubr.bf16.gmra.mrb[56].mxu1 %v3957_v28  ;;  %v3337_v6 = vpack.c.bf16 %v5776_v27, %v5792_v49 }
 0x8c7   : > { %v5796_v37 = vpop.eup %5795  ;;  %3468 = vmatmul.mubr.bf16.gmra.mrb[56].mxu0 %v3335_v22  ;;  %v3317_v53 = vadd.f32 %v5794_v5, %v5792_v49  ;;  %v3338_v15 = vpack.c.bf16 %v5778_v43, %v5794_v5  ;;  %v10531_v43 = vld [vmem:[#allocation77_spill] sm:$0xff]  ;;  %v2678_v16 = vpop.xlane.xlu0 %2677  ;;  %v10536_v22 = vld [vmem:[#allocation83_spill] sm:$0xff] }
 0x8c8   : > { %v5798_v11 = vpop.eup %5797 }
 0x8c9   : > { %v5800_v36 = vpop.eup %5799  ;;  %3318 = vadd.xlane.f32.xlu1 %v3317_v53  ;;  %3475 = vmatprep.mubr.bf16.mxu0 %v3338_v15  ;;  %v10537_v15 = vld [vmem:[#allocation43_spill] sm:$0xff] }
 0x8ca   : > { %v5802_v23 = vpop.eup %5801  ;;  %3907 = vadd.xlane.f32.xlu0 %v10519_v14  ;;  %v3959_v26 = vpack.c.bf16 %v5796_v37, %v5800_v36 }
 0x8cb   : > { %v3960_v42 = vpack.c.bf16 %v5798_v11, %v5802_v23  ;;  %v3939_v51 = vadd.f32 %v5802_v23, %v5800_v36  ;;  %v5804_v20 = vpop.eup %5803  ;;  %v2684_v53 = vpop.xlane.xlu0 %2683  ;;  %v10538_v23 = vld [vmem:[#allocation123_spill] sm:$0xff] }
 0x8cc   : > { %v2879_v9 = vmul.f32 %v5804_v20, %v10527_v29  ;;  %v5806_v55 = vpop.eup %5805 }
 0x8cd   : > { %3898 = vadd.xlane.f32.xlu1 %v10520_v52  ;;  %4097 = vmatprep.mubr.bf16.mxu1 %v3960_v42  ;;  %v2878_v24 = vmul.f32 %v5806_v55, %v10529_v4  ;;  %v5808_v12 = vpop.eup %5807  ;;  %v10539_v42 = vld [vmem:[#allocation88_spill] sm:$0xff] }
 0x8ce   : > { %3913 = vadd.xlane.f32.xlu0 %v10521_v61  ;;  %4098 = vmatmul.mubr.bf16.gmra.mrb[60].mxu1 %v3959_v26  ;;  %v2882_v44 = vmul.f32 %v5808_v12, %v10530_v8  ;;  %v10540_v61 = vld [vmem:[#allocation128_spill] sm:$0xff] }
 0x8cf   : > { %3476 = vmatmul.mubr.bf16.gmra.mrb[60].mxu0 %v3337_v6 }
 0x8d1   : > { %3904 = vadd.xlane.f32.xlu1 %v3903_v35 }
 0x8d2   : > { %3919 = vadd.xlane.f32.xlu0 %v8980_v21  ;;  %v3942_v21 = vadd.f32 %v5798_v11, %v5796_v37 }
 0x8d5   : > { %3910 = vadd.xlane.f32.xlu1 %v3909_v38  ;;  %v10541_v38 = vld [vmem:[#allocation122_spill] sm:$0xff] }
 0x8d6   : > { %3925 = vadd.xlane.f32.xlu0 %v8960_v33  ;;  %v2657_v33 = vpop.xlane.xlu1 %2656 }
 0x8d9   : > { %3916 = vadd.xlane.f32.xlu1 %v3915_v62 }
 0x8da   : > { %3931 = vadd.xlane.f32.xlu0 %v3930_v10  ;;  %v2663_v60 = vpop.xlane.xlu1 %2662 }
 0x8dd   : > { %3922 = vadd.xlane.f32.xlu1 %v8955_v40  ;;  %v10525_v40 = vld [vmem:[#allocation117_spill] sm:$0xff] }
 0x8de   : > { %3937 = vadd.xlane.f32.xlu0 %v3936_v41  ;;  %5809 = vrcp.f32 %v10525_v40  ;;  %v2669_v0 = vpop.xlane.xlu1 %2668  ;;  %v10542_v41 = vld [vmem:[#allocation124_spill] sm:$0xff] }
 0x8df   : > { %5811 = vrcp.f32 %v2657_v33 }
 0x8e0   : > { %5813 = vrcp.f32 %v10526_v54 }
 0x8e1   : > { %3928 = vadd.xlane.f32.xlu1 %v3927_v47  ;;  %5815 = vrcp.f32 %v2663_v60 }
 0x8e2   : > { %3943 = vadd.xlane.f32.xlu0 %v3942_v21  ;;  %5817 = vrcp.f32 %v10528_v48  ;;  %v2675_v27 = vpop.xlane.xlu1 %2674 }
 0x8e3   : > { %5819 = vrcp.f32 %v2669_v0 }
 0x8e4   : > { %5821 = vrcp.f32 %v2660_v45 }
 0x8e5   : > { %3934 = vadd.xlane.f32.xlu1 %v3933_v7  ;;  %5823 = vrcp.f32 %v2675_v27  ;;  %v10543_v7 = vld [vmem:[#allocation129_spill] sm:$0xff] }
 0x8e6   : > { %v2681_v19 = vpop.xlane.xlu1 %2680  ;;  %5825 = vrcp.f32 %v2666_v32 }
 0x8e7   : > { %5827 = vrcp.f32 %v2681_v19 }
 0x8e8   : > { %v5810_v30 = vpop.eup %5809  ;;  %5829 = vrcp.f32 %v2672_v63 }
 0x8e9   : > { %3940 = vadd.xlane.f32.xlu1 %v3939_v51  ;;  %v5812_v57 = vpop.eup %5811  ;;  %v2880_v56 = vmul.f32 %v5810_v30, %v10531_v43  ;;  %5831 = vrcp.f32 %v2678_v16  ;;  %v3280_v51 = vpop.xlane.xlu0 %3279 }
 0x8ea   : > { %v5814_v3 = vpop.eup %5813  ;;  %v2884_v2 = vmul.f32 %v5812_v57, %v10532_v39  ;;  %5833 = vrcp.f32 %v2684_v53  ;;  %v3277_v18 = vpop.xlane.xlu1 %3276 }
 0x8eb   : > { %v5816_v17 = vpop.eup %5815  ;;  %v2881_v58 = vmul.f32 %v5814_v3, %v10533_v13  ;;  %5835 = vrcp.f32 %v3277_v18 }
 0x8ec   : > { %v5818_v46 = vpop.eup %5817  ;;  %v2886_v28 = vmul.f32 %v5816_v17, %v10534_v1  ;;  %5837 = vrcp.f32 %v3280_v51 }
 0x8ed   : > { %v5820_v50 = vpop.eup %5819  ;;  %v2883_v25 = vmul.f32 %v5818_v46, %v10535_v31  ;;  %v3286_v60 = vpop.xlane.xlu0 %3285 }
 0x8ee   : > { %v5822_v49 = vpop.eup %5821  ;;  %v2888_v5 = vmul.f32 %v5820_v50, %v10536_v22  ;;  %v3283_v34 = vpop.xlane.xlu1 %3282 }
 0x8ef   : > { %v5824_v37 = vpop.eup %5823  ;;  %v2885_v11 = vmul.f32 %v5822_v49, %v10537_v15  ;;  %5839 = vrcp.f32 %v3283_v34 }
 0x8f0   : > { %v5826_v36 = vpop.eup %5825  ;;  %v2890_v14 = vmul.f32 %v5824_v37, %v10538_v23  ;;  %5841 = vrcp.f32 %v3286_v60 }
 0x8f1   : > { %v5828_v26 = vpop.eup %5827  ;;  %v2887_v52 = vmul.f32 %v5826_v36, %v10539_v42  ;;  %v3292_v59 = vpop.xlane.xlu0 %3291 }
 0x8f2   : > { %v5830_v6 = vpop.eup %5829  ;;  %v2892_v35 = vmul.f32 %v5828_v26, %v10540_v61  ;;  %v3289_v45 = vpop.xlane.xlu1 %3288 }
 0x8f3   : > { %v2889_v62 = vmul.f32 %v5830_v6, %v10541_v38  ;;  %v5832_v10 = vpop.eup %5831  ;;  %5843 = vrcp.f32 %v3289_v45 }
 0x8f4   : > { %v2891_v47 = vmul.f32 %v5832_v10, %v10542_v41  ;;  %v5834_v21 = vpop.eup %5833  ;;  %5845 = vrcp.f32 %v3292_v59 }
 0x8f5   : > { %v2893_v33 = vmul.f32 %v5834_v21, %v10543_v7  ;;  %v3298_v40 = vpop.xlane.xlu0 %3297  ;;  %v5836_v55 = vpop.eup %5835 }
 0x8f6   : > { %v3295_v20 = vpop.xlane.xlu1 %3294 }
 0x8f7   : > { %5847 = vrcp.f32 %v3295_v20 }
 0x8f8   : > { %4156 = vrot.lane.b32.xlu0 %v2879_v9, %s6231_s2  ;;  %5849 = vrcp.f32 %v3298_v40 }
 0x8fa   : > { %4154 = vrot.lane.b32.xlu1 %v2878_v24, %s6231_s2  ;;  %v9122_v12 = vpop.xlane.xlu1 %3300 }
 0x8fc   : > { %4162 = vrot.lane.b32.xlu0 %v2882_v44, %s6231_s2  ;;  %v5838_v44 = vpop.eup %5837 }
 0x8fd   : > { %v5840_v46 = vpop.eup %5839 }
 0x8fe   : > { %4158 = vrot.lane.b32.xlu1 %v2880_v56, %s6231_s2 }
 0x900   : > { %4166 = vrot.lane.b32.xlu0 %v2884_v2, %s6231_s2 }
 0x902   : > { %4160 = vrot.lane.b32.xlu1 %v2881_v58, %s6231_s2 }
 0x904   : > { %4170 = vrot.lane.b32.xlu0 %v2886_v28, %s6231_s2 }
 0x906   : > { %4164 = vrot.lane.b32.xlu1 %v2883_v25, %s6231_s2  ;;  %v5842_v25 = vpop.eup %5841 }
 0x907   : > { %v5844_v6 = vpop.eup %5843 }
 0x908   : > { %4174 = vrot.lane.b32.xlu0 %v2888_v5, %s6231_s2  ;;  %v5846_v41 = vpop.eup %5845 }
 0x90a   : > { %4168 = vrot.lane.b32.xlu1 %v2885_v11, %s6231_s2 }
 0x90c   : > { %4178 = vrot.lane.b32.xlu0 %v2890_v14, %s6231_s2 }
 0x90e   : > { %4172 = vrot.lane.b32.xlu1 %v2887_v52, %s6231_s2 }
 0x910   : > { %4182 = vrot.lane.b32.xlu0 %v2892_v35, %s6231_s2 }
 0x912   : > { %4176 = vrot.lane.b32.xlu1 %v2889_v62, %s6231_s2 }
 0x916   : > { %4180 = vrot.lane.b32.xlu1 %v2891_v47, %s6231_s2 }
 0x91a   : > { %4184 = vrot.lane.b32.xlu1 %v2893_v33, %s6231_s2  ;;  %s6086_s2 = scalar_lea.vmem %s9722_s9, 2048 }
 0x91b   : > { %p6087_p1 = scmp.ne.s32.totalorder %s9722_s9, %s6086_s2 }
 0x91d   : > { %p6088_p6 = pnand %p6087_p1, %p6448_p11 }
 0x91f   : > { %p6089_p13 = pneg %p6088_p6 }
 0x942   : > { %v9118_v0 = vpop.xlane.xlu0 %3303 }
 0x944   : > { %v4994_v54 = vpop.f32.mrb[32].mxu0 }
 0x945   : > { %v4995_v29 = vpop.f32.mrb[33].mxu0 }
 0x946   : > { %v4996_v9 = vadd.f32 %v4995_v29, %v4994_v54  ;;  %v9120_v32 = vpop.xlane.xlu0 %3309  ;;  %v4997_v48 = vpop.f32.mrb[34].mxu0 }
 0x947   : > { %v4998_v24 = vpop.f32.mrb[35].mxu0  ;;  %v9132_v17 = vpop.xlane.xlu1 %3306 }
 0x948   : > { %v3500_v4 = vmul.f32 %v5836_v55, %v4996_v9  ;;  %v5058_v27 = vpop.f32.mrb[32].mxu1  ;;  %v4999_v30 = vadd.f32 %v4998_v24, %v4997_v48  ;;  %v5848_v29 = vpop.eup %5847 }
 0x949   : > { %v5059_v8 = vpop.f32.mrb[33].mxu1 }
 0x94a   : > { %v9124_v57 = vadd.f32 %v5059_v8, %v5058_v27  ;;  %v9126_v43 = vpop.xlane.xlu0 %3315  ;;  %v5061_v56 = vpop.f32.mrb[34].mxu1  ;;  %4218 = vrot.lane.b32.xlu0 %v3500_v4, %s6230_s14  ;;  %v3501_v63 = vmul.f32 %v5838_v44, %v4999_v30 }
 0x94b   : > { %v5062_v3 = vpop.f32.mrb[35].mxu1  ;;  %v5850_v27 = vpop.eup %5849 }
 0x94c   : > { %v9129_v19 = vadd.f32 %v5062_v3, %v5061_v56  ;;  %v5000_v39 = vpop.f32.mrb[36].mxu0  ;;  %4220 = vrot.lane.b32.xlu1 %v3501_v63, %s6230_s14 }
 0x94d   : > { %v5001_v2 = vpop.f32.mrb[37].mxu0 }
 0x94e   : > { %v5002_v13 = vadd.f32 %v5001_v2, %v5000_v39  ;;  %v5003_v58 = vpop.f32.mrb[38].mxu0  ;;  %v9136_v22 = vpop.xlane.xlu1 %3312 }
 0x94f   : > { %v9134_v16 = vpop.xlane.xlu0 %3321  ;;  %v5004_v1 = vpop.f32.mrb[39].mxu0 }
 0x950   : > { %v3502_v28 = vmul.f32 %v5840_v46, %v5002_v13  ;;  %v5005_v50 = vadd.f32 %v5004_v1, %v5003_v58  ;;  %v5064_v31 = vpop.f32.mrb[36].mxu1 }
 0x951   : > { %v5065_v49 = vpop.f32.mrb[37].mxu1 }
 0x952   : > { %v3503_v5 = vmul.f32 %v5842_v25, %v5005_v50  ;;  %v9138_v37 = vadd.f32 %v5065_v49, %v5064_v31  ;;  %v5067_v53 = vpop.f32.mrb[38].mxu1  ;;  %4222 = vrot.lane.b32.xlu0 %v3502_v28, %s6230_s14 }
 0x953   : > { %v9141_v15 = vpop.xlane.xlu0 %3901  ;;  %v5068_v11 = vpop.f32.mrb[39].mxu1 }
 0x954   : > { %v9143_v36 = vadd.f32 %v5068_v11, %v5067_v53  ;;  %v5006_v23 = vpop.f32.mrb[40].mxu0  ;;  %4224 = vrot.lane.b32.xlu1 %v3503_v5, %s6230_s14  ;;  %v10544_v5 = vld [vmem:[#allocation102_spill] sm:$0xff] }
 0x955   : > { %v5007_v14 = vpop.f32.mrb[41].mxu0  ;;  %5851 = vrcp.f32 %v10544_v5 }
 0x956   : > { %v5008_v26 = vadd.f32 %v5007_v14, %v5006_v23  ;;  %v9146_v42 = vpop.xlane.xlu1 %3318  ;;  %v5009_v52 = vpop.f32.mrb[42].mxu0  ;;  %v10545_v14 = vld [vmem:[#allocation105_spill] sm:$0xff] }
 0x957   : > { %v9148_v61 = vpop.xlane.xlu0 %3907  ;;  %v5010_v35 = vpop.f32.mrb[43].mxu0  ;;  %5853 = vrcp.f32 %v10545_v14 }
 0x958   : > { %v3504_v38 = vmul.f32 %v5844_v6, %v5008_v26  ;;  %v5011_v62 = vadd.f32 %v5010_v35, %v5009_v52  ;;  %v5070_v10 = vpop.f32.mrb[40].mxu1 }
 0x959   : > { %v5071_v47 = vpop.f32.mrb[41].mxu1 }
 0x95a   : > { %v3505_v21 = vmul.f32 %v5846_v41, %v5011_v62  ;;  %v9150_v7 = vadd.f32 %v5071_v47, %v5070_v10  ;;  %v9152_v33 = vpop.xlane.xlu1 %3898  ;;  %v5073_v51 = vpop.f32.mrb[42].mxu1  ;;  %4226 = vrot.lane.b32.xlu0 %v3504_v38, %s6230_s14  ;;  %v10546_v62 = vld [vmem:[#allocation113_spill] sm:$0xff]  ;;  %v10547_v10 = vld [vmem:[#allocation80_spill] sm:$0xff] }
 0x95b   : > { %v9155_v18 = vpop.xlane.xlu0 %3913  ;;  %v5074_v60 = vpop.f32.mrb[43].mxu1  ;;  %5855 = vrcp.f32 %v10546_v62 }
 0x95c   : > { %v9157_v34 = vadd.f32 %v5074_v60, %v5073_v51  ;;  %v5012_v59 = vpop.f32.mrb[44].mxu0  ;;  %4228 = vrot.lane.b32.xlu1 %v3505_v21, %s6230_s14 }
 0x95d   : > { %v5013_v40 = vpop.f32.mrb[45].mxu0 }
 0x95e   : > { %v5014_v45 = vadd.f32 %v5013_v40, %v5012_v59  ;;  %v9160_v54 = vpop.xlane.xlu1 %3904  ;;  %v5015_v20 = vpop.f32.mrb[46].mxu0  ;;  %v10548_v59 = vld [vmem:[#allocation115_spill] sm:$0xff]  ;;  %v10549_v40 = vld [vmem:[#allocation36_spill] sm:$0xff] }
 0x95f   : > { %v9162_v9 = vpop.xlane.xlu0 %3919  ;;  %v5016_v55 = vpop.f32.mrb[47].mxu0  ;;  %5857 = vrcp.f32 %v10548_v59 }
 0x960   : > { %v3506_v48 = vmul.f32 %v5848_v29, %v5014_v45  ;;  %v5017_v4 = vadd.f32 %v5016_v55, %v5015_v20  ;;  %v5076_v24 = vpop.f32.mrb[44].mxu1  ;;  %v5852_v6 = vpop.eup %5851  ;;  %5859 = vrcp.f32 %v9122_v12  ;;  %v10553_v12 = vld [vmem:[#allocation107_spill] sm:$0xff] }
 0x961   : > { %v5077_v30 = vpop.f32.mrb[45].mxu1  ;;  %v2240_v41 = vmul.f32 %v5852_v6, %v10547_v10  ;;  %v5854_v47 = vpop.eup %5853  ;;  %5861 = vrcp.f32 %v9118_v0 }
 0x962   : > { %v3507_v8 = vmul.f32 %v5850_v27, %v5017_v4  ;;  %v9164_v44 = vadd.f32 %v5077_v30, %v5076_v24  ;;  %v9166_v56 = vpop.xlane.xlu1 %3910  ;;  %v5079_v63 = vpop.f32.mrb[46].mxu1  ;;  %4230 = vrot.lane.b32.xlu0 %v3506_v48, %s6230_s14  ;;  %v2242_v45 = vmul.f32 %v5854_v47, %v10549_v40  ;;  %v10550_v30 = vld [vmem:[#allocation101_spill] sm:$0xff] }
 0x963   : > { %v9169_v3 = vpop.xlane.xlu0 %3925  ;;  %v5080_v39 = vpop.f32.mrb[47].mxu1 }
 0x964   : > { %v9171_v2 = vadd.f32 %v5080_v39, %v5079_v63  ;;  %4232 = vrot.lane.b32.xlu1 %v3507_v8, %s6230_s14  ;;  %v10551_v39 = vld [vmem:[#allocation94_spill] sm:$0xff] }
 0x965   : > { %v5856_v4 = vpop.eup %5855  ;;  %5863 = vrcp.f32 %v10551_v39 }
 0x966   : > { %v9174_v13 = vpop.xlane.xlu1 %3916  ;;  %v2252_v8 = vmul.f32 %v5856_v4, %v10550_v30  ;;  %v10554_v4 = vld [vmem:[#allocation98_spill] sm:$0xff] }
 0x967   : > { %v9176_v58 = vpop.xlane.xlu0 %3931 }
 0x968   : > { %v5082_v46 = vpop.f32.mrb[48].mxu1 }
 0x969   : > { %v5083_v1 = vpop.f32.mrb[49].mxu1  ;;  %v5858_v63 = vpop.eup %5857 }
 0x96a   : > { %v9178_v28 = vpop.xlane.xlu1 %3922  ;;  %v9180_v50 = vadd.f32 %v5083_v1, %v5082_v46  ;;  %v5085_v31 = vpop.f32.mrb[50].mxu1  ;;  %v2254_v14 = vmul.f32 %v5858_v63, %v10553_v12  ;;  %v10555_v63 = vld [vmem:[#allocation99_spill] sm:$0xff] }
 0x96b   : > { %v9182_v25 = vpop.xlane.xlu0 %3937  ;;  %v5086_v49 = vpop.f32.mrb[51].mxu1 }
 0x96c   : > { %v9185_v53 = vadd.f32 %v5086_v49, %v5085_v31  ;;  %v10552_v31 = vld [vmem:[#allocation96_spill] sm:$0xff]  ;;  %v5860_v47 = vpop.eup %5859 }
 0x96d   : > { %5865 = vrcp.f32 %v10552_v31 }
 0x96e   : > { %v9187_v11 = vpop.xlane.xlu1 %3928  ;;  %5867 = vrcp.f32 %v9132_v17 }
 0x96f   : > { %v9189_v23 = vpop.xlane.xlu0 %3943  ;;  %5869 = vrcp.f32 %v9120_v32 }
 0x970   : > { %5871 = vrcp.f32 %v10554_v4 }
 0x971   : > { %5873 = vrcp.f32 %v9136_v22 }
 0x972   : > { %v9192_v26 = vpop.xlane.xlu1 %3934  ;;  %5875 = vrcp.f32 %v9126_v43 }
 0x973   : > { %v9194_v52 = vpop.permute.xlu0 %4156  ;;  %5877 = vrcp.f32 %v9146_v42 }
 0x974   : > { %5879 = vrcp.f32 %v9134_v16 }
 0x975   : > { %5881 = vrcp.f32 %v9152_v33 }
 0x976   : > { %v9196_v35 = vpop.xlane.xlu1 %3940  ;;  %5883 = vrcp.f32 %v9141_v15 }
 0x977   : > { %v9198_v38 = vpop.permute.xlu0 %4162  ;;  %5885 = vrcp.f32 %v9160_v54 }
 0x978   : > { %5887 = vrcp.f32 %v9148_v61 }
 0x979   : > { %5889 = vrcp.f32 %v9166_v56 }
 0x97a   : > { %v4155_v21 = vpop.permute.xlu1 %4154  ;;  %5891 = vrcp.f32 %v9155_v18 }
 0x97b   : > { %v9203_v51 = vsel %vm4330_vm7, %v2240_v41, %v4155_v21  ;;  %v9205_v60 = vpop.permute.xlu0 %4166 }
 0x97e   : > { %v4159_v20 = vpop.permute.xlu1 %4158 }
 0x97f   : > { %v9210_v29 = vsel %vm4330_vm7, %v2242_v45, %v4159_v20  ;;  %v9212_v55 = vpop.permute.xlu0 %4170  ;;  %v5862_v20 = vpop.eup %5861  ;;  %5893 = vrcp.f32 %v9174_v13 }
 0x980   : > { %v5864_v17 = vpop.eup %5863  ;;  %5895 = vrcp.f32 %v9162_v9 }
 0x981   : > { %v2251_v39 = vmul.f32 %v5864_v17, %v10555_v63 }
 0x982   : > { %v9214_v48 = vpop.permute.xlu1 %4160 }
 0x983   : > { %v9217_v24 = vpop.permute.xlu0 %4174 }
 0x986   : > { %v9220_v27 = vpop.permute.xlu1 %4164 }
 0x987   : > { %v4179_v46 = vpop.permute.xlu0 %4178 }
 0x988   : > { %v9225_v1 = vsel %vm4330_vm7, %v2252_v8, %v4179_v46 }
 0x98a   : > { %v5018_v49 = vpop.f32.mrb[48].mxu0  ;;  %v9228_v5 = vpop.permute.xlu1 %4168 }
 0x98b   : > { %v5019_v0 = vpop.f32.mrb[49].mxu0  ;;  %v4183_v6 = vpop.permute.xlu0 %4182 }
 0x98c   : > { %v5020_v62 = vadd.f32 %v5019_v0, %v5018_v49  ;;  %v9233_v10 = vsel %vm4330_vm7, %v2254_v14, %v4183_v6  ;;  %v5021_v41 = vpop.f32.mrb[50].mxu0  ;;  %v5866_v14 = vpop.eup %5865  ;;  %5897 = vrcp.f32 %v9178_v28 }
 0x98d   : > { %v5022_v21 = vpop.f32.mrb[51].mxu0 }
 0x98e   : > { %v3508_v59 = vmul.f32 %v5860_v47, %v5020_v62  ;;  %v5023_v40 = vadd.f32 %v5022_v21, %v5021_v41  ;;  %v9236_v45 = vpop.permute.xlu1 %4172  ;;  %v5868_v47 = vpop.eup %5867  ;;  %5899 = vrcp.f32 %v9169_v3 }
 0x98f   : > { %v5870_v17 = vpop.eup %5869  ;;  %5901 = vrcp.f32 %v9187_v11 }
 0x990   : > { %v3509_v30 = vmul.f32 %v5862_v20, %v5023_v40  ;;  %4234 = vrot.lane.b32.xlu0 %v3508_v59, %s6230_s14  ;;  %v10556_v40 = vld [vmem:[#allocation104_spill] sm:$0xff] }
 0x991   : > { %v5088_v8 = vpop.f32.mrb[52].mxu1  ;;  %v2253_v20 = vmul.f32 %v5866_v14, %v10556_v40 }
 0x992   : > { %v5024_v46 = vpop.f32.mrb[52].mxu0  ;;  %4236 = vrot.lane.b32.xlu1 %v3509_v30, %s6230_s14  ;;  %v5089_v31 = vpop.f32.mrb[53].mxu1 }
 0x993   : > { %v5025_v32 = vpop.f32.mrb[53].mxu0  ;;  %v9243_v49 = vadd.f32 %v5089_v31, %v5088_v8  ;;  %v4177_v12 = vpop.permute.xlu1 %4176 }
 0x994   : > { %v5026_v0 = vadd.f32 %v5025_v32, %v5024_v46  ;;  %v9246_v6 = vsel %vm4330_vm7, %v2251_v39, %v4177_v12  ;;  %v5027_v62 = vpop.f32.mrb[54].mxu0  ;;  %v5091_v41 = vpop.f32.mrb[54].mxu1  ;;  %v10557_v32 = vld [vmem:[#allocation109_spill] sm:$0xff] }
 0x995   : > { %v5028_v21 = vpop.f32.mrb[55].mxu0  ;;  %v5092_v59 = vpop.f32.mrb[55].mxu1 }
 0x996   : > { %v3510_v4 = vmul.f32 %v5868_v47, %v5026_v0  ;;  %v5029_v22 = vadd.f32 %v5028_v21, %v5027_v62  ;;  %v9250_v30 = vadd.f32 %v5092_v59, %v5091_v41  ;;  %v5872_v39 = vpop.eup %5871  ;;  %5903 = vrcp.f32 %v9176_v58 }
 0x997   : > { %v4181_v8 = vpop.permute.xlu1 %4180  ;;  %v2255_v43 = vmul.f32 %v5872_v39, %v10557_v32 }
 0x998   : > { %v3511_v63 = vmul.f32 %v5870_v17, %v5029_v22  ;;  %v9253_v46 = vsel %vm4330_vm7, %v2253_v20, %v4181_v8  ;;  %4238 = vrot.lane.b32.xlu0 %v3510_v4, %s6230_s14  ;;  %v5874_v20 = vpop.eup %5873  ;;  %5905 = vrcp.f32 %v9192_v26 }
 0x999   : > { %v5094_v31 = vpop.f32.mrb[56].mxu1 }
 0x99a   : > { %v5030_v12 = vpop.f32.mrb[56].mxu0  ;;  %4240 = vrot.lane.b32.xlu1 %v3511_v63, %s6230_s14  ;;  %v5095_v14 = vpop.f32.mrb[57].mxu1 }
 0x99b   : > { %v5031_v0 = vpop.f32.mrb[57].mxu0  ;;  %v9259_v62 = vadd.f32 %v5095_v14, %v5094_v31  ;;  %v4185_v41 = vpop.permute.xlu1 %4184 }
 0x99c   : > { %v5032_v47 = vadd.f32 %v5031_v0, %v5030_v12  ;;  %v9263_v21 = vsel %vm4330_vm7, %v2255_v43, %v4185_v41  ;;  %v5033_v59 = vpop.f32.mrb[58].mxu0  ;;  %v5097_v40 = vpop.f32.mrb[58].mxu1 }
 0x99d   : > { %v5034_v4 = vpop.f32.mrb[59].mxu0  ;;  %v5098_v22 = vpop.f32.mrb[59].mxu1 }
 0x99e   : > { %v3512_v17 = vmul.f32 %v5874_v20, %v5032_v47  ;;  %v5035_v8 = vadd.f32 %v5034_v4, %v5033_v59  ;;  %v9266_v42 = vadd.f32 %v5098_v22, %v5097_v40  ;;  %v5876_v63 = vpop.eup %5875  ;;  %5907 = vrcp.f32 %v9182_v25 }
 0x99f   : > { %v5878_v15 = vpop.eup %5877  ;;  %5909 = vrcp.f32 %v9196_v35 }
 0x9a0   : > { %v3513_v39 = vmul.f32 %v5876_v63, %v5035_v8  ;;  %4242 = vrot.lane.b32.xlu0 %v3512_v17, %s6230_s14  ;;  %v5880_v54 = vpop.eup %5879  ;;  %5911 = vrcp.f32 %v9189_v23 }
 0x9a1   : > { %v5100_v16 = vpop.f32.mrb[60].mxu1  ;;  %v5882_v4 = vpop.eup %5881 }
 0x9a2   : > { %v5036_v31 = vpop.f32.mrb[60].mxu0  ;;  %4244 = vrot.lane.b32.xlu1 %v3513_v39, %s6230_s14  ;;  %v5101_v32 = vpop.f32.mrb[61].mxu1  ;;  %v4122_v17 = vmul.f32 %v5882_v4, %v9124_v57  ;;  %v10565_v4 = vld [vmem:[#allocation111_spill] sm:$0xff] }
 0x9a3   : > { %v5037_v33 = vpop.f32.mrb[61].mxu0  ;;  %v9273_v43 = vadd.f32 %v5101_v32, %v5100_v16  ;;  %v5103_v12 = vpop.f32.mrb[62].mxu1 }
 0x9a4   : > { %v5038_v14 = vadd.f32 %v5037_v33, %v5036_v31  ;;  %v5039_v0 = vpop.f32.mrb[62].mxu0  ;;  %v5104_v41 = vpop.f32.mrb[63].mxu1 }
 0x9a5   : > { %v5040_v47 = vpop.f32.mrb[63].mxu0  ;;  %v9276_v59 = vadd.f32 %v5104_v41, %v5103_v12  ;;  %v5884_v22 = vpop.eup %5883  ;;  %v10558_v12 = vld [vmem:[#allocation25_spill] sm:$0xff] }
 0x9a6   : > { %v3514_v40 = vmul.f32 %v5878_v15, %v5038_v14  ;;  %v5041_v20 = vadd.f32 %v5040_v47, %v5039_v0  ;;  %v5886_v56 = vpop.eup %5885  ;;  %v4123_v8 = vmul.f32 %v5884_v22, %v9129_v19  ;;  %5913 = vrcp.f32 %v10558_v12  ;;  %v10559_v14 = vld [vmem:[#allocation86_spill] sm:$0xff]  ;;  %v10560_v0 = vld [vmem:[#allocation32_spill] sm:$0xff]  ;;  %v10574_v12 = vld [vmem:[#allocation93_spill] sm:$0xff] }
 0x9a7   : > { %v5888_v63 = vpop.eup %5887  ;;  %v4124_v18 = vmul.f32 %v5886_v56, %v9138_v37  ;;  %5915 = vrcp.f32 %v10559_v14  ;;  %v10561_v15 = vld [vmem:[#allocation90_spill] sm:$0xff]  ;;  %v10562_v47 = vld [vmem:[#allocation92_spill] sm:$0xff] }
 0x9a8   : > { %v3515_v61 = vmul.f32 %v5880_v54, %v5041_v20  ;;  %4246 = vrot.lane.b32.xlu0 %v3514_v40, %s6230_s14  ;;  %v5890_v39 = vpop.eup %5889  ;;  %v4125_v57 = vmul.f32 %v5888_v63, %v9143_v36  ;;  %5917 = vrcp.f32 %v10560_v0  ;;  %v10563_v54 = vld [vmem:[#allocation108_spill] sm:$0xff]  ;;  %v10564_v40 = vld [vmem:[#allocation110_spill] sm:$0xff] }
 0x9a9   : > { %v5892_v13 = vpop.eup %5891  ;;  %v4126_v9 = vmul.f32 %v5890_v39, %v9150_v7  ;;  %5919 = vrcp.f32 %v10561_v15  ;;  %v9384_v15 = vld [vmem:[%s9365_s19 + $0x10] sm:$0xff] }
 0x9aa   : > { %4248 = vrot.lane.b32.xlu1 %v3515_v61, %s6230_s14  ;;  %v5894_v19 = vpop.eup %5893  ;;  %v4127_v28 = vmul.f32 %v5892_v13, %v9157_v34  ;;  %5921 = vrcp.f32 %v10562_v47  ;;  %v10566_v61 = vld [vmem:[#allocation112_spill] sm:$0xff]  ;;  %s9733_s14 = scalar_lea.sflag [#allocation8], %s303_s18 }
 0x9ab   : > { %v5896_v37 = vpop.eup %5895  ;;  %v4128_v3 = vmul.f32 %v5894_v19, %v9164_v44  ;;  %5923 = vrcp.f32 %v10563_v54 }
 0x9ac   : > { %4282 = vrot.lane.b32.xlu0 %v4122_v17, %s6229_s21  ;;  %v5898_v36 = vpop.eup %5897  ;;  %v4129_v16 = vmul.f32 %v5896_v37, %v9171_v2  ;;  %5925 = vrcp.f32 %v10564_v40  ;;  %v10575_v40 = vld [vmem:[#allocation97_spill] sm:$0xff] }
 0x9ad   : > { %v5900_v7 = vpop.eup %5899  ;;  %v4130_v34 = vmul.f32 %v5898_v36, %v9180_v50  ;;  %5927 = vrcp.f32 %v10565_v4 }
 0x9ae   : > { %4284 = vrot.lane.b32.xlu1 %v4123_v8, %s6229_s21  ;;  %v4131_v58 = vmul.f32 %v5900_v7, %v9185_v53  ;;  %v5902_v44 = vpop.eup %5901  ;;  %5929 = vrcp.f32 %v10566_v61  ;;  %v9394_v61 = vld [vmem:[%s9365_s19 + $0x18] sm:$0xff] }
 0x9af   : > { %v4132_v2 = vmul.f32 %v5902_v44, %v9243_v49  ;;  %v5904_v11 = vpop.eup %5903  ;;  %v10569_v44 = vld [vmem:[#allocation26_spill] sm:$0xff] }
 0x9b0   : > { %4286 = vrot.lane.b32.xlu0 %v4124_v18, %s6229_s21  ;;  %v4133_v25 = vmul.f32 %v5904_v11, %v9250_v30  ;;  %v5906_v50 = vpop.eup %5905  ;;  %v10570_v11 = vld [vmem:[#allocation37_spill] sm:$0xff] }
 0x9b1   : > { %v4134_v26 = vmul.f32 %v5906_v50, %v9259_v62  ;;  %v5908_v53 = vpop.eup %5907  ;;  %v9368_v50 = vld [vmem:[%s9365_s19] sm:$0xff] }
 0x9b2   : > { %4288 = vrot.lane.b32.xlu1 %v4125_v57, %s6229_s21  ;;  %v4135_v35 = vmul.f32 %v5908_v53, %v9266_v42  ;;  %v5910_v23 = vpop.eup %5909  ;;  %v10571_v53 = vld [vmem:[#allocation91_spill] sm:$0xff] }
 0x9b3   : > { %v4136_v49 = vmul.f32 %v5910_v23, %v9273_v43  ;;  %v5912_v31 = vpop.eup %5911  ;;  %v10572_v23 = vld [vmem:[#allocation95_spill] sm:$0xff] }
 0x9b4   : > { %4290 = vrot.lane.b32.xlu0 %v4126_v9, %s6229_s21  ;;  %v4137_v30 = vmul.f32 %v5912_v31, %v9276_v59  ;;  %v5914_v17 = vpop.eup %5913  ;;  %v10573_v31 = vld [vmem:[#allocation89_spill] sm:$0xff] }
 0x9b5   : > { %v5916_v8 = vpop.eup %5915 }
 0x9b6   : > { %4292 = vrot.lane.b32.xlu1 %v4127_v28, %s6229_s21  ;;  %v5918_v63 = vpop.eup %5917 }
 0x9b7   : > { %v5920_v39 = vpop.eup %5919 }
 0x9b8   : > { %4294 = vrot.lane.b32.xlu0 %v4128_v3, %s6229_s21  ;;  %v5922_v57 = vpop.eup %5921 }
 0x9b9   : > { %v5924_v9 = vpop.eup %5923 }
 0x9ba   : > { %4296 = vrot.lane.b32.xlu1 %v4129_v16, %s6229_s21  ;;  %v5926_v19 = vpop.eup %5925  ;;  %v10567_v16 = vld [vmem:[#allocation87_spill] sm:$0xff] }
 0x9bb   : > { %v5928_v37 = vpop.eup %5927  ;;  %v2245_v7 = vmul.f32 %v5918_v63, %v10567_v16  ;;  %v4518_v16 = vsub.f32 1.0, %v9384_v15 }
 0x9bc   : > { %4298 = vrot.lane.b32.xlu0 %v4130_v34, %s6229_s21  ;;  %v9323_v62 = vpop.permute.xlu0 %4218  ;;  %v5930_v3 = vpop.eup %5929  ;;  %v10568_v34 = vld [vmem:[#allocation82_spill] sm:$0xff]  ;;  %v2248_v14 = vmul.f32 %v5928_v37, %v10574_v12  ;;  %v1521_v37 = vld [vmem:[%s9381_s4] sm:$0xff] }
 0x9bd   : > { %v2250_v4 = vmul.f32 %v5930_v3, %v10575_v40  ;;  %v1522_v3 = vld [vmem:[%s9381_s4 + $0x8] sm:$0xff] }
 0x9be   : > { %4300 = vrot.lane.b32.xlu1 %v4131_v58, %s6229_s21  ;;  %v9325_v32 = vpop.permute.xlu1 %4220  ;;  %v2241_v58 = vmul.f32 %v5914_v17, %v10568_v34 }
 0x9c0   : > { %4302 = vrot.lane.b32.xlu0 %v4132_v2, %s6229_s21  ;;  %v2244_v2 = vmul.f32 %v5924_v9, %v10569_v44  ;;  %v4332_v47 = vsel %vm4330_vm7, %v2241_v58, %v9194_v52  ;;  %v4516_v52 = vsub.f32 1.0, %v9368_v50  ;;  %v9418_v9 = vsel %vm4330_vm7, %v2250_v4, %v9217_v24  ;;  %v1523_v58 = vld [vmem:[%s9381_s4 + $0x10] sm:$0xff] }
 0x9c1   : > { %v4348_v24 = vsel %vm4347_vm9, %v9203_v51, %v9323_v62  ;;  %v4519_v44 = vsub.f32 1.0, %v9394_v61 }
 0x9c2   : > { %4304 = vrot.lane.b32.xlu1 %v4133_v25, %s6229_s21  ;;  %v2243_v25 = vmul.f32 %v5916_v8, %v10570_v11  ;;  %v9390_v54 = vsel %vm4330_vm7, %v2244_v2, %v9198_v38  ;;  %v9405_v38 = vld [vmem:[%s9365_s19 + $0x20] sm:$0xff]  ;;  %v9440_v2 = vld [vmem:[%s9365_s19 + $0x30] sm:$0xff]  ;;  %v9443_v11 = vld [vmem:[%s9365_s19 + $0x38] sm:$0xff] }
 0x9c3   : > { %10577 = vst [vmem:[#allocation64_spill] sm:$0xff] %v9443_v11  ;;  %v4520_v51 = vsub.f32 1.0, %v9405_v38 }
 0x9c4   : > { %4306 = vrot.lane.b32.xlu0 %v4134_v26, %s6229_s21  ;;  %v9327_v33 = vpop.permute.xlu0 %4222  ;;  %v9371_v26 = vld [vmem:[%s9365_s19 + $0x8] sm:$0xff] }
 0x9c5   : > { %v4517_v63 = vsub.f32 1.0, %v9371_v26  ;;  %v4350_v40 = vsel %vm4347_vm9, %v9210_v29, %v9327_v33 }
 0x9c6   : > { %4308 = vrot.lane.b32.xlu1 %v4135_v35, %s6229_s21  ;;  %v9329_v42 = vpop.permute.xlu1 %4224  ;;  %v2247_v35 = vmul.f32 %v5920_v39, %v10571_v53  ;;  %v9408_v39 = vld [vmem:[%s9365_s19 + $0x28] sm:$0xff] }
 0x9c7   : > { %v4521_v62 = vsub.f32 1.0, %v9408_v39 }
 0x9c8   : > { %4310 = vrot.lane.b32.xlu0 %v4136_v49, %s6229_s21  ;;  %v2249_v49 = vmul.f32 %v5922_v57, %v10572_v23  ;;  %v9412_v57 = vsel %vm4330_vm7, %v2248_v14, %v9212_v55  ;;  %v4336_v55 = vsel %vm4330_vm7, %v2245_v7, %v9220_v27  ;;  %v1524_v7 = vld [vmem:[%s9381_s4 + $0x18] sm:$0xff]  ;;  %v9468_v14 = vmul.f32 %v4518_v16, %v1523_v58 }
 0x9c9   : > { %v1528_v16 = vld [vmem:[%s9381_s4 + $0x38] sm:$0xff] }
 0x9ca   : > { %4312 = vrot.lane.b32.xlu1 %v4137_v30, %s6229_s21  ;;  %v2246_v30 = vmul.f32 %v5926_v19, %v10573_v31  ;;  %v9423_v19 = vld [vmem:[%s10576_s11] ss:$0 sm:$0xff]  ;;  %v9447_v27 = vsel %vm4330_vm7, %v2249_v49, %v9236_v45  ;;  %v9460_v45 = vmul.f32 %v4517_v63, %v1522_v3  ;;  %v1526_v31 = vld [vmem:[%s9381_s4 + $0x28] sm:$0xff]  ;;  %v1527_v3 = vld [vmem:[%s9381_s4 + $0x30] sm:$0xff]  ;;  %s9727_s21 = scalar_lea.hbm %s10581_s16, %s4821_s24 }
 0x9cb   : > { %v1525_v49 = vld [vmem:[%s9381_s4 + $0x20] sm:$0xff] }
 0x9cc   : > { %v9332_v43 = vpop.permute.xlu0 %4226  ;;  %v9398_v17 = vsel %vm4330_vm7, %v2246_v30, %v9205_v60  ;;  %v4334_v60 = vsel %vm4330_vm7, %v2243_v25, %v9214_v48  ;;  %v9432_v48 = vsel %vm4330_vm7, %v2247_v35, %v9228_v5  ;;  %v4349_v25 = vsel %vm4347_vm9, %v4332_v47, %v9325_v32  ;;  %v9465_v30 = vld [vmem:[%s9365_s19 + $0x40] sm:$0xff] }
 0x9cd   : > { %v9458_v35 = vmul.f32 %v4516_v52, %v1521_v37  ;;  %v4522_v32 = vsub.f32 1.0, %v9440_v2  ;;  %v4523_v47 = vsub.f32 1.0, %v9443_v11  ;;  %v9479_v37 = vmul.f32 %v4519_v44, %v1524_v7  ;;  %v9500_v11 = vld [vmem:[%s9365_s19 + $0x50] sm:$0xff] }
 0x9ce   : > { %v9336_v41 = vpop.permute.xlu1 %4228  ;;  %v9487_v58 = vmul.f32 %v4520_v51, %v1525_v49  ;;  %v4524_v29 = vsub.f32 1.0, %v9465_v30  ;;  %v4351_v33 = vsel %vm4347_vm9, %v4334_v60, %v9329_v42  ;;  %v4352_v42 = vsel %vm4347_vm9, %v9390_v54, %v9332_v43 }
 0x9cf   : > { %v9503_v49 = vmul.f32 %v4522_v32, %v1527_v3  ;;  %v4353_v3 = vsel %vm4347_vm9, %v4336_v55, %v9336_v41 }
 0x9d4   : > { %v9340_v59 = vpop.permute.xlu0 %4230 }
 0x9d6   : > { %v9344_v20 = vpop.permute.xlu1 %4232 }
 0xa02   : > { %v9348_v22 = vpop.permute.xlu0 %4234 }
 0xa03   : > { %v4356_v41 = vsel %vm4347_vm9, %v9412_v57, %v9348_v22 }
 0xa04   : > { %v9350_v56 = vpop.permute.xlu1 %4236 }
 0xa0a   : > { %v9352_v18 = vpop.permute.xlu0 %4238 }
 0xa0c   : > { %v9354_v13 = vpop.permute.xlu1 %4240 }
 0xa0d   : > { %v4359_v22 = vsel %vm4347_vm9, %v9246_v6, %v9354_v13 }
 0xa12   : > { %v9356_v28 = vpop.permute.xlu0 %4242 }
 0xa14   : > { %v9358_v36 = vpop.permute.xlu1 %4244 }
 0xa1a   : > { %v9377_v0 = vpop.permute.xlu0 %4246 }
 0xa1b   : > { %v9567_v13 = vsel %vm4347_vm9, %v9233_v10, %v9377_v0 }
 0xa1c   : > { %v9400_v8 = vpop.permute.xlu1 %4248 }
 0xa1e   : > { %v4283_v34 = vpop.permute.xlu0 %4282 }
 0xa1f   : > { %v4365_v5 = vsel %vm4364_vm15, %v4348_v24, %v4283_v34  ;;  %v9484_v24 = vld [vmem:[%s9365_s19 + $0x48] sm:$0xff] }
 0xa20   : > { %v9456_v53 = vadd.f32 %v9423_v19, %v4365_v5  ;;  %v4285_v23 = vpop.permute.xlu1 %4284  ;;  %v9489_v5 = vmul.f32 %v4521_v62, %v1526_v31  ;;  %v9505_v62 = vmul.f32 %v4523_v47, %v1528_v16  ;;  %v4525_v31 = vsub.f32 1.0, %v9484_v24 }
 0xa21   : > { %v4366_v12 = vsel %vm4364_vm15, %v4349_v25, %v4285_v23  ;;  %v4526_v47 = vsub.f32 1.0, %v9500_v11 }
 0xa22   : > { %v4420_v4 = vmin.f32 %v9456_v53, 0.0  ;;  %v9477_v52 = vadd.f32 %v9423_v19, %v4366_v12  ;;  %v4287_v63 = vpop.permute.xlu0 %4286  ;;  %v1529_v12 = vld [vmem:[%s9381_s4 + $0x40] sm:$0xff]  ;;  %vm4404_vm3 = vcmp.gt.f32.partialorder %v9456_v53, 0.0 }
 0xa23   : > { %v4367_v34 = vsel %vm4364_vm15, %v4350_v40, %v4287_v63  ;;  %v9516_v32 = vmul.f32 %v4524_v29, %v1529_v12  ;;  %v4355_v29 = vsel %vm4347_vm9, %v9432_v48, %v9344_v20  ;;  %v4358_v20 = vsel %vm4347_vm9, %v9418_v9, %v9352_v18 }
 0xa24   : > { %v4436_v25 = vmul.f32 1.442695, %v4420_v4  ;;  %v4421_v23 = vmin.f32 %v9477_v52, 0.0  ;;  %v9496_v44 = vadd.f32 %v9423_v19, %v4367_v34  ;;  %v4289_v7 = vpop.permute.xlu1 %4288  ;;  %v9561_v18 = vsel %vm4347_vm9, %v9253_v46, %v9358_v36 }
 0xa25   : > { %v4368_v51 = vsel %vm4364_vm15, %v4351_v33, %v4289_v7  ;;  %v4354_v33 = vsel %vm4347_vm9, %v9398_v17, %v9340_v59  ;;  %v4357_v59 = vsel %vm4347_vm9, %v9447_v27, %v9350_v56  ;;  %v9556_v56 = vsel %vm4347_vm9, %v9225_v1, %v9356_v28 }
 0xa26   : > { %5931 = vpow2.f32 %v4436_v25  ;;  %v4438_v60 = vmul.f32 1.442695, %v4421_v23  ;;  %v4422_v40 = vmin.f32 %v9496_v44, 0.0  ;;  %v4291_v4 = vpop.permute.xlu0 %4290  ;;  %v9513_v63 = vadd.f32 %v9423_v19, %v4368_v51 }
 0xa27   : > { %v4369_v34 = vsel %vm4364_vm15, %v4352_v42, %v4291_v4  ;;  %v9573_v1 = vsel %vm4347_vm9, %v9263_v21, %v9400_v8  ;;  %vm4405_vm1 = vcmp.gt.f32.partialorder %v9477_v52, 0.0  ;;  %vm4406_vm6 = vcmp.gt.f32.partialorder %v9496_v44, 0.0 }
 0xa28   : > { %5933 = vpow2.f32 %v4438_v60  ;;  %v4440_v16 = vmul.f32 1.442695, %v4422_v40  ;;  %v9522_v43 = vadd.f32 %v9423_v19, %v4369_v34  ;;  %v4293_v54 = vpop.permute.xlu1 %4292  ;;  %v4423_v25 = vmin.f32 %v9513_v63, 0.0 }
 0xa29   : > { %v4370_v23 = vsel %vm4364_vm15, %v4353_v3, %v4293_v54  ;;  %vm4407_vm10 = vcmp.gt.f32.partialorder %v9513_v63, 0.0 }
 0xa2a   : > { %5935 = vpow2.f32 %v4440_v16  ;;  %v4424_v55 = vmin.f32 %v9522_v43, 0.0  ;;  %v9537_v7 = vadd.f32 %v9423_v19, %v4370_v23  ;;  %v4295_v12 = vpop.permute.xlu0 %4294  ;;  %v4442_v17 = vmul.f32 1.442695, %v4423_v25 }
 0xa2b   : > { %v4371_v48 = vsel %vm4364_vm15, %v4354_v33, %v4295_v12  ;;  %vm4408_vm0 = vcmp.gt.f32.partialorder %v9522_v43, 0.0 }
 0xa2c   : > { %v4444_v57 = vmul.f32 1.442695, %v4424_v55  ;;  %v4425_v51 = vmin.f32 %v9537_v7, 0.0  ;;  %v9551_v42 = vadd.f32 %v9423_v19, %v4371_v48  ;;  %v4297_v60 = vpop.permute.xlu1 %4296  ;;  %5937 = vpow2.f32 %v4442_v17 }
 0xa2d   : > { %v4372_v6 = vsel %vm4364_vm15, %v4355_v29, %v4297_v60  ;;  %vm4409_vm4 = vcmp.gt.f32.partialorder %v9537_v7, 0.0 }
 0xa2e   : > { %5939 = vpow2.f32 %v4444_v57  ;;  %v4446_v9 = vmul.f32 1.442695, %v4425_v51  ;;  %v4426_v27 = vmin.f32 %v9551_v42, 0.0  ;;  %v4299_v40 = vpop.permute.xlu0 %4298  ;;  %v9577_v46 = vadd.f32 %v9423_v19, %v4372_v6 }
 0xa2f   : > { %v4373_v28 = vsel %vm4364_vm15, %v4356_v41, %v4299_v40  ;;  %vm4410_vm11 = vcmp.gt.f32.partialorder %v9551_v42, 0.0 }
 0xa30   : > { %v5932_v36 = vpop.eup %5931  ;;  %5941 = vpow2.f32 %v4446_v9  ;;  %v4448_v10 = vmul.f32 1.442695, %v4426_v27  ;;  %v9582_v0 = vadd.f32 %v9423_v19, %v4373_v28  ;;  %v4301_v4 = vpop.permute.xlu1 %4300  ;;  %v4427_v21 = vmin.f32 %v9577_v46, 0.0 }
 0xa31   : > { %v4802_v34 = vadd.f32 -1.0, %v5932_v36  ;;  %v4374_v8 = vsel %vm4364_vm15, %v4357_v59, %v4301_v4  ;;  %vm4411_vm8 = vcmp.gt.f32.partialorder %v9577_v46, 0.0 }
 0xa32   : > { %v5934_v3 = vpop.eup %5933  ;;  %5943 = vpow2.f32 %v4448_v10  ;;  %v4428_v16 = vmin.f32 %v9582_v0, 0.0  ;;  %v9590_v54 = vadd.f32 %v9423_v19, %v4374_v8  ;;  %v4303_v33 = vpop.permute.xlu0 %4302  ;;  %v4450_v23 = vmul.f32 1.442695, %v4427_v21 }
 0xa33   : > { %v4484_v29 = vsel %vm4404_vm3, %v9456_v53, %v4802_v34  ;;  %v4803_v25 = vadd.f32 -1.0, %v5934_v3  ;;  %v4375_v41 = vsel %vm4364_vm15, %v4358_v20, %v4303_v33  ;;  %vm4412_vm13 = vcmp.gt.f32.partialorder %v9582_v0, 0.0 }
 0xa34   : > { %v5936_v55 = vpop.eup %5935  ;;  %v4500_v12 = vmul.f32 %v4484_v29, %v9368_v50  ;;  %v4452_v59 = vmul.f32 1.442695, %v4428_v16  ;;  %v4429_v17 = vmin.f32 %v9590_v54, 0.0  ;;  %v4305_v48 = vpop.permute.xlu1 %4304  ;;  %5945 = vpow2.f32 %v4450_v23 }
 0xa35   : > { %v4485_v57 = vsel %vm4405_vm1, %v9477_v52, %v4803_v25  ;;  %v4804_v51 = vadd.f32 -1.0, %v5936_v55  ;;  %v9603_v53 = vadd.f32 %v9423_v19, %v4375_v41  ;;  %v4376_v40 = vsel %vm4364_vm15, %v4359_v22, %v4305_v48 }
 0xa36   : > { %v4548_v20 = vadd.f32 %v9458_v35, %v4500_v12  ;;  %v4501_v50 = vmul.f32 %v4485_v57, %v9371_v26  ;;  %5947 = vpow2.f32 %v4452_v59  ;;  %v4454_v60 = vmul.f32 1.442695, %v4429_v17  ;;  %v4307_v6 = vpop.permute.xlu0 %4306  ;;  %v5938_v9 = vpop.eup %5937 }
 0xa37   : > { %v4486_v27 = vsel %vm4406_vm6, %v9496_v44, %v4804_v51  ;;  %v4430_v52 = vmin.f32 %v9603_v53, 0.0  ;;  %v4805_v36 = vadd.f32 -1.0, %v5938_v9  ;;  %v9617_v44 = vadd.f32 %v9423_v19, %v4376_v40  ;;  %v10578_v9 = vld [vmem:[#allocation64_spill] sm:$0xff] }
 0xa38   : > { %v5940_v28 = vpop.eup %5939  ;;  %4564 = vst [vmem:[%s6543_s10] sm:$0xff] %v4548_v20  ;;  %v4549_v35 = vadd.f32 %v9460_v45, %v4501_v50  ;;  %v4502_v26 = vmul.f32 %v4486_v27, %v9384_v15  ;;  %5949 = vpow2.f32 %v4454_v60  ;;  %v4309_v10 = vpop.permute.xlu1 %4308  ;;  %v4377_v21 = vsel %vm4364_vm15, %v9556_v56, %v4307_v6  ;;  %v1530_v50 = vld [vmem:[%s9381_s4 + $0x48] sm:$0xff] }
 0xa39   : > { %v4806_v4 = vadd.f32 -1.0, %v5940_v28  ;;  %v4456_v34 = vmul.f32 1.442695, %v4430_v52  ;;  %v4487_v15 = vsel %vm4407_vm10, %v9513_v63, %v4805_v36  ;;  %v9627_v45 = vadd.f32 %v9423_v19, %v4377_v21 }
 0xa3a   : > { %v5942_v8 = vpop.eup %5941  ;;  %4565 = vst [vmem:[%s6543_s10 + $0x8] sm:$0xff] %v4549_v35  ;;  %v4550_v22 = vadd.f32 %v9468_v14, %v4502_v26  ;;  %v4378_v3 = vsel %vm4364_vm15, %v9561_v18, %v4309_v10  ;;  %v4503_v16 = vmul.f32 %v4487_v15, %v9394_v61  ;;  %v4431_v63 = vmin.f32 %v9617_v44, 0.0  ;;  %v4311_v18 = vpop.permute.xlu0 %4310  ;;  %v1531_v35 = vld [vmem:[%s9381_s4 + $0x50] sm:$0xff]  ;;  %v1566_v10 = vld [vmem:[%s9365_s19 + $0x58] sm:$0xff] }
 0xa3b   : > { %v4488_v56 = vsel %vm4408_vm0, %v9522_v43, %v4806_v4  ;;  %v4807_v33 = vadd.f32 -1.0, %v5942_v8  ;;  %5951 = vpow2.f32 %v4456_v34  ;;  %v4432_v41 = vmin.f32 %v9627_v45, 0.0 }
 0xa3c   : > { %v5944_v29 = vpop.eup %5943  ;;  %4566 = vst [vmem:[%s6543_s10 + $0x10] sm:$0xff] %v4550_v22  ;;  %v4504_v14 = vmul.f32 %v4488_v56, %v9405_v38  ;;  %v4313_v25 = vpop.permute.xlu1 %4312  ;;  %v4551_v61 = vadd.f32 %v9479_v37, %v4503_v16  ;;  %v4458_v12 = vmul.f32 1.442695, %v4431_v63  ;;  %v9648_v59 = vadd.f32 %v9423_v19, %v4378_v3  ;;  %v1532_v3 = vld [vmem:[%s9381_s4 + $0x58] sm:$0xff] }
 0xa3d   : > { %v4489_v43 = vsel %vm4409_vm4, %v9537_v7, %v4807_v33  ;;  %v4808_v23 = vadd.f32 -1.0, %v5944_v29  ;;  %v4460_v48 = vmul.f32 1.442695, %v4432_v41  ;;  %v4379_v7 = vsel %vm4364_vm15, %v9567_v13, %v4311_v18  ;;  %v1533_v33 = vld [vmem:[%s9381_s4 + $0x60] sm:$0xff]  ;;  %v1568_v29 = vld [vmem:[%s9365_s19 + $0x68] sm:$0xff] }
 0xa3e   : > { %v4552_v38 = vadd.f32 %v9487_v58, %v4504_v14  ;;  %v4505_v55 = vmul.f32 %v4489_v43, %v9408_v39  ;;  %v5946_v17 = vpop.eup %5945  ;;  %4567 = vst [vmem:[%s6543_s10 + $0x18] sm:$0xff] %v4551_v61  ;;  %v4380_v57 = vsel %vm4364_vm15, %v9573_v1, %v4313_v25  ;;  %5953 = vpow2.f32 %v4458_v12  ;;  %v1569_v43 = vld [vmem:[%s9365_s19 + $0x70] sm:$0xff] }
 0xa3f   : > { %v4490_v37 = vsel %vm4410_vm11, %v9551_v42, %v4808_v23  ;;  %v4809_v20 = vadd.f32 -1.0, %v5946_v17  ;;  %5955 = vpow2.f32 %v4460_v48  ;;  %v4433_v13 = vmin.f32 %v9648_v59, 0.0 }
 0xa40   : > { %v5948_v58 = vpop.eup %5947  ;;  %4568 = vst [vmem:[%s6543_s10 + $0x20] sm:$0xff] %v4552_v38  ;;  %v4553_v39 = vadd.f32 %v9489_v5, %v4505_v55  ;;  %v4506_v51 = vmul.f32 %v4490_v37, %v9440_v2  ;;  %v9668_v2 = vadd.f32 %v9423_v19, %v4379_v7  ;;  %v9671_v6 = vadd.f32 %v9423_v19, %v4380_v57  ;;  %v1534_v38 = vld [vmem:[%s9381_s4 + $0x68] sm:$0xff]  ;;  %v1570_v55 = vld [vmem:[%s9365_s19 + $0x78] sm:$0xff] }
 0xa41   : > { %v4810_v42 = vadd.f32 -1.0, %v5948_v58  ;;  %v4491_v5 = vsel %vm4411_vm8, %v9577_v46, %v4809_v20  ;;  %v4462_v28 = vmul.f32 1.442695, %v4433_v13  ;;  %vm4413_vm14 = vcmp.gt.f32.partialorder %v9590_v54, 0.0  ;;  %v1535_v58 = vld [vmem:[%s9381_s4 + $0x70] sm:$0xff]  ;;  %v1536_v20 = vld [vmem:[%s9381_s4 + $0x78] sm:$0xff] }
 0xa42   : > { %v5950_v60 = vpop.eup %5949  ;;  %4569 = vst [vmem:[%s6543_s10 + $0x28] sm:$0xff] %v4553_v39  ;;  %v4554_v1 = vadd.f32 %v9503_v49, %v4506_v51  ;;  %v4507_v27 = vmul.f32 %v4491_v5, %v10578_v9  ;;  %v4541_v46 = vmul.f32 %v4525_v31, %v1530_v50  ;;  %v4434_v19 = vmin.f32 %v9668_v2, 0.0  ;;  %v1567_v31 = vld [vmem:[%s9365_s19 + $0x60] sm:$0xff]  ;;  %s6232_s19 = smov [#allocation12]  }
 0xa43   : > { %v4492_v52 = vsel %vm4412_vm13, %v9582_v0, %v4810_v42  ;;  %v4811_v40 = vadd.f32 -1.0, %v5950_v60  ;;  %5957 = vpow2.f32 %v4462_v28  ;;  %v4435_v4 = vmin.f32 %v9671_v6, 0.0  ;;  %s6090_s4 = sshll.u32 %s6232_s19, 4  ;;  %s6091_s4 = int_to_ptr.vmem [resolvable:$false] %s6090_s4 }
 0xa44   : > { %4570 = vst [vmem:[%s6543_s10 + $0x30] sm:$0xff] %v4554_v1  ;;  %v4508_v49 = vmul.f32 %v4492_v52, %v9465_v30  ;;  %v4555_v36 = vadd.f32 %v9505_v62, %v4507_v27  ;;  %v4464_v8 = vmul.f32 1.442695, %v4434_v19  ;;  %vm4414_vm2 = vcmp.gt.f32.partialorder %v9603_v53, 0.0  ;;  %s6092_s27 = scalar_lea.vmem %s6091_s4, 4096  ;;  %p6093_p5 = scmp.lt.s32.totalorder %s9722_s9, %s6091_s4 }
 0xa45   : > { %v5952_v26 = vpop.eup %5951  ;;  %v4493_v0 = vsel %vm4413_vm14, %v9590_v54, %v4811_v40  ;;  %v4542_v62 = vmul.f32 %v4526_v47, %v1531_v35  ;;  %v4466_v54 = vmul.f32 1.442695, %v4435_v4  ;;  %v4528_v16 = vsub.f32 1.0, %v1567_v31  ;;  %p6094_p4 = scmp.lt.s32.totalorder %s6092_s27, %s6086_s2 }
 0xa46   : > { %v4556_v30 = vadd.f32 %v9516_v32, %v4508_v49  ;;  %v4509_v34 = vmul.f32 %v4493_v0, %v9484_v24  ;;  %v4812_v21 = vadd.f32 -1.0, %v5952_v26  ;;  %4571 = vst [vmem:[%s6543_s10 + $0x38] sm:$0xff] %v4555_v36  ;;  %v4527_v32 = vsub.f32 1.0, %v1566_v10 }
 0xa47   : > { %5959 = vpow2.f32 %v4464_v8  ;;  %vm4415_vm5 = vcmp.gt.f32.partialorder %v9617_v44, 0.0  ;;  %vm4416_vm12 = vcmp.gt.f32.partialorder %v9627_v45, 0.0  ;;  %v4544_v25 = vmul.f32 %v4528_v16, %v1533_v33  ;;  %p6095_p12 = por %p6094_p4, %p6093_p5 }
 0xa48   : > { %4572 = vst [vmem:[%s6543_s10 + $0x40] sm:$0xff] %v4556_v30  ;;  %v4557_v22 = vadd.f32 %v4541_v46, %v4509_v34  ;;  %v4494_v15 = vsel %vm4414_vm2, %v9603_v53, %v4812_v21  ;;  %5961 = vpow2.f32 %v4466_v54  ;;  %v5954_v56 = vpop.eup %5953  ;;  %v4543_v53 = vmul.f32 %v4527_v32, %v1532_v3 }
 0xa49   : > { %v4510_v24 = vmul.f32 %v4494_v15, %v9500_v11  ;;  %v5956_v47 = vpop.eup %5955  ;;  %v4813_v63 = vadd.f32 -1.0, %v5954_v56  ;;  %v4529_v61 = vsub.f32 1.0, %v1568_v29  ;;  %v4530_v7 = vsub.f32 1.0, %v1569_v43  ;;  %p6096_p0 = pnand %p6095_p12, %p6089_p13 }
 0xa4a   : > { %4573 = vst [vmem:[%s6543_s10 + $0x48] sm:$0xff] %v4557_v22  ;;  %v4814_v18 = vadd.f32 -1.0, %v5956_v47  ;;  %vm4417_vm7 = vcmp.gt.f32.partialorder %v9648_v59, 0.0  ;;  %v4531_v39 = vsub.f32 1.0, %v1570_v55  ;;  %vm4418_vm9 = vcmp.gt.f32.partialorder %v9668_v2, 0.0 }
 0xa4b   : > { %v4558_v14 = vadd.f32 %v4542_v62, %v4510_v24  ;;  %v4495_v11 = vsel %vm4415_vm5, %v9617_v44, %v4813_v63  ;;  %v4545_v57 = vmul.f32 %v4529_v61, %v1534_v38  ;;  %v4546_v60 = vmul.f32 %v4530_v7, %v1535_v58 }
 0xa4c   : > { %v4511_v23 = vmul.f32 %v4495_v11, %v1566_v10  ;;  %v4496_v41 = vsel %vm4416_vm12, %v9627_v45, %v4814_v18  ;;  %vm4419_vm15 = vcmp.gt.f32.partialorder %v9671_v6, 0.0 }
 0xa4d   : > { %4574 = vst [vmem:[%s6543_s10 + $0x50] sm:$0xff] %v4558_v14  ;;  %v5958_v12 = vpop.eup %5957  ;;  %v4512_v17 = vmul.f32 %v4496_v41, %v1567_v31 }
 0xa4e   : > { %v4559_v37 = vadd.f32 %v4543_v53, %v4511_v23  ;;  %v4815_v48 = vadd.f32 -1.0, %v5958_v12 }
 0xa4f   : > { %v4560_v44 = vadd.f32 %v4544_v25, %v4512_v17 }
 0xa50   : > { %4575 = vst [vmem:[%s6543_s10 + $0x58] sm:$0xff] %v4559_v37  ;;  %v4497_v45 = vsel %vm4417_vm7, %v9648_v59, %v4815_v48  ;;  %v4547_v59 = vmul.f32 %v4531_v39, %v1536_v20 }
 0xa51   : > { %v5960_v51 = vpop.eup %5959  ;;  %4576 = vst [vmem:[%s6543_s10 + $0x60] sm:$0xff] %v4560_v44  ;;  %v4513_v50 = vmul.f32 %v4497_v45, %v1568_v29 }
 0xa52   : > { %v5962_v42 = vpop.eup %5961  ;;  %v4816_v13 = vadd.f32 -1.0, %v5960_v51 }
 0xa53   : > { %v4817_v1 = vadd.f32 -1.0, %v5962_v42  ;;  %v4561_v5 = vadd.f32 %v4545_v57, %v4513_v50 }
 0xa54   : > { %v4498_v9 = vsel %vm4418_vm9, %v9668_v2, %v4816_v13 }
 0xa55   : > { %v4514_v27 = vmul.f32 %v4498_v9, %v1569_v43  ;;  %v4499_v52 = vsel %vm4419_vm15, %v9671_v6, %v4817_v1  ;;  %4577 = vst [vmem:[%s6543_s10 + $0x68] sm:$0xff] %v4561_v5 }
 0xa56   : > { %v4515_v40 = vmul.f32 %v4499_v52, %v1570_v55 }
 0xa57   : > { %v4562_v28 = vadd.f32 %v4546_v60, %v4514_v27 }
 0xa58   : > { %v4563_v49 = vadd.f32 %v4547_v59, %v4515_v40 }
 0xa59   : > { %4578 = vst [vmem:[%s6543_s10 + $0x70] sm:$0xff] %v4562_v28 }
 0xa5a   : > { %4579 = vst [vmem:[%s6543_s10 + $0x78] sm:$0xff] %v4563_v49 }
 0xa5b   : > { %6099 = shalt.err (!%p6096_p0)
}
 0xa5c   : > { %s6100_s18 = scalar_lea.hbm %s9727_s21, 2048  ;;  %s6104_s11 = scalar_lea.hbm %s10581_s16, 8192 }
 0xa5d   : > { %p6101_p2 = scmp.ne.s32.totalorder %s9727_s21, %s6100_s18  ;;  %p6105_p9 = scmp.lt.u32.totalorder %s9727_s21, %s10581_s16 }
 0xa5e   : > { %p6106_p8 = scmp.lt.u32.totalorder %s6104_s11, %s6100_s18  ;;  %p6108_p1 = scmp.lt.u32.totalorder %s6100_s18, %s9727_s21 }
 0xa5f   : > { %p6102_p7 = pnand %p6101_p2, %p6448_p11 }
 0xa60   : > { %p6107_p3 = por %p6106_p8, %p6105_p9 }
 0xa61   : > { %p6103_p10 = pneg %p6102_p7 }
 0xa62   : > { %p6109_p6 = por %p6108_p1, %p6107_p3 }
 0xa64   : > { %p6110_p13 = pnand %p6109_p6, %p6103_p10 }
 0xa66   : > { %6113 = shalt.err (!%p6110_p13)
}
 0xa67   : > { %s6233_s5 = smov 128   ;;  %s6234_s8 = smov 8  }
 0xa68   : > { %5178 = dma.vmem_to_hbm [thread:$0]  (%p6448_p11), %s9722_s9, 2048, %s9727_s21, %s9733_s14, %s6233_s5, %s6233_s5, %s6234_s8  }
 0xa69 PF: > { %s10582_s24 = sld [smem:[#allocation17_spill]]  ;;  %s10583_s17 = sld [smem:[#allocation21_spill]] }
 0xa6a   : > { %p5198_p5 = scmp.ge.s32.totalorder %s6216_s7, 2 }
 0xa6f   : > { %s4611_s20 = sand.u32 1, %s10582_s24   ;;  %p10584_p4 = scmp.ne.s32.totalorder %s10583_s17, 0 }
 0xa70   : > { %s4612_s2 = scalar_lea.sflag [#allocation8], %s4611_s20 }
 0xa71   : > { %p5192_p12 = pnand %p5198_p5, %p10584_p4 }
 0xa73   : > { %6171 = dma.done.wait (!%p5192_p12), %s4612_s2, 2048  }
 0xa74   : > { %6173 = vsyncadd (!%p5192_p12), %s4612_s2, 4294965248  ;;  %s25_s7 = sadd.s32 1, %s6216_s7   ;;  %s10585_s9 = sld [smem:[#allocation23_spill]] }
 0xa75   : > { %p22_p0 = scmp.ge.s32.totalorder %s25_s7, 6   ;;  %s10586_s14 = sld [smem:[#allocation24_spill]] }
 0xa76   : > { %s10587_s21 = smov %s6180_s22  ;;  %s10588_s22 = smov %s6184_s23 }
 0xa77   : > { %s10589_s23 = smov %s6472_s6  ;;  %s10590_s24 = smov %s6192_s25 }
 0xa78   : > { %s10591_s25 = smov %s6196_s26  ;;  %s10592_s26 = smov %s6469_s3 }
 0xa79   : > { %s10593_s27 = smov %s6208_s29  ;;  %s10594_s28 = smov %s6212_s30 }
 0xa7a   : > { %s10595_s29 = smov %s10585_s9  ;;  %24 = sbr.rel (!%p22_p0) target bundleno = 18 (0x12), region = 116 }
 0xa7b   : > { %s10596_s30 = smov %s10586_s14 }
 0xa81   :  { %4617 = vsyncpa [#allocation7], 1 }
 0xa82   :  { %4619 = vsyncpa [#allocation7 + $0x1], 1 }
 0xa83   :  { %4620 = vsyncpa [#allocation10], 1 }
 0xa84   :  { %4622 = vsyncpa [#allocation10 + $0x1], 1 }
 0xa85   :  { %4623 = vsyncpa [#allocation8], 1 }
 0xa86   :  { %4625 = vsyncpa [#allocation8 + $0x1], 1 }

</bundles_post_ra>
